<compile_context>
chip_gen: v7x
topology: tpu7x:2x2x1
jax: 0.10.0
libtpu: 0.0.40
codegen_flags: <defaults>
</compile_context>

<pallas_src>
import math

import jax
import jax.numpy as jnp
from jax.experimental import pallas as pl
from jax.experimental.pallas import tpu as pltpu

RAY_OCTAVES = 60          # -> embedding feature dim = 2 * 3 * 60 = 360
RAY_START_OCTAVE = -30


# ---------------------------------------------------------------------------
# Synthetic ray generator.
# TODO(synk): original get_vertical_rays is not in the source; synthesize a
# deterministic pinhole-style "vertical" ray grid of shape (H*W, 3) instead.
# ---------------------------------------------------------------------------
def get_vertical_rays(width, height):
    xs = (jnp.arange(width, dtype=jnp.float32) + 0.5) / width * 2.0 - 1.0
    ys = (jnp.arange(height, dtype=jnp.float32) + 0.5) / height * 2.0 - 1.0
    gx, gy = jnp.meshgrid(xs, ys, indexing="xy")               # (H, W)
    dirs = jnp.stack([gx, -jnp.ones_like(gx), gy], axis=-1)    # (H, W, 3)
    dirs = dirs / jnp.linalg.norm(dirs, axis=-1, keepdims=True)
    return dirs.reshape(height * width, 3)                     # (H*W, 3)


# ---------------------------------------------------------------------------
# Positional-encoding kernel (parameter-init time, runs once).
# coords_ref: (TH, dim*O) pre-expanded coords (coord[c // O] in column c)
# mult_ref:   (1, dim*O)  multiplier row (mult[c % O] in column c)
# out_ref:    (TH, 2*dim*O): cols [0, dim*O) = sin, cols [dim*O, ..) = cos
# sin and cos are each computed only over dim*O columns (minimum EUP work);
# the concat's lane relayout lands on XLU slots which have slack here.
# ---------------------------------------------------------------------------
def _pos_enc_kernel(coords_ref, mult_ref, out_ref):
    scaled = coords_ref[...] * mult_ref[...]                   # (TH, dim*O) f32
    out_ref[...] = jnp.concatenate(
        [jnp.sin(scaled), jnp.cos(scaled)], axis=-1)


def positional_encoding(coords, num_octaves=RAY_OCTAVES,
                        start_octave=RAY_START_OCTAVE, *, max_rows=1024):
    """coords: (HW, 3) -> (HW, 2 * 3 * num_octaves), float32."""
    hw, dim = coords.shape
    half_dim = dim * num_octaves
    out_dim = 2 * half_dim

    octaves = jnp.arange(start_octave, start_octave + num_octaves,
                         dtype=jnp.float32)
    mult = (2.0 ** octaves) * math.pi                          # (O,)

    # Lane-dense layout plumbing (pure JAX, outside the kernel).
    # column c (< dim*O) holds coord[c // O]; multiplier row holds mult[c % O].
    # Kept as an exact f32 elementwise product (no MXU selector matmul):
    # octaves reach 2^29*pi, so any change to the multiply changes sin/cos.
    coords_exp = jnp.repeat(coords.astype(jnp.float32),
                            num_octaves, axis=-1)              # (HW, dim*O)
    mult_row = jnp.tile(mult, dim).reshape(1, half_dim)        # (1, dim*O)

    # Row tiling: full HW if small, else 1024-row blocks (multiple of 8).
    th = hw if hw <= max_rows else max_rows
    grid = (pl.cdiv(hw, th),)

    return pl.pallas_call(
        _pos_enc_kernel,
        out_shape=jax.ShapeDtypeStruct((hw, out_dim), jnp.float32),
        grid=grid,
        in_specs=[
            pl.BlockSpec((th, half_dim), lambda i: (i, 0)),
            pl.BlockSpec((1, half_dim), lambda i: (0, 0)),
        ],
        out_specs=pl.BlockSpec((th, out_dim), lambda i: (i, 0)),
        compiler_params=pltpu.CompilerParams(
            dimension_semantics=("parallel",)),
    )(coords_exp, mult_row)


# ---------------------------------------------------------------------------
# Forward kernel: lane-dense broadcast copy.
# emb_ref: (1, TF)   out_ref: (TB, TF)
# ---------------------------------------------------------------------------
def _repeat_kernel(emb_ref, out_ref):
    out_ref[...] = jnp.broadcast_to(emb_ref[...], out_ref.shape
                                    ).astype(out_ref.dtype)


def _default_target_block_bytes():
    # ~8 MiB output blocks on v6e/v7x (32 MiB scoped-VMEM default); ~4 MiB on
    # v5e (16 MiB scoped default) and on unknown chips.  Conservative fallback
    # if device detection fails.
    try:
        kind = jax.devices()[0].device_kind.lower()
    except Exception:
        return 4 << 20
    if "v6" in kind or "v7" in kind:
        return 8 << 20
    return 4 << 20


def learned_ray_embedding_forward(emb, N, *, target_block_bytes=None,
                                  out_dtype=None):
    """emb: (1, HW, D) learned parameter.  Returns (N, 1, HW, D).

    out_dtype defaults to emb.dtype (matching torch semantics).  Passing
    e.g. bf16 halves HBM write traffic but changes output dtype (semantics
    change) -- left off by default.
    """
    one, hw, d = emb.shape
    assert one == 1
    if target_block_bytes is None:
        target_block_bytes = _default_target_block_bytes()
    out_dtype = emb.dtype if out_dtype is None else out_dtype

    f = hw * d
    itemsize = jnp.dtype(out_dtype).itemsize

    # Pad the flattened feature dim to a multiple of 128 so every store is a
    # full unmasked (lane-dense) vst; slice the padding off afterwards.
    f_pad = ((f + 127) // 128) * 128
    emb2d = emb.reshape(1, f)                                  # free reshape
    if f_pad != f:
        emb2d = jnp.pad(emb2d, ((0, 0), (0, f_pad - f)))
    row_bytes = f_pad * itemsize

    # --- Row tile first (fewer grid steps; amortizes any emb re-read) -------
    if N * row_bytes <= target_block_bytes:
        tb = N                                   # whole batch in one block
    elif 8 * row_bytes <= target_block_bytes:
        tb = ((target_block_bytes // row_bytes) // 8) * 8
    else:
        tb = N if N < 8 else 8                   # rows too wide: tile columns

    # --- Column tile: full width when it fits, else lane-aligned chunk ------
    if tb * row_bytes <= target_block_bytes:
        tf = f_pad
    else:
        tf = min(f_pad, max(128, (target_block_bytes // (tb * itemsize))
                            // 128 * 128))

    # Footprint guard: keep double-buffered (output + input) blocks well under
    # the scoped-VMEM default on every chip (v5e 16 MiB, v6e/v7x 32 MiB).
    budget = 2 * target_block_bytes + target_block_bytes // 2
    while 2 * (tb + 1) * tf * itemsize > budget and tf > 128:
        tf = max(128, (tf // 2 + 127) // 128 * 128)

    n_f = pl.cdiv(f_pad, tf)
    n_b = pl.cdiv(N, tb)

    # v7x insurance: if the grid collapsed to one tile, split the feature axis
    # so both TensorCores get work (near-zero cost on single-TC v5e/v6e).
    if n_f * n_b < 2 and f_pad >= 256:
        tf = max(128, (f_pad // 2 + 127) // 128 * 128)
        n_f = pl.cdiv(f_pad, tf)

    # Grid order: feature tiles OUTER, batch tiles INNER -> the emb input
    # block index (0, j) is constant across the inner axis, so Pallas elides
    # the repeated input DMA (emb is read from HBM only n_f times total).
    grid = (n_f, n_b)

    out = pl.pallas_call(
        _repeat_kernel,
        out_shape=jax.ShapeDtypeStruct((N, f_pad), out_dtype),
        grid=grid,
        in_specs=[pl.BlockSpec((1, tf), lambda j, i: (0, j))],
        out_specs=pl.BlockSpec((tb, tf), lambda j, i: (i, j)),
        compiler_params=pltpu.CompilerParams(
            dimension_semantics=("parallel", "parallel")),
    )(emb2d)

    if f_pad != f:
        out = out[:, :f]
    return out.reshape(N, 1, hw, d)


# ---------------------------------------------------------------------------
# Module-like wrapper: deterministic parameter init + forward.
# ---------------------------------------------------------------------------
class LearnedRayEmbedding:
    def __init__(self, ray_octaves=RAY_OCTAVES,
                 ray_start_octave=RAY_START_OCTAVE, h=16, w=12, key=None):
        rays = get_vertical_rays(width=w, height=h)            # (H*W, 3)
        if key is not None:
            # deterministic PRNGKey-seeded jitter for the example input
            rays = rays + 0.01 * jax.random.normal(key, rays.shape,
                                                   dtype=jnp.float32)
        self.rays = rays
        emb = positional_encoding(rays, ray_octaves, ray_start_octave)
        self.emb = emb[None]                                   # (1, H*W, 2*3*O)

    def __call__(self, N):
        return learned_ray_embedding_forward(self.emb, N)


# ---------------------------------------------------------------------------
# Pure-JAX references for verification.
# ---------------------------------------------------------------------------
def _pos_enc_ref(coords, num_octaves, start_octave):
    octaves = jnp.arange(start_octave, start_octave + num_octaves,
                         dtype=jnp.float32)
    mult = 2.0 ** octaves * math.pi
    shape, dim = coords.shape[:-1], coords.shape[-1]
    scaled = coords[..., None] * mult                          # (..., 3, O)
    s = jnp.sin(scaled).reshape(*shape, dim * num_octaves)
    c = jnp.cos(scaled).reshape(*shape, dim * num_octaves)
    return jnp.concatenate([s, c], axis=-1)


if __name__ == "__main__":
    key = jax.random.PRNGKey(0)
    H, W, N = 16, 12, 2                                        # small shapes

    module = LearnedRayEmbedding(h=H, w=W, key=key)

    # check positional-encoding kernel against reference
    emb_ref = _pos_enc_ref(module.rays, RAY_OCTAVES, RAY_START_OCTAVE)[None]
    assert jnp.allclose(module.emb, emb_ref, atol=2e-5, rtol=2e-5)

    # forward
    out = jax.block_until_ready(module(N))

    # forward reference: emb[None].repeat(N, 1, 1, 1)
    ref = jnp.broadcast_to(module.emb[None],
                           (N, 1, H * W, 2 * 3 * RAY_OCTAVES))
    assert out.shape == (N, 1, H * W, 360)
    assert jnp.allclose(out, ref)

    print("KERNEL_OK")
</pallas_src>

<mosaic_0001>
module attributes {stable_mosaic.version = 11 : i64} {
  func.func @_pos_enc_kernel(%arg0: i32, %arg1: memref<192x180xf32, #tpu.memory_space<vmem>>, %arg2: memref<1x180xf32, #tpu.memory_space<vmem>>, %arg3: memref<192x360xf32, #tpu.memory_space<vmem>>) attributes {dimension_semantics = [#tpu.dimension_semantics<parallel>], iteration_bounds = array<i64: 1>, scalar_prefetch = 0 : i64, scratch_operands = 0 : i64, tpu.core_type = #tpu.core_type<tc>, window_params = [{transform_indices = @transform_0, window_bounds = array<i64: 192, 180>}, {pipeline_mode = #tpu.pipeline_mode<synchronous>, transform_indices = @transform_1, window_bounds = array<i64: 1, 180>}, {transform_indices = @transform_2, window_bounds = array<i64: 192, 360>}]} {
    %c0 = arith.constant 0 : index
    %c0_0 = arith.constant 0 : index
    %0 = vector.load %arg1[%c0, %c0_0] : memref<192x180xf32, #tpu.memory_space<vmem>>, vector<192x180xf32>
    %c0_1 = arith.constant 0 : index
    %c0_2 = arith.constant 0 : index
    %1 = vector.load %arg2[%c0_1, %c0_2] : memref<1x180xf32, #tpu.memory_space<vmem>>, vector<1x180xf32>
    %2 = vector.broadcast %1 : vector<1x180xf32> to vector<192x180xf32>
    %3 = arith.mulf %0, %2 : vector<192x180xf32>
    %4 = math.sin %3 : vector<192x180xf32>
    %5 = math.cos %3 : vector<192x180xf32>
    %6 = tpu.concatenate %4, %5 in 1 : vector<192x180xf32>, vector<192x180xf32> -> vector<192x360xf32>
    %c0_3 = arith.constant 0 : index
    %c0_4 = arith.constant 0 : index
    %7 = vector.load %arg3[%c0_3, %c0_4] : memref<192x360xf32, #tpu.memory_space<vmem>>, vector<192x360xf32>
    tpu.vector_store %arg3[%c0_3, %c0_4], %6 {strides = array<i32>} : memref<192x360xf32, #tpu.memory_space<vmem>>, vector<192x360xf32>,
    return
  }
  func.func @transform_0(%arg0: i32) -> (i32, i32) {
    %c0_i32 = arith.constant 0 : i32
    %c0_i32_0 = arith.constant 0 : i32
    return %arg0, %c0_i32 : i32, i32
  }
  func.func @transform_1(%arg0: i32) -> (i32, i32) {
    %c0_i32 = arith.constant 0 : i32
    %c0_i32_0 = arith.constant 0 : i32
    %c0_i32_1 = arith.constant 0 : i32
    return %c0_i32, %c0_i32_0 : i32, i32
  }
  func.func @transform_2(%arg0: i32) -> (i32, i32) {
    %c0_i32 = arith.constant 0 : i32
    %c0_i32_0 = arith.constant 0 : i32
    return %arg0, %c0_i32 : i32, i32
  }
}

</mosaic_0001>

<bundles_post_ra>
// kernel: tpu_custom_call.1
= control target key start
LH: loop header
LB: loop body
LE: loop exit
PB: predicated region body
PF: predicated region fallthrough
CT: control target
= control target key end

     0   :  { %v62_v0 = vlaneseq  ;;  %s16518_s0 = inlined_call_operand.vmem [shape: f32[192,180], index: 0, kind: input, shape index: {}]   ;;  %s16519_s1 = inlined_call_operand.vmem [shape: f32[1,180], index: 1, kind: input, shape index: {}]   ;;  %s16520_s2 = inlined_call_operand.hbm [shape: f32[192,360], index: 2, kind: output, shape index: {}]  }
   0x1   :  { %v60_v2 = vld [vmem:[%s16519_s1] sm:$0x3] }
   0x2   :  { %v63_v1 = vshrl.u32 %v62_v0, 7 }
   0x4   :  { %v64_v3 = vsub.s32 0, %v63_v1  ;;  %v68_v4 = vsub.s32 1, %v63_v1 }
   0x5   :  { %7 = vsyncpa [#allocation3], 0  ;;  %v14_v5 = vld [vmem:[%s16518_s0 + $0x10] sm:$0xff]  ;;  %v12_v6 = vld [vmem:[%s16518_s0] sm:$0xff]  ;;  %v16537_v40 = vmov 683565275  }
   0x6   :  { %v11222_v7 = vrot.slane %v60_v2, %v64_v3  ;;  %v15_v8 = vld [vmem:[%s16518_s0 + $0x18] sm:$0xff]  ;;  %v11227_v9 = vrot.slane %v60_v2, %v68_v4  ;;  %v16533_v42 = vmov 2475754826   ;;  %v16529_v44 = vmov 2131351028   ;;  %s11194_s22 = smov 52  }
   0x7   :  { %v16531_v46 = vmov 2102212464   ;;  %v16522_v48 = vmov 920167782   ;;  %v16524_v56 = vmov 1326507024  }
   0x8   :  { %v11230_v10 = vmul.f32 %v11222_v7, %v14_v5  ;;  %v11233_v11 = vmul.f32 %v11222_v7, %v12_v6  ;;  %v11236_v12 = vmul.f32 %v11227_v9, %v15_v8 }
   0xa   :  { %v328_v13 = vand.u32 2147483647, %v11230_v10  ;;  %v331_v14 = vand.u32 2139095040, %v11230_v10  ;;  %v120_v15 = vand.u32 2147483647, %v11233_v11  ;;  %v123_v16 = vand.u32 2139095040, %v11233_v11 }
   0xb   :  { %v435_v21 = vand.u32 2139095040, %v11236_v12  ;;  %v432_v34 = vand.u32 2147483647, %v11236_v12  ;;  %vm330_vm13 = vcmp.lt.s32.totalorder %v11230_v10, 0 }
   0xc   :  { %v332_v17 = vshrl.u32 %v331_v14, 23  ;;  %v335_v18 = vand.u32 8388607, %v328_v13  ;;  %v124_v19 = vshrl.u32 %v123_v16, 23  ;;  %v127_v20 = vand.u32 8388607, %v120_v15 }
   0xd   :  { %v436_v24 = vshrl.u32 %v435_v21, 23 }
   0xe   :  { %v10394_v22 = vadd.s32 4294967169, %v332_v17  ;;  %v10386_v23 = vadd.s32 4294967169, %v124_v19  ;;  %v336_v26 = vor.u32 8388608, %v335_v18  ;;  %v128_v27 = vor.u32 8388608, %v127_v20 }
   0xf   :  { %v10398_v29 = vadd.s32 4294967169, %v436_v24 }
  0x10   :  { %v338_v25 = vadd.s32 1, %v10394_v22  ;;  %v130_v28 = vadd.s32 1, %v10386_v23  ;;  %v11248_v35 = vshll.u32 %v336_v26, 8  ;;  %v11250_v37 = vshll.u32 %v128_v27, 8 }
  0x11   :  { %v11252_v38 = vadd.s32 1, %v10398_v29 }
  0x12   :  { %vm339_vm0 = vcmp.gt.s32.totalorder %v338_v25, 0  ;;  %vm131_vm1 = vcmp.gt.s32.totalorder %v130_v28, 0 }
  0x13   :  { %v340_v30 = vsel %vm339_vm0, %v338_v25, 0  ;;  %v132_v33 = vsel %vm131_vm1, %v130_v28, 0  ;;  %vm443_vm6 = vcmp.gt.s32.totalorder %v11252_v38, 0 }
  0x14   :  { %v341_v31 = vshrl.u32 %v340_v30, 5  ;;  %v342_v32 = vand.u32 31, %v340_v30  ;;  %v134_v36 = vand.u32 31, %v132_v33  ;;  %v11259_v50 = vshrl.u32 %v132_v33, 5 }
  0x16   :  { %v343_v39 = vsub.s32 32, %v342_v32  ;;  %v345_v41 = vshll.u32 %v16537_v40, %v342_v32  ;;  %v348_v43 = vshll.u32 %v16533_v42, %v342_v32  ;;  %v351_v45 = vshll.u32 %v16529_v44, %v342_v32 }
  0x17   :  { %v354_v47 = vshll.u32 %v16531_v46, %v342_v32  ;;  %v357_v49 = vshll.u32 %v16522_v48, %v342_v32  ;;  %vm360_vm2 = vcmp.lt.s32.totalorder %v341_v31, 1  ;;  %vm361_vm3 = vcmp.lt.s32.totalorder %v341_v31, 2 }
  0x18   :  { %v344_v51 = vshrl.u32 %v16537_v40, %v343_v39  ;;  %v346_v52 = vshrl.u32 %v16533_v42, %v343_v39  ;;  %v349_v53 = vshrl.u32 %v16529_v44, %v343_v39  ;;  %v352_v54 = vshrl.u32 %v16531_v46, %v343_v39 }
  0x19   :  { %v355_v55 = vshrl.u32 %v16522_v48, %v343_v39  ;;  %v358_v57 = vshrl.u32 %v16524_v56, %v343_v39  ;;  %vm363_vm4 = vcmp.lt.s32.totalorder %v341_v31, 4  ;;  %v135_v61 = vsub.s32 32, %v134_v36 }
  0x1a   :  { %v347_v58 = vor.u32 %v346_v52, %v345_v41  ;;  %v350_v59 = vor.u32 %v349_v53, %v348_v43  ;;  %v353_v60 = vor.u32 %v352_v54, %v351_v45  ;;  %vm362_vm5 = vcmp.lt.s32.totalorder %v341_v31, 3 }
  0x1b   :  { %v356_v62 = vor.u32 %v355_v55, %v354_v47  ;;  %v359_v63 = vor.u32 %v358_v57, %v357_v49  ;;  %v137_v0 = vshll.u32 %v16537_v40, %v134_v36  ;;  %v140_v14 = vshll.u32 %v16533_v42, %v134_v36 }
  0x1c   :  { %v364_v1 = vsel %vm360_vm2, %v344_v51, %v347_v58  ;;  %v365_v2 = vsel %vm363_vm4, %v353_v60, 2102212464  ;;  %v368_v3 = vsel %vm360_vm2, %v347_v58, %v350_v59  ;;  %v372_v4 = vsel %vm360_vm2, %v350_v59, %v353_v60 }
  0x1d   :  { %v366_v5 = vsel %vm362_vm5, %v350_v59, %v365_v2  ;;  %v369_v6 = vsel %vm363_vm4, %v356_v62, 920167782  ;;  %v373_v8 = vsel %vm363_vm4, %v359_v63, 1326507024  ;;  %v136_v18 = vshrl.u32 %v16537_v40, %v135_v61 }
  0x1e   :  { %v370_v16 = vsel %vm362_vm5, %v353_v60, %v369_v6  ;;  %v374_v17 = vsel %vm362_vm5, %v356_v62, %v373_v8  ;;  %v138_v19 = vshrl.u32 %v16533_v42, %v135_v61  ;;  %v367_v20 = vsel %vm361_vm3, %v364_v1, %v366_v5 }
  0x1f   :  { %v371_v21 = vsel %vm361_vm3, %v368_v3, %v370_v16  ;;  %v375_v22 = vsel %vm361_vm3, %v372_v4, %v374_v17  ;;  %v141_v23 = vshrl.u32 %v16529_v44, %v135_v61  ;;  %v143_v30 = vshll.u32 %v16529_v44, %v134_v36 }
  0x20   :  { %v11280_v24 = vmul.u32.u64.low %v11248_v35, %v375_v22  ;;  %v11281_v25 = vmul.u32.u64.high %v11248_v35, %v375_v22, %v11280_v24  ;;  %v11284_v26 = vmul.u32.u64.low %v11248_v35, %v371_v21  ;;  %v11285_v27 = vmul.u32.u64.high %v11248_v35, %v371_v21, %v11284_v26  ;;  %v17_v22 = vld [vmem:[%s16518_s0 + $0x28] sm:$0xff] }
  0x21   :  { %v139_v28 = vor.u32 %v138_v19, %v137_v0  ;;  %v142_v29 = vor.u32 %v141_v23, %v140_v14  ;;  %v144_v32 = vshrl.u32 %v16531_v46, %v135_v61  ;;  %v146_v31 = vshll.u32 %v16531_v46, %v134_v36  ;;  %v16_v23 = vld [vmem:[%s16518_s0 + $0x20] sm:$0xff] }
  0x22   :  { %v147_v33 = vshrl.u32 %v16522_v48, %v135_v61  ;;  %v149_v39 = vshll.u32 %v16522_v48, %v134_v36  ;;  %v150_v41 = vshrl.u32 %v16524_v56, %v135_v61  ;;  %v383_v43 = vmul.u32 %v11248_v35, %v367_v20  ;;  %v13_v61 = vld [vmem:[%s16518_s0 + $0x8] sm:$0xff] }
  0x23   :  { %v145_v45 = vor.u32 %v144_v32, %v143_v30  ;;  %vm152_vm7 = vcmp.lt.s32.totalorder %v11259_v50, 1  ;;  %vm153_vm8 = vcmp.lt.s32.totalorder %v11259_v50, 2  ;;  %vm385_vm9 = vc.u32 %v11281_v25, %v11284_v26 }
  0x24   :  { %v386_v47 = vadd.s32 1, %v11285_v27  ;;  %v148_v49 = vor.u32 %v147_v33, %v146_v31  ;;  %vm154_vm10 = vcmp.lt.s32.totalorder %v11259_v50, 3  ;;  %v151_v51 = vor.u32 %v150_v41, %v149_v39 }
  0x25   :  { %vm155_vm11 = vcmp.lt.s32.totalorder %v11259_v50, 4  ;;  %v156_v36 = vsel %vm152_vm7, %v136_v18, %v139_v28  ;;  %v160_v52 = vsel %vm152_vm7, %v139_v28, %v142_v29  ;;  %v164_v55 = vsel %vm152_vm7, %v142_v29, %v145_v45 }
  0x26   :  { %v387_v35 = vsel %vm385_vm9, %v386_v47, %v11285_v27  ;;  %v157_v53 = vsel %vm155_vm11, %v145_v45, 2102212464  ;;  %v161_v54 = vsel %vm155_vm11, %v148_v49, 920167782  ;;  %v165_v60 = vsel %vm155_vm11, %v151_v51, 1326507024 }
  0x27   :  { %v388_v57 = vadd.s32 %v387_v35, %v383_v43  ;;  %v158_v58 = vsel %vm154_vm10, %v142_v29, %v157_v53  ;;  %v162_v59 = vsel %vm154_vm10, %v145_v45, %v161_v54  ;;  %v166_v0 = vsel %vm154_vm10, %v148_v49, %v165_v60 }
  0x28   :  { %v159_v62 = vsel %vm153_vm8, %v156_v36, %v158_v58  ;;  %v163_v63 = vsel %vm153_vm8, %v160_v52, %v162_v59  ;;  %v444_v1 = vsel %vm443_vm6, %v11252_v38, 0  ;;  %v167_v3 = vsel %vm153_vm8, %v164_v55, %v166_v0 }
  0x29   :  { %v389_v2 = vadd.s32 536870912, %v388_v57  ;;  %v11322_v4 = vmul.u32.u64.low %v11250_v37, %v163_v63  ;;  %v11323_v5 = vmul.u32.u64.high %v11250_v37, %v163_v63, %v11322_v4  ;;  %v11331_v14 = vmul.f32 %v11227_v9, %v13_v61 }
  0x2a   :  { %v11327_v6 = vmul.u32.u64.low %v11250_v37, %v167_v3  ;;  %v11328_v8 = vmul.u32.u64.high %v11250_v37, %v167_v3, %v11327_v6  ;;  %v439_v38 = vand.u32 8388607, %v432_v34  ;;  %v446_v17 = vand.u32 31, %v444_v1 }
  0x2b   :  { %v11333_v16 = vshrl.u32 %v389_v2, 30  ;;  %v175_v50 = vmul.u32 %v11250_v37, %v159_v62  ;;  %v178_v19 = vadd.s32 1, %v11323_v5  ;;  %v224_v20 = vand.u32 2147483647, %v11331_v14 }
  0x2c   :  { %vm177_vm12 = vc.u32 %v11328_v8, %v11322_v4  ;;  %v227_v21 = vand.u32 2139095040, %v11331_v14  ;;  %v440_v27 = vor.u32 8388608, %v439_v38  ;;  %v447_v28 = vsub.s32 32, %v446_v17 }
  0x2d   :  { %v391_v18 = vshll.u32 %v11333_v16, 30  ;;  %v179_v24 = vsel %vm177_vm12, %v178_v19, %v11323_v5  ;;  %v11355_v32 = vmul.f32 %v11227_v9, %v17_v22  ;;  %v11358_v31 = vmul.f32 %v11222_v7, %v16_v23 }
  0x2e   :  { %v180_v29 = vadd.s32 %v179_v24, %v175_v50  ;;  %v11360_v39 = vshrl.u32 %v444_v1, 5  ;;  %v228_v41 = vshrl.u32 %v227_v21, 23  ;;  %v11364_v43 = vand.u32 8388607, %v224_v20 }
  0x2f   :  { %v11350_v37 = vsub.s32 %v388_v57, %v391_v18  ;;  %v455_v47 = vshll.u32 %v16529_v44, %v446_v17  ;;  %v456_v49 = vshrl.u32 %v16531_v46, %v447_v28  ;;  %v11369_v51 = vshll.u32 %v440_v27, 8 }
  0x30   :  { %v181_v33 = vadd.s32 536870912, %v180_v29  ;;  %v384_v36 = vadd.s32 %v11284_v26, %v11281_v25  ;;  %v449_v35 = vshll.u32 %v16537_v40, %v446_v17  ;;  %v450_v53 = vshrl.u32 %v16533_v42, %v447_v28 }
  0x31   :  { %v394_v30 = vsub.s32 0, %v11350_v37  ;;  %v452_v55 = vshll.u32 %v16533_v42, %v446_v17  ;;  %v453_v57 = vshrl.u32 %v16529_v44, %v447_v28  ;;  %v458_v58 = vshll.u32 %v16531_v46, %v446_v17 }
  0x32   :  { %v11373_v52 = vshrl.u32 %v181_v33, 30  ;;  %v459_v60 = vshrl.u32 %v16522_v48, %v447_v28  ;;  %vm464_vm14 = vcmp.lt.s32.totalorder %v11360_v39, 1  ;;  %v10390_v25 = vadd.s32 4294967169, %v228_v41 }
  0x33   :  { %v10395_v45 = vmin.u32 %v394_v30, %v11350_v37  ;;  %v448_v61 = vshrl.u32 %v16537_v40, %v447_v28  ;;  %v457_v62 = vor.u32 %v456_v49, %v455_v47  ;;  %vm467_vm15 = vcmp.lt.s32.totalorder %v11360_v39, 4 }
  0x34   :  { %v183_v59 = vshll.u32 %v11373_v52, 30  ;;  %v451_v0 = vor.u32 %v450_v53, %v449_v35  ;;  %v461_v1 = vshll.u32 %v16522_v48, %v446_v17  ;;  %v462_v2 = vshrl.u32 %v16524_v56, %v447_v28 }
  0x35   :  { %v396_v54 = vclz %v10395_v45  ;;  %v454_v3 = vor.u32 %v453_v57, %v452_v55  ;;  %v460_v5 = vor.u32 %v459_v60, %v458_v58  ;;  %v469_v6 = vsel %vm467_vm15, %v457_v62, 2102212464 }
  0x36   :  { %v11386_v63 = vsub.s32 %v180_v29, %v183_v59  ;;  %v414_v50 = vsub.s32 4, %v11333_v16  ;;  %vm465_vm1 = vcmp.lt.s32.totalorder %v11360_v39, 2  ;;  %vm466_vm2 = vcmp.lt.s32.totalorder %v11360_v39, 3 }
  0x37   :  { %v10396_v26 = vadd.s32 4294967294, %v396_v54  ;;  %vm11399_vm3 = vcmp.le.f32.partialorder %v328_v13, 0.7853982  ;;  %v463_v24 = vor.u32 %v462_v2, %v461_v1  ;;  %v468_v27 = vsel %vm464_vm14, %v448_v61, %v451_v0 }
  0x38   :  { %v186_v18 = vsub.s32 0, %v11386_v63  ;;  %v470_v28 = vsel %vm466_vm2, %v454_v3, %v469_v6  ;;  %v472_v30 = vsel %vm464_vm14, %v451_v0, %v454_v3  ;;  %v473_v13 = vsel %vm467_vm15, %v460_v5, 920167782 }
  0x39   :  { %vm10397_vm0 = vcmp.lt.s32.totalorder %v10396_v26, 0  ;;  %v415_v33 = vsel %vm330_vm13, %v414_v50, %v11333_v16  ;;  %v176_v41 = vadd.s32 %v11322_v4, %v11328_v8  ;;  %v206_v47 = vsub.s32 4, %v11373_v52 }
  0x3a   :  { %v399_v38 = vsel %vm10397_vm0, 0, %v10396_v26  ;;  %v10387_v23 = vmin.u32 %v186_v18, %v11386_v63  ;;  %vm122_vm4 = vcmp.lt.s32.totalorder %v11233_v11, 0  ;;  %v476_v53 = vsel %vm464_vm14, %v454_v3, %v457_v62 }
  0x3b   :  { %v400_v19 = vsub.s32 32, %v399_v38  ;;  %v401_v21 = vshll.u32 %v11350_v37, %v399_v38  ;;  %v404_v22 = vsub.s32 4294967266, %v399_v38  ;;  %v471_v16 = vsel %vm465_vm1, %v468_v27, %v470_v28 }
  0x3c   :  { %v188_v45 = vclz %v10387_v23  ;;  %v477_v8 = vsel %vm467_vm15, %v463_v24, 1326507024  ;;  %v234_v59 = vadd.s32 1, %v10390_v25  ;;  %vm11433_vm5 = vcmp.le.f32.partialorder %v120_v15, 0.7853982 }
  0x3d   :  { %v402_v29 = vshrl.u32 %v384_v36, %v400_v19  ;;  %v405_v37 = vadd.s32 127, %v404_v22  ;;  %v474_v36 = vsel %vm466_vm2, %v457_v62, %v473_v13  ;;  %v478_v58 = vsel %vm466_vm2, %v460_v5, %v477_v8 }
  0x3e   :  { %v10388_v54 = vadd.s32 4294967294, %v188_v45  ;;  %v475_v4 = vsel %vm465_vm1, %v472_v30, %v474_v36  ;;  %v479_v26 = vsel %vm465_vm1, %v476_v53, %v478_v58  ;;  %vm235_vm7 = vcmp.gt.s32.totalorder %v234_v59, 0 }
  0x3f   :  { %v403_v49 = vor.u32 %v402_v29, %v401_v21  ;;  %v406_v35 = vshll.u32 %v405_v37, 23  ;;  %v11440_v61 = vmul.u32.u64.low %v11369_v51, %v475_v4  ;;  %v11441_v62 = vmul.u32.u64.high %v11369_v51, %v475_v4, %v11440_v61 }
  0x40   :  { %vm10389_vm6 = vcmp.lt.s32.totalorder %v10388_v54, 0  ;;  %v11445_v2 = vmul.u32.u64.low %v11369_v51, %v479_v26  ;;  %v11446_v25 = vmul.u32.u64.high %v11369_v51, %v479_v26, %v11445_v2  ;;  %v417_v39 = vsel %vm11399_vm3, 0, %v415_v33 }
  0x41   :  { %v407_v55 = vor.u32 4788187, %v406_v35  ;;  %v410_v57 = vcvt.s32.f32 %v403_v49  ;;  %v191_v1 = vsel %vm10389_vm6, 0, %v10388_v54  ;;  %v487_v38 = vmul.u32 %v11369_v51, %v471_v16 }
  0x42   :  { %v192_v3 = vsub.s32 32, %v191_v1  ;;  %v193_v15 = vshll.u32 %v11386_v63, %v191_v1  ;;  %v196_v5 = vsub.s32 4294967266, %v191_v1  ;;  %v236_v50 = vsel %vm235_vm7, %v234_v59, 0 }
  0x43   :  { %v408_v0 = vand.u32 2147483647, %v407_v55  ;;  %v421_v18 = vadd.s32 3, %v417_v39  ;;  %v490_v22 = vadd.s32 1, %v11441_v62  ;;  %vm489_vm8 = vc.u32 %v11446_v25, %v11440_v61 }
  0x44   :  { %v194_v19 = vshrl.u32 %v176_v41, %v192_v3  ;;  %v197_v21 = vadd.s32 127, %v196_v5  ;;  %v232_v63 = vor.u32 8388608, %v11364_v43  ;;  %v238_v24 = vand.u32 31, %v236_v50 }
  0x45   :  { %v411_v6 = vmul.f32 %v410_v57, %v408_v0  ;;  %v207_v29 = vsel %vm122_vm4, %v206_v47, %v11373_v52  ;;  %v491_v51 = vsel %vm489_vm8, %v490_v22, %v11441_v62  ;;  %v11462_v30 = vand.u32 3, %v417_v39 }
  0x46   :  { %v195_v27 = vor.u32 %v194_v19, %v193_v15  ;;  %v198_v28 = vshll.u32 %v197_v21, 23  ;;  %v492_v13 = vadd.s32 %v491_v51, %v487_v38  ;;  %v239_v33 = vsub.s32 32, %v238_v24 }
  0x47   :  { %v412_v23 = vxor.u32 2147483648, %v411_v6  ;;  %v11467_v41 = vand.u32 3, %v421_v18  ;;  %v209_v52 = vsel %vm11433_vm5, 0, %v207_v29  ;;  %v11471_v35 = vshrl.u32 %v236_v50, 5 }
  0x48   :  { %v199_v45 = vor.u32 4788187, %v198_v28  ;;  %v202_v49 = vcvt.s32.f32 %v195_v27  ;;  %v493_v47 = vadd.s32 536870912, %v492_v13  ;;  %v241_v53 = vshll.u32 %v16537_v40, %v238_v24 }
  0x49   :  { %v413_v37 = vsel %vm330_vm13, %v412_v23, %v411_v6  ;;  %v244_v54 = vshll.u32 %v16533_v42, %v238_v24  ;;  %v242_v17 = vshrl.u32 %v16533_v42, %v239_v33  ;;  %v245_v4 = vshrl.u32 %v16529_v44, %v239_v33 }
  0x4a   :  { %v416_v43 = vsel %vm11399_vm3, %v11230_v10, %v413_v37  ;;  %v200_v36 = vand.u32 2147483647, %v199_v45  ;;  %v11475_v16 = vshrl.u32 %v493_v47, 30  ;;  %v250_v8 = vshll.u32 %v16531_v46, %v238_v24 }
  0x4b   :  { %10972 = vcosq.f32 %v416_v43  ;;  %vm424_vm9 = vcmp.eq.s32.totalorder %v11467_v41, 0  ;;  %vm5413_vm10 = vcmp.eq.s32.totalorder %v11462_v30, 0  ;;  %vm5416_vm11 = vcmp.eq.s32.totalorder %v11462_v30, 2 }
  0x4c   :  { %10974 = vsinq.f32 %v416_v43  ;;  %v203_v55 = vmul.f32 %v202_v49, %v200_v36  ;;  %v251_v57 = vshrl.u32 %v16522_v48, %v239_v33  ;;  %vm423_vm12 = vcmp.lt.s32.totalorder %v11467_v41, 2 }
  0x4d   :  { %vm427_vm13 = vcmp.eq.s32.totalorder %v11467_v41, 2  ;;  %vm5412_vm14 = vcmp.lt.s32.totalorder %v11462_v30, 2  ;;  %v495_v58 = vshll.u32 %v11475_v16, 30  ;;  %v247_v59 = vshll.u32 %v16529_v44, %v238_v24 }
  0x4e   :  { %v248_v26 = vshrl.u32 %v16531_v46, %v239_v33  ;;  %vm420_vm15 = vweird.f32 %v11230_v10  ;;  %v204_v62 = vxor.u32 2147483648, %v203_v55  ;;  %v213_v0 = vadd.s32 3, %v209_v52 }
  0x4f   :  { %v11491_v1 = vand.u32 3, %v209_v52  ;;  %vm256_vm0 = vcmp.lt.s32.totalorder %v11471_v35, 1  ;;  %v11494_v2 = vsub.s32 %v492_v13, %v495_v58  ;;  %v243_v3 = vor.u32 %v242_v17, %v241_v53 }
  0x50   :  { %v246_v15 = vor.u32 %v245_v4, %v244_v54  ;;  %v252_v5 = vor.u32 %v251_v57, %v250_v8  ;;  %v205_v6 = vsel %vm122_vm4, %v204_v62, %v203_v55  ;;  %v253_v39 = vshll.u32 %v16522_v48, %v238_v24 }
  0x51   :  { %v254_v38 = vshrl.u32 %v16524_v56, %v239_v33  ;;  %vm259_vm1 = vcmp.lt.s32.totalorder %v11471_v35, 4  ;;  %v208_v50 = vsel %vm11433_vm5, %v11233_v11, %v205_v6  ;;  %v498_v18 = vsub.s32 0, %v11494_v2 }
  0x52   :  { %v240_v19 = vshrl.u32 %v16537_v40, %v239_v33  ;;  %v249_v21 = vor.u32 %v248_v26, %v247_v59  ;;  %10976 = vcosq.f32 %v208_v50  ;;  %v11506_v22 = vand.u32 3, %v213_v0 }
  0x53   :  { %vm258_vm2 = vcmp.lt.s32.totalorder %v11471_v35, 3  ;;  %v11509_v23 = vshll.u32 %v232_v63, 8  ;;  %10978 = vsinq.f32 %v208_v50  ;;  %v10399_v27 = vmin.u32 %v498_v18, %v11494_v2 }
  0x54   :  { %v261_v60 = vsel %vm259_vm1, %v249_v21, 2102212464  ;;  %v265_v28 = vsel %vm259_vm1, %v252_v5, 920167782  ;;  %vm5210_vm3 = vcmp.eq.s32.totalorder %v11491_v1, 2  ;;  %v255_v37 = vor.u32 %v254_v38, %v253_v39 }
  0x55   :  { %v10973_v24 = vpop.eup %10972  ;;  %vm257_vm4 = vcmp.lt.s32.totalorder %v11471_v35, 2  ;;  %v264_v63 = vsel %vm256_vm0, %v243_v3, %v246_v15  ;;  %vm5207_vm5 = vcmp.eq.s32.totalorder %v11491_v1, 0  ;;  %v488_v33 = vadd.s32 %v11440_v61, %v11446_v25 }
  0x56   :  { %v10975_v29 = vpop.eup %10974  ;;  %v428_v51 = vxor.u32 2147483648, %v10973_v24  ;;  %v500_v43 = vclz %v10399_v27  ;;  %v260_v45 = vsel %vm256_vm0, %v240_v19, %v243_v3  ;;  %vm215_vm6 = vcmp.lt.s32.totalorder %v11506_v22, 2 }
  0x57   :  { %v425_v13 = vxor.u32 2147483648, %v10975_v29  ;;  %vm5206_vm7 = vcmp.lt.s32.totalorder %v11491_v1, 2  ;;  %v262_v47 = vsel %vm258_vm2, %v246_v15, %v261_v60  ;;  %v266_v61 = vsel %vm258_vm2, %v249_v21, %v265_v28 }
  0x58   :  { %v5418_v49 = vsel %vm5416_vm11, %v428_v51, %v10975_v29  ;;  %v429_v52 = vsel %vm427_vm13, %v428_v51, %v10975_v29  ;;  %vm212_vm8 = vweird.f32 %v11233_v11  ;;  %vm434_vm11 = vcmp.lt.s32.totalorder %v11236_v12, 0 }
  0x59   :  { %v5415_v25 = vsel %vm5413_vm10, %v10973_v24, %v425_v13  ;;  %v426_v36 = vsel %vm424_vm9, %v10973_v24, %v425_v13  ;;  %v10400_v53 = vadd.s32 4294967294, %v500_v43  ;;  %v267_v54 = vsel %vm257_vm4, %v264_v63, %v266_v61 }
  0x5a   :  { %v5419_v17 = vsel %vm5412_vm14, %v5415_v25, %v5418_v49  ;;  %v430_v4 = vsel %vm423_vm12, %v426_v36, %v429_v52  ;;  %v268_v8 = vsel %vm256_vm0, %v246_v15, %v249_v21  ;;  %v269_v55 = vsel %vm259_vm1, %v255_v37, 1326507024 }
  0x5b   :  { %v5420_v57 = vsel %vm420_vm15, nan, %v5419_v17  ;;  %v431_v58 = vsel %vm420_vm15, nan, %v430_v4  ;;  %vm10401_vm9 = vcmp.lt.s32.totalorder %v10400_v53, 0  ;;  %v270_v30 = vsel %vm258_vm2, %v252_v5, %v269_v55 }
  0x5c   :  { %10108 = vrot.lane.b32.xlu1 %v5420_v57, %s11194_s22  ;;  %10301 = vst [vmem:[#allocation2 + $0x18] sm:$0xff] %v431_v58  ;;  %vm11560_vm10 = vcmp.le.f32.partialorder %v432_v34, 0.7853982  ;;  %v503_v59 = vsel %vm10401_vm9, 0, %v10400_v53  ;;  %v271_v26 = vsel %vm257_vm4, %v268_v8, %v270_v30  ;;  %v263_v5 = vsel %vm257_vm4, %v260_v45, %v262_v47  ;;  %v10977_v34 = vpop.eup %10976 }
  0x5d   :  { %v11567_v10 = vmul.u32.u64.low %v11509_v23, %v267_v54  ;;  %v11568_v62 = vmul.u32.u64.high %v11509_v23, %v267_v54, %v11567_v10  ;;  %v504_v0 = vsub.s32 32, %v503_v59  ;;  %v505_v3 = vshll.u32 %v11494_v2, %v503_v59  ;;  %v10979_v50 = vpop.eup %10978 }
  0x5e   :  { %v508_v15 = vsub.s32 4294967266, %v503_v59  ;;  %vm219_vm12 = vcmp.eq.s32.totalorder %v11506_v22, 2  ;;  %v518_v6 = vsub.s32 4, %v11475_v16  ;;  %vm216_vm13 = vcmp.eq.s32.totalorder %v11506_v22, 0 }
  0x5f   :  { %v11577_v39 = vmul.u32.u64.low %v11509_v23, %v271_v26  ;;  %v11578_v38 = vmul.u32.u64.high %v11509_v23, %v271_v26, %v11577_v39  ;;  %v220_v18 = vxor.u32 2147483648, %v10977_v34  ;;  %v506_v19 = vshrl.u32 %v488_v33, %v504_v0 }
  0x60   :  { %v509_v21 = vadd.s32 127, %v508_v15  ;;  %v217_v2 = vxor.u32 2147483648, %v10979_v50  ;;  %v279_v24 = vmul.u32 %v11509_v23, %v263_v5  ;;  %v282_v35 = vadd.s32 1, %v11568_v62  ;;  %v19_v15 = vld [vmem:[%s16518_s0 + $0x38] sm:$0xff] }
  0x61   :  { %v643_v27 = vand.u32 2139095040, %v11355_v32  ;;  %v5212_v60 = vsel %vm5210_vm3, %v220_v18, %v10979_v50  ;;  %v221_v28 = vsel %vm219_vm12, %v220_v18, %v10979_v50  ;;  %v507_v29 = vor.u32 %v506_v19, %v505_v3 }
  0x62   :  { %v510_v51 = vshll.u32 %v509_v21, 23  ;;  %v5209_v37 = vsel %vm5207_vm5, %v10977_v34, %v217_v2  ;;  %v218_v63 = vsel %vm216_vm13, %v10977_v34, %v217_v2  ;;  %v519_v13 = vsel %vm434_vm11, %v518_v6, %v11475_v16 }
  0x63   :  { %vm281_vm14 = vc.u32 %v11578_v38, %v11567_v10  ;;  %v5213_v23 = vsel %vm5206_vm7, %v5209_v37, %v5212_v60  ;;  %v222_v33 = vsel %vm215_vm6, %v218_v63, %v221_v28  ;;  %v514_v45 = vcvt.s32.f32 %v507_v29 }
  0x64   :  { %v511_v43 = vor.u32 4788187, %v510_v51  ;;  %v5214_v49 = vsel %vm212_vm8, nan, %v5213_v23  ;;  %v223_v52 = vsel %vm212_vm8, nan, %v222_v33  ;;  %v283_v47 = vsel %vm281_vm14, %v282_v35, %v11568_v62 }
  0x65   :  { %v644_v16 = vshrl.u32 %v643_v27, 23  ;;  %10104 = vrot.lane.b32.xlu0 %v5214_v49, %s11194_s22  ;;  %10297 = vst [vmem:[#allocation2] sm:$0xff] %v223_v52  ;;  %v521_v1 = vsel %vm11560_vm10, 0, %v519_v13  ;;  %v284_v22 = vadd.s32 %v283_v47, %v279_v24  ;;  %v640_v25 = vand.u32 2147483647, %v11355_v32 }
  0x66   :  { %v512_v61 = vand.u32 2147483647, %v511_v43  ;;  %v525_v36 = vadd.s32 3, %v521_v1  ;;  %v539_v11 = vand.u32 2139095040, %v11358_v31  ;;  %v11613_v30 = vand.u32 3, %v521_v1 }
  0x67   :  { %v10406_v53 = vadd.s32 4294967169, %v644_v16  ;;  %v285_v17 = vadd.s32 536870912, %v284_v22  ;;  %v647_v57 = vand.u32 8388607, %v640_v25  ;;  %v536_v59 = vand.u32 2147483647, %v11358_v31 }
  0x68   :  { %v515_v54 = vmul.f32 %v514_v45, %v512_v61  ;;  %v11611_v58 = vand.u32 3, %v525_v36  ;;  %v540_v3 = vshrl.u32 %v539_v11, 23  ;;  %v11632_v19 = vmul.f32 %v11227_v9, %v19_v15 }
  0x69   :  { %v650_v4 = vadd.s32 1, %v10406_v53  ;;  %v11607_v55 = vshrl.u32 %v285_v17, 30  ;;  %v648_v39 = vor.u32 8388608, %v647_v57  ;;  %v11629_v18 = vand.u32 8388607, %v536_v59 }
  0x6a   :  { %v516_v8 = vxor.u32 2147483648, %v515_v54  ;;  %vm531_vm0 = vcmp.eq.s32.totalorder %v11611_v58, 2  ;;  %vm5519_vm1 = vcmp.eq.s32.totalorder %v11613_v30, 2  ;;  %v10402_v2 = vadd.s32 4294967169, %v540_v3 }
  0x6b   :  { %vm651_vm15 = vcmp.gt.s32.totalorder %v650_v4, 0  ;;  %v287_v62 = vshll.u32 %v11607_v55, 30  ;;  %vm528_vm2 = vcmp.eq.s32.totalorder %v11611_v58, 0  ;;  %vm5516_vm3 = vcmp.eq.s32.totalorder %v11613_v30, 0 }
  0x6c   :  { %v517_v26 = vsel %vm434_vm11, %v516_v8, %v515_v54  ;;  %v652_v0 = vsel %vm651_vm15, %v650_v4, 0  ;;  %v280_v24 = vadd.s32 %v11567_v10, %v11578_v38  ;;  %vm527_vm4 = vcmp.lt.s32.totalorder %v11611_v58, 2 }
  0x6d   :  { %v520_v5 = vsel %vm11560_vm10, %v11236_v12, %v517_v26  ;;  %v654_v34 = vand.u32 31, %v652_v0  ;;  %v11625_v6 = vsub.s32 %v284_v22, %v287_v62  ;;  %vm5515_vm5 = vcmp.lt.s32.totalorder %v11613_v30, 2 }
  0x6e   :  { %10980 = vcosq.f32 %v520_v5  ;;  %v11648_v29 = vshrl.u32 %v652_v0, 5  ;;  %v11651_v37 = vshll.u32 %v648_v39, 8  ;;  %vm524_vm6 = vweird.f32 %v11236_v12 }
  0x6f   :  { %10982 = vsinq.f32 %v520_v5  ;;  %v655_v50 = vsub.s32 32, %v654_v34  ;;  %v290_v41 = vsub.s32 0, %v11625_v6  ;;  %v657_v21 = vshll.u32 %v16537_v40, %v654_v34 }
  0x70   :  { %v660_v27 = vshll.u32 %v16533_v42, %v654_v34  ;;  %v663_v51 = vshll.u32 %v16529_v44, %v654_v34  ;;  %v310_v10 = vsub.s32 4, %v11607_v55  ;;  %v544_v63 = vor.u32 8388608, %v11629_v18 }
  0x71   :  { %v658_v35 = vshrl.u32 %v16533_v42, %v655_v50  ;;  %v661_v60 = vshrl.u32 %v16529_v44, %v655_v50  ;;  %v10391_v28 = vmin.u32 %v290_v41, %v11625_v6  ;;  %v664_v38 = vshrl.u32 %v16531_v46, %v655_v50 }
  0x72   :  { %v851_v13 = vand.u32 2139095040, %v11632_v19  ;;  %v656_v33 = vshrl.u32 %v16537_v40, %v655_v50  ;;  %v546_v45 = vadd.s32 1, %v10402_v2  ;;  %v666_v52 = vshll.u32 %v16531_v46, %v654_v34 }
  0x73   :  { %v292_v23 = vclz %v10391_v28  ;;  %v659_v43 = vor.u32 %v658_v35, %v657_v21  ;;  %v662_v49 = vor.u32 %v661_v60, %v660_v27  ;;  %v667_v47 = vshrl.u32 %v16522_v48, %v655_v50 }
  0x74   :  { %v669_v16 = vshll.u32 %v16522_v48, %v654_v34  ;;  %vm226_vm7 = vcmp.lt.s32.totalorder %v11331_v14, 0  ;;  %v665_v1 = vor.u32 %v664_v38, %v663_v51  ;;  %v670_v22 = vshrl.u32 %v16524_v56, %v655_v50 }
  0x75   :  { %v10392_v61 = vadd.s32 4294967294, %v292_v23  ;;  %vm672_vm8 = vcmp.lt.s32.totalorder %v11648_v29, 1  ;;  %v668_v36 = vor.u32 %v667_v47, %v666_v52  ;;  %vm673_vm11 = vcmp.lt.s32.totalorder %v11648_v29, 2 }
  0x76   :  { %vm674_vm9 = vcmp.lt.s32.totalorder %v11648_v29, 3  ;;  %vm675_vm10 = vcmp.lt.s32.totalorder %v11648_v29, 4  ;;  %v671_v54 = vor.u32 %v670_v22, %v669_v16  ;;  %v676_v17 = vsel %vm672_vm8, %v656_v33, %v659_v43 }
  0x77   :  { %vm10393_vm12 = vcmp.lt.s32.totalorder %v10392_v61, 0  ;;  %v677_v11 = vsel %vm675_vm10, %v665_v1, 2102212464  ;;  %v680_v26 = vsel %vm672_vm8, %v659_v43, %v662_v49  ;;  %v681_v62 = vsel %vm675_vm10, %v668_v36, 920167782 }
  0x78   :  { %v10981_v53 = vpop.eup %10980  ;;  %v295_v57 = vsel %vm10393_vm12, 0, %v10392_v61  ;;  %v678_v50 = vsel %vm674_vm9, %v662_v49, %v677_v11  ;;  %v682_v41 = vsel %vm674_vm9, %v665_v1, %v681_v62  ;;  %v684_v51 = vsel %vm672_vm8, %v662_v49, %v665_v1 }
  0x79   :  { %v10983_v4 = vpop.eup %10982  ;;  %v532_v8 = vxor.u32 2147483648, %v10981_v53  ;;  %v296_v3 = vsub.s32 32, %v295_v57  ;;  %v297_v15 = vshll.u32 %v11625_v6, %v295_v57  ;;  %v300_v5 = vsub.s32 4294967266, %v295_v57 }
  0x7a   :  { %v529_v0 = vxor.u32 2147483648, %v10983_v4  ;;  %v683_v28 = vsel %vm673_vm11, %v680_v26, %v682_v41  ;;  %v311_v58 = vsel %vm226_vm7, %v310_v10, %v11607_v55  ;;  %v685_v30 = vsel %vm675_vm10, %v671_v54, 1326507024 }
  0x7b   :  { %v533_v34 = vsel %vm531_vm0, %v532_v8, %v10983_v4  ;;  %v5521_v39 = vsel %vm5519_vm1, %v532_v8, %v10983_v4  ;;  %v298_v6 = vshrl.u32 %v280_v24, %v296_v3  ;;  %v301_v35 = vadd.s32 127, %v300_v5 }
  0x7c   :  { %v530_v21 = vsel %vm528_vm2, %v10981_v53, %v529_v0  ;;  %v5518_v2 = vsel %vm5516_vm3, %v10981_v53, %v529_v0  ;;  %v11710_v43 = vmul.u32.u64.low %v11651_v37, %v683_v28  ;;  %v11711_v49 = vmul.u32.u64.high %v11651_v37, %v683_v28, %v11710_v43 }
  0x7d   :  { %v534_v27 = vsel %vm527_vm4, %v530_v21, %v533_v34  ;;  %v5522_v60 = vsel %vm5515_vm5, %v5518_v2, %v5521_v39  ;;  %v299_v23 = vor.u32 %v298_v6, %v297_v15  ;;  %v302_v33 = vshll.u32 %v301_v35, 23 }
  0x7e   :  { %v11699_v38 = vsel %vm524_vm6, nan, %v534_v27  ;;  %v5523_v24 = vsel %vm524_vm6, nan, %v5522_v60  ;;  %v686_v12 = vsel %vm674_vm9, %v668_v36, %v685_v30  ;;  %vm547_vm13 = vcmp.gt.s32.totalorder %v546_v45, 0 }
  0x7f   :  { %10110 = vrot.lane.b32.xlu1 %v5523_v24, %s11194_s22  ;;  %v303_v52 = vor.u32 4788187, %v302_v33  ;;  %v306_v47 = vcvt.s32.f32 %v299_v23  ;;  %vm11718_vm14 = vcmp.le.f32.partialorder %v224_v20, 0.7853982  ;;  %v679_v55 = vsel %vm673_vm11, %v676_v17, %v678_v50 }
  0x80   :  { %v687_v10 = vsel %vm673_vm11, %v684_v51, %v686_v12  ;;  %v548_v61 = vsel %vm547_vm13, %v546_v45, 0  ;;  %v313_v20 = vsel %vm11718_vm14, 0, %v311_v58  ;;  %v698_v54 = vadd.s32 1, %v11711_v49 }
  0x81   :  { %v304_v1 = vand.u32 2147483647, %v303_v52  ;;  %v11727_v22 = vmul.u32.u64.low %v11651_v37, %v687_v10  ;;  %v11728_v53 = vmul.u32.u64.high %v11651_v37, %v687_v10, %v11727_v22  ;;  %v11730_v36 = vshrl.u32 %v548_v61, 5 }
  0x82   :  { %v550_v11 = vand.u32 31, %v548_v61  ;;  %v11737_v17 = vshll.u32 %v544_v63, 8  ;;  %v317_v4 = vadd.s32 3, %v313_v20  ;;  %v695_v45 = vmul.u32 %v11651_v37, %v679_v55 }
  0x83   :  { %v307_v29 = vmul.f32 %v306_v47, %v304_v1  ;;  %v852_v8 = vshrl.u32 %v851_v13, 23  ;;  %vm568_vm15 = vcmp.lt.s32.totalorder %v11730_v36, 1  ;;  %vm697_vm0 = vc.u32 %v11728_v53, %v11710_v43 }
  0x84   :  { %v551_v57 = vsub.s32 32, %v550_v11  ;;  %v553_v26 = vshll.u32 %v16537_v40, %v550_v11  ;;  %v556_v62 = vshll.u32 %v16533_v42, %v550_v11  ;;  %v559_v18 = vshll.u32 %v16529_v44, %v550_v11 }
  0x85   :  { %v308_v0 = vxor.u32 2147483648, %v307_v29  ;;  %v562_v63 = vshll.u32 %v16531_v46, %v550_v11  ;;  %v699_v37 = vsel %vm697_vm0, %v698_v54, %v11711_v49  ;;  %vm570_vm1 = vcmp.lt.s32.totalorder %v11730_v36, 3 }
  0x86   :  { %v554_v3 = vshrl.u32 %v16533_v42, %v551_v57  ;;  %v557_v13 = vshrl.u32 %v16529_v44, %v551_v57  ;;  %v700_v5 = vadd.s32 %v699_v37, %v695_v45  ;;  %v560_v34 = vshrl.u32 %v16531_v46, %v551_v57 }
  0x87   :  { %v309_v15 = vsel %vm226_vm7, %v308_v0, %v307_v29  ;;  %v563_v39 = vshrl.u32 %v16522_v48, %v551_v57  ;;  %v565_v2 = vshll.u32 %v16522_v48, %v550_v11  ;;  %v566_v60 = vshrl.u32 %v16524_v56, %v551_v57 }
  0x88   :  { %v312_v50 = vsel %vm11718_vm14, %v11331_v14, %v309_v15  ;;  %v555_v41 = vor.u32 %v554_v3, %v553_v26  ;;  %v558_v21 = vor.u32 %v557_v13, %v556_v62  ;;  %v701_v6 = vadd.s32 536870912, %v700_v5 }
  0x89   :  { %10984 = vcosq.f32 %v312_v50  ;;  %v561_v35 = vor.u32 %v560_v34, %v559_v18  ;;  %v564_v27 = vor.u32 %v563_v39, %v562_v63  ;;  %vm569_vm2 = vcmp.lt.s32.totalorder %v11730_v36, 2 }
  0x8a   :  { %10986 = vsinq.f32 %v312_v50  ;;  %vm571_vm3 = vcmp.lt.s32.totalorder %v11730_v36, 4  ;;  %v11764_v28 = vshrl.u32 %v701_v6, 30  ;;  %v552_v51 = vshrl.u32 %v16537_v40, %v551_v57 }
  0x8b   :  { %v576_v24 = vsel %vm568_vm15, %v555_v41, %v558_v21  ;;  %v577_v23 = vsel %vm571_vm3, %v564_v27, 920167782  ;;  %v567_v33 = vor.u32 %v566_v60, %v565_v2  ;;  %v573_v58 = vsel %vm571_vm3, %v561_v35, 2102212464 }
  0x8c   :  { %v578_v30 = vsel %vm570_vm1, %v561_v35, %v577_v23  ;;  %v10414_v49 = vadd.s32 4294967169, %v852_v8  ;;  %v5308_v52 = vand.u32 3, %v313_v20  ;;  %v703_v47 = vshll.u32 %v11764_v28, 30 }
  0x8d   :  { %v579_v12 = vsel %vm569_vm2, %v576_v24, %v578_v30  ;;  %v580_v16 = vsel %vm568_vm15, %v558_v21, %v561_v35  ;;  %v318_v55 = vand.u32 3, %v317_v4  ;;  %v581_v10 = vsel %vm571_vm3, %v567_v33, 1326507024 }
  0x8e   :  { %v11777_v61 = vmul.u32.u64.low %v11737_v17, %v579_v12  ;;  %v11778_v1 = vmul.u32.u64.high %v11737_v17, %v579_v12, %v11777_v61  ;;  %v11781_v22 = vsub.s32 %v700_v5, %v703_v47  ;;  %v572_v20 = vsel %vm568_vm15, %v552_v51, %v555_v41 }
  0x8f   :  { %v574_v54 = vsel %vm570_vm1, %v558_v21, %v573_v58  ;;  %v582_v11 = vsel %vm570_vm1, %v564_v27, %v581_v10  ;;  %vm316_vm4 = vweird.f32 %v11331_v14  ;;  %v858_v4 = vadd.s32 1, %v10414_v49 }
  0x90   :  { %v583_v29 = vsel %vm569_vm2, %v580_v16, %v582_v11  ;;  %vm5309_vm5 = vcmp.lt.s32.totalorder %v5308_v52, 2  ;;  %vm642_vm6 = vcmp.lt.s32.totalorder %v11355_v32, 0  ;;  %v706_v45 = vsub.s32 0, %v11781_v22 }
  0x91   :  { %v848_v8 = vand.u32 2147483647, %v11632_v19  ;;  %vm5310_vm7 = vcmp.eq.s32.totalorder %v5308_v52, 0  ;;  %v575_v57 = vsel %vm569_vm2, %v572_v20, %v574_v54  ;;  %vm323_vm8 = vcmp.eq.s32.totalorder %v318_v55, 2 }
  0x92   :  { %v11798_v26 = vmul.u32.u64.low %v11737_v17, %v583_v29  ;;  %v11799_v62 = vmul.u32.u64.high %v11737_v17, %v583_v29, %v11798_v26  ;;  %vm5313_vm11 = vcmp.eq.s32.totalorder %v5308_v52, 2  ;;  %v10407_v18 = vmin.u32 %v706_v45, %v11781_v22 }
  0x93   :  { %v10985_v0 = vpop.eup %10984  ;;  %vm859_vm9 = vcmp.gt.s32.totalorder %v858_v4, 0  ;;  %vm319_vm10 = vcmp.lt.s32.totalorder %v318_v55, 2  ;;  %vm320_vm12 = vcmp.eq.s32.totalorder %v318_v55, 0  ;;  %v594_v3 = vadd.s32 1, %v11778_v1 }
  0x94   :  { %v10987_v63 = vpop.eup %10986  ;;  %v324_v37 = vxor.u32 2147483648, %v10985_v0  ;;  %v708_v15 = vclz %v10407_v18  ;;  %v591_v36 = vmul.u32 %v11737_v17, %v575_v57  ;;  %v855_v5 = vand.u32 8388607, %v848_v8 }
  0x95   :  { %v321_v13 = vxor.u32 2147483648, %v10987_v63  ;;  %v726_v50 = vsub.s32 4, %v11764_v28  ;;  %v860_v41 = vsel %vm859_vm9, %v858_v4, 0  ;;  %vm593_vm13 = vc.u32 %v11799_v62, %v11777_v61 }
  0x96   :  { %v325_v34 = vsel %vm323_vm8, %v324_v37, %v10987_v63  ;;  %v5315_v39 = vsel %vm5313_vm11, %v324_v37, %v10987_v63  ;;  %v10408_v6 = vadd.s32 4294967294, %v708_v15  ;;  %v696_v17 = vadd.s32 %v11710_v43, %v11728_v53 }
  0x97   :  { %v322_v21 = vsel %vm320_vm12, %v10985_v0, %v321_v13  ;;  %v5312_v2 = vsel %vm5310_vm7, %v10985_v0, %v321_v13  ;;  %v595_v60 = vsel %vm593_vm13, %v594_v3, %v11778_v1  ;;  %v727_v58 = vsel %vm642_vm6, %v726_v50, %v11764_v28  ;;  %v18_v50 = vld [vmem:[%s16518_s0 + $0x30] sm:$0xff] }
  0x98   :  { %v326_v35 = vsel %vm319_vm10, %v322_v21, %v325_v34  ;;  %v5316_v27 = vsel %vm5309_vm5, %v5312_v2, %v5315_v39  ;;  %vm10409_vm14 = vcmp.lt.s32.totalorder %v10408_v6, 0  ;;  %v596_v23 = vadd.s32 %v595_v60, %v591_v36 }
  0x99   :  { %v11817_v51 = vsel %vm316_vm4, nan, %v326_v35  ;;  %v5317_v24 = vsel %vm316_vm4, nan, %v5316_v27  ;;  %v711_v33 = vsel %vm10409_vm14, 0, %v10408_v6  ;;  %v862_v30 = vand.u32 31, %v860_v41 }
  0x9a   :  { %10106 = vrot.lane.b32.xlu0 %v5317_v24, %s11194_s22  ;;  %v712_v43 = vsub.s32 32, %v711_v33  ;;  %v713_v53 = vshll.u32 %v11781_v22, %v711_v33  ;;  %v716_v49 = vsub.s32 4294967266, %v711_v33  ;;  %v597_v52 = vadd.s32 536870912, %v596_v23 }
  0x9b   :  { %vm11828_vm15 = vcmp.le.f32.partialorder %v640_v25, 0.7853982  ;;  %v863_v47 = vsub.s32 32, %v862_v30  ;;  %v856_v10 = vor.u32 8388608, %v855_v5  ;;  %v11834_v1 = vshrl.u32 %v860_v41, 5 }
  0x9c   :  { %v714_v12 = vshrl.u32 %v696_v17, %v712_v43  ;;  %v717_v16 = vadd.s32 127, %v716_v49  ;;  %v598_v55 = vshrl.u32 %v597_v52, 30  ;;  %v729_v28 = vsel %vm11828_vm15, 0, %v727_v58 }
  0x9d   :  { %v865_v22 = vshll.u32 %v16537_v40, %v862_v30  ;;  %v868_v20 = vshll.u32 %v16533_v42, %v862_v30  ;;  %v871_v29 = vshll.u32 %v16529_v44, %v862_v30  ;;  %v866_v4 = vshrl.u32 %v16533_v42, %v863_v47 }
  0x9e   :  { %v715_v54 = vor.u32 %v714_v12, %v713_v53  ;;  %v718_v11 = vshll.u32 %v717_v16, 23  ;;  %v599_v25 = vshll.u32 %v598_v55, 30  ;;  %v869_v45 = vshrl.u32 %v16529_v44, %v863_v47 }
  0x9f   :  { %v874_v57 = vshll.u32 %v16531_v46, %v862_v30  ;;  %v875_v26 = vshrl.u32 %v16522_v48, %v863_v47  ;;  %v872_v37 = vshrl.u32 %v16531_v46, %v863_v47  ;;  %v733_v3 = vadd.s32 3, %v729_v28 }
  0xa0   :  { %v719_v0 = vor.u32 4788187, %v718_v11  ;;  %v722_v18 = vcvt.s32.f32 %v715_v54  ;;  %v11843_v63 = vsub.s32 %v596_v23, %v599_v25  ;;  %v877_v13 = vshll.u32 %v16522_v48, %v862_v30 }
  0xa1   :  { %v878_v15 = vshrl.u32 %v16524_v56, %v863_v47  ;;  %v11848_v5 = vand.u32 3, %v729_v28  ;;  %vm538_vm0 = vcmp.lt.s32.totalorder %v11358_v31, 0  ;;  %v11852_v39 = vshll.u32 %v856_v10, 8 }
  0xa2   :  { %v720_v36 = vand.u32 2147483647, %v719_v0  ;;  %v602_v34 = vsub.s32 0, %v11843_v63  ;;  %v867_v41 = vor.u32 %v866_v4, %v865_v22  ;;  %v870_v21 = vor.u32 %v869_v45, %v868_v20 }
  0xa3   :  { %v876_v2 = vor.u32 %v875_v26, %v874_v57  ;;  %vm880_vm1 = vcmp.lt.s32.totalorder %v11834_v1, 1  ;;  %v873_v27 = vor.u32 %v872_v37, %v871_v29  ;;  %vm883_vm2 = vcmp.lt.s32.totalorder %v11834_v1, 4 }
  0xa4   :  { %v723_v6 = vmul.f32 %v722_v18, %v720_v36  ;;  %v10403_v35 = vmin.u32 %v602_v34, %v11843_v63  ;;  %v864_v17 = vshrl.u32 %v16537_v40, %v863_v47  ;;  %v879_v60 = vor.u32 %v878_v15, %v877_v13 }
  0xa5   :  { %vm882_vm3 = vcmp.lt.s32.totalorder %v11834_v1, 3  ;;  %v11863_v24 = vmul.f32 %v11222_v7, %v18_v50  ;;  %v592_v33 = vadd.s32 %v11777_v61, %v11799_v62  ;;  %v885_v30 = vsel %vm883_vm2, %v873_v27, 2102212464 }
  0xa6   :  { %v724_v23 = vxor.u32 2147483648, %v723_v6  ;;  %v604_v58 = vclz %v10403_v35  ;;  %v622_v43 = vsub.s32 4, %v598_v55  ;;  %vm881_vm4 = vcmp.lt.s32.totalorder %v11834_v1, 2 }
  0xa7   :  { %v888_v53 = vsel %vm880_vm1, %v867_v41, %v870_v21  ;;  %v889_v49 = vsel %vm883_vm2, %v876_v2, 920167782  ;;  %v892_v62 = vsel %vm880_vm1, %v870_v21, %v873_v27  ;;  %v884_v16 = vsel %vm880_vm1, %v864_v17, %v867_v41 }
  0xa8   :  { %v725_v52 = vsel %vm642_vm6, %v724_v23, %v723_v6  ;;  %v10404_v47 = vadd.s32 4294967294, %v604_v58  ;;  %v890_v61 = vsel %vm882_vm3, %v873_v27, %v889_v49  ;;  %v886_v10 = vsel %vm882_vm3, %v870_v21, %v885_v30  ;;  %v21_v23 = vld [vmem:[%s16518_s0 + $0x48] sm:$0xff] }
  0xa9   :  { %v728_v12 = vsel %vm11828_vm15, %v11355_v32, %v725_v52  ;;  %v893_v28 = vsel %vm883_vm2, %v879_v60, 1326507024  ;;  %v891_v22 = vsel %vm881_vm4, %v888_v53, %v890_v61  ;;  %v623_v54 = vsel %vm538_vm0, %v622_v43, %v598_v55 }
  0xaa   :  { %10988 = vcosq.f32 %v728_v12  ;;  %vm10405_vm5 = vcmp.lt.s32.totalorder %v10404_v47, 0  ;;  %v894_v20 = vsel %vm882_vm3, %v876_v2, %v893_v28  ;;  %v887_v45 = vsel %vm881_vm4, %v884_v16, %v886_v10 }
  0xab   :  { %10990 = vsinq.f32 %v728_v12  ;;  %v607_v14 = vsel %vm10405_vm5, 0, %v10404_v47  ;;  %v895_v11 = vsel %vm881_vm4, %v892_v62, %v894_v20  ;;  %vm11911_vm6 = vcmp.le.f32.partialorder %v536_v59, 0.7853982 }
  0xac   :  { %v608_v25 = vsub.s32 32, %v607_v14  ;;  %v609_v29 = vshll.u32 %v11843_v63, %v607_v14  ;;  %v612_v4 = vsub.s32 4294967266, %v607_v14  ;;  %v747_v1 = vand.u32 2139095040, %v11863_v24 }
  0xad   :  { %v11901_v57 = vmul.u32.u64.low %v11852_v39, %v895_v11  ;;  %v11902_v26 = vmul.u32.u64.high %v11852_v39, %v895_v11, %v11901_v57  ;;  %v11905_v0 = vmul.u32.u64.low %v11852_v39, %v891_v22  ;;  %v11906_v18 = vmul.u32.u64.high %v11852_v39, %v891_v22, %v11905_v0 }
  0xae   :  { %v610_v63 = vshrl.u32 %v592_v33, %v608_v25  ;;  %v613_v37 = vadd.s32 127, %v612_v4  ;;  %vm732_vm7 = vweird.f32 %v11355_v32  ;;  %v734_v13 = vand.u32 3, %v733_v3 }
  0xaf   :  { %v625_v15 = vsel %vm11911_vm6, 0, %v623_v54  ;;  %v903_v50 = vmul.u32 %v11852_v39, %v887_v45  ;;  %v748_v41 = vshrl.u32 %v747_v1, 23  ;;  %vm5721_vm8 = vcmp.lt.s32.totalorder %v11848_v5, 2 }
  0xb0   :  { %v611_v36 = vor.u32 %v610_v63, %v609_v29  ;;  %v614_v34 = vshll.u32 %v613_v37, 23  ;;  %v629_v59 = vadd.s32 3, %v625_v15  ;;  %vm905_vm11 = vc.u32 %v11902_v26, %v11905_v0 }
  0xb1   :  { %v906_v21 = vadd.s32 1, %v11906_v18  ;;  %vm5722_vm9 = vcmp.eq.s32.totalorder %v11848_v5, 0  ;;  %v10410_v6 = vadd.s32 4294967169, %v748_v41  ;;  %vm735_vm10 = vcmp.lt.s32.totalorder %v734_v13, 2 }
  0xb2   :  { %v615_v2 = vor.u32 4788187, %v614_v34  ;;  %v618_v3 = vcvt.s32.f32 %v611_v36  ;;  %vm736_vm12 = vcmp.eq.s32.totalorder %v734_v13, 0  ;;  %vm5725_vm13 = vcmp.eq.s32.totalorder %v11848_v5, 2 }
  0xb3   :  { %v907_v39 = vsel %vm905_vm11, %v906_v21, %v11906_v18  ;;  %vm739_vm14 = vcmp.eq.s32.totalorder %v734_v13, 2  ;;  %v754_v60 = vadd.s32 1, %v10410_v6  ;;  %v11930_v30 = vand.u32 3, %v629_v59 }
  0xb4   :  { %v10989_v35 = vpop.eup %10988  ;;  %v616_v27 = vand.u32 2147483647, %v615_v2  ;;  %v908_v17 = vadd.s32 %v907_v39, %v903_v50  ;;  %v11932_v43 = vand.u32 3, %v625_v15  ;;  %v744_v53 = vand.u32 2147483647, %v11863_v24 }
  0xb5   :  { %v10991_v33 = vpop.eup %10990  ;;  %v740_v58 = vxor.u32 2147483648, %v10989_v35  ;;  %vm755_vm15 = vcmp.gt.s32.totalorder %v754_v60, 0  ;;  %v11938_v16 = vmul.f32 %v11227_v9, %v21_v23  ;;  %vm850_vm1 = vcmp.lt.s32.totalorder %v11632_v19, 0 }
  0xb6   :  { %v737_v49 = vxor.u32 2147483648, %v10991_v33  ;;  %v619_v52 = vmul.f32 %v618_v3, %v616_v27  ;;  %v909_v47 = vadd.s32 536870912, %v908_v17  ;;  %v756_v12 = vsel %vm755_vm15, %v754_v60, 0 }
  0xb7   :  { %v741_v61 = vsel %vm739_vm14, %v740_v58, %v10991_v33  ;;  %v5727_v62 = vsel %vm5725_vm13, %v740_v58, %v10991_v33  ;;  %v751_v11 = vand.u32 8388607, %v744_v53  ;;  %v758_v25 = vand.u32 31, %v756_v12 }
  0xb8   :  { %v738_v10 = vsel %vm736_vm12, %v10989_v35, %v737_v49  ;;  %v5724_v28 = vsel %vm5722_vm9, %v10989_v35, %v737_v49  ;;  %v620_v22 = vxor.u32 2147483648, %v619_v52  ;;  %v910_v20 = vshrl.u32 %v909_v47, 30 }
  0xb9   :  { %v742_v14 = vsel %vm735_vm10, %v738_v10, %v741_v61  ;;  %v5728_v54 = vsel %vm5721_vm8, %v5724_v28, %v5727_v62  ;;  %v759_v18 = vsub.s32 32, %v758_v25  ;;  %v1059_v37 = vand.u32 2139095040, %v11938_v16 }
  0xba   :  { %v11950_v29 = vsel %vm732_vm7, nan, %v742_v14  ;;  %v5729_v4 = vsel %vm732_vm7, nan, %v5728_v54  ;;  %v621_v45 = vsel %vm538_vm0, %v620_v22, %v619_v52  ;;  %v911_v57 = vshll.u32 %v910_v20, 30 }
  0xbb   :  { %10114 = vrot.lane.b32.xlu1 %v5729_v4, %s11194_s22  ;;  %v624_v5 = vsel %vm11911_vm6, %v11358_v31, %v621_v45  ;;  %v761_v32 = vshll.u32 %v16537_v40, %v758_v25  ;;  %v762_v1 = vshrl.u32 %v16533_v42, %v759_v18  ;;  %v764_v13 = vshll.u32 %v16533_v42, %v758_v25 }
  0xbc   :  { %10992 = vcosq.f32 %v624_v5  ;;  %v11961_v63 = vsub.s32 %v908_v17, %v911_v57  ;;  %vm635_vm0 = vcmp.eq.s32.totalorder %v11930_v30, 2  ;;  %vm5622_vm2 = vcmp.eq.s32.totalorder %v11932_v43, 2 }
  0xbd   :  { %10994 = vsinq.f32 %v624_v5  ;;  %v752_v15 = vor.u32 8388608, %v751_v11  ;;  %v765_v36 = vshrl.u32 %v16529_v44, %v759_v18  ;;  %vm632_vm3 = vcmp.eq.s32.totalorder %v11930_v30, 0 }
  0xbe   :  { %v914_v55 = vsub.s32 0, %v11961_v63  ;;  %vm5619_vm4 = vcmp.eq.s32.totalorder %v11932_v43, 0  ;;  %v11973_v34 = vshrl.u32 %v756_v12, 5  ;;  %v767_v50 = vshll.u32 %v16529_v44, %v758_v25 }
  0xbf   :  { %v768_v41 = vshrl.u32 %v16531_v46, %v759_v18  ;;  %v770_v59 = vshll.u32 %v16531_v46, %v758_v25  ;;  %vm631_vm5 = vcmp.lt.s32.totalorder %v11930_v30, 2  ;;  %vm5618_vm6 = vcmp.lt.s32.totalorder %v11932_v43, 2  ;;  %v20_v30 = vld [vmem:[%s16518_s0 + $0x40] sm:$0xff] }
  0xc0   :  { %v10415_v21 = vmin.u32 %v914_v55, %v11961_v63  ;;  %v771_v2 = vshrl.u32 %v16522_v48, %v759_v18  ;;  %v1056_v3 = vand.u32 2147483647, %v11938_v16  ;;  %v1060_v6 = vshrl.u32 %v1059_v37, 23 }
  0xc1   :  { %vm628_vm7 = vweird.f32 %v11358_v31  ;;  %v934_v39 = vsub.s32 4, %v910_v20  ;;  %v760_v35 = vshrl.u32 %v16537_v40, %v759_v18  ;;  %v763_v27 = vor.u32 %v762_v1, %v761_v32 }
  0xc2   :  { %v766_v17 = vor.u32 %v765_v36, %v764_v13  ;;  %v916_v60 = vclz %v10415_v21  ;;  %v772_v23 = vor.u32 %v771_v2, %v770_v59  ;;  %v773_v33 = vshll.u32 %v16522_v48, %v758_v25 }
  0xc3   :  { %v774_v58 = vshrl.u32 %v16524_v56, %v759_v18  ;;  %v904_v49 = vadd.s32 %v11905_v0, %v11902_v26  ;;  %v769_v52 = vor.u32 %v768_v41, %v767_v50  ;;  %vm776_vm8 = vcmp.lt.s32.totalorder %v11973_v34, 1 }
  0xc4   :  { %v11990_v47 = vshll.u32 %v752_v15, 8  ;;  %v10416_v61 = vadd.s32 4294967294, %v916_v60  ;;  %vm778_vm11 = vcmp.lt.s32.totalorder %v11973_v34, 3  ;;  %v10422_v62 = vadd.s32 4294967169, %v1060_v6 }
  0xc5   :  { %v11995_v12 = vand.u32 8388607, %v1056_v3  ;;  %v935_v10 = vsel %vm850_vm1, %v934_v39, %v910_v20  ;;  %v775_v28 = vor.u32 %v774_v58, %v773_v33  ;;  %vm777_vm9 = vcmp.lt.s32.totalorder %v11973_v34, 2 }
  0xc6   :  { %vm779_vm10 = vcmp.lt.s32.totalorder %v11973_v34, 4  ;;  %v10993_v26 = vpop.eup %10992  ;;  %vm10417_vm12 = vcmp.lt.s32.totalorder %v10416_v61, 0  ;;  %v780_v0 = vsel %vm776_vm8, %v760_v35, %v763_v27  ;;  %v784_v22 = vsel %vm776_vm8, %v763_v27, %v766_v17 }
  0xc7   :  { %v785_v14 = vsel %vm779_vm10, %v772_v23, 920167782  ;;  %v10995_v54 = vpop.eup %10994  ;;  %v636_v11 = vxor.u32 2147483648, %v10993_v26  ;;  %v919_v25 = vsel %vm10417_vm12, 0, %v10416_v61  ;;  %v781_v20 = vsel %vm779_vm10, %v769_v52, 2102212464 }
  0xc8   :  { %v786_v4 = vsel %vm778_vm11, %v769_v52, %v785_v14  ;;  %v633_v45 = vxor.u32 2147483648, %v10995_v54  ;;  %v920_v57 = vsub.s32 32, %v919_v25  ;;  %v921_v5 = vshll.u32 %v11961_v63, %v919_v25 }
  0xc9   :  { %v924_v18 = vsub.s32 4294967266, %v919_v25  ;;  %v637_v37 = vsel %vm635_vm0, %v636_v11, %v10995_v54  ;;  %v5624_v32 = vsel %vm5622_vm2, %v636_v11, %v10995_v54  ;;  %v787_v1 = vsel %vm777_vm9, %v784_v22, %v786_v4 }
  0xca   :  { %v788_v13 = vsel %vm776_vm8, %v766_v17, %v769_v52  ;;  %v634_v55 = vsel %vm632_vm3, %v10993_v26, %v633_v45  ;;  %v5621_v15 = vsel %vm5619_vm4, %v10993_v26, %v633_v45  ;;  %v922_v63 = vshrl.u32 %v904_v49, %v920_v57 }
  0xcb   :  { %v925_v36 = vadd.s32 127, %v924_v18  ;;  %v638_v50 = vsel %vm631_vm5, %v634_v55, %v637_v37  ;;  %v5625_v41 = vsel %vm5618_vm6, %v5621_v15, %v5624_v32  ;;  %v782_v59 = vsel %vm778_vm11, %v766_v17, %v781_v20 }
  0xcc   :  { %v789_v21 = vsel %vm779_vm10, %v775_v28, 1326507024  ;;  %v639_v2 = vsel %vm628_vm7, nan, %v638_v50  ;;  %v5626_v6 = vsel %vm628_vm7, nan, %v5625_v41  ;;  %v923_v39 = vor.u32 %v922_v63, %v921_v5 }
  0xcd   :  { %v926_v35 = vshll.u32 %v925_v36, 23  ;;  %10304 = vst [vmem:[#allocation2 + $0x30] sm:$0xff] %v639_v2  ;;  %10112 = vrot.lane.b32.xlu0 %v5626_v6, %s11194_s22  ;;  %v790_v43 = vsel %vm778_vm11, %v772_v23, %v789_v21  ;;  %v12043_v27 = vmul.u32.u64.low %v11990_v47, %v787_v1  ;;  %v12044_v17 = vmul.u32.u64.high %v11990_v47, %v787_v1, %v12043_v27 }
  0xce   :  { %v1066_v60 = vadd.s32 1, %v10422_v62  ;;  %v930_v33 = vcvt.s32.f32 %v923_v39  ;;  %v783_v58 = vsel %vm777_vm9, %v780_v0, %v782_v59  ;;  %v791_v49 = vsel %vm777_vm9, %v788_v13, %v790_v43 }
  0xcf   :  { %v927_v31 = vor.u32 4788187, %v926_v35  ;;  %v12052_v52 = vmul.u32.u64.low %v11990_v47, %v791_v49  ;;  %v12053_v61 = vmul.u32.u64.high %v11990_v47, %v791_v49, %v12052_v52  ;;  %v12056_v23 = vmul.f32 %v11222_v7, %v20_v30 }
  0xd0   :  { %vm1067_vm13 = vcmp.gt.s32.totalorder %v1066_v60, 0  ;;  %vm12060_vm14 = vcmp.le.f32.partialorder %v848_v8, 0.7853982  ;;  %v799_v0 = vmul.u32 %v11990_v47, %v783_v58  ;;  %v802_v22 = vadd.s32 1, %v12044_v17 }
  0xd1   :  { %v928_v28 = vand.u32 2147483647, %v927_v31  ;;  %v1068_v26 = vsel %vm1067_vm13, %v1066_v60, 0  ;;  %v937_v34 = vsel %vm12060_vm14, 0, %v935_v10  ;;  %v1064_v25 = vor.u32 8388608, %v11995_v12 }
  0xd2   :  { %v1070_v14 = vand.u32 31, %v1068_v26  ;;  %v941_v11 = vadd.s32 3, %v937_v34  ;;  %vm801_vm15 = vc.u32 %v12053_v61, %v12043_v27  ;;  %v955_v4 = vand.u32 2139095040, %v12056_v23 }
  0xd3   :  { %v931_v54 = vmul.f32 %v930_v33, %v928_v28  ;;  %v803_v10 = vsel %vm801_vm15, %v802_v22, %v12044_v17  ;;  %v1069_v18 = vshrl.u32 %v1068_v26, 5  ;;  %v5926_v39 = vand.u32 3, %v937_v34 }
  0xd4   :  { %v1071_v8 = vsub.s32 32, %v1070_v14  ;;  %v1073_v20 = vshll.u32 %v16537_v40, %v1070_v14  ;;  %v1076_v47 = vshll.u32 %v16533_v42, %v1070_v14  ;;  %v1079_v57 = vshll.u32 %v16529_v44, %v1070_v14 }
  0xd5   :  { %v932_v45 = vxor.u32 2147483648, %v931_v54  ;;  %v804_v5 = vadd.s32 %v803_v10, %v799_v0  ;;  %v1082_v13 = vshll.u32 %v16531_v46, %v1070_v14  ;;  %v1085_v21 = vshll.u32 %v16522_v48, %v1070_v14 }
  0xd6   :  { %v1074_v37 = vshrl.u32 %v16533_v42, %v1071_v8  ;;  %v1077_v12 = vshrl.u32 %v16529_v44, %v1071_v8  ;;  %v1080_v1 = vshrl.u32 %v16531_v46, %v1071_v8  ;;  %v1083_v55 = vshrl.u32 %v16522_v48, %v1071_v8 }
  0xd7   :  { %v933_v32 = vsel %vm850_vm1, %v932_v45, %v931_v54  ;;  %v805_v63 = vadd.s32 536870912, %v804_v5  ;;  %v1086_v6 = vshrl.u32 %v16524_v56, %v1071_v8  ;;  %vm1088_vm1 = vcmp.lt.s32.totalorder %v1069_v18, 1 }
  0xd8   :  { %v936_v15 = vsel %vm12060_vm14, %v11632_v19, %v933_v32  ;;  %v1075_v36 = vor.u32 %v1074_v37, %v1073_v20  ;;  %v1078_v50 = vor.u32 %v1077_v12, %v1076_v47  ;;  %v1081_v41 = vor.u32 %v1080_v1, %v1079_v57 }
  0xd9   :  { %10996 = vcosq.f32 %v936_v15  ;;  %v1084_v59 = vor.u32 %v1083_v55, %v1082_v13  ;;  %v12087_v2 = vshrl.u32 %v805_v63, 30  ;;  %v1072_v35 = vshrl.u32 %v16537_v40, %v1071_v8 }
  0xda   :  { %10998 = vsinq.f32 %v936_v15  ;;  %vm1090_vm0 = vcmp.lt.s32.totalorder %v1069_v18, 3  ;;  %vm1091_vm2 = vcmp.lt.s32.totalorder %v1069_v18, 4  ;;  %v1087_v43 = vor.u32 %v1086_v6, %v1085_v21 }
  0xdb   :  { %v807_v30 = vshll.u32 %v12087_v2, 30  ;;  %vm1089_vm3 = vcmp.lt.s32.totalorder %v1069_v18, 2  ;;  %v1093_v17 = vsel %vm1091_vm2, %v1081_v41, 2102212464  ;;  %v942_v60 = vand.u32 3, %v941_v11 }
  0xdc   :  { %v1096_v31 = vsel %vm1088_vm1, %v1075_v36, %v1078_v50  ;;  %v1097_v33 = vsel %vm1091_vm2, %v1084_v59, 920167782  ;;  %v1104_v58 = vshll.u32 %v1064_v25, 8  ;;  %v1100_v62 = vsel %vm1088_vm1, %v1078_v50, %v1081_v41 }
  0xdd   :  { %v12095_v49 = vsub.s32 %v804_v5, %v807_v30  ;;  %v1098_v52 = vsel %vm1090_vm0, %v1081_v41, %v1097_v33  ;;  %v956_v28 = vshrl.u32 %v955_v4, 23  ;;  %v1092_v26 = vsel %vm1088_vm1, %v1072_v35, %v1075_v36 }
  0xde   :  { %v1094_v34 = vsel %vm1090_vm0, %v1078_v50, %v1093_v17  ;;  %v1099_v0 = vsel %vm1089_vm3, %v1096_v31, %v1098_v52  ;;  %v1101_v22 = vsel %vm1091_vm2, %v1087_v43, 1326507024  ;;  %vm940_vm4 = vweird.f32 %v11632_v19 }
  0xdf   :  { %v810_v14 = vsub.s32 0, %v12095_v49  ;;  %v1102_v54 = vsel %vm1090_vm0, %v1084_v59, %v1101_v22  ;;  %v952_v11 = vand.u32 2147483647, %v12056_v23  ;;  %vm5927_vm5 = vcmp.lt.s32.totalorder %v5926_v39, 2 }
  0xe0   :  { %v1103_v25 = vsel %vm1089_vm3, %v1100_v62, %v1102_v54  ;;  %v12108_v8 = vmul.u32.u64.low %v1104_v58, %v1099_v0  ;;  %v12109_v20 = vmul.u32.u64.high %v1104_v58, %v1099_v0, %v12108_v8  ;;  %vm5928_vm6 = vcmp.eq.s32.totalorder %v5926_v39, 0 }
  0xe1   :  { %vm746_vm7 = vcmp.lt.s32.totalorder %v11863_v24, 0  ;;  %v10411_v4 = vmin.u32 %v810_v14, %v12095_v49  ;;  %v1095_v45 = vsel %vm1089_vm3, %v1092_v26, %v1094_v34  ;;  %v10418_v10 = vadd.s32 4294967169, %v956_v28 }
  0xe2   :  { %vm947_vm8 = vcmp.eq.s32.totalorder %v942_v60, 2  ;;  %vm5931_vm11 = vcmp.eq.s32.totalorder %v5926_v39, 2  ;;  %v12115_v57 = vmul.u32.u64.low %v1104_v58, %v1103_v25  ;;  %v12116_v5 = vmul.u32.u64.high %v1104_v58, %v1103_v25, %v12115_v57  ;;  %v23_v39 = vld [vmem:[%s16518_s0 + $0x58] sm:$0xff] }
  0xe3   :  { %v10997_v47 = vpop.eup %10996  ;;  %vm943_vm9 = vcmp.lt.s32.totalorder %v942_v60, 2  ;;  %vm944_vm10 = vcmp.eq.s32.totalorder %v942_v60, 0  ;;  %v812_v32 = vclz %v10411_v4  ;;  %v800_v13 = vadd.s32 %v12043_v27, %v12053_v61 }
  0xe4   :  { %v10999_v37 = vpop.eup %10998  ;;  %v948_v12 = vxor.u32 2147483648, %v10997_v47  ;;  %v1111_v55 = vmul.u32 %v1104_v58, %v1095_v45  ;;  %v1114_v18 = vadd.s32 1, %v12109_v20  ;;  %v962_v50 = vadd.s32 1, %v10418_v10 }
  0xe5   :  { %v945_v1 = vxor.u32 2147483648, %v10999_v37  ;;  %v10412_v36 = vadd.s32 4294967294, %v812_v32  ;;  %v830_v21 = vsub.s32 4, %v12087_v2  ;;  %vm1113_vm12 = vc.u32 %v12116_v5, %v12108_v8 }
  0xe6   :  { %v949_v15 = vsel %vm947_vm8, %v948_v12, %v10999_v37  ;;  %v5933_v63 = vsel %vm5931_vm11, %v948_v12, %v10999_v37  ;;  %v1115_v27 = vsel %vm1113_vm12, %v1114_v18, %v12109_v20  ;;  %vm963_vm14 = vcmp.gt.s32.totalorder %v962_v50, 0 }
  0xe7   :  { %v946_v41 = vsel %vm944_vm10, %v10997_v47, %v945_v1  ;;  %v5930_v59 = vsel %vm5928_vm6, %v10997_v47, %v945_v1  ;;  %vm10413_vm13 = vcmp.lt.s32.totalorder %v10412_v36, 0  ;;  %v1116_v17 = vadd.s32 %v1115_v27, %v1111_v55 }
  0xe8   :  { %v950_v6 = vsel %vm943_vm9, %v946_v41, %v949_v15  ;;  %v5934_v35 = vsel %vm5927_vm5, %v5930_v59, %v5933_v63  ;;  %v815_v43 = vsel %vm10413_vm13, 0, %v10412_v36  ;;  %v831_v58 = vsel %vm746_vm7, %v830_v21, %v12087_v2 }
  0xe9   :  { %v12130_v61 = vsel %vm940_vm4, nan, %v950_v6  ;;  %v5935_v30 = vsel %vm940_vm4, nan, %v5934_v35  ;;  %v816_v31 = vsub.s32 32, %v815_v43  ;;  %v817_v60 = vshll.u32 %v12095_v49, %v815_v43 }
  0xea   :  { %10118 = vrot.lane.b32.xlu1 %v5935_v30, %s11194_s22  ;;  %v820_v33 = vsub.s32 4294967266, %v815_v43  ;;  %v1117_v52 = vadd.s32 536870912, %v1116_v17  ;;  %v964_v19 = vsel %vm963_vm14, %v962_v50, 0  ;;  %vm12144_vm15 = vcmp.le.f32.partialorder %v744_v53, 0.7853982 }
  0xeb   :  { %v818_v62 = vshrl.u32 %v800_v13, %v816_v31  ;;  %v966_v26 = vand.u32 31, %v964_v19  ;;  %v959_v0 = vand.u32 8388607, %v952_v11  ;;  %v12153_v22 = vmul.f32 %v11227_v9, %v23_v39 }
  0xec   :  { %v821_v28 = vadd.s32 127, %v820_v33  ;;  %v12148_v49 = vshrl.u32 %v1117_v52, 30  ;;  %v833_v54 = vsel %vm12144_vm15, 0, %v831_v58  ;;  %v965_v15 = vshrl.u32 %v964_v19, 5 }
  0xed   :  { %v819_v2 = vor.u32 %v818_v62, %v817_v60  ;;  %v967_v25 = vsub.s32 32, %v966_v26  ;;  %v837_v45 = vadd.s32 3, %v833_v54  ;;  %v1264_v10 = vand.u32 2147483647, %v12153_v22 }
  0xee   :  { %v822_v14 = vshll.u32 %v821_v28, 23  ;;  %v1119_v20 = vshll.u32 %v12148_v49, 30  ;;  %v12159_v47 = vand.u32 3, %v833_v54  ;;  %v960_v37 = vor.u32 8388608, %v959_v0 }
  0xef   :  { %v826_v4 = vcvt.s32.f32 %v819_v2  ;;  %v969_v12 = vshll.u32 %v16537_v40, %v966_v26  ;;  %v970_v1 = vshrl.u32 %v16533_v42, %v967_v25  ;;  %v972_v13 = vshll.u32 %v16533_v42, %v966_v26 }
  0xf0   :  { %v823_v53 = vor.u32 4788187, %v822_v14  ;;  %v12161_v57 = vsub.s32 %v1116_v17, %v1119_v20  ;;  %v973_v55 = vshrl.u32 %v16529_v44, %v967_v25  ;;  %v975_v63 = vshll.u32 %v16529_v44, %v966_v26 }
  0xf1   :  { %v978_v36 = vshll.u32 %v16531_v46, %v966_v26  ;;  %v976_v41 = vshrl.u32 %v16531_v46, %v967_v25  ;;  %v979_v59 = vshrl.u32 %v16522_v48, %v967_v25  ;;  %v981_v21 = vshll.u32 %v16522_v48, %v966_v26 }
  0xf2   :  { %v824_v32 = vand.u32 2147483647, %v823_v53  ;;  %v1122_v18 = vsub.s32 0, %v12161_v57  ;;  %v12173_v6 = vand.u32 3, %v837_v45  ;;  %v1112_v35 = vadd.s32 %v12108_v8, %v12116_v5 }
  0xf3   :  { %v12178_v30 = vshll.u32 %v960_v37, 8  ;;  %v971_v17 = vor.u32 %v970_v1, %v969_v12  ;;  %v974_v31 = vor.u32 %v973_v55, %v972_v13  ;;  %v982_v60 = vshrl.u32 %v16524_v56, %v967_v25 }
  0xf4   :  { %v827_v50 = vmul.f32 %v826_v4, %v824_v32  ;;  %v10423_v27 = vmin.u32 %v1122_v18, %v12161_v57  ;;  %v968_v39 = vshrl.u32 %v16537_v40, %v967_v25  ;;  %v980_v58 = vor.u32 %v979_v59, %v978_v36 }
  0xf5   :  { %v1267_v52 = vand.u32 2139095040, %v12153_v22  ;;  %v977_v62 = vor.u32 %v976_v41, %v975_v63  ;;  %v983_v8 = vor.u32 %v982_v60, %v981_v21  ;;  %vm984_vm1 = vcmp.lt.s32.totalorder %v965_v15, 1 }
  0xf6   :  { %v828_v43 = vxor.u32 2147483648, %v827_v50  ;;  %v1124_v33 = vclz %v10423_v27  ;;  %vm1058_vm0 = vcmp.lt.s32.totalorder %v11938_v16, 0  ;;  %vm986_vm2 = vcmp.lt.s32.totalorder %v965_v15, 3 }
  0xf7   :  { %vm987_vm3 = vcmp.lt.s32.totalorder %v965_v15, 4  ;;  %vm985_vm4 = vcmp.lt.s32.totalorder %v965_v15, 2  ;;  %v992_v0 = vsel %vm984_vm1, %v971_v17, %v974_v31  ;;  %v988_v2 = vsel %vm984_vm1, %v968_v39, %v971_v17 }
  0xf8   :  { %v829_v19 = vsel %vm746_vm7, %v828_v43, %v827_v50  ;;  %v10424_v28 = vadd.s32 4294967294, %v1124_v33  ;;  %v989_v26 = vsel %vm987_vm3, %v977_v62, 2102212464  ;;  %v993_v14 = vsel %vm987_vm3, %v980_v58, 920167782 }
  0xf9   :  { %v832_v5 = vsel %vm12144_vm15, %v11863_v24, %v829_v19  ;;  %vm12195_vm6 = vcmp.le.f32.partialorder %v1056_v3, 0.7853982  ;;  %v990_v25 = vsel %vm986_vm2, %v974_v31, %v989_v26  ;;  %v994_v20 = vsel %vm986_vm2, %v977_v62, %v993_v14 }
  0xfa   :  { %11000 = vcosq.f32 %v832_v5  ;;  %vm10425_vm5 = vcmp.lt.s32.totalorder %v10424_v28, 0  ;;  %v996_v53 = vsel %vm984_vm1, %v974_v31, %v977_v62  ;;  %v995_v12 = vsel %vm985_vm4, %v992_v0, %v994_v20 }
  0xfb   :  { %11002 = vsinq.f32 %v832_v5  ;;  %v1127_v54 = vsel %vm10425_vm5, 0, %v10424_v28  ;;  %v1142_v32 = vsub.s32 4, %v12148_v49  ;;  %v997_v3 = vsel %vm987_vm3, %v983_v8, 1326507024 }
  0xfc   :  { %v1128_v4 = vsub.s32 32, %v1127_v54  ;;  %v1129_v45 = vshll.u32 %v12161_v57, %v1127_v54  ;;  %v1132_v37 = vsub.s32 4294967266, %v1127_v54  ;;  %vm836_vm7 = vweird.f32 %v11863_v24 }
  0xfd   :  { %v12207_v1 = vmul.u32.u64.low %v12178_v30, %v995_v12  ;;  %v12208_v13 = vmul.u32.u64.high %v12178_v30, %v995_v12, %v12207_v1  ;;  %v998_v63 = vsel %vm986_vm2, %v980_v58, %v997_v3  ;;  %v1268_v36 = vshrl.u32 %v1267_v52, 23 }
  0xfe   :  { %v1130_v55 = vshrl.u32 %v1112_v35, %v1128_v4  ;;  %v1133_v18 = vadd.s32 127, %v1132_v37  ;;  %vm5824_vm8 = vcmp.lt.s32.totalorder %v12159_v47, 2  ;;  %vm5825_vm11 = vcmp.eq.s32.totalorder %v12159_v47, 0  ;;  %v22_v35 = vld [vmem:[%s16518_s0 + $0x50] sm:$0xff] }
  0xff   :  { %v991_v57 = vsel %vm985_vm4, %v988_v2, %v990_v25  ;;  %v999_v50 = vsel %vm985_vm4, %v996_v53, %v998_v63  ;;  %vm5828_vm9 = vcmp.eq.s32.totalorder %v12159_v47, 2  ;;  %v1143_v43 = vsel %vm1058_vm0, %v1142_v32, %v12148_v49 }
 0x100   :  { %v1131_v41 = vor.u32 %v1130_v55, %v1129_v45  ;;  %v1134_v59 = vshll.u32 %v1133_v18, 23  ;;  %v12218_v21 = vmul.u32.u64.low %v12178_v30, %v999_v50  ;;  %v12219_v27 = vmul.u32.u64.high %v12178_v30, %v999_v50, %v12218_v21 }
 0x101   :  { %v1010_v17 = vadd.s32 1, %v12208_v13  ;;  %v10430_v15 = vadd.s32 4294967169, %v1268_v36  ;;  %vm839_vm10 = vcmp.lt.s32.totalorder %v12173_v6, 2  ;;  %v1007_v33 = vmul.u32 %v12178_v30, %v991_v57 }
 0x102   :  { %v1135_v31 = vor.u32 4788187, %v1134_v59  ;;  %v1138_v60 = vcvt.s32.f32 %v1131_v41  ;;  %vm840_vm12 = vcmp.eq.s32.totalorder %v12173_v6, 0  ;;  %vm843_vm13 = vcmp.eq.s32.totalorder %v12173_v6, 2 }
 0x103   :  { %v1274_v58 = vadd.s32 1, %v10430_v15  ;;  %v12234_v52 = vmul.f32 %v11222_v7, %v22_v35  ;;  %v1145_v8 = vsel %vm12195_vm6, 0, %v1143_v43  ;;  %vm1009_vm14 = vc.u32 %v12219_v27, %v12207_v1 }
 0x104   :  { %v11001_v39 = vpop.eup %11000  ;;  %v1136_v62 = vand.u32 2147483647, %v1135_v31  ;;  %v1149_v30 = vadd.s32 3, %v1145_v8  ;;  %v1011_v28 = vsel %vm1009_vm14, %v1010_v17, %v12208_v13  ;;  %v1271_v13 = vand.u32 8388607, %v1264_v10 }
 0x105   :  { %v11003_v19 = vpop.eup %11002  ;;  %v844_v49 = vxor.u32 2147483648, %v11001_v39  ;;  %vm1275_vm15 = vcmp.gt.s32.totalorder %v1274_v58, 0  ;;  %v1012_v14 = vadd.s32 %v1011_v28, %v1007_v33  ;;  %v1163_v53 = vand.u32 2139095040, %v12234_v52 }
 0x106   :  { %v841_v5 = vxor.u32 2147483648, %v11003_v19  ;;  %v1139_v2 = vmul.f32 %v1138_v60, %v1136_v62  ;;  %v1276_v20 = vsel %vm1275_vm15, %v1274_v58, 0  ;;  %v12261_v47 = vand.u32 3, %v1149_v30 }
 0x107   :  { %v845_v26 = vsel %vm843_vm13, %v844_v49, %v11003_v19  ;;  %v5830_v0 = vsel %vm5828_vm9, %v844_v49, %v11003_v19  ;;  %v1013_v12 = vadd.s32 536870912, %v1012_v14  ;;  %v1278_v55 = vand.u32 31, %v1276_v20 }
 0x108   :  { %v842_v54 = vsel %vm840_vm12, %v11001_v39, %v841_v5  ;;  %v5827_v25 = vsel %vm5825_vm11, %v11001_v39, %v841_v5  ;;  %v1140_v37 = vxor.u32 2147483648, %v1139_v2  ;;  %v12263_v18 = vand.u32 3, %v1145_v8 }
 0x109   :  { %v846_v4 = vsel %vm839_vm10, %v842_v54, %v845_v26  ;;  %v5831_v45 = vsel %vm5824_vm8, %v5827_v25, %v5830_v0  ;;  %v1014_v63 = vshrl.u32 %v1013_v12, 30  ;;  %vm954_vm1 = vcmp.lt.s32.totalorder %v12056_v23, 0 }
 0x10a   :  { %v847_v32 = vsel %vm836_vm7, nan, %v846_v4  ;;  %v5832_v3 = vsel %vm836_vm7, nan, %v5831_v45  ;;  %v1141_v6 = vsel %vm1058_vm0, %v1140_v37, %v1139_v2  ;;  %v1279_v36 = vsub.s32 32, %v1278_v55 }
 0x10b   :  { %10307 = vst [vmem:[#allocation2 + $0x48] sm:$0xff] %v847_v32  ;;  %10116 = vrot.lane.b32.xlu0 %v5832_v3, %s11194_s22  ;;  %v1144_v24 = vsel %vm12195_vm6, %v11938_v16, %v1141_v6  ;;  %v1160_v57 = vand.u32 2147483647, %v12234_v52  ;;  %v1164_v50 = vshrl.u32 %v1163_v53, 23  ;;  %v1015_v41 = vshll.u32 %v1014_v63, 30 }
 0x10c   :  { %11004 = vcosq.f32 %v1144_v24  ;;  %v12270_v59 = vshrl.u32 %v1276_v20, 5  ;;  %v1281_v21 = vshll.u32 %v16537_v40, %v1278_v55  ;;  %v1282_v35 = vshrl.u32 %v16533_v42, %v1279_v36 }
 0x10d   :  { %11006 = vsinq.f32 %v1144_v24  ;;  %v1284_v43 = vshll.u32 %v16533_v42, %v1278_v55  ;;  %v1285_v34 = vshrl.u32 %v16529_v44, %v1279_v36  ;;  %vm6137_vm0 = vcmp.eq.s32.totalorder %v12263_v18, 2 }
 0x10e   :  { %v12277_v17 = vsub.s32 %v1012_v14, %v1015_v41  ;;  %v1287_v15 = vshll.u32 %v16529_v44, %v1278_v55  ;;  %v1288_v31 = vshrl.u32 %v16531_v46, %v1279_v36  ;;  %v1290_v60 = vshll.u32 %v16531_v46, %v1278_v55 }
 0x10f   :  { %vm1152_vm2 = vcmp.eq.s32.totalorder %v12261_v47, 0  ;;  %vm1155_vm3 = vcmp.eq.s32.totalorder %v12261_v47, 2  ;;  %vm6134_vm4 = vcmp.eq.s32.totalorder %v12263_v18, 0  ;;  %v1272_v33 = vor.u32 8388608, %v1271_v13 }
 0x110   :  { %v1291_v39 = vshrl.u32 %v16522_v48, %v1279_v36  ;;  %v10426_v58 = vadd.s32 4294967169, %v1164_v50  ;;  %vm1151_vm5 = vcmp.lt.s32.totalorder %v12261_v47, 2  ;;  %vm6133_vm6 = vcmp.lt.s32.totalorder %v12263_v18, 2  ;;  %v25_v47 = vld [vmem:[%s16518_s0 + $0x68] sm:$0xff] }
 0x111   :  { %v1018_v19 = vsub.s32 0, %v12277_v17  ;;  %v1038_v49 = vsub.s32 4, %v1014_v63  ;;  %v1280_v62 = vshrl.u32 %v16537_v40, %v1279_v36  ;;  %v12292_v8 = vand.u32 8388607, %v1160_v57 }
 0x112   :  { %vm1148_vm7 = vweird.f32 %v11938_v16  ;;  %v1283_v5 = vor.u32 %v1282_v35, %v1281_v21  ;;  %v1286_v30 = vor.u32 %v1285_v34, %v1284_v43  ;;  %v1293_v28 = vshll.u32 %v16522_v48, %v1278_v55 }
 0x113   :  { %v1294_v26 = vshrl.u32 %v16524_v56, %v1279_v36  ;;  %v10419_v0 = vmin.u32 %v1018_v19, %v12277_v17  ;;  %v1289_v2 = vor.u32 %v1288_v31, %v1287_v15  ;;  %v1292_v14 = vor.u32 %v1291_v39, %v1290_v60 }
 0x114   :  { %vm1296_vm8 = vcmp.lt.s32.totalorder %v12270_v59, 1  ;;  %v1008_v54 = vadd.s32 %v12207_v1, %v12219_v27  ;;  %v12301_v20 = vshll.u32 %v1272_v33, 8  ;;  %v1170_v53 = vadd.s32 1, %v10426_v58 }
 0x115   :  { %v1295_v25 = vor.u32 %v1294_v26, %v1293_v28  ;;  %v1020_v4 = vclz %v10419_v0  ;;  %v1039_v45 = vsel %vm954_vm1, %v1038_v49, %v1014_v63  ;;  %vm1298_vm11 = vcmp.lt.s32.totalorder %v12270_v59, 3 }
 0x116   :  { %v1168_v37 = vor.u32 8388608, %v12292_v8  ;;  %vm1297_vm9 = vcmp.lt.s32.totalorder %v12270_v59, 2  ;;  %vm1299_vm10 = vcmp.lt.s32.totalorder %v12270_v59, 4  ;;  %v1300_v12 = vsel %vm1296_vm8, %v1280_v62, %v1283_v5  ;;  %v11005_v27 = vpop.eup %11004 }
 0x117   :  { %v1304_v1 = vsel %vm1296_vm8, %v1283_v5, %v1286_v30  ;;  %vm12315_vm12 = vcmp.le.f32.partialorder %v952_v11, 0.7853982  ;;  %v10420_v3 = vadd.s32 4294967294, %v1020_v4  ;;  %v1301_v13 = vsel %vm1299_vm10, %v1289_v2, 2102212464  ;;  %v11007_v63 = vpop.eup %11006 }
 0x118   :  { %v1305_v55 = vsel %vm1299_vm10, %v1292_v14, 920167782  ;;  %v1308_v6 = vsel %vm1296_vm8, %v1286_v30, %v1289_v2  ;;  %v1156_v24 = vxor.u32 2147483648, %v11005_v27  ;;  %v1309_v50 = vsel %vm1299_vm10, %v1295_v25, 1326507024 }
 0x119   :  { %v1306_v36 = vsel %vm1298_vm11, %v1289_v2, %v1305_v55  ;;  %vm1171_vm13 = vcmp.gt.s32.totalorder %v1170_v53, 0  ;;  %v1153_v41 = vxor.u32 2147483648, %v11007_v63  ;;  %vm10421_vm14 = vcmp.lt.s32.totalorder %v10420_v3, 0 }
 0x11a   :  { %v1302_v11 = vsel %vm1298_vm11, %v1286_v30, %v1301_v13  ;;  %v1307_v21 = vsel %vm1297_vm9, %v1304_v1, %v1306_v36  ;;  %v1157_v35 = vsel %vm1155_vm3, %v1156_v24, %v11007_v63  ;;  %v6139_v43 = vsel %vm6137_vm0, %v1156_v24, %v11007_v63 }
 0x11b   :  { %v1023_v34 = vsel %vm10421_vm14, 0, %v10420_v3  ;;  %v1310_v15 = vsel %vm1298_vm11, %v1292_v14, %v1309_v50  ;;  %v1154_v31 = vsel %vm1152_vm2, %v11005_v27, %v1153_v41  ;;  %v6136_v60 = vsel %vm6134_vm4, %v11005_v27, %v1153_v41 }
 0x11c   :  { %v1024_v33 = vsub.s32 32, %v1023_v34  ;;  %v1025_v39 = vshll.u32 %v12277_v17, %v1023_v34  ;;  %v1158_v58 = vsel %vm1151_vm5, %v1154_v31, %v1157_v35  ;;  %v6140_v19 = vsel %vm6133_vm6, %v6136_v60, %v6139_v43 }
 0x11d   :  { %v1028_v49 = vsub.s32 4294967266, %v1023_v34  ;;  %v1311_v62 = vsel %vm1297_vm9, %v1308_v6, %v1310_v15  ;;  %v12346_v8 = vsel %vm1148_vm7, nan, %v1158_v58  ;;  %v6141_v5 = vsel %vm1148_vm7, nan, %v6140_v19 }
 0x11e   :  { %v1026_v30 = vshrl.u32 %v1008_v54, %v1024_v33  ;;  %v1303_v17 = vsel %vm1297_vm9, %v1300_v12, %v1302_v11  ;;  %10122 = vrot.lane.b32.xlu1 %v6141_v5, %s11194_s22  ;;  %v12357_v28 = vmul.u32.u64.low %v12301_v20, %v1311_v62  ;;  %v12358_v26 = vmul.u32.u64.high %v12301_v20, %v1311_v62, %v12357_v28 }
 0x11f   :  { %v1029_v18 = vadd.s32 127, %v1028_v49  ;;  %v1172_v0 = vsel %vm1171_vm13, %v1170_v53, 0  ;;  %v12362_v16 = vmul.u32.u64.low %v12301_v20, %v1307_v21  ;;  %v12363_v14 = vmul.u32.u64.high %v12301_v20, %v1307_v21, %v12362_v16 }
 0x120   :  { %v1027_v2 = vor.u32 %v1026_v30, %v1025_v39  ;;  %v1173_v59 = vshrl.u32 %v1172_v0, 5  ;;  %v1041_v25 = vsel %vm12315_vm12, 0, %v1039_v45  ;;  %v1174_v4 = vand.u32 31, %v1172_v0 }
 0x121   :  { %v1030_v54 = vshll.u32 %v1029_v18, 23  ;;  %v12369_v12 = vmul.f32 %v11227_v9, %v25_v47  ;;  %v1319_v27 = vmul.u32 %v12301_v20, %v1303_v17  ;;  %v12372_v53 = vshll.u32 %v1168_v37, 8 }
 0x122   :  { %v1034_v1 = vcvt.s32.f32 %v1027_v2  ;;  %vm1192_vm15 = vcmp.lt.s32.totalorder %v1173_v59, 1  ;;  %vm1321_vm0 = vc.u32 %v12358_v26, %v12362_v16  ;;  %v1175_v13 = vsub.s32 32, %v1174_v4 }
 0x123   :  { %v1031_v3 = vor.u32 4788187, %v1030_v54  ;;  %vm1194_vm2 = vcmp.lt.s32.totalorder %v1173_v59, 3  ;;  %v1322_v55 = vadd.s32 1, %v12363_v14  ;;  %v1177_v45 = vshll.u32 %v16537_v40, %v1174_v4 }
 0x124   :  { %v1180_v6 = vshll.u32 %v16533_v42, %v1174_v4  ;;  %v1183_v63 = vshll.u32 %v16529_v44, %v1174_v4  ;;  %v1176_v20 = vshrl.u32 %v16537_v40, %v1175_v13  ;;  %v1178_v37 = vshrl.u32 %v16533_v42, %v1175_v13 }
 0x125   :  { %v1032_v24 = vand.u32 2147483647, %v1031_v3  ;;  %v1181_v36 = vshrl.u32 %v16529_v44, %v1175_v13  ;;  %v1323_v50 = vsel %vm1321_vm0, %v1322_v55, %v12363_v14  ;;  %v1184_v41 = vshrl.u32 %v16531_v46, %v1175_v13 }
 0x126   :  { %v1186_v11 = vshll.u32 %v16531_v46, %v1174_v4  ;;  %v1187_v21 = vshrl.u32 %v16522_v48, %v1175_v13  ;;  %v1324_v43 = vadd.s32 %v1323_v50, %v1319_v27  ;;  %v1179_v34 = vor.u32 %v1178_v37, %v1177_v45 }
 0x127   :  { %v1035_v35 = vmul.f32 %v1034_v1, %v1032_v24  ;;  %v1182_v15 = vor.u32 %v1181_v36, %v1180_v6  ;;  %v1185_v31 = vor.u32 %v1184_v41, %v1183_v63  ;;  %v1189_v33 = vshll.u32 %v16522_v48, %v1174_v4 }
 0x128   :  { %v1188_v60 = vor.u32 %v1187_v21, %v1186_v11  ;;  %v1190_v39 = vshrl.u32 %v16524_v56, %v1175_v13  ;;  %v1325_v19 = vadd.s32 536870912, %v1324_v43  ;;  %vm1193_vm3 = vcmp.lt.s32.totalorder %v1173_v59, 2 }
 0x129   :  { %v1036_v58 = vxor.u32 2147483648, %v1035_v35  ;;  %vm1195_vm4 = vcmp.lt.s32.totalorder %v1173_v59, 4  ;;  %v1200_v5 = vsel %vm1192_vm15, %v1179_v34, %v1182_v15  ;;  %v1045_v47 = vadd.s32 3, %v1041_v25 }
 0x12a   :  { %v1191_v49 = vor.u32 %v1190_v39, %v1189_v33  ;;  %v1197_v62 = vsel %vm1195_vm4, %v1185_v31, 2102212464  ;;  %v1201_v30 = vsel %vm1195_vm4, %v1188_v60, 920167782  ;;  %v1326_v18 = vshrl.u32 %v1325_v19, 30 }
 0x12b   :  { %v1037_v17 = vsel %vm954_vm1, %v1036_v58, %v1035_v35  ;;  %v1202_v28 = vsel %vm1194_vm2, %v1185_v31, %v1201_v30  ;;  %v1196_v2 = vsel %vm1192_vm15, %v1176_v20, %v1179_v34  ;;  %v1204_v54 = vsel %vm1192_vm15, %v1182_v15, %v1185_v31 }
 0x12c   :  { %v1040_v0 = vsel %vm12315_vm12, %v12056_v23, %v1037_v17  ;;  %v1203_v14 = vsel %vm1193_vm3, %v1200_v5, %v1202_v28  ;;  %v1327_v4 = vshll.u32 %v1326_v18, 30  ;;  %v1198_v1 = vsel %vm1194_vm2, %v1182_v15, %v1197_v62 }
 0x12d   :  { %11008 = vcosq.f32 %v1040_v0  ;;  %v1205_v27 = vsel %vm1195_vm4, %v1191_v49, 1326507024  ;;  %v12405_v13 = vmul.u32.u64.low %v12372_v53, %v1203_v14  ;;  %v12406_v55 = vmul.u32.u64.high %v12372_v53, %v1203_v14, %v12405_v13 }
 0x12e   :  { %11010 = vsinq.f32 %v1040_v0  ;;  %v1206_v3 = vsel %vm1194_vm2, %v1188_v60, %v1205_v27  ;;  %v12409_v32 = vsub.s32 %v1324_v43, %v1327_v4  ;;  %v1199_v6 = vsel %vm1193_vm3, %v1196_v2, %v1198_v1 }
 0x12f   :  { %v1207_v45 = vsel %vm1193_vm3, %v1204_v54, %v1206_v3  ;;  %v6029_v20 = vand.u32 3, %v1041_v25  ;;  %v1046_v36 = vand.u32 3, %v1045_v47  ;;  %v1218_v50 = vadd.s32 1, %v12406_v55 }
 0x130   :  { %v12414_v63 = vmul.u32.u64.low %v12372_v53, %v1207_v45  ;;  %v12415_v24 = vmul.u32.u64.high %v12372_v53, %v1207_v45, %v12414_v63  ;;  %v1330_v37 = vsub.s32 0, %v12409_v32  ;;  %v1475_v41 = vand.u32 2139095040, %v12369_v12 }
 0x131   :  { %vm1044_vm1 = vweird.f32 %v12056_v23  ;;  %v1215_v21 = vmul.u32 %v12372_v53, %v1199_v6  ;;  %vm1266_vm5 = vcmp.lt.s32.totalorder %v12153_v22, 0  ;;  %v1350_v59 = vsub.s32 4, %v1326_v18  ;;  %v24_v63 = vld [vmem:[%s16518_s0 + $0x60] sm:$0xff] }
 0x132   :  { %v10431_v11 = vmin.u32 %v1330_v37, %v12409_v32  ;;  %vm1217_vm6 = vc.u32 %v12415_v24, %v12405_v13  ;;  %v1476_v25 = vshrl.u32 %v1475_v41, 23  ;;  %vm6030_vm7 = vcmp.lt.s32.totalorder %v6029_v20, 2 }
 0x133   :  { %vm6031_vm8 = vcmp.eq.s32.totalorder %v6029_v20, 0  ;;  %v1472_v43 = vand.u32 2147483647, %v12369_v12  ;;  %vm1047_vm11 = vcmp.lt.s32.totalorder %v1046_v36, 2  ;;  %vm6034_vm9 = vcmp.eq.s32.totalorder %v6029_v20, 2 }
 0x134   :  { %v1332_v35 = vclz %v10431_v11  ;;  %v1219_v34 = vsel %vm1217_vm6, %v1218_v50, %v12406_v55  ;;  %v10438_v15 = vadd.s32 4294967169, %v1476_v25  ;;  %vm1048_vm10 = vcmp.eq.s32.totalorder %v1046_v36, 0 }
 0x135   :  { %vm1051_vm12 = vcmp.eq.s32.totalorder %v1046_v36, 2  ;;  %v1220_v60 = vadd.s32 %v1219_v34, %v1215_v21  ;;  %v1320_v58 = vadd.s32 %v12362_v16, %v12358_v26  ;;  %v1351_v19 = vsel %vm1266_vm5, %v1350_v59, %v1326_v18 }
 0x136   :  { %v10432_v53 = vadd.s32 4294967294, %v1332_v35  ;;  %v1482_v49 = vadd.s32 1, %v10438_v15  ;;  %v1479_v30 = vand.u32 8388607, %v1472_v43  ;;  %vm12449_vm15 = vcmp.le.f32.partialorder %v1264_v10, 0.7853982 }
 0x137   :  { %v11009_v31 = vpop.eup %11008  ;;  %v1221_v5 = vadd.s32 536870912, %v1220_v60  ;;  %v1353_v20 = vsel %vm12449_vm15, 0, %v1351_v19  ;;  %v12464_v59 = vmul.f32 %v11222_v7, %v24_v63  ;;  %v1216_v19 = vadd.s32 %v12405_v13, %v12415_v24 }
 0x138   :  { %v11011_v33 = vpop.eup %11010  ;;  %v1052_v39 = vxor.u32 2147483648, %v11009_v31  ;;  %vm10433_vm13 = vcmp.lt.s32.totalorder %v10432_v53, 0  ;;  %vm1483_vm14 = vcmp.gt.s32.totalorder %v1482_v49, 0  ;;  %v1357_v50 = vadd.s32 3, %v1353_v20 }
 0x139   :  { %v1049_v62 = vxor.u32 2147483648, %v11011_v33  ;;  %v1335_v28 = vsel %vm10433_vm13, 0, %v10432_v53  ;;  %v12440_v4 = vshrl.u32 %v1221_v5, 30  ;;  %v1484_v55 = vsel %vm1483_vm14, %v1482_v49, 0 }
 0x13a   :  { %v1053_v17 = vsel %vm1051_vm12, %v1052_v39, %v11011_v33  ;;  %v6036_v47 = vsel %vm6034_vm9, %v1052_v39, %v11011_v33  ;;  %v1336_v26 = vsub.s32 32, %v1335_v28  ;;  %v1337_v16 = vshll.u32 %v12409_v32, %v1335_v28 }
 0x13b   :  { %v1050_v0 = vsel %vm1048_vm10, %v11009_v31, %v1049_v62  ;;  %v6033_v2 = vsel %vm6031_vm8, %v11009_v31, %v1049_v62  ;;  %v1340_v54 = vsub.s32 4294967266, %v1335_v28  ;;  %v1223_v6 = vshll.u32 %v12440_v4, 30 }
 0x13c   :  { %v1054_v18 = vsel %vm1047_vm11, %v1050_v0, %v1053_v17  ;;  %v6037_v14 = vsel %vm6030_vm7, %v6033_v2, %v6036_v47  ;;  %v1338_v3 = vshrl.u32 %v1320_v58, %v1336_v26  ;;  %v1486_v37 = vand.u32 31, %v1484_v55 }
 0x13d   :  { %v1055_v1 = vsel %vm1044_vm1, nan, %v1054_v18  ;;  %v6038_v27 = vsel %vm1044_vm1, nan, %v6037_v14  ;;  %v1341_v45 = vadd.s32 127, %v1340_v54  ;;  %v12459_v41 = vsub.s32 %v1220_v60, %v1223_v6 }
 0x13e   :  { %10310 = vst [vmem:[#allocation2 + $0x60] sm:$0xff] %v1055_v1  ;;  %10120 = vrot.lane.b32.xlu0 %v6038_v27, %s11194_s22  ;;  %v1339_v23 = vor.u32 %v1338_v3, %v1337_v16  ;;  %v1480_v10 = vor.u32 8388608, %v1479_v30  ;;  %v12461_v11 = vshrl.u32 %v1484_v55, 5  ;;  %v1487_v21 = vsub.s32 32, %v1486_v37 }
 0x13f   :  { %v1342_v36 = vshll.u32 %v1341_v45, 23  ;;  %v1226_v34 = vsub.s32 0, %v12459_v41  ;;  %v1489_v15 = vshll.u32 %v16537_v40, %v1486_v37  ;;  %v12468_v31 = vand.u32 3, %v1353_v20 }
 0x140   :  { %v1346_v35 = vcvt.s32.f32 %v1339_v23  ;;  %v1490_v53 = vshrl.u32 %v16533_v42, %v1487_v21  ;;  %v1492_v60 = vshll.u32 %v16533_v42, %v1486_v37  ;;  %v1493_v33 = vshrl.u32 %v16529_v44, %v1487_v21 }
 0x141   :  { %v1343_v25 = vor.u32 4788187, %v1342_v36  ;;  %v12473_v58 = vand.u32 3, %v1357_v50  ;;  %v10427_v49 = vmin.u32 %v1226_v34, %v12459_v41  ;;  %v1246_v62 = vsub.s32 4, %v12440_v4 }
 0x142   :  { %vm1504_vm0 = vcmp.lt.s32.totalorder %v12461_v11, 1  ;;  %v12480_v5 = vshll.u32 %v1480_v10, 8  ;;  %v1371_v30 = vand.u32 2139095040, %v12464_v59  ;;  %vm1162_vm2 = vcmp.lt.s32.totalorder %v12234_v52, 0 }
 0x143   :  { %v1344_v39 = vand.u32 2147483647, %v1343_v25  ;;  %v1228_v47 = vclz %v10427_v49  ;;  %v1488_v28 = vshrl.u32 %v16537_v40, %v1487_v21  ;;  %v1491_v0 = vor.u32 %v1490_v53, %v1489_v15 }
 0x144   :  { %v1494_v2 = vor.u32 %v1493_v33, %v1492_v60  ;;  %v1495_v13 = vshll.u32 %v16529_v44, %v1486_v37  ;;  %v1496_v24 = vshrl.u32 %v16531_v46, %v1487_v21  ;;  %v1498_v26 = vshll.u32 %v16531_v46, %v1486_v37 }
 0x145   :  { %v1347_v17 = vmul.f32 %v1346_v35, %v1344_v39  ;;  %v10428_v18 = vadd.s32 4294967294, %v1228_v47  ;;  %v1499_v14 = vshrl.u32 %v16522_v48, %v1487_v21  ;;  %v1501_v54 = vshll.u32 %v16522_v48, %v1486_v37 }
 0x146   :  { %v1497_v1 = vor.u32 %v1496_v24, %v1495_v13  ;;  %v1502_v27 = vshrl.u32 %v16524_v56, %v1487_v21  ;;  %vm1505_vm3 = vcmp.lt.s32.totalorder %v12461_v11, 2  ;;  %vm1506_vm4 = vcmp.lt.s32.totalorder %v12461_v11, 3  ;;  %v27_v24 = vld [vmem:[%s16518_s0 + $0x78] sm:$0xff] }
 0x147   :  { %v1348_v16 = vxor.u32 2147483648, %v1347_v17  ;;  %vm10429_vm1 = vcmp.lt.s32.totalorder %v10428_v18, 0  ;;  %v1500_v55 = vor.u32 %v1499_v14, %v1498_v26  ;;  %vm1507_vm6 = vcmp.lt.s32.totalorder %v12461_v11, 4 }
 0x148   :  { %vm12501_vm7 = vcmp.le.f32.partialorder %v1160_v57, 0.7853982  ;;  %v1231_v63 = vsel %vm10429_vm1, 0, %v10428_v18  ;;  %v1503_v23 = vor.u32 %v1502_v27, %v1501_v54  ;;  %v1508_v20 = vsel %vm1504_vm0, %v1488_v28, %v1491_v0 }
 0x149   :  { %v1349_v3 = vsel %vm1266_vm5, %v1348_v16, %v1347_v17  ;;  %v1232_v37 = vsub.s32 32, %v1231_v63  ;;  %v1233_v36 = vshll.u32 %v12459_v41, %v1231_v63  ;;  %v1236_v50 = vsub.s32 4294967266, %v1231_v63 }
 0x14a   :  { %v1352_v45 = vsel %vm12449_vm15, %v12153_v22, %v1349_v3  ;;  %v1509_v32 = vsel %vm1507_vm6, %v1497_v1, 2102212464  ;;  %v1512_v57 = vsel %vm1504_vm0, %v1491_v0, %v1494_v2  ;;  %v1513_v10 = vsel %vm1507_vm6, %v1500_v55, 920167782 }
 0x14b   :  { %11012 = vcosq.f32 %v1352_v45  ;;  %v1234_v21 = vshrl.u32 %v1216_v19, %v1232_v37  ;;  %v1237_v25 = vadd.s32 127, %v1236_v50  ;;  %v1510_v35 = vsel %vm1506_vm4, %v1494_v2, %v1509_v32 }
 0x14c   :  { %11014 = vsinq.f32 %v1352_v45  ;;  %v1514_v34 = vsel %vm1506_vm4, %v1497_v1, %v1513_v10  ;;  %v1247_v41 = vsel %vm1162_vm2, %v1246_v62, %v12440_v4  ;;  %v1516_v53 = vsel %vm1504_vm0, %v1494_v2, %v1497_v1 }
 0x14d   :  { %v1515_v15 = vsel %vm1505_vm3, %v1512_v57, %v1514_v34  ;;  %v1517_v60 = vsel %vm1507_vm6, %v1503_v23, 1326507024  ;;  %vm6339_vm5 = vcmp.lt.s32.totalorder %v12468_v31, 2  ;;  %v1235_v33 = vor.u32 %v1234_v21, %v1233_v36 }
 0x14e   :  { %v1238_v39 = vshll.u32 %v1237_v25, 23  ;;  %v1511_v19 = vsel %vm1505_vm3, %v1508_v20, %v1510_v35  ;;  %v1518_v49 = vsel %vm1506_vm4, %v1500_v55, %v1517_v60  ;;  %vm1356_vm8 = vweird.f32 %v12153_v22 }
 0x14f   :  { %v1519_v4 = vsel %vm1505_vm3, %v1516_v53, %v1518_v49  ;;  %v12536_v62 = vmul.u32.u64.low %v12480_v5, %v1515_v15  ;;  %v12537_v17 = vmul.u32.u64.high %v12480_v5, %v1515_v15, %v12536_v62  ;;  %v1372_v47 = vshrl.u32 %v1371_v30, 23 }
 0x150   :  { %v1239_v28 = vor.u32 4788187, %v1238_v39  ;;  %v1242_v0 = vcvt.s32.f32 %v1235_v33  ;;  %v12541_v2 = vmul.u32.u64.low %v12480_v5, %v1519_v4  ;;  %v12542_v13 = vmul.u32.u64.high %v12480_v5, %v1519_v4, %v12541_v2 }
 0x151   :  { %vm1359_vm11 = vcmp.lt.s32.totalorder %v12473_v58, 2  ;;  %vm6340_vm9 = vcmp.eq.s32.totalorder %v12468_v31, 0  ;;  %vm6343_vm10 = vcmp.eq.s32.totalorder %v12468_v31, 2  ;;  %v10434_v11 = vadd.s32 4294967169, %v1372_v47 }
 0x152   :  { %vm1360_vm12 = vcmp.eq.s32.totalorder %v12473_v58, 0  ;;  %v1240_v30 = vand.u32 2147483647, %v1239_v28  ;;  %v1249_v26 = vsel %vm12501_vm7, 0, %v1247_v41  ;;  %v1527_v16 = vmul.u32 %v12480_v5, %v1511_v19 }
 0x153   :  { %vm1363_vm13 = vcmp.eq.s32.totalorder %v12473_v58, 2  ;;  %v1530_v18 = vadd.s32 1, %v12537_v17  ;;  %v1368_v14 = vand.u32 2147483647, %v12464_v59  ;;  %v1378_v54 = vadd.s32 1, %v10434_v11 }
 0x154   :  { %v1243_v27 = vmul.f32 %v1242_v0, %v1240_v30  ;;  %v1253_v3 = vadd.s32 3, %v1249_v26  ;;  %vm1529_vm14 = vc.u32 %v12542_v13, %v12536_v62  ;;  %v12560_v55 = vmul.f32 %v11227_v9, %v27_v24 }
 0x155   :  { %v11013_v1 = vpop.eup %11012  ;;  %v12562_v23 = vand.u32 3, %v1249_v26  ;;  %v1531_v5 = vsel %vm1529_vm14, %v1530_v18, %v12537_v17  ;;  %vm1379_vm15 = vcmp.gt.s32.totalorder %v1378_v54, 0  ;;  %v1375_v10 = vand.u32 8388607, %v1368_v14 }
 0x156   :  { %v11015_v45 = vpop.eup %11014  ;;  %v1364_v63 = vxor.u32 2147483648, %v11013_v1  ;;  %v1244_v37 = vxor.u32 2147483648, %v1243_v27  ;;  %v1532_v36 = vadd.s32 %v1531_v5, %v1527_v16  ;;  %v1380_v50 = vsel %vm1379_vm15, %v1378_v54, 0 }
 0x157   :  { %v1361_v20 = vxor.u32 2147483648, %v11015_v45  ;;  %v1382_v21 = vand.u32 31, %v1380_v50  ;;  %v1254_v31 = vand.u32 3, %v1253_v3  ;;  %vm6240_vm0 = vcmp.eq.s32.totalorder %v12562_v23, 2 }
 0x158   :  { %v1365_v32 = vsel %vm1363_vm13, %v1364_v63, %v11015_v45  ;;  %v6345_v57 = vsel %vm6343_vm10, %v1364_v63, %v11015_v45  ;;  %v1245_v34 = vsel %vm1162_vm2, %v1244_v37, %v1243_v27  ;;  %v1533_v41 = vadd.s32 536870912, %v1532_v36 }
 0x159   :  { %v1362_v25 = vsel %vm1360_vm12, %v11013_v1, %v1361_v20  ;;  %v6342_v35 = vsel %vm6340_vm9, %v11013_v1, %v1361_v20  ;;  %v1248_v60 = vsel %vm12501_vm7, %v12234_v52, %v1245_v34  ;;  %v1383_v33 = vsub.s32 32, %v1382_v21 }
 0x15a   :  { %v1366_v15 = vsel %vm1359_vm11, %v1362_v25, %v1365_v32  ;;  %v6346_v53 = vsel %vm6339_vm5, %v6342_v35, %v6345_v57  ;;  %11016 = vcosq.f32 %v1248_v60  ;;  %v12590_v49 = vshrl.u32 %v1533_v41, 30 }
 0x15b   :  { %v12586_v39 = vsel %vm1356_vm8, nan, %v1366_v15  ;;  %v6347_v19 = vsel %vm1356_vm8, nan, %v6346_v53  ;;  %11018 = vsinq.f32 %v1248_v60  ;;  %v1385_v58 = vshll.u32 %v16537_v40, %v1382_v21 }
 0x15c   :  { %10126 = vrot.lane.b32.xlu1 %v6347_v19, %s11194_s22  ;;  %v1535_v6 = vshll.u32 %v12590_v49, 30  ;;  %v1386_v4 = vshrl.u32 %v16533_v42, %v1383_v33  ;;  %v1388_v17 = vshll.u32 %v16533_v42, %v1382_v21  ;;  %v1389_v22 = vshrl.u32 %v16529_v44, %v1383_v33 }
 0x15d   :  { %vm6237_vm2 = vcmp.eq.s32.totalorder %v12562_v23, 0  ;;  %v12600_v47 = vshrl.u32 %v1380_v50, 5  ;;  %v1391_v28 = vshll.u32 %v16529_v44, %v1382_v21  ;;  %v1392_v0 = vshrl.u32 %v16531_v46, %v1383_v33 }
 0x15e   :  { %v1394_v2 = vshll.u32 %v16531_v46, %v1382_v21  ;;  %vm6236_vm3 = vcmp.lt.s32.totalorder %v12562_v23, 2  ;;  %v12606_v11 = vsub.s32 %v1532_v36, %v1535_v6  ;;  %v1376_v24 = vor.u32 8388608, %v1375_v10 }
 0x15f   :  { %v1395_v30 = vshrl.u32 %v16522_v48, %v1383_v33  ;;  %v1683_v26 = vand.u32 2139095040, %v12560_v55  ;;  %vm1252_vm4 = vweird.f32 %v12234_v52  ;;  %vm1255_vm1 = vcmp.lt.s32.totalorder %v1254_v31, 2 }
 0x160   :  { %vm1256_vm6 = vcmp.eq.s32.totalorder %v1254_v31, 0  ;;  %v1397_v16 = vshll.u32 %v16522_v48, %v1382_v21  ;;  %v1398_v18 = vshrl.u32 %v16524_v56, %v1383_v33  ;;  %v1538_v54 = vsub.s32 0, %v12606_v11 }
 0x161   :  { %v1384_v1 = vshrl.u32 %v16537_v40, %v1383_v33  ;;  %v1387_v27 = vor.u32 %v1386_v4, %v1385_v58  ;;  %v1390_v3 = vor.u32 %v1389_v22, %v1388_v17  ;;  %vm1259_vm7 = vcmp.eq.s32.totalorder %v1254_v31, 2 }
 0x162   :  { %v1393_v45 = vor.u32 %v1392_v0, %v1391_v28  ;;  %v1396_v63 = vor.u32 %v1395_v30, %v1394_v2  ;;  %vm1400_vm5 = vcmp.lt.s32.totalorder %v12600_v47, 1  ;;  %v1528_v5 = vadd.s32 %v12536_v62, %v12542_v13 }
 0x163   :  { %v10439_v20 = vmin.u32 %v1538_v54, %v12606_v11  ;;  %v12619_v37 = vshll.u32 %v1376_v24, 8  ;;  %v1684_v36 = vshrl.u32 %v1683_v26, 23  ;;  %v1558_v50 = vsub.s32 4, %v12590_v49 }
 0x164   :  { %v1399_v32 = vor.u32 %v1398_v18, %v1397_v16  ;;  %vm1402_vm8 = vcmp.lt.s32.totalorder %v12600_v47, 3  ;;  %vm1403_vm11 = vcmp.lt.s32.totalorder %v12600_v47, 4  ;;  %v11017_v57 = vpop.eup %11016  ;;  %vm1401_vm9 = vcmp.lt.s32.totalorder %v12600_v47, 2 }
 0x165   :  { %v1540_v10 = vclz %v10439_v20  ;;  %v1404_v21 = vsel %vm1400_vm5, %v1384_v1, %v1387_v27  ;;  %v1408_v62 = vsel %vm1400_vm5, %v1387_v27, %v1390_v3  ;;  %v11019_v13 = vpop.eup %11018  ;;  %v1260_v25 = vxor.u32 2147483648, %v11017_v57 }
 0x166   :  { %v1405_v35 = vsel %vm1403_vm11, %v1393_v45, 2102212464  ;;  %v1409_v34 = vsel %vm1403_vm11, %v1396_v63, 920167782  ;;  %v1412_v41 = vsel %vm1400_vm5, %v1390_v3, %v1393_v45  ;;  %v1257_v15 = vxor.u32 2147483648, %v11019_v13 }
 0x167   :  { %v10440_v53 = vadd.s32 4294967294, %v1540_v10  ;;  %v1406_v60 = vsel %vm1402_vm8, %v1390_v3, %v1405_v35  ;;  %v1410_v33 = vsel %vm1402_vm8, %v1393_v45, %v1409_v34  ;;  %v1261_v19 = vsel %vm1259_vm7, %v1260_v25, %v11019_v13 }
 0x168   :  { %v6242_v58 = vsel %vm6240_vm0, %v1260_v25, %v11019_v13  ;;  %v1407_v6 = vsel %vm1401_vm9, %v1404_v21, %v1406_v60  ;;  %v1411_v4 = vsel %vm1401_vm9, %v1408_v62, %v1410_v33  ;;  %v1258_v17 = vsel %vm1256_vm6, %v11017_v57, %v1257_v15 }
 0x169   :  { %v6239_v22 = vsel %vm6237_vm2, %v11017_v57, %v1257_v15  ;;  %vm10441_vm10 = vcmp.lt.s32.totalorder %v10440_v53, 0  ;;  %v1413_v28 = vsel %vm1403_vm11, %v1399_v32, 1326507024  ;;  %v1262_v0 = vsel %vm1255_vm1, %v1258_v17, %v1261_v19 }
 0x16a   :  { %v6243_v2 = vsel %vm6236_vm3, %v6239_v22, %v6242_v58  ;;  %v1543_v24 = vsel %vm10441_vm10, 0, %v10440_v53  ;;  %v1414_v30 = vsel %vm1402_vm8, %v1396_v63, %v1413_v28  ;;  %v1263_v26 = vsel %vm1252_vm4, nan, %v1262_v0 }
 0x16b   :  { %v6244_v16 = vsel %vm1252_vm4, nan, %v6243_v2  ;;  %v1544_v18 = vsub.s32 32, %v1543_v24  ;;  %v1545_v54 = vshll.u32 %v12606_v11, %v1543_v24  ;;  %10313 = vst [vmem:[#allocation2 + $0x78] sm:$0xff] %v1263_v26  ;;  %v1548_v31 = vsub.s32 4294967266, %v1543_v24 }
 0x16c   :  { %10124 = vrot.lane.b32.xlu0 %v6244_v16, %s11194_s22  ;;  %v1415_v23 = vsel %vm1401_vm9, %v1412_v41, %v1414_v30  ;;  %v12665_v1 = vmul.u32.u64.low %v12619_v37, %v1411_v4  ;;  %v12666_v27 = vmul.u32.u64.high %v12619_v37, %v1411_v4, %v12665_v1  ;;  %v10446_v20 = vadd.s32 4294967169, %v1684_v36 }
 0x16d   :  { %v1546_v3 = vshrl.u32 %v1528_v5, %v1544_v18  ;;  %v12670_v45 = vmul.u32.u64.low %v12619_v37, %v1415_v23  ;;  %v12671_v52 = vmul.u32.u64.high %v12619_v37, %v1415_v23, %v12670_v45  ;;  %v1549_v63 = vadd.s32 127, %v1548_v31  ;;  %v26_v5 = vld [vmem:[%s16518_s0 + $0x70] sm:$0xff] }
 0x16e   :  { %vm1474_vm12 = vcmp.lt.s32.totalorder %v12369_v12, 0  ;;  %v1423_v32 = vmul.u32 %v12619_v37, %v1407_v6  ;;  %v1426_v10 = vadd.s32 1, %v12666_v27  ;;  %v1690_v21 = vadd.s32 1, %v10446_v20 }
 0x16f   :  { %v1547_v11 = vor.u32 %v1546_v3, %v1545_v54  ;;  %v1550_v57 = vshll.u32 %v1549_v63, 23  ;;  %v1559_v47 = vsel %vm1474_vm12, %v1558_v50, %v12590_v49  ;;  %vm12684_vm13 = vcmp.le.f32.partialorder %v1472_v43, 0.7853982 }
 0x170   :  { %vm1425_vm14 = vc.u32 %v12671_v52, %v12665_v1  ;;  %v1680_v37 = vand.u32 2147483647, %v12560_v55  ;;  %vm1691_vm15 = vcmp.gt.s32.totalorder %v1690_v21, 0  ;;  %v1561_v13 = vsel %vm12684_vm13, 0, %v1559_v47 }
 0x171   :  { %v1551_v62 = vor.u32 4788187, %v1550_v57  ;;  %v1554_v49 = vcvt.s32.f32 %v1547_v11  ;;  %v1427_v50 = vsel %vm1425_vm14, %v1426_v10, %v12666_v27  ;;  %v1692_v35 = vsel %vm1691_vm15, %v1690_v21, 0 }
 0x172   :  { %v1428_v25 = vadd.s32 %v1427_v50, %v1423_v32  ;;  %v12695_v43 = vmul.f32 %v11222_v7, %v26_v5  ;;  %v1694_v41 = vand.u32 31, %v1692_v35  ;;  %v1565_v15 = vadd.s32 3, %v1561_v13 }
 0x173   :  { %v1552_v34 = vand.u32 2147483647, %v1551_v62  ;;  %v12697_v33 = vand.u32 3, %v1561_v13  ;;  %v1687_v19 = vand.u32 8388607, %v1680_v37  ;;  %v12703_v4 = vshrl.u32 %v1692_v35, 5 }
 0x174   :  { %v1429_v53 = vadd.s32 536870912, %v1428_v25  ;;  %v1695_v58 = vsub.s32 32, %v1694_v41  ;;  %v1697_v17 = vshll.u32 %v16537_v40, %v1694_v41  ;;  %v1579_v22 = vand.u32 2139095040, %v12695_v43 }
 0x175   :  { %v1555_v60 = vmul.f32 %v1554_v49, %v1552_v34  ;;  %v1700_v0 = vshll.u32 %v16533_v42, %v1694_v41  ;;  %v1703_v2 = vshll.u32 %v16529_v44, %v1694_v41  ;;  %v1706_v24 = vshll.u32 %v16531_v46, %v1694_v41 }
 0x176   :  { %v12701_v6 = vshrl.u32 %v1429_v53, 30  ;;  %v1698_v26 = vshrl.u32 %v16533_v42, %v1695_v58  ;;  %v1701_v16 = vshrl.u32 %v16529_v44, %v1695_v58  ;;  %v1709_v18 = vshll.u32 %v16522_v48, %v1694_v41 }
 0x177   :  { %v1556_v28 = vxor.u32 2147483648, %v1555_v60  ;;  %v1704_v31 = vshrl.u32 %v16531_v46, %v1695_v58  ;;  %v1707_v23 = vshrl.u32 %v16522_v48, %v1695_v58  ;;  %v1710_v27 = vshrl.u32 %v16524_v56, %v1695_v58 }
 0x178   :  { %v1431_v30 = vshll.u32 %v12701_v6, 30  ;;  %v12722_v45 = vand.u32 3, %v1565_v15  ;;  %v1688_v20 = vor.u32 8388608, %v1687_v19  ;;  %v1696_v11 = vshrl.u32 %v16537_v40, %v1695_v58 }
 0x179   :  { %v1557_v54 = vsel %vm1474_vm12, %v1556_v28, %v1555_v60  ;;  %v1580_v32 = vshrl.u32 %v1579_v22, 23  ;;  %v1699_v47 = vor.u32 %v1698_v26, %v1697_v17  ;;  %v1702_v10 = vor.u32 %v1701_v16, %v1700_v0 }
 0x17a   :  { %v1560_v3 = vsel %vm12684_vm13, %v12369_v12, %v1557_v54  ;;  %v12724_v63 = vsub.s32 %v1428_v25, %v1431_v30  ;;  %vm6549_vm0 = vcmp.eq.s32.totalorder %v12697_v33, 2  ;;  %v1705_v21 = vor.u32 %v1704_v31, %v1703_v2 }
 0x17b   :  { %11020 = vcosq.f32 %v1560_v3  ;;  %v1708_v5 = vor.u32 %v1707_v23, %v1706_v24  ;;  %v1711_v36 = vor.u32 %v1710_v27, %v1709_v18  ;;  %vm1712_vm2 = vcmp.lt.s32.totalorder %v12703_v4, 1 }
 0x17c   :  { %11022 = vsinq.f32 %v1560_v3  ;;  %v1434_v57 = vsub.s32 0, %v12724_v63  ;;  %vm1568_vm3 = vcmp.eq.s32.totalorder %v12722_v45, 0  ;;  %vm1571_vm4 = vcmp.eq.s32.totalorder %v12722_v45, 2 }
 0x17d   :  { %vm6546_vm1 = vcmp.eq.s32.totalorder %v12697_v33, 0  ;;  %vm1370_vm6 = vcmp.lt.s32.totalorder %v12464_v59, 0  ;;  %vm1715_vm7 = vcmp.lt.s32.totalorder %v12703_v4, 4  ;;  %v1576_v49 = vand.u32 2147483647, %v12695_v43 }
 0x17e   :  { %v10435_v62 = vmin.u32 %v1434_v57, %v12724_v63  ;;  %vm1567_vm5 = vcmp.lt.s32.totalorder %v12722_v45, 2  ;;  %vm6545_vm8 = vcmp.lt.s32.totalorder %v12697_v33, 2  ;;  %vm1714_vm11 = vcmp.lt.s32.totalorder %v12703_v4, 3 }
 0x17f   :  { %v1717_v50 = vsel %vm1715_vm7, %v1705_v21, 2102212464  ;;  %v12742_v13 = vshll.u32 %v1688_v20, 8  ;;  %v10442_v25 = vadd.s32 4294967169, %v1580_v32  ;;  %vm1564_vm9 = vweird.f32 %v12369_v12 }
 0x180   :  { %v1436_v35 = vclz %v10435_v62  ;;  %vm1713_vm10 = vcmp.lt.s32.totalorder %v12703_v4, 2  ;;  %v1716_v34 = vsel %vm1712_vm2, %v1696_v11, %v1699_v47  ;;  %v1720_v41 = vsel %vm1712_vm2, %v1699_v47, %v1702_v10 }
 0x181   :  { %v1718_v15 = vsel %vm1714_vm11, %v1702_v10, %v1717_v50  ;;  %v1721_v53 = vsel %vm1715_vm7, %v1708_v5, 920167782  ;;  %v1724_v60 = vsel %vm1712_vm2, %v1702_v10, %v1705_v21  ;;  %v1725_v19 = vsel %vm1715_vm7, %v1711_v36, 1326507024 }
 0x182   :  { %v1424_v58 = vadd.s32 %v12665_v1, %v12671_v52  ;;  %v10436_v17 = vadd.s32 4294967294, %v1436_v35  ;;  %v1722_v22 = vsel %vm1714_vm11, %v1705_v21, %v1721_v53  ;;  %v1726_v28 = vsel %vm1714_vm11, %v1708_v5, %v1725_v19 }
 0x183   :  { %v1454_v0 = vsub.s32 4, %v12701_v6  ;;  %v1723_v2 = vsel %vm1713_vm10, %v1720_v41, %v1722_v22  ;;  %v1727_v24 = vsel %vm1713_vm10, %v1724_v60, %v1726_v28  ;;  %v1586_v30 = vadd.s32 1, %v10442_v25 }
 0x184   :  { %vm10437_vm12 = vcmp.lt.s32.totalorder %v10436_v17, 0  ;;  %v1719_v1 = vsel %vm1713_vm10, %v1716_v34, %v1718_v15  ;;  %v12772_v52 = vmul.u32.u64.low %v12742_v13, %v1727_v24  ;;  %v12773_v26 = vmul.u32.u64.high %v12742_v13, %v1727_v24, %v12772_v52 }
 0x185   :  { %v11021_v16 = vpop.eup %11020  ;;  %v1439_v18 = vsel %vm10437_vm12, 0, %v10436_v17  ;;  %v12776_v54 = vmul.u32.u64.low %v12742_v13, %v1723_v2  ;;  %v12777_v31 = vmul.u32.u64.high %v12742_v13, %v1723_v2, %v12776_v54  ;;  %vm1587_vm13 = vcmp.gt.s32.totalorder %v1586_v30, 0 }
 0x186   :  { %v11023_v23 = vpop.eup %11022  ;;  %v1572_v27 = vxor.u32 2147483648, %v11021_v16  ;;  %v1440_v3 = vsub.s32 32, %v1439_v18  ;;  %v1441_v20 = vshll.u32 %v12724_v63, %v1439_v18  ;;  %v1444_v11 = vsub.s32 4294967266, %v1439_v18 }
 0x187   :  { %v1569_v4 = vxor.u32 2147483648, %v11023_v23  ;;  %v1455_v32 = vsel %vm1370_vm6, %v1454_v0, %v12701_v6  ;;  %v1735_v57 = vmul.u32 %v12742_v13, %v1719_v1  ;;  %v1583_v47 = vand.u32 8388607, %v1576_v49 }
 0x188   :  { %v1573_v10 = vsel %vm1571_vm4, %v1572_v27, %v11023_v23  ;;  %v6551_v21 = vsel %vm6549_vm0, %v1572_v27, %v11023_v23  ;;  %v1442_v5 = vshrl.u32 %v1424_v58, %v1440_v3  ;;  %v1445_v36 = vadd.s32 127, %v1444_v11 }
 0x189   :  { %v1570_v63 = vsel %vm1568_vm3, %v11021_v16, %v1569_v4  ;;  %v6548_v62 = vsel %vm6546_vm1, %v11021_v16, %v1569_v4  ;;  %vm1737_vm14 = vc.u32 %v12773_v26, %v12776_v54  ;;  %v1588_v6 = vsel %vm1587_vm13, %v1586_v30, 0 }
 0x18a   :  { %v1574_v50 = vsel %vm1567_vm5, %v1570_v63, %v1573_v10  ;;  %v6552_v13 = vsel %vm6545_vm8, %v6548_v62, %v6551_v21  ;;  %v1443_v25 = vor.u32 %v1442_v5, %v1441_v20  ;;  %v1446_v35 = vshll.u32 %v1445_v36, 23  ;;  %v29_v36 = vld [vmem:[%s16518_s0 + $0x88] sm:$0xff] }
 0x18b   :  { %v12804_v34 = vsel %vm1564_vm9, nan, %v1574_v50  ;;  %v6553_v41 = vsel %vm1564_vm9, nan, %v6552_v13  ;;  %v1738_v15 = vadd.s32 1, %v12777_v31  ;;  %v12809_v53 = vshrl.u32 %v1588_v6, 5 }
 0x18c   :  { %16573 = vst [vmem:[#allocation5_spill] sm:$0xff] %v12804_v34  ;;  %10130 = vrot.lane.b32.xlu1 %v6553_v41, %s11194_s22  ;;  %vm12814_vm15 = vcmp.le.f32.partialorder %v1368_v14, 0.7853982  ;;  %v1447_v45 = vor.u32 4788187, %v1446_v35  ;;  %v1450_v60 = vcvt.s32.f32 %v1443_v25  ;;  %v1590_v19 = vand.u32 31, %v1588_v6 }
 0x18d   :  { %v1457_v58 = vsel %vm12814_vm15, 0, %v1455_v32  ;;  %v1739_v12 = vsel %vm1737_vm14, %v1738_v15, %v12777_v31  ;;  %v1584_v17 = vor.u32 8388608, %v1583_v47  ;;  %vm1608_vm0 = vcmp.lt.s32.totalorder %v12809_v53, 1 }
 0x18e   :  { %v1448_v22 = vand.u32 2147483647, %v1447_v45  ;;  %v1740_v28 = vadd.s32 %v1739_v12, %v1735_v57  ;;  %v1591_v0 = vsub.s32 32, %v1590_v19  ;;  %v1593_v14 = vshll.u32 %v16537_v40, %v1590_v19 }
 0x18f   :  { %v1596_v2 = vshll.u32 %v16533_v42, %v1590_v19  ;;  %v1599_v24 = vshll.u32 %v16529_v44, %v1590_v19  ;;  %v1602_v30 = vshll.u32 %v16531_v46, %v1590_v19  ;;  %v1605_v18 = vshll.u32 %v16522_v48, %v1590_v19 }
 0x190   :  { %v1451_v1 = vmul.f32 %v1450_v60, %v1448_v22  ;;  %v1741_v52 = vadd.s32 536870912, %v1740_v28  ;;  %v1594_v16 = vshrl.u32 %v16533_v42, %v1591_v0  ;;  %v1597_v31 = vshrl.u32 %v16529_v44, %v1591_v0 }
 0x191   :  { %v1600_v23 = vshrl.u32 %v16531_v46, %v1591_v0  ;;  %v1603_v27 = vshrl.u32 %v16522_v48, %v1591_v0  ;;  %v1606_v3 = vshrl.u32 %v16524_v56, %v1591_v0  ;;  %vm1611_vm2 = vcmp.lt.s32.totalorder %v12809_v53, 4 }
 0x192   :  { %v1452_v20 = vxor.u32 2147483648, %v1451_v1  ;;  %v1742_v11 = vshrl.u32 %v1741_v52, 30  ;;  %v1595_v4 = vor.u32 %v1594_v16, %v1593_v14  ;;  %v1598_v32 = vor.u32 %v1597_v31, %v1596_v2 }
 0x193   :  { %v1601_v57 = vor.u32 %v1600_v23, %v1599_v24  ;;  %v1604_v47 = vor.u32 %v1603_v27, %v1602_v30  ;;  %v12836_v10 = vshll.u32 %v1584_v17, 8  ;;  %vm1609_vm3 = vcmp.lt.s32.totalorder %v12809_v53, 2 }
 0x194   :  { %v1453_v21 = vsel %vm1370_vm6, %v1452_v20, %v1451_v1  ;;  %v1743_v5 = vshll.u32 %v1742_v11, 30  ;;  %vm1610_vm4 = vcmp.lt.s32.totalorder %v12809_v53, 3  ;;  %v1607_v62 = vor.u32 %v1606_v3, %v1605_v18 }
 0x195   :  { %v1456_v63 = vsel %vm12814_vm15, %v12464_v59, %v1453_v21  ;;  %v1616_v6 = vsel %vm1608_vm0, %v1595_v4, %v1598_v32  ;;  %v1617_v50 = vsel %vm1611_vm2, %v1604_v47, 920167782  ;;  %v1461_v25 = vadd.s32 3, %v1457_v58 }
 0x196   :  { %11024 = vcosq.f32 %v1456_v63  ;;  %v12852_v13 = vsub.s32 %v1740_v28, %v1743_v5  ;;  %v1618_v35 = vsel %vm1610_vm4, %v1601_v57, %v1617_v50  ;;  %v12857_v41 = vmul.f32 %v11227_v9, %v29_v36 }
 0x197   :  { %11026 = vsinq.f32 %v1456_v63  ;;  %v6441_v15 = vand.u32 3, %v1457_v58  ;;  %v1619_v45 = vsel %vm1609_vm3, %v1616_v6, %v1618_v35  ;;  %v1592_v60 = vshrl.u32 %v16537_v40, %v1591_v0 }
 0x198   :  { %v1746_v33 = vsub.s32 0, %v12852_v13  ;;  %v1621_v19 = vsel %vm1611_vm2, %v1607_v62, 1326507024  ;;  %v12866_v12 = vmul.u32.u64.low %v12836_v10, %v1619_v45  ;;  %v12867_v17 = vmul.u32.u64.high %v12836_v10, %v1619_v45, %v12866_v12 }
 0x199   :  { %v1613_v58 = vsel %vm1611_vm2, %v1601_v57, 2102212464  ;;  %v1620_v28 = vsel %vm1608_vm0, %v1598_v32, %v1601_v57  ;;  %vm1460_vm1 = vweird.f32 %v12464_v59  ;;  %v1462_v14 = vand.u32 3, %v1461_v25 }
 0x19a   :  { %v10447_v22 = vmin.u32 %v1746_v33, %v12852_v13  ;;  %vm1682_vm6 = vcmp.lt.s32.totalorder %v12560_v55, 0  ;;  %v1622_v0 = vsel %vm1610_vm4, %v1604_v47, %v1621_v19  ;;  %v1891_v2 = vand.u32 2139095040, %v12857_v41 }
 0x19b   :  { %vm6442_vm7 = vcmp.lt.s32.totalorder %v6441_v15, 2  ;;  %vm6443_vm5 = vcmp.eq.s32.totalorder %v6441_v15, 0  ;;  %v1766_v30 = vsub.s32 4, %v1742_v11  ;;  %v1612_v1 = vsel %vm1608_vm0, %v1592_v60, %v1595_v4 }
 0x19c   :  { %v1748_v24 = vclz %v10447_v22  ;;  %v1614_v52 = vsel %vm1610_vm4, %v1598_v32, %v1613_v58  ;;  %v1623_v16 = vsel %vm1609_vm3, %v1620_v28, %v1622_v0  ;;  %v1892_v18 = vshrl.u32 %v1891_v2, 23 }
 0x19d   :  { %vm6446_vm8 = vcmp.eq.s32.totalorder %v6441_v15, 2  ;;  %v12887_v23 = vmul.u32.u64.low %v12836_v10, %v1623_v16  ;;  %v12888_v27 = vmul.u32.u64.high %v12836_v10, %v1623_v16, %v12887_v23  ;;  %vm1463_vm11 = vcmp.lt.s32.totalorder %v1462_v14, 2 }
 0x19e   :  { %v10448_v31 = vadd.s32 4294967294, %v1748_v24  ;;  %vm1464_vm9 = vcmp.eq.s32.totalorder %v1462_v14, 0  ;;  %vm1467_vm10 = vcmp.eq.s32.totalorder %v1462_v14, 2  ;;  %v10454_v3 = vadd.s32 4294967169, %v1892_v18 }
 0x19f   :  { %v1736_v4 = vadd.s32 %v12776_v54, %v12773_v26  ;;  %v1767_v32 = vsel %vm1682_vm6, %v1766_v30, %v1742_v11  ;;  %v1615_v57 = vsel %vm1609_vm3, %v1612_v1, %v1614_v52  ;;  %v1634_v36 = vadd.s32 1, %v12867_v17 }
 0x1a0   :  { %v11025_v20 = vpop.eup %11024  ;;  %vm10449_vm12 = vcmp.lt.s32.totalorder %v10448_v31, 0  ;;  %v1898_v63 = vadd.s32 1, %v10454_v3  ;;  %v1631_v11 = vmul.u32 %v12836_v10, %v1615_v57  ;;  %vm1633_vm13 = vc.u32 %v12888_v27, %v12866_v12 }
 0x1a1   :  { %v11027_v47 = vpop.eup %11026  ;;  %v1468_v21 = vxor.u32 2147483648, %v11025_v20  ;;  %v1751_v5 = vsel %vm10449_vm12, 0, %v10448_v31  ;;  %v1635_v22 = vsel %vm1633_vm13, %v1634_v36, %v12867_v17  ;;  %v1888_v14 = vand.u32 2147483647, %v12857_v41 }
 0x1a2   :  { %v1465_v62 = vxor.u32 2147483648, %v11027_v47  ;;  %v1752_v6 = vsub.s32 32, %v1751_v5  ;;  %v1753_v50 = vshll.u32 %v12852_v13, %v1751_v5  ;;  %v1756_v25 = vsub.s32 4294967266, %v1751_v5  ;;  %v28_v13 = vld [vmem:[%s16518_s0 + $0x80] sm:$0xff] }
 0x1a3   :  { %v1469_v26 = vsel %vm1467_vm10, %v1468_v21, %v11027_v47  ;;  %v6448_v54 = vsel %vm6446_vm8, %v1468_v21, %v11027_v47  ;;  %vm1899_vm14 = vcmp.gt.s32.totalorder %v1898_v63, 0  ;;  %v1636_v2 = vadd.s32 %v1635_v22, %v1631_v11 }
 0x1a4   :  { %v1466_v53 = vsel %vm1464_vm9, %v11025_v20, %v1465_v62  ;;  %v6445_v35 = vsel %vm6443_vm5, %v11025_v20, %v1465_v62  ;;  %v1754_v33 = vshrl.u32 %v1736_v4, %v1752_v6  ;;  %v1757_v45 = vadd.s32 127, %v1756_v25 }
 0x1a5   :  { %v1470_v60 = vsel %vm1463_vm11, %v1466_v53, %v1469_v26  ;;  %v6449_v19 = vsel %vm6442_vm7, %v6445_v35, %v6448_v54  ;;  %v1900_v24 = vsel %vm1899_vm14, %v1898_v63, 0  ;;  %v12918_v15 = vmul.f32 %v11222_v7, %v28_v13 }
 0x1a6   :  { %v1471_v10 = vsel %vm1460_vm1, nan, %v1470_v60  ;;  %v6450_v58 = vsel %vm1460_vm1, nan, %v6449_v19  ;;  %v1755_v28 = vor.u32 %v1754_v33, %v1753_v50  ;;  %v1758_v0 = vshll.u32 %v1757_v45, 23 }
 0x1a7   :  { %10316 = vst [vmem:[#allocation2 + $0x90] sm:$0xff] %v1471_v10  ;;  %10128 = vrot.lane.b32.xlu0 %v6450_v58, %s11194_s22  ;;  %vm12922_vm15 = vcmp.le.f32.partialorder %v1680_v37, 0.7853982  ;;  %v1902_v1 = vand.u32 31, %v1900_v24  ;;  %v1637_v16 = vadd.s32 536870912, %v1636_v2  ;;  %v1787_v4 = vand.u32 2139095040, %v12918_v15 }
 0x1a8   :  { %v1759_v59 = vor.u32 4788187, %v1758_v0  ;;  %v1762_v30 = vcvt.s32.f32 %v1755_v28  ;;  %v1769_v52 = vsel %vm12922_vm15, 0, %v1767_v32  ;;  %v1895_v20 = vand.u32 8388607, %v1888_v14 }
 0x1a9   :  { %v1773_v31 = vadd.s32 3, %v1769_v52  ;;  %v1903_v23 = vsub.s32 32, %v1902_v1  ;;  %v12928_v3 = vshrl.u32 %v1637_v16, 30  ;;  %v1905_v37 = vshll.u32 %v16537_v40, %v1902_v1 }
 0x1aa   :  { %v1760_v18 = vand.u32 2147483647, %v1759_v59  ;;  %v1908_v47 = vshll.u32 %v16533_v42, %v1902_v1  ;;  %v1911_v21 = vshll.u32 %v16529_v44, %v1902_v1  ;;  %v1914_v32 = vshll.u32 %v16531_v46, %v1902_v1 }
 0x1ab   :  { %v1639_v5 = vshll.u32 %v12928_v3, 30  ;;  %v1906_v36 = vshrl.u32 %v16533_v42, %v1903_v23  ;;  %v1909_v63 = vshrl.u32 %v16529_v44, %v1903_v23  ;;  %v1917_v62 = vshll.u32 %v16522_v48, %v1902_v1 }
 0x1ac   :  { %v1763_v57 = vmul.f32 %v1762_v30, %v1760_v18  ;;  %v1912_v50 = vshrl.u32 %v16531_v46, %v1903_v23  ;;  %v1915_v25 = vshrl.u32 %v16522_v48, %v1903_v23  ;;  %v1918_v26 = vshrl.u32 %v16524_v56, %v1903_v23 }
 0x1ad   :  { %v12944_v54 = vand.u32 3, %v1769_v52  ;;  %v12946_v11 = vsub.s32 %v1636_v2, %v1639_v5  ;;  %v1901_v53 = vshrl.u32 %v1900_v24, 5  ;;  %v12950_v33 = vand.u32 3, %v1773_v31 }
 0x1ae   :  { %v1764_v6 = vxor.u32 2147483648, %v1763_v57  ;;  %v1896_v45 = vor.u32 8388608, %v1895_v20  ;;  %v1788_v13 = vshrl.u32 %v1787_v4, 23  ;;  %v1907_v22 = vor.u32 %v1906_v36, %v1905_v37 }
 0x1af   :  { %v1642_v19 = vsub.s32 0, %v12946_v11  ;;  %v1910_v10 = vor.u32 %v1909_v63, %v1908_v47  ;;  %v1913_v58 = vor.u32 %v1912_v50, %v1911_v21  ;;  %v1916_v28 = vor.u32 %v1915_v25, %v1914_v32 }
 0x1b0   :  { %v1765_v35 = vsel %vm1682_vm6, %v1764_v6, %v1763_v57  ;;  %v1919_v0 = vor.u32 %v1918_v26, %v1917_v62  ;;  %vm1920_vm0 = vcmp.lt.s32.totalorder %v1901_v53, 1  ;;  %vm1923_vm2 = vcmp.lt.s32.totalorder %v1901_v53, 4 }
 0x1b1   :  { %v1768_v60 = vsel %vm12922_vm15, %v12560_v55, %v1765_v35  ;;  %v10443_v2 = vmin.u32 %v1642_v19, %v12946_v11  ;;  %vm6755_vm3 = vcmp.eq.s32.totalorder %v12944_v54, 2  ;;  %v1904_v24 = vshrl.u32 %v16537_v40, %v1903_v23 }
 0x1b2   :  { %11028 = vcosq.f32 %v1768_v60  ;;  %vm1922_vm4 = vcmp.lt.s32.totalorder %v1901_v53, 3  ;;  %vm1776_vm1 = vcmp.eq.s32.totalorder %v12950_v33, 0  ;;  %vm6752_vm6 = vcmp.eq.s32.totalorder %v12944_v54, 0 }
 0x1b3   :  { %11030 = vsinq.f32 %v1768_v60  ;;  %v1644_v17 = vclz %v10443_v2  ;;  %vm1921_vm7 = vcmp.lt.s32.totalorder %v1901_v53, 2  ;;  %v1925_v59 = vsel %vm1923_vm2, %v1913_v58, 2102212464 }
 0x1b4   :  { %v1936_v30 = vshll.u32 %v1896_v45, 8  ;;  %vm1775_vm5 = vcmp.lt.s32.totalorder %v12950_v33, 2  ;;  %vm6751_vm8 = vcmp.lt.s32.totalorder %v12944_v54, 2  ;;  %v1928_v1 = vsel %vm1920_vm0, %v1907_v22, %v1910_v10 }
 0x1b5   :  { %v1929_v52 = vsel %vm1923_vm2, %v1916_v28, 920167782  ;;  %v1932_v16 = vsel %vm1920_vm0, %v1910_v10, %v1913_v58  ;;  %v10450_v18 = vadd.s32 4294967169, %v1788_v13  ;;  %vm1772_vm11 = vweird.f32 %v12560_v55 }
 0x1b6   :  { %vm1578_vm9 = vcmp.lt.s32.totalorder %v12695_v43, 0  ;;  %v1632_v31 = vadd.s32 %v12866_v12, %v12888_v27  ;;  %v10444_v23 = vadd.s32 4294967294, %v1644_v17  ;;  %v1930_v20 = vsel %vm1922_vm4, %v1913_v58, %v1929_v52 }
 0x1b7   :  { %v1933_v37 = vsel %vm1923_vm2, %v1919_v0, 1326507024  ;;  %v1924_v4 = vsel %vm1920_vm0, %v1904_v24, %v1907_v22  ;;  %v1926_v57 = vsel %vm1922_vm4, %v1910_v10, %v1925_v59  ;;  %v1931_v47 = vsel %vm1921_vm7, %v1928_v1, %v1930_v20 }
 0x1b8   :  { %v1934_v21 = vsel %vm1922_vm4, %v1916_v28, %v1933_v37  ;;  %vm10445_vm10 = vcmp.lt.s32.totalorder %v10444_v23, 0  ;;  %v12978_v5 = vmul.u32.u64.low %v1936_v30, %v1931_v47  ;;  %v12979_v36 = vmul.u32.u64.high %v1936_v30, %v1931_v47, %v12978_v5 }
 0x1b9   :  { %v1935_v32 = vsel %vm1921_vm7, %v1932_v16, %v1934_v21  ;;  %vm12984_vm12 = vcmp.le.f32.partialorder %v1576_v49, 0.7853982  ;;  %v1647_v27 = vsel %vm10445_vm10, 0, %v10444_v23  ;;  %v1794_v6 = vadd.s32 1, %v10450_v18  ;;  %v31_v16 = vld [vmem:[%s16518_s0 + $0x98] sm:$0xff] }
 0x1ba   :  { %v12988_v63 = vmul.u32.u64.low %v1936_v30, %v1935_v32  ;;  %v12989_v62 = vmul.u32.u64.high %v1936_v30, %v1935_v32, %v12988_v63  ;;  %v1648_v50 = vsub.s32 32, %v1647_v27  ;;  %v1649_v25 = vshll.u32 %v12946_v11, %v1647_v27 }
 0x1bb   :  { %v1652_v26 = vsub.s32 4294967266, %v1647_v27  ;;  %v1927_v35 = vsel %vm1921_vm7, %v1924_v4, %v1926_v57  ;;  %vm1779_vm13 = vcmp.eq.s32.totalorder %v12950_v33, 2  ;;  %v1662_v13 = vsub.s32 4, %v12928_v3 }
 0x1bc   :  { %v11029_v45 = vpop.eup %11028  ;;  %v1784_v49 = vand.u32 2147483647, %v12918_v15  ;;  %vm1795_vm14 = vcmp.gt.s32.totalorder %v1794_v6, 0  ;;  %v1650_v22 = vshrl.u32 %v1632_v31, %v1648_v50  ;;  %v1946_v58 = vadd.s32 1, %v12979_v36 }
 0x1bd   :  { %v11031_v60 = vpop.eup %11030  ;;  %v1780_v19 = vxor.u32 2147483648, %v11029_v45  ;;  %v1653_v10 = vadd.s32 127, %v1652_v26  ;;  %v1943_v0 = vmul.u32 %v1936_v30, %v1927_v35  ;;  %vm1945_vm15 = vc.u32 %v12989_v62, %v12978_v5 }
 0x1be   :  { %v1777_v28 = vxor.u32 2147483648, %v11031_v60  ;;  %v1796_v11 = vsel %vm1795_vm14, %v1794_v6, 0  ;;  %v1651_v24 = vor.u32 %v1650_v22, %v1649_v25  ;;  %v1663_v30 = vsel %vm1578_vm9, %v1662_v13, %v12928_v3 }
 0x1bf   :  { %v1781_v53 = vsel %vm1779_vm13, %v1780_v19, %v11031_v60  ;;  %v6757_v2 = vsel %vm6755_vm3, %v1780_v19, %v11031_v60  ;;  %v1654_v17 = vshll.u32 %v1653_v10, 23  ;;  %v1947_v52 = vsel %vm1945_vm15, %v1946_v58, %v12979_v36 }
 0x1c0   :  { %v1778_v59 = vsel %vm1776_vm1, %v11029_v45, %v1777_v28  ;;  %v6754_v1 = vsel %vm6752_vm6, %v11029_v45, %v1777_v28  ;;  %v1658_v20 = vcvt.s32.f32 %v1651_v24  ;;  %v1948_v4 = vadd.s32 %v1947_v52, %v1943_v0 }
 0x1c1   :  { %v1782_v18 = vsel %vm1775_vm5, %v1778_v59, %v1781_v53  ;;  %v6758_v31 = vsel %vm6751_vm8, %v6754_v1, %v6757_v2  ;;  %v1655_v23 = vor.u32 4788187, %v1654_v17  ;;  %v1798_v57 = vand.u32 31, %v1796_v11 }
 0x1c2   :  { %v13018_v37 = vsel %vm1772_vm11, nan, %v1782_v18  ;;  %v6759_v3 = vsel %vm1772_vm11, nan, %v6758_v31  ;;  %v1665_v33 = vsel %vm12984_vm12, 0, %v1663_v30  ;;  %v1791_v54 = vand.u32 8388607, %v1784_v49 }
 0x1c3   :  { %16580 = vst [vmem:[#allocation6_spill] sm:$0xff] %v13018_v37  ;;  %10134 = vrot.lane.b32.xlu1 %v6759_v3, %s11194_s22  ;;  %v1656_v47 = vand.u32 2147483647, %v1655_v23  ;;  %v13028_v21 = vmul.f32 %v11227_v9, %v31_v16  ;;  %v1949_v32 = vadd.s32 536870912, %v1948_v4  ;;  %v13030_v36 = vshrl.u32 %v1796_v11, 5 }
 0x1c4   :  { %v1799_v27 = vsub.s32 32, %v1798_v57  ;;  %v1801_v55 = vshll.u32 %v16537_v40, %v1798_v57  ;;  %v1804_v6 = vshll.u32 %v16533_v42, %v1798_v57  ;;  %v1807_v50 = vshll.u32 %v16529_v44, %v1798_v57 }
 0x1c5   :  { %v1659_v63 = vmul.f32 %v1658_v20, %v1656_v47  ;;  %v1810_v25 = vshll.u32 %v16531_v46, %v1798_v57  ;;  %v13036_v26 = vshrl.u32 %v1949_v32, 30  ;;  %v1813_v13 = vshll.u32 %v16522_v48, %v1798_v57 }
 0x1c6   :  { %v1802_v35 = vshrl.u32 %v16533_v42, %v1799_v27  ;;  %v1805_v45 = vshrl.u32 %v16529_v44, %v1799_v27  ;;  %v1808_v19 = vshrl.u32 %v16531_v46, %v1799_v27  ;;  %v1811_v22 = vshrl.u32 %v16522_v48, %v1799_v27 }
 0x1c7   :  { %v1660_v60 = vxor.u32 2147483648, %v1659_v63  ;;  %v1814_v10 = vshrl.u32 %v16524_v56, %v1799_v27  ;;  %v1669_v58 = vadd.s32 3, %v1665_v33  ;;  %v13044_v28 = vand.u32 3, %v1665_v33 }
 0x1c8   :  { %v1951_v0 = vshll.u32 %v13036_v26, 30  ;;  %v2096_v11 = vand.u32 2147483647, %v13028_v21  ;;  %v1792_v2 = vor.u32 8388608, %v1791_v54  ;;  %v1803_v24 = vor.u32 %v1802_v35, %v1801_v55 }
 0x1c9   :  { %v1661_v53 = vsel %vm1578_vm9, %v1660_v60, %v1659_v63  ;;  %v1812_v17 = vor.u32 %v1811_v22, %v1810_v25  ;;  %v1806_v30 = vor.u32 %v1805_v45, %v1804_v6  ;;  %vm1819_vm0 = vcmp.lt.s32.totalorder %v13030_v36, 4 }
 0x1ca   :  { %v1664_v59 = vsel %vm12984_vm12, %v12695_v43, %v1661_v53  ;;  %v13053_v1 = vsub.s32 %v1948_v4, %v1951_v0  ;;  %v1809_v52 = vor.u32 %v1808_v19, %v1807_v50  ;;  %v1815_v16 = vor.u32 %v1814_v10, %v1813_v13 }
 0x1cb   :  { %11032 = vcosq.f32 %v1664_v59  ;;  %vm1816_vm2 = vcmp.lt.s32.totalorder %v13030_v36, 1  ;;  %vm1890_vm3 = vcmp.lt.s32.totalorder %v12857_v41, 0  ;;  %v1800_v31 = vshrl.u32 %v16537_v40, %v1799_v27 }
 0x1cc   :  { %11034 = vsinq.f32 %v1664_v59  ;;  %v1954_v18 = vsub.s32 0, %v13053_v1  ;;  %vm1818_vm4 = vcmp.lt.s32.totalorder %v13030_v36, 3  ;;  %v1670_v12 = vand.u32 3, %v1669_v58 }
 0x1cd   :  { %v1825_v23 = vsel %vm1819_vm0, %v1812_v17, 920167782  ;;  %v1832_v20 = vshll.u32 %v1792_v2, 8  ;;  %v2099_v3 = vand.u32 2139095040, %v13028_v21  ;;  %vm1817_vm1 = vcmp.lt.s32.totalorder %v13030_v36, 2 }
 0x1ce   :  { %v10455_v4 = vmin.u32 %v1954_v18, %v13053_v1  ;;  %v1821_v57 = vsel %vm1819_vm0, %v1809_v52, 2102212464  ;;  %v1824_v47 = vsel %vm1816_vm2, %v1803_v24, %v1806_v30  ;;  %vm6648_vm6 = vcmp.lt.s32.totalorder %v13044_v28, 2 }
 0x1cf   :  { %vm6649_vm7 = vcmp.eq.s32.totalorder %v13044_v28, 0  ;;  %v1826_v33 = vsel %vm1818_vm4, %v1809_v52, %v1825_v23  ;;  %v1828_v54 = vsel %vm1816_vm2, %v1806_v30, %v1809_v52  ;;  %v1829_v32 = vsel %vm1819_vm0, %v1815_v16, 1326507024 }
 0x1d0   :  { %vm1668_vm5 = vweird.f32 %v12695_v43  ;;  %vm6652_vm8 = vcmp.eq.s32.totalorder %v13044_v28, 2  ;;  %v1956_v27 = vclz %v10455_v4  ;;  %v1974_v55 = vsub.s32 4, %v13036_v26 }
 0x1d1   :  { %v1820_v63 = vsel %vm1816_vm2, %v1800_v31, %v1803_v24  ;;  %v1822_v6 = vsel %vm1818_vm4, %v1806_v30, %v1821_v57  ;;  %v1827_v50 = vsel %vm1817_vm1, %v1824_v47, %v1826_v33  ;;  %v1830_v25 = vsel %vm1818_vm4, %v1812_v17, %v1829_v32 }
 0x1d2   :  { %v2100_v35 = vshrl.u32 %v2099_v3, 23  ;;  %v10456_v45 = vadd.s32 4294967294, %v1956_v27  ;;  %v1831_v13 = vsel %vm1817_vm1, %v1828_v54, %v1830_v25  ;;  %vm1671_vm11 = vcmp.lt.s32.totalorder %v1670_v12, 2 }
 0x1d3   :  { %v13091_v60 = vmul.u32.u64.low %v1832_v20, %v1827_v50  ;;  %v13092_v19 = vmul.u32.u64.high %v1832_v20, %v1827_v50, %v13091_v60  ;;  %v13095_v22 = vmul.u32.u64.low %v1832_v20, %v1831_v13  ;;  %v13096_v10 = vmul.u32.u64.high %v1832_v20, %v1831_v13, %v13095_v22 }
 0x1d4   :  { %v10462_v58 = vadd.s32 4294967169, %v2100_v35  ;;  %vm1672_vm9 = vcmp.eq.s32.totalorder %v1670_v12, 0  ;;  %v1944_v0 = vadd.s32 %v12978_v5, %v12989_v62  ;;  %vm10457_vm10 = vcmp.lt.s32.totalorder %v10456_v45, 0 }
 0x1d5   :  { %v1823_v53 = vsel %vm1817_vm1, %v1820_v63, %v1822_v6  ;;  %v11033_v2 = vpop.eup %11032  ;;  %vm1675_vm12 = vcmp.eq.s32.totalorder %v1670_v12, 2  ;;  %v1959_v24 = vsel %vm10457_vm10, 0, %v10456_v45  ;;  %v1975_v17 = vsel %vm1890_vm3, %v1974_v55, %v13036_v26 }
 0x1d6   :  { %v2106_v59 = vadd.s32 1, %v10462_v58  ;;  %v11035_v30 = vpop.eup %11034  ;;  %v1676_v52 = vxor.u32 2147483648, %v11033_v2  ;;  %v1960_v16 = vsub.s32 32, %v1959_v24  ;;  %v1961_v18 = vshll.u32 %v13053_v1, %v1959_v24 }
 0x1d7   :  { %v1964_v31 = vsub.s32 4294967266, %v1959_v24  ;;  %v1673_v23 = vxor.u32 2147483648, %v11035_v30  ;;  %v1839_v5 = vmul.u32 %v1832_v20, %v1823_v53  ;;  %vm1841_vm13 = vc.u32 %v13096_v10, %v13091_v60 }
 0x1d8   :  { %v1842_v62 = vadd.s32 1, %v13092_v19  ;;  %v1677_v36 = vsel %vm1675_vm12, %v1676_v52, %v11035_v30  ;;  %v6654_v3 = vsel %vm6652_vm8, %v1676_v52, %v11035_v30  ;;  %v1962_v4 = vshrl.u32 %v1944_v0, %v1960_v16 }
 0x1d9   :  { %v1965_v26 = vadd.s32 127, %v1964_v31  ;;  %v1674_v57 = vsel %vm1672_vm9, %v11033_v2, %v1673_v23  ;;  %v6651_v47 = vsel %vm6649_vm7, %v11033_v2, %v1673_v23  ;;  %vm2107_vm14 = vcmp.gt.s32.totalorder %v2106_v59, 0 }
 0x1da   :  { %v1843_v1 = vsel %vm1841_vm13, %v1842_v62, %v13092_v19  ;;  %v1678_v20 = vsel %vm1671_vm11, %v1674_v57, %v1677_v36  ;;  %v6655_v33 = vsel %vm6648_vm6, %v6651_v47, %v6654_v3  ;;  %v1963_v54 = vor.u32 %v1962_v4, %v1961_v18 }
 0x1db   :  { %v1966_v32 = vshll.u32 %v1965_v26, 23  ;;  %v1679_v27 = vsel %vm1668_vm5, nan, %v1678_v20  ;;  %v6656_v55 = vsel %vm1668_vm5, nan, %v6655_v33  ;;  %v1844_v63 = vadd.s32 %v1843_v1, %v1839_v5 }
 0x1dc   :  { %v2108_v6 = vsel %vm2107_vm14, %v2106_v59, 0  ;;  %10319 = vst [vmem:[#allocation2 + $0xa8] sm:$0xff] %v1679_v27  ;;  %10132 = vrot.lane.b32.xlu0 %v6656_v55, %s11194_s22  ;;  %v1970_v25 = vcvt.s32.f32 %v1963_v54  ;;  %vm13125_vm15 = vcmp.le.f32.partialorder %v1888_v14, 0.7853982  ;;  %v2103_v58 = vand.u32 8388607, %v2096_v11 }
 0x1dd   :  { %v1967_v50 = vor.u32 4788187, %v1966_v32  ;;  %v2110_v12 = vand.u32 31, %v2108_v6  ;;  %v1845_v35 = vadd.s32 536870912, %v1844_v63  ;;  %v1977_v43 = vsel %vm13125_vm15, 0, %v1975_v17  ;;  %v30_v55 = vld [vmem:[%s16518_s0 + $0x90] sm:$0xff] }
 0x1de   :  { %v1981_v19 = vadd.s32 3, %v1977_v43  ;;  %v2109_v62 = vshrl.u32 %v2108_v6, 5  ;;  %v13152_v4 = vand.u32 3, %v1977_v43  ;;  %v2104_v26 = vor.u32 8388608, %v2103_v58 }
 0x1df   :  { %v1968_v45 = vand.u32 2147483647, %v1967_v50  ;;  %v2111_v13 = vsub.s32 32, %v2110_v12  ;;  %v13131_v22 = vshrl.u32 %v1845_v35, 30  ;;  %v2113_v0 = vshll.u32 %v16537_v40, %v2110_v12 }
 0x1e0   :  { %v2116_v14 = vshll.u32 %v16533_v42, %v2110_v12  ;;  %v2119_v2 = vshll.u32 %v16529_v44, %v2110_v12  ;;  %v2122_v24 = vshll.u32 %v16531_v46, %v2110_v12  ;;  %v2125_v52 = vshll.u32 %v16522_v48, %v2110_v12 }
 0x1e1   :  { %v1971_v53 = vmul.f32 %v1970_v25, %v1968_v45  ;;  %v1847_v59 = vshll.u32 %v13131_v22, 30  ;;  %v2114_v17 = vshrl.u32 %v16533_v42, %v2111_v13  ;;  %v2117_v30 = vshrl.u32 %v16529_v44, %v2111_v13 }
 0x1e2   :  { %v2120_v18 = vshrl.u32 %v16531_v46, %v2111_v13  ;;  %v2123_v31 = vshrl.u32 %v16522_v48, %v2111_v13  ;;  %v2126_v23 = vshrl.u32 %v16524_v56, %v2111_v13  ;;  %v13150_v3 = vand.u32 3, %v1981_v19 }
 0x1e3   :  { %v1972_v16 = vxor.u32 2147483648, %v1971_v53  ;;  %v13146_v5 = vsub.s32 %v1844_v63, %v1847_v59  ;;  %v2115_v1 = vor.u32 %v2114_v17, %v2113_v0  ;;  %v2118_v20 = vor.u32 %v2117_v30, %v2116_v14 }
 0x1e4   :  { %v2121_v33 = vor.u32 %v2120_v18, %v2119_v2  ;;  %v2124_v54 = vor.u32 %v2123_v31, %v2122_v24  ;;  %v2127_v32 = vor.u32 %v2126_v23, %v2125_v52  ;;  %vm2128_vm0 = vcmp.lt.s32.totalorder %v2109_v62, 1 }
 0x1e5   :  { %v1973_v36 = vsel %vm1890_vm3, %v1972_v16, %v1971_v53  ;;  %v1850_v47 = vsub.s32 0, %v13146_v5  ;;  %vm2131_vm2 = vcmp.lt.s32.totalorder %v2109_v62, 4  ;;  %vm6961_vm3 = vcmp.eq.s32.totalorder %v13152_v4, 2 }
 0x1e6   :  { %v1976_v57 = vsel %vm13125_vm15, %v12857_v41, %v1973_v36  ;;  %v2112_v63 = vshrl.u32 %v16537_v40, %v2111_v13  ;;  %vm2130_vm4 = vcmp.lt.s32.totalorder %v2109_v62, 3  ;;  %vm1984_vm1 = vcmp.eq.s32.totalorder %v13150_v3, 0 }
 0x1e7   :  { %11036 = vcosq.f32 %v1976_v57  ;;  %v10451_v27 = vmin.u32 %v1850_v47, %v13146_v5  ;;  %vm6958_vm6 = vcmp.eq.s32.totalorder %v13152_v4, 0  ;;  %vm2129_vm7 = vcmp.lt.s32.totalorder %v2109_v62, 2 }
 0x1e8   :  { %11038 = vsinq.f32 %v1976_v57  ;;  %v2133_v50 = vsel %vm2131_vm2, %v2121_v33, 2102212464  ;;  %v2144_v25 = vshll.u32 %v2104_v26, 8  ;;  %vm1983_vm5 = vcmp.lt.s32.totalorder %v13150_v3, 2 }
 0x1e9   :  { %v1852_v6 = vclz %v10451_v27  ;;  %vm6957_vm8 = vcmp.lt.s32.totalorder %v13152_v4, 2  ;;  %v2136_v12 = vsel %vm2128_vm0, %v2115_v1, %v2118_v20  ;;  %v2137_v28 = vsel %vm2131_vm2, %v2124_v54, 920167782 }
 0x1ea   :  { %v2140_v35 = vsel %vm2128_vm0, %v2118_v20, %v2121_v33  ;;  %v13173_v45 = vmul.f32 %v11222_v7, %v30_v55  ;;  %vm1980_vm11 = vweird.f32 %v12857_v41  ;;  %vm1786_vm9 = vcmp.lt.s32.totalorder %v12918_v15, 0 }
 0x1eb   :  { %v1840_v43 = vadd.s32 %v13091_v60, %v13096_v10  ;;  %v10452_v13 = vadd.s32 4294967294, %v1852_v6  ;;  %v2138_v19 = vsel %vm2130_vm4, %v2121_v33, %v2137_v28  ;;  %v2141_v58 = vsel %vm2131_vm2, %v2127_v32, 1326507024 }
 0x1ec   :  { %v2132_v0 = vsel %vm2128_vm0, %v2112_v63, %v2115_v1  ;;  %v2134_v53 = vsel %vm2130_vm4, %v2118_v20, %v2133_v50  ;;  %v2139_v14 = vsel %vm2129_vm7, %v2136_v12, %v2138_v19  ;;  %v2142_v2 = vsel %vm2130_vm4, %v2124_v54, %v2141_v58 }
 0x1ed   :  { %vm10453_vm10 = vcmp.lt.s32.totalorder %v10452_v13, 0  ;;  %v2143_v24 = vsel %vm2129_vm7, %v2140_v35, %v2142_v2  ;;  %v13186_v59 = vmul.u32.u64.low %v2144_v25, %v2139_v14  ;;  %v13187_v17 = vmul.u32.u64.high %v2144_v25, %v2139_v14, %v13186_v59 }
 0x1ee   :  { %v1855_v60 = vsel %vm10453_vm10, 0, %v10452_v13  ;;  %v13190_v10 = vmul.u32.u64.low %v2144_v25, %v2143_v24  ;;  %v13191_v30 = vmul.u32.u64.high %v2144_v25, %v2143_v24, %v13190_v10  ;;  %v1995_v52 = vand.u32 2139095040, %v13173_v45 }
 0x1ef   :  { %v1856_v16 = vsub.s32 32, %v1855_v60  ;;  %v1857_v18 = vshll.u32 %v13146_v5, %v1855_v60  ;;  %v1860_v31 = vsub.s32 4294967266, %v1855_v60  ;;  %v2135_v23 = vsel %vm2129_vm7, %v2132_v0, %v2134_v53  ;;  %v33_v0 = vld [vmem:[%s16518_s0 + $0xa8] sm:$0xff] }
 0x1f0   :  { %vm1987_vm12 = vcmp.eq.s32.totalorder %v13150_v3, 2  ;;  %v1870_v26 = vsub.s32 4, %v13131_v22  ;;  %v1992_v57 = vand.u32 2147483647, %v13173_v45  ;;  %v1996_v47 = vshrl.u32 %v1995_v52, 23 }
 0x1f1   :  { %v11037_v36 = vpop.eup %11036  ;;  %v1858_v33 = vshrl.u32 %v1840_v43, %v1856_v16  ;;  %v1861_v54 = vadd.s32 127, %v1860_v31  ;;  %v2154_v32 = vadd.s32 1, %v13187_v17  ;;  %v2151_v55 = vmul.u32 %v2144_v25, %v2135_v23 }
 0x1f2   :  { %v11039_v1 = vpop.eup %11038  ;;  %v1988_v20 = vxor.u32 2147483648, %v11037_v36  ;;  %vm2153_vm13 = vc.u32 %v13191_v30, %v13186_v59  ;;  %v10458_v5 = vadd.s32 4294967169, %v1996_v47  ;;  %v1871_v25 = vsel %vm1786_vm9, %v1870_v26, %v13131_v22 }
 0x1f3   :  { %v1985_v27 = vxor.u32 2147483648, %v11039_v1  ;;  %v1859_v6 = vor.u32 %v1858_v33, %v1857_v18  ;;  %v1862_v50 = vshll.u32 %v1861_v54, 23  ;;  %v2155_v35 = vsel %vm2153_vm13, %v2154_v32, %v13187_v17 }
 0x1f4   :  { %v1989_v62 = vsel %vm1987_vm12, %v1988_v20, %v11039_v1  ;;  %v6963_v63 = vsel %vm6961_vm3, %v1988_v20, %v11039_v1  ;;  %v2156_v14 = vadd.s32 %v2155_v35, %v2151_v55  ;;  %v2002_v2 = vadd.s32 1, %v10458_v5 }
 0x1f5   :  { %v1986_v12 = vsel %vm1984_vm1, %v11037_v36, %v1985_v27  ;;  %v6960_v28 = vsel %vm6958_vm6, %v11037_v36, %v1985_v27  ;;  %v1863_v19 = vor.u32 4788187, %v1862_v50  ;;  %v1866_v58 = vcvt.s32.f32 %v1859_v6 }
 0x1f6   :  { %v1990_v43 = vsel %vm1983_vm5, %v1986_v12, %v1989_v62  ;;  %v6964_v13 = vsel %vm6957_vm8, %v6960_v28, %v6963_v63  ;;  %vm13228_vm14 = vcmp.le.f32.partialorder %v1784_v49, 0.7853982  ;;  %v2157_v17 = vadd.s32 536870912, %v2156_v14 }
 0x1f7   :  { %v13221_v53 = vsel %vm1980_vm11, nan, %v1990_v43  ;;  %v6965_v22 = vsel %vm1980_vm11, nan, %v6964_v13  ;;  %v1864_v4 = vand.u32 2147483647, %v1863_v19  ;;  %v1873_v24 = vsel %vm13228_vm14, 0, %v1871_v25 }
 0x1f8   :  { %16583 = vst [vmem:[#allocation7_spill] sm:$0xff] %v13221_v53  ;;  %10138 = vrot.lane.b32.xlu1 %v6965_v22, %s11194_s22  ;;  %vm2003_vm15 = vcmp.gt.s32.totalorder %v2002_v2, 0  ;;  %v13235_v60 = vmul.f32 %v11227_v9, %v33_v0  ;;  %v1877_v10 = vadd.s32 3, %v1873_v24  ;;  %v1999_v52 = vand.u32 8388607, %v1992_v57 }
 0x1f9   :  { %v1867_v41 = vmul.f32 %v1866_v58, %v1864_v4  ;;  %v2004_v16 = vsel %vm2003_vm15, %v2002_v2, 0  ;;  %v2158_v18 = vshrl.u32 %v2157_v17, 30  ;;  %v13239_v23 = vand.u32 3, %v1873_v24 }
 0x1fa   :  { %v2006_v49 = vand.u32 31, %v2004_v16  ;;  %vm2098_vm0 = vcmp.lt.s32.totalorder %v13028_v21, 0  ;;  %v2307_v47 = vand.u32 2139095040, %v13235_v60  ;;  %v13245_v20 = vand.u32 3, %v1877_v10 }
 0x1fb   :  { %v1868_v31 = vxor.u32 2147483648, %v1867_v41  ;;  %v2159_v36 = vshll.u32 %v2158_v18, 30  ;;  %v2000_v33 = vor.u32 8388608, %v1999_v52  ;;  %v2304_v54 = vand.u32 2147483647, %v13235_v60 }
 0x1fc   :  { %v2007_v26 = vsub.s32 32, %v2006_v49  ;;  %v2009_v55 = vshll.u32 %v16537_v40, %v2006_v49  ;;  %v2012_v5 = vshll.u32 %v16533_v42, %v2006_v49  ;;  %v2018_v6 = vshll.u32 %v16531_v46, %v2006_v49 }
 0x1fd   :  { %v1869_v1 = vsel %vm1786_vm9, %v1868_v31, %v1867_v41  ;;  %v13251_v27 = vsub.s32 %v2156_v14, %v2159_v36  ;;  %v2015_v12 = vshll.u32 %v16529_v44, %v2006_v49  ;;  %v2308_v28 = vshrl.u32 %v2307_v47, 23 }
 0x1fe   :  { %v1872_v32 = vsel %vm13228_vm14, %v12918_v15, %v1869_v1  ;;  %v2010_v62 = vshrl.u32 %v16533_v42, %v2007_v26  ;;  %v2013_v63 = vshrl.u32 %v16529_v44, %v2007_v26  ;;  %vm1883_vm2 = vcmp.eq.s32.totalorder %v13245_v20, 2 }
 0x1ff   :  { %11040 = vcosq.f32 %v1872_v32  ;;  %v2162_v50 = vsub.s32 0, %v13251_v27  ;;  %vm6858_vm3 = vcmp.eq.s32.totalorder %v13239_v23, 2  ;;  %v2182_v25 = vsub.s32 4, %v2158_v18 }
 0x200   :  { %11042 = vsinq.f32 %v1872_v32  ;;  %v2005_v35 = vshrl.u32 %v2004_v16, 5  ;;  %v2016_v43 = vshrl.u32 %v16531_v46, %v2007_v26  ;;  %v2019_v13 = vshrl.u32 %v16522_v48, %v2007_v26 }
 0x201   :  { %vm1880_vm4 = vcmp.eq.s32.totalorder %v13245_v20, 0  ;;  %vm6855_vm1 = vcmp.eq.s32.totalorder %v13239_v23, 0  ;;  %v2152_v19 = vadd.s32 %v13186_v59, %v13191_v30  ;;  %v10463_v58 = vmin.u32 %v2162_v50, %v13251_v27 }
 0x202   :  { %v2011_v0 = vor.u32 %v2010_v62, %v2009_v55  ;;  %v2014_v22 = vor.u32 %v2013_v63, %v2012_v5  ;;  %vm1879_vm6 = vcmp.lt.s32.totalorder %v13245_v20, 2  ;;  %vm6854_vm7 = vcmp.lt.s32.totalorder %v13239_v23, 2 }
 0x203   :  { %v2008_v14 = vshrl.u32 %v16537_v40, %v2007_v26  ;;  %v2020_v2 = vor.u32 %v2019_v13, %v2018_v6  ;;  %v2021_v3 = vshll.u32 %v16522_v48, %v2006_v49  ;;  %v13273_v4 = vshll.u32 %v2000_v33, 8 }
 0x204   :  { %vm1876_vm5 = vweird.f32 %v12918_v15  ;;  %v2164_v24 = vclz %v10463_v58  ;;  %v2017_v17 = vor.u32 %v2016_v43, %v2015_v12  ;;  %v10470_v59 = vadd.s32 4294967169, %v2308_v28 }
 0x205   :  { %v13278_v30 = vand.u32 8388607, %v2304_v54  ;;  %v2183_v41 = vsel %vm2098_vm0, %v2182_v25, %v2158_v18  ;;  %v2022_v10 = vshrl.u32 %v16524_v56, %v2007_v26  ;;  %vm2024_vm8 = vcmp.lt.s32.totalorder %v2005_v35, 1 }
 0x206   :  { %vm2026_vm11 = vcmp.lt.s32.totalorder %v2005_v35, 3  ;;  %v10464_v52 = vadd.s32 4294967294, %v2164_v24  ;;  %vm2025_vm9 = vcmp.lt.s32.totalorder %v2005_v35, 2  ;;  %vm2027_vm10 = vcmp.lt.s32.totalorder %v2005_v35, 4 }
 0x207   :  { %v2032_v16 = vsel %vm2024_vm8, %v2011_v0, %v2014_v22  ;;  %v2023_v49 = vor.u32 %v2022_v10, %v2021_v3  ;;  %v2028_v31 = vsel %vm2024_vm8, %v2008_v14, %v2011_v0  ;;  %v2029_v36 = vsel %vm2027_vm10, %v2017_v17, 2102212464 }
 0x208   :  { %v2033_v47 = vsel %vm2027_vm10, %v2020_v2, 920167782  ;;  %vm10465_vm12 = vcmp.lt.s32.totalorder %v10464_v52, 0  ;;  %v2030_v1 = vsel %vm2026_vm11, %v2014_v22, %v2029_v36  ;;  %v2036_v32 = vsel %vm2024_vm8, %v2014_v22, %v2017_v17 }
 0x209   :  { %v2034_v33 = vsel %vm2026_vm11, %v2017_v17, %v2033_v47  ;;  %v11041_v55 = vpop.eup %11040  ;;  %v2167_v18 = vsel %vm10465_vm12, 0, %v10464_v52  ;;  %v2037_v5 = vsel %vm2027_vm10, %v2023_v49, 1326507024  ;;  %v2314_v62 = vadd.s32 1, %v10470_v59 }
 0x20a   :  { %v2035_v26 = vsel %vm2025_vm9, %v2032_v16, %v2034_v33  ;;  %v11043_v63 = vpop.eup %11042  ;;  %v1884_v6 = vxor.u32 2147483648, %v11041_v55  ;;  %v2168_v50 = vsub.s32 32, %v2167_v18  ;;  %v2169_v12 = vshll.u32 %v13251_v27, %v2167_v18 }
 0x20b   :  { %v2172_v28 = vsub.s32 4294967266, %v2167_v18  ;;  %v1881_v25 = vxor.u32 2147483648, %v11043_v63  ;;  %v2038_v43 = vsel %vm2026_vm11, %v2020_v2, %v2037_v5  ;;  %v2031_v2 = vsel %vm2025_vm9, %v2028_v31, %v2030_v1  ;;  %v32_v31 = vld [vmem:[%s16518_s0 + $0xa0] sm:$0xff] }
 0x20c   :  { %v13289_v13 = vmul.u32.u64.low %v13273_v4, %v2035_v26  ;;  %v13290_v58 = vmul.u32.u64.high %v13273_v4, %v2035_v26, %v13289_v13  ;;  %v1885_v0 = vsel %vm1883_vm2, %v1884_v6, %v11043_v63  ;;  %v6860_v22 = vsel %vm6858_vm3, %v1884_v6, %v11043_v63 }
 0x20d   :  { %v2170_v14 = vshrl.u32 %v2152_v19, %v2168_v50  ;;  %v2173_v3 = vadd.s32 127, %v2172_v28  ;;  %v1882_v27 = vsel %vm1880_vm4, %v11041_v55, %v1881_v25  ;;  %v6857_v24 = vsel %vm6855_vm1, %v11041_v55, %v1881_v25 }
 0x20e   :  { %v2039_v17 = vsel %vm2025_vm9, %v2036_v32, %v2038_v43  ;;  %v1886_v59 = vsel %vm1879_vm6, %v1882_v27, %v1885_v0  ;;  %v6861_v10 = vsel %vm6854_vm7, %v6857_v24, %v6860_v22  ;;  %v2050_v23 = vadd.s32 1, %v13290_v58 }
 0x20f   :  { %v2171_v52 = vor.u32 %v2170_v14, %v2169_v12  ;;  %v2174_v16 = vshll.u32 %v2173_v3, 23  ;;  %v1887_v19 = vsel %vm1876_vm5, nan, %v1886_v59  ;;  %v6862_v49 = vsel %vm1876_vm5, nan, %v6861_v10 }
 0x210   :  { %v13312_v36 = vmul.u32.u64.low %v13273_v4, %v2039_v17  ;;  %v13313_v47 = vmul.u32.u64.high %v13273_v4, %v2039_v17, %v13312_v36  ;;  %10322 = vst [vmem:[#allocation2 + $0xc0] sm:$0xff] %v1887_v19  ;;  %10136 = vrot.lane.b32.xlu0 %v6862_v49, %s11194_s22  ;;  %vm2315_vm13 = vcmp.gt.s32.totalorder %v2314_v62, 0  ;;  %vm13322_vm14 = vcmp.le.f32.partialorder %v2096_v11, 0.7853982 }
 0x211   :  { %v2175_v20 = vor.u32 4788187, %v2174_v16  ;;  %v2178_v35 = vcvt.s32.f32 %v2171_v52  ;;  %v2047_v1 = vmul.u32 %v13273_v4, %v2031_v2  ;;  %v2316_v33 = vsel %vm2315_vm13, %v2314_v62, 0 }
 0x212   :  { %v2185_v55 = vsel %vm13322_vm14, 0, %v2183_v41  ;;  %v2318_v18 = vand.u32 31, %v2316_v33  ;;  %vm2049_vm15 = vc.u32 %v13313_v47, %v13289_v13  ;;  %v2312_v5 = vor.u32 8388608, %v13278_v30 }
 0x213   :  { %v2176_v32 = vand.u32 2147483647, %v2175_v20  ;;  %v2189_v26 = vadd.s32 3, %v2185_v55  ;;  %v13333_v63 = vmul.f32 %v11222_v7, %v32_v31  ;;  %v2051_v6 = vsel %vm2049_vm15, %v2050_v23, %v13290_v58 }
 0x214   :  { %v2319_v50 = vsub.s32 32, %v2318_v18  ;;  %v2321_v4 = vshll.u32 %v16537_v40, %v2318_v18  ;;  %v2052_v62 = vadd.s32 %v2051_v6, %v2047_v1  ;;  %v2317_v12 = vshrl.u32 %v2316_v33, 5 }
 0x215   :  { %v2179_v11 = vmul.f32 %v2178_v35, %v2176_v32  ;;  %v2324_v41 = vshll.u32 %v16533_v42, %v2318_v18  ;;  %v2330_v28 = vshll.u32 %v16531_v46, %v2318_v18  ;;  %v2327_v0 = vshll.u32 %v16529_v44, %v2318_v18 }
 0x216   :  { %v2322_v43 = vshrl.u32 %v16533_v42, %v2319_v50  ;;  %v2325_v30 = vshrl.u32 %v16529_v44, %v2319_v50  ;;  %v2053_v22 = vadd.s32 536870912, %v2052_v62  ;;  %v2328_v14 = vshrl.u32 %v16531_v46, %v2319_v50 }
 0x217   :  { %v2180_v25 = vxor.u32 2147483648, %v2179_v11  ;;  %v2331_v58 = vshrl.u32 %v16522_v48, %v2319_v50  ;;  %v2333_v3 = vshll.u32 %v16522_v48, %v2318_v18  ;;  %v2334_v2 = vshrl.u32 %v16524_v56, %v2319_v50 }
 0x218   :  { %v2323_v24 = vor.u32 %v2322_v43, %v2321_v4  ;;  %v2203_v17 = vand.u32 2139095040, %v13333_v63  ;;  %v13352_v10 = vshrl.u32 %v2053_v22, 30  ;;  %v2326_v52 = vor.u32 %v2325_v30, %v2324_v41 }
 0x219   :  { %v2181_v27 = vsel %vm2098_vm0, %v2180_v25, %v2179_v11  ;;  %v2332_v16 = vor.u32 %v2331_v58, %v2330_v28  ;;  %v2329_v19 = vor.u32 %v2328_v14, %v2327_v0  ;;  %v2335_v49 = vor.u32 %v2334_v2, %v2333_v3 }
 0x21a   :  { %v2184_v59 = vsel %vm13322_vm14, %v13028_v21, %v2181_v27  ;;  %vm2336_vm2 = vcmp.lt.s32.totalorder %v2317_v12, 1  ;;  %v2055_v36 = vshll.u32 %v13352_v10, 30  ;;  %v2320_v20 = vshrl.u32 %v16537_v40, %v2319_v50 }
 0x21b   :  { %11044 = vcosq.f32 %v2184_v59  ;;  %vm2338_vm0 = vcmp.lt.s32.totalorder %v2317_v12, 3  ;;  %v7162_v35 = vand.u32 3, %v2185_v55  ;;  %vm2337_vm3 = vcmp.lt.s32.totalorder %v2317_v12, 2 }
 0x21c   :  { %11046 = vsinq.f32 %v2184_v59  ;;  %vm2339_vm4 = vcmp.lt.s32.totalorder %v2317_v12, 4  ;;  %v2204_v23 = vshrl.u32 %v2203_v17, 23  ;;  %v13356_v31 = vsub.s32 %v2052_v62, %v2055_v36 }
 0x21d   :  { %v2341_v15 = vsel %vm2339_vm4, %v2329_v19, 2102212464  ;;  %v2344_v1 = vsel %vm2336_vm2, %v2323_v24, %v2326_v52  ;;  %v2345_v33 = vsel %vm2339_vm4, %v2332_v16, 920167782  ;;  %v2349_v18 = vsel %vm2339_vm4, %v2335_v49, 1326507024 }
 0x21e   :  { %v2346_v32 = vsel %vm2338_vm0, %v2329_v19, %v2345_v33  ;;  %v2352_v11 = vshll.u32 %v2312_v5, 8  ;;  %v2190_v6 = vand.u32 3, %v2189_v26  ;;  %v2058_v4 = vsub.s32 0, %v13356_v31 }
 0x21f   :  { %v2340_v50 = vsel %vm2336_vm2, %v2320_v20, %v2323_v24  ;;  %v2348_v55 = vsel %vm2336_vm2, %v2326_v52, %v2329_v19  ;;  %v2342_v41 = vsel %vm2338_vm0, %v2326_v52, %v2341_v15  ;;  %v2347_v62 = vsel %vm2337_vm3, %v2344_v1, %v2346_v32 }
 0x220   :  { %v2350_v28 = vsel %vm2338_vm0, %v2332_v16, %v2349_v18  ;;  %v10466_v25 = vadd.s32 4294967169, %v2204_v23  ;;  %vm2188_vm1 = vweird.f32 %v13028_v21  ;;  %vm7163_vm6 = vcmp.lt.s32.totalorder %v7162_v35, 2 }
 0x221   :  { %v10459_v43 = vmin.u32 %v2058_v4, %v13356_v31  ;;  %v2200_v26 = vand.u32 2147483647, %v13333_v63  ;;  %vm7164_vm7 = vcmp.eq.s32.totalorder %v7162_v35, 0  ;;  %v2351_v5 = vsel %vm2337_vm3, %v2348_v55, %v2350_v28 }
 0x222   :  { %v13370_v30 = vmul.u32.u64.low %v2352_v11, %v2347_v62  ;;  %v13371_v0 = vmul.u32.u64.high %v2352_v11, %v2347_v62, %v13370_v30  ;;  %vm2191_vm5 = vcmp.lt.s32.totalorder %v2190_v6, 2  ;;  %vm7167_vm8 = vcmp.eq.s32.totalorder %v7162_v35, 2 }
 0x223   :  { %v2060_v22 = vclz %v10459_v43  ;;  %v2343_v14 = vsel %vm2337_vm3, %v2340_v50, %v2342_v41  ;;  %vm2195_vm11 = vcmp.eq.s32.totalorder %v2190_v6, 2  ;;  %v2210_v24 = vadd.s32 1, %v10466_v25 }
 0x224   :  { %v13375_v3 = vmul.u32.u64.low %v2352_v11, %v2351_v5  ;;  %v13376_v27 = vmul.u32.u64.high %v2352_v11, %v2351_v5, %v13375_v3  ;;  %vm2192_vm9 = vcmp.eq.s32.totalorder %v2190_v6, 0  ;;  %v2048_v59 = vadd.s32 %v13289_v13, %v13313_v47 }
 0x225   :  { %v11045_v58 = vpop.eup %11044  ;;  %v10460_v52 = vadd.s32 4294967294, %v2060_v22  ;;  %v2078_v19 = vsub.s32 4, %v13352_v10  ;;  %v2359_v49 = vmul.u32 %v2352_v11, %v2343_v14  ;;  %vm2211_vm10 = vcmp.gt.s32.totalorder %v2210_v24, 0 }
 0x226   :  { %v11047_v2 = vpop.eup %11046  ;;  %v2196_v17 = vxor.u32 2147483648, %v11045_v58  ;;  %v2362_v20 = vadd.s32 1, %v13371_v0  ;;  %v2212_v33 = vsel %vm2211_vm10, %v2210_v24, 0  ;;  %vm2361_vm13 = vc.u32 %v13376_v27, %v13370_v30 }
 0x227   :  { %v2193_v16 = vxor.u32 2147483648, %v11047_v2  ;;  %vm10461_vm12 = vcmp.lt.s32.totalorder %v10460_v52, 0  ;;  %v2214_v55 = vand.u32 31, %v2212_v33  ;;  %vm13399_vm14 = vcmp.le.f32.partialorder %v1992_v57, 0.7853982 }
 0x228   :  { %v2197_v12 = vsel %vm2195_vm11, %v2196_v17, %v11047_v2  ;;  %v7169_v36 = vsel %vm7167_vm8, %v2196_v17, %v11047_v2  ;;  %v2063_v1 = vsel %vm10461_vm12, 0, %v10460_v52  ;;  %v2363_v35 = vsel %vm2361_vm13, %v2362_v20, %v13371_v0 }
 0x229   :  { %v2194_v23 = vsel %vm2192_vm9, %v11045_v58, %v2193_v16  ;;  %v7166_v15 = vsel %vm7164_vm7, %v11045_v58, %v2193_v16  ;;  %v2064_v47 = vsub.s32 32, %v2063_v1  ;;  %v2065_v18 = vshll.u32 %v13356_v31, %v2063_v1 }
 0x22a   :  { %v2198_v32 = vsel %vm2191_vm5, %v2194_v23, %v2197_v12  ;;  %v7170_v13 = vsel %vm7163_vm6, %v7166_v15, %v7169_v36  ;;  %v2068_v50 = vsub.s32 4294967266, %v2063_v1  ;;  %vm1994_vm15 = vcmp.lt.s32.totalorder %v13173_v45, 0 }
 0x22b   :  { %v13389_v11 = vsel %vm2188_vm1, nan, %v2198_v32  ;;  %v7171_v4 = vsel %vm2188_vm1, nan, %v7170_v13  ;;  %v2066_v6 = vshrl.u32 %v2048_v59, %v2064_v47  ;;  %v2364_v41 = vadd.s32 %v2363_v35, %v2359_v49 }
 0x22c   :  { %16588 = vst [vmem:[#allocation8_spill] sm:$0xff] %v13389_v11  ;;  %10142 = vrot.lane.b32.xlu1 %v7171_v4, %s11194_s22  ;;  %v2069_v21 = vadd.s32 127, %v2068_v50  ;;  %v2079_v28 = vsel %vm1994_vm15, %v2078_v19, %v13352_v10  ;;  %v2207_v25 = vand.u32 8388607, %v2200_v26  ;;  %v2215_v43 = vsub.s32 32, %v2214_v55 }
 0x22d   :  { %v2067_v62 = vor.u32 %v2066_v6, %v2065_v18  ;;  %v2365_v0 = vadd.s32 536870912, %v2364_v41  ;;  %v13409_v22 = vshrl.u32 %v2212_v33, 5  ;;  %v2217_v57 = vshll.u32 %v16537_v40, %v2214_v55 }
 0x22e   :  { %v2070_v5 = vshll.u32 %v2069_v21, 23  ;;  %v2220_v58 = vshll.u32 %v16533_v42, %v2214_v55  ;;  %v2223_v3 = vshll.u32 %v16529_v44, %v2214_v55  ;;  %v2226_v24 = vshll.u32 %v16531_v46, %v2214_v55 }
 0x22f   :  { %v2074_v14 = vcvt.s32.f32 %v2067_v62  ;;  %v13415_v17 = vshrl.u32 %v2365_v0, 30  ;;  %v2218_v10 = vshrl.u32 %v16533_v42, %v2215_v43  ;;  %v2227_v59 = vshrl.u32 %v16522_v48, %v2215_v43  ;;  %v35_v62 = vld [vmem:[%s16518_s0 + $0xb8] sm:$0xff] }
 0x230   :  { %v2071_v2 = vor.u32 4788187, %v2070_v5  ;;  %v2221_v52 = vshrl.u32 %v16529_v44, %v2215_v43  ;;  %v2224_v16 = vshrl.u32 %v16531_v46, %v2215_v43  ;;  %v2229_v19 = vshll.u32 %v16522_v48, %v2214_v55 }
 0x231   :  { %v2230_v49 = vshrl.u32 %v16524_v56, %v2215_v43  ;;  %v2081_v36 = vsel %vm13399_vm14, 0, %v2079_v28  ;;  %v2367_v20 = vshll.u32 %v13415_v17, 30  ;;  %v2208_v15 = vor.u32 8388608, %v2207_v25 }
 0x232   :  { %v2072_v12 = vand.u32 2147483647, %v2071_v2  ;;  %v2085_v23 = vadd.s32 3, %v2081_v36  ;;  %v2216_v1 = vshrl.u32 %v16537_v40, %v2215_v43  ;;  %v2219_v13 = vor.u32 %v2218_v10, %v2217_v57 }
 0x233   :  { %v13427_v32 = vsub.s32 %v2364_v41, %v2367_v20  ;;  %v2228_v47 = vor.u32 %v2227_v59, %v2226_v24  ;;  %v2222_v18 = vor.u32 %v2221_v52, %v2220_v58  ;;  %v2225_v4 = vor.u32 %v2224_v16, %v2223_v3 }
 0x234   :  { %v2075_v33 = vmul.f32 %v2074_v14, %v2072_v12  ;;  %v2231_v50 = vor.u32 %v2230_v49, %v2229_v19  ;;  %vm2235_vm2 = vcmp.lt.s32.totalorder %v13409_v22, 4  ;;  %v13430_v35 = vand.u32 3, %v2081_v36 }
 0x235   :  { %vm2306_vm0 = vcmp.lt.s32.totalorder %v13235_v60, 0  ;;  %v2370_v55 = vsub.s32 0, %v13427_v32  ;;  %vm2232_vm3 = vcmp.lt.s32.totalorder %v13409_v22, 1  ;;  %vm2233_vm4 = vcmp.lt.s32.totalorder %v13409_v22, 2 }
 0x236   :  { %v2076_v6 = vxor.u32 2147483648, %v2075_v33  ;;  %vm2234_vm1 = vcmp.lt.s32.totalorder %v13409_v22, 3  ;;  %v2237_v21 = vsel %vm2235_vm2, %v2225_v4, 2102212464  ;;  %v2248_v41 = vshll.u32 %v2208_v15, 8 }
 0x237   :  { %v10471_v25 = vmin.u32 %v2370_v55, %v13427_v32  ;;  %v2236_v43 = vsel %vm2232_vm3, %v2216_v1, %v2219_v13  ;;  %v2241_v5 = vsel %vm2235_vm2, %v2228_v47, 920167782  ;;  %v2238_v57 = vsel %vm2234_vm1, %v2222_v18, %v2237_v21 }
 0x238   :  { %v2077_v28 = vsel %vm1994_vm15, %v2076_v6, %v2075_v33  ;;  %v2240_v14 = vsel %vm2232_vm3, %v2219_v13, %v2222_v18  ;;  %v2245_v58 = vsel %vm2235_vm2, %v2231_v50, 1326507024  ;;  %vm13460_vm6 = vcmp.le.f32.partialorder %v2304_v54, 0.7853982  ;;  %v34_v13 = vld [vmem:[%s16518_s0 + $0xb0] sm:$0xff] }
 0x239   :  { %v2080_v0 = vsel %vm13399_vm14, %v13173_v45, %v2077_v28  ;;  %v2372_v24 = vclz %v10471_v25  ;;  %v2244_v31 = vsel %vm2232_vm3, %v2222_v18, %v2225_v4  ;;  %v13467_v2 = vmul.f32 %v11227_v9, %v35_v62 }
 0x23a   :  { %11048 = vcosq.f32 %v2080_v0  ;;  %v13469_v10 = vand.u32 3, %v2085_v23  ;;  %v2390_v59 = vsub.s32 4, %v13415_v17  ;;  %v2242_v52 = vsel %vm2234_vm1, %v2225_v4, %v2241_v5 }
 0x23b   :  { %11050 = vsinq.f32 %v2080_v0  ;;  %v10472_v16 = vadd.s32 4294967294, %v2372_v24  ;;  %v2239_v54 = vsel %vm2233_vm4, %v2236_v43, %v2238_v57  ;;  %v2243_v19 = vsel %vm2233_vm4, %v2240_v14, %v2242_v52 }
 0x23c   :  { %v2246_v49 = vsel %vm2234_vm1, %v2228_v47, %v2245_v58  ;;  %vm7061_vm7 = vcmp.eq.s32.totalorder %v13430_v35, 0  ;;  %v2360_v12 = vadd.s32 %v13370_v30, %v13376_v27  ;;  %vm7060_vm5 = vcmp.lt.s32.totalorder %v13430_v35, 2 }
 0x23d   :  { %v2247_v36 = vsel %vm2233_vm4, %v2244_v31, %v2246_v49  ;;  %v13485_v20 = vmul.u32.u64.low %v2248_v41, %v2243_v19  ;;  %v13486_v23 = vmul.u32.u64.high %v2248_v41, %v2243_v19, %v13485_v20  ;;  %vm10473_vm8 = vcmp.lt.s32.totalorder %v10472_v16, 0 }
 0x23e   :  { %v13490_v15 = vmul.u32.u64.low %v2248_v41, %v2247_v36  ;;  %v13491_v1 = vmul.u32.u64.high %v2248_v41, %v2247_v36, %v13490_v15  ;;  %v2515_v33 = vand.u32 2139095040, %v13467_v2  ;;  %vm2084_vm11 = vweird.f32 %v13173_v45 }
 0x23f   :  { %vm7064_vm9 = vcmp.eq.s32.totalorder %v13430_v35, 2  ;;  %v2375_v30 = vsel %vm10473_vm8, 0, %v10472_v16  ;;  %v2391_v27 = vsel %vm2306_vm0, %v2390_v59, %v13415_v17  ;;  %v2255_v22 = vmul.u32 %v2248_v41, %v2239_v54 }
 0x240   :  { %v2376_v47 = vsub.s32 32, %v2375_v30  ;;  %v2377_v18 = vshll.u32 %v13427_v32, %v2375_v30  ;;  %v2380_v4 = vsub.s32 4294967266, %v2375_v30  ;;  %v2516_v50 = vshrl.u32 %v2515_v33, 23 }
 0x241   :  { %vm2087_vm10 = vcmp.lt.s32.totalorder %v13469_v10, 2  ;;  %v2258_v6 = vadd.s32 1, %v13486_v23  ;;  %v2512_v55 = vand.u32 2147483647, %v13467_v2  ;;  %v13507_v21 = vmul.f32 %v11222_v7, %v34_v13 }
 0x242   :  { %vm2088_vm12 = vcmp.eq.s32.totalorder %v13469_v10, 0  ;;  %v2378_v62 = vshrl.u32 %v2360_v12, %v2376_v47  ;;  %v2381_v28 = vadd.s32 127, %v2380_v4  ;;  %vm2257_vm13 = vc.u32 %v13491_v1, %v13485_v20 }
 0x243   :  { %vm2091_vm14 = vcmp.eq.s32.totalorder %v13469_v10, 2  ;;  %v2393_v17 = vsel %vm13460_vm6, 0, %v2391_v27  ;;  %v2259_v32 = vsel %vm2257_vm13, %v2258_v6, %v13486_v23  ;;  %v10478_v41 = vadd.s32 4294967169, %v2516_v50 }
 0x244   :  { %v11049_v25 = vpop.eup %11048  ;;  %v2379_v43 = vor.u32 %v2378_v62, %v2377_v18  ;;  %v2382_v5 = vshll.u32 %v2381_v28, 23  ;;  %v2397_v0 = vadd.s32 3, %v2393_v17  ;;  %v2260_v57 = vadd.s32 %v2259_v32, %v2255_v22 }
 0x245   :  { %v11051_v14 = vpop.eup %11050  ;;  %v2092_v58 = vxor.u32 2147483648, %v11049_v25  ;;  %v2519_v24 = vand.u32 8388607, %v2512_v55  ;;  %v2522_v31 = vadd.s32 1, %v10478_v41  ;;  %v2411_v59 = vand.u32 2139095040, %v13507_v21 }
 0x246   :  { %v2089_v52 = vxor.u32 2147483648, %v11051_v14  ;;  %v2383_v16 = vor.u32 4788187, %v2382_v5  ;;  %v2386_v54 = vcvt.s32.f32 %v2379_v43  ;;  %v2261_v19 = vadd.s32 536870912, %v2260_v57 }
 0x247   :  { %v2093_v49 = vsel %vm2091_vm14, %v2092_v58, %v11051_v14  ;;  %v7066_v12 = vsel %vm7064_vm9, %v2092_v58, %v11051_v14  ;;  %vm2523_vm15 = vcmp.gt.s32.totalorder %v2522_v31, 0  ;;  %v2408_v36 = vand.u32 2147483647, %v13507_v21 }
 0x248   :  { %v2090_v23 = vsel %vm2088_vm12, %v11049_v25, %v2089_v52  ;;  %v7063_v15 = vsel %vm7061_vm7, %v11049_v25, %v2089_v52  ;;  %v2384_v33 = vand.u32 2147483647, %v2383_v16  ;;  %v2262_v13 = vshrl.u32 %v2261_v19, 30 }
 0x249   :  { %v2094_v30 = vsel %vm2087_vm10, %v2090_v23, %v2093_v49  ;;  %v7067_v27 = vsel %vm7060_vm5, %v7063_v15, %v7066_v12  ;;  %v2524_v22 = vsel %vm2523_vm15, %v2522_v31, 0  ;;  %v2412_v47 = vshrl.u32 %v2411_v59, 23 }
 0x24a   :  { %v2095_v18 = vsel %vm2084_vm11, nan, %v2094_v30  ;;  %v7068_v4 = vsel %vm2084_vm11, nan, %v7067_v27  ;;  %v2387_v50 = vmul.f32 %v2386_v54, %v2384_v33  ;;  %v2263_v6 = vshll.u32 %v2262_v13, 30 }
 0x24b   :  { %10325 = vst [vmem:[#allocation2 + $0xd8] sm:$0xff] %v2095_v18  ;;  %10140 = vrot.lane.b32.xlu0 %v7068_v4, %s11194_s22  ;;  %v2526_v62 = vand.u32 31, %v2524_v22  ;;  %v13537_v10 = vand.u32 3, %v2393_v17  ;;  %vm2202_vm2 = vcmp.lt.s32.totalorder %v13333_v63, 0  ;;  %v13542_v32 = vand.u32 3, %v2397_v0 }
 0x24c   :  { %v2388_v28 = vxor.u32 2147483648, %v2387_v50  ;;  %v13540_v35 = vsub.s32 %v2260_v57, %v2263_v6  ;;  %v2520_v41 = vor.u32 8388608, %v2519_v24  ;;  %v13546_v45 = vand.u32 8388607, %v2408_v36 }
 0x24d   :  { %v2527_v25 = vsub.s32 32, %v2526_v62  ;;  %v2286_v14 = vsub.s32 4, %v2262_v13  ;;  %v10474_v17 = vadd.s32 4294967169, %v2412_v47  ;;  %v2256_v0 = vadd.s32 %v13485_v20, %v13491_v1 }
 0x24e   :  { %v2389_v43 = vsel %vm2306_vm0, %v2388_v28, %v2387_v50  ;;  %v2266_v5 = vsub.s32 0, %v13540_v35  ;;  %v2529_v58 = vshll.u32 %v16537_v40, %v2526_v62  ;;  %v2532_v24 = vshll.u32 %v16533_v42, %v2526_v62 }
 0x24f   :  { %v2392_v57 = vsel %vm13460_vm6, %v13235_v60, %v2389_v43  ;;  %vm13560_vm3 = vcmp.le.f32.partialorder %v2200_v26, 0.7853982  ;;  %v2530_v52 = vshrl.u32 %v16533_v42, %v2527_v25  ;;  %v2533_v3 = vshrl.u32 %v16529_v44, %v2527_v25 }
 0x250   :  { %11052 = vcosq.f32 %v2392_v57  ;;  %v10467_v59 = vmin.u32 %v2266_v5, %v13540_v35  ;;  %v2525_v16 = vshrl.u32 %v2524_v22, 5  ;;  %v2535_v20 = vshll.u32 %v16529_v44, %v2526_v62 }
 0x251   :  { %11054 = vsinq.f32 %v2392_v57  ;;  %v13568_v1 = vshll.u32 %v2520_v41, 8  ;;  %vm2403_vm0 = vcmp.eq.s32.totalorder %v13542_v32, 2  ;;  %vm7373_vm4 = vcmp.eq.s32.totalorder %v13537_v10, 2 }
 0x252   :  { %v2268_v26 = vclz %v10467_v59  ;;  %v2287_v54 = vsel %vm2202_vm2, %v2286_v14, %v2262_v13  ;;  %v2416_v19 = vor.u32 8388608, %v13546_v45  ;;  %v13575_v49 = vadd.s32 1, %v10474_v17 }
 0x253   :  { %vm2400_vm1 = vcmp.eq.s32.totalorder %v13542_v32, 0  ;;  %vm7370_vm6 = vcmp.eq.s32.totalorder %v13537_v10, 0  ;;  %v2528_v12 = vshrl.u32 %v16537_v40, %v2527_v25  ;;  %v2531_v23 = vor.u32 %v2530_v52, %v2529_v58 }
 0x254   :  { %v2534_v15 = vor.u32 %v2533_v3, %v2532_v24  ;;  %v2536_v33 = vshrl.u32 %v16531_v46, %v2527_v25  ;;  %vm2399_vm7 = vcmp.lt.s32.totalorder %v13542_v32, 2  ;;  %vm7369_vm5 = vcmp.lt.s32.totalorder %v13537_v10, 2 }
 0x255   :  { %v10468_v30 = vadd.s32 4294967294, %v2268_v26  ;;  %v2538_v13 = vshll.u32 %v16531_v46, %v2526_v62  ;;  %v2539_v27 = vshrl.u32 %v16522_v48, %v2527_v25  ;;  %v2541_v22 = vshll.u32 %v16522_v48, %v2526_v62 }
 0x256   :  { %vm2396_vm8 = vweird.f32 %v13235_v60  ;;  %v2537_v47 = vor.u32 %v2536_v33, %v2535_v20  ;;  %v2542_v18 = vshrl.u32 %v16524_v56, %v2527_v25  ;;  %vm2544_vm11 = vcmp.lt.s32.totalorder %v2525_v16, 1 }
 0x257   :  { %vm2545_vm9 = vcmp.lt.s32.totalorder %v2525_v16, 2  ;;  %vm10469_vm10 = vcmp.lt.s32.totalorder %v10468_v30, 0  ;;  %v2540_v4 = vor.u32 %v2539_v27, %v2538_v13  ;;  %vm2546_vm12 = vcmp.lt.s32.totalorder %v2525_v16, 3 }
 0x258   :  { %vm2547_vm13 = vcmp.lt.s32.totalorder %v2525_v16, 4  ;;  %v2271_v50 = vsel %vm10469_vm10, 0, %v10468_v30  ;;  %v2543_v6 = vor.u32 %v2542_v18, %v2541_v22  ;;  %v2548_v28 = vsel %vm2544_vm11, %v2528_v12, %v2531_v23  ;;  %v37_v16 = vld [vmem:[%s16518_s0 + $0xc8] sm:$0xff] }
 0x259   :  { %v2549_v41 = vsel %vm2547_vm13, %v2537_v47, 2102212464  ;;  %v2272_v43 = vsub.s32 32, %v2271_v50  ;;  %v2273_v62 = vshll.u32 %v13540_v35, %v2271_v50  ;;  %v2276_v5 = vsub.s32 4294967266, %v2271_v50 }
 0x25a   :  { %v2550_v14 = vsel %vm2546_vm12, %v2534_v15, %v2549_v41  ;;  %v2289_v25 = vsel %vm13560_vm3, 0, %v2287_v54  ;;  %v2552_v17 = vsel %vm2544_vm11, %v2531_v23, %v2534_v15  ;;  %v2553_v57 = vsel %vm2547_vm13, %v2540_v4, 920167782  ;;  %v11053_v24 = vpop.eup %11052 }
 0x25b   :  { %v2556_v58 = vsel %vm2544_vm11, %v2534_v15, %v2537_v47  ;;  %v2274_v59 = vshrl.u32 %v2256_v0, %v2272_v43  ;;  %v2277_v52 = vadd.s32 127, %v2276_v5  ;;  %v2554_v3 = vsel %vm2546_vm12, %v2537_v47, %v2553_v57  ;;  %v11055_v35 = vpop.eup %11054 }
 0x25c   :  { %v2557_v20 = vsel %vm2547_vm13, %v2543_v6, 1326507024  ;;  %v2404_v26 = vxor.u32 2147483648, %v11053_v24  ;;  %v2551_v12 = vsel %vm2545_vm9, %v2548_v28, %v2550_v14  ;;  %v2555_v33 = vsel %vm2545_vm9, %v2552_v17, %v2554_v3 }
 0x25d   :  { %v2558_v54 = vsel %vm2546_vm12, %v2540_v4, %v2557_v20  ;;  %v2401_v23 = vxor.u32 2147483648, %v11055_v35  ;;  %v2275_v30 = vor.u32 %v2274_v59, %v2273_v62  ;;  %v2278_v13 = vshll.u32 %v2277_v52, 23 }
 0x25e   :  { %v2559_v15 = vsel %vm2545_vm9, %v2556_v58, %v2558_v54  ;;  %v2405_v0 = vsel %vm2403_vm0, %v2404_v26, %v11055_v35  ;;  %v7375_v27 = vsel %vm7373_vm4, %v2404_v26, %v11055_v35  ;;  %vm2419_vm14 = vcmp.gt.s32.totalorder %v13575_v49, 0 }
 0x25f   :  { %v13608_v22 = vmul.u32.u64.low %v13568_v1, %v2559_v15  ;;  %v13609_v47 = vmul.u32.u64.high %v13568_v1, %v2559_v15, %v13608_v22  ;;  %v2402_v18 = vsel %vm2400_vm1, %v11053_v24, %v2401_v23  ;;  %v7372_v4 = vsel %vm7370_vm6, %v11053_v24, %v2401_v23 }
 0x260   :  { %v2279_v50 = vor.u32 4788187, %v2278_v13  ;;  %v2282_v6 = vcvt.s32.f32 %v2275_v30  ;;  %v2406_v28 = vsel %vm2399_vm7, %v2402_v18, %v2405_v0  ;;  %v7376_v41 = vsel %vm7369_vm5, %v7372_v4, %v7375_v27 }
 0x261   :  { %v13623_v43 = vmul.u32.u64.low %v13568_v1, %v2555_v33  ;;  %v13624_v62 = vmul.u32.u64.high %v13568_v1, %v2555_v33, %v13623_v43  ;;  %v13629_v5 = vsel %vm2396_vm8, nan, %v2406_v28  ;;  %v7377_v14 = vsel %vm2396_vm8, nan, %v7376_v41 }
 0x262   :  { %16595 = vst [vmem:[#allocation9_spill] sm:$0xff] %v13629_v5  ;;  %v2280_v17 = vand.u32 2147483647, %v2279_v50  ;;  %10146 = vrot.lane.b32.xlu1 %v7377_v14, %s11194_s22  ;;  %v2420_v10 = vsel %vm2419_vm14, %v13575_v49, 0  ;;  %v13637_v32 = vmul.f32 %v11227_v9, %v37_v16  ;;  %v2567_v58 = vmul.u32 %v13568_v1, %v2551_v12 }
 0x263   :  { %vm2569_vm15 = vc.u32 %v13609_v47, %v13623_v43  ;;  %v2422_v24 = vand.u32 31, %v2420_v10  ;;  %v2293_v59 = vadd.s32 3, %v2289_v25  ;;  %v13642_v60 = vand.u32 3, %v2289_v25 }
 0x264   :  { %v2283_v57 = vmul.f32 %v2282_v6, %v2280_v17  ;;  %v2570_v52 = vadd.s32 1, %v13624_v62  ;;  %v13647_v3 = vshll.u32 %v2416_v19, 8  ;;  %v2421_v20 = vshrl.u32 %v2420_v10, 5 }
 0x265   :  { %v2423_v35 = vsub.s32 32, %v2422_v24  ;;  %v2425_v26 = vshll.u32 %v16537_v40, %v2422_v24  ;;  %v2428_v12 = vshll.u32 %v16533_v42, %v2422_v24  ;;  %v2431_v33 = vshll.u32 %v16529_v44, %v2422_v24 }
 0x266   :  { %v2284_v49 = vxor.u32 2147483648, %v2283_v57  ;;  %v2571_v1 = vsel %vm2569_vm15, %v2570_v52, %v13624_v62  ;;  %v2434_v25 = vshll.u32 %v16531_v46, %v2422_v24  ;;  %v2437_v19 = vshll.u32 %v16522_v48, %v2422_v24 }
 0x267   :  { %v2572_v23 = vadd.s32 %v2571_v1, %v2567_v58  ;;  %v2426_v45 = vshrl.u32 %v16533_v42, %v2423_v35  ;;  %v2429_v13 = vshrl.u32 %v16529_v44, %v2423_v35  ;;  %v2432_v15 = vshrl.u32 %v16531_v46, %v2423_v35 }
 0x268   :  { %v2285_v54 = vsel %vm2202_vm2, %v2284_v49, %v2283_v57  ;;  %v2435_v0 = vshrl.u32 %v16522_v48, %v2423_v35  ;;  %v2438_v18 = vshrl.u32 %v16524_v56, %v2423_v35  ;;  %v2424_v28 = vshrl.u32 %v16537_v40, %v2423_v35 }
 0x269   :  { %v2288_v30 = vsel %vm13560_vm3, %v13333_v63, %v2285_v54  ;;  %v2573_v27 = vadd.s32 536870912, %v2572_v23  ;;  %v2427_v22 = vor.u32 %v2426_v45, %v2425_v26  ;;  %v2430_v4 = vor.u32 %v2429_v13, %v2428_v12 }
 0x26a   :  { %11056 = vcosq.f32 %v2288_v30  ;;  %v2433_v50 = vor.u32 %v2432_v15, %v2431_v33  ;;  %v2436_v6 = vor.u32 %v2435_v0, %v2434_v25  ;;  %v2439_v31 = vor.u32 %v2438_v18, %v2437_v19 }
 0x26b   :  { %11058 = vsinq.f32 %v2288_v30  ;;  %v2574_v16 = vshrl.u32 %v2573_v27, 30  ;;  %vm2440_vm2 = vcmp.lt.s32.totalorder %v2421_v20, 1  ;;  %vm2441_vm3 = vcmp.lt.s32.totalorder %v2421_v20, 2 }
 0x26c   :  { %vm2442_vm0 = vcmp.lt.s32.totalorder %v2421_v20, 3  ;;  %vm2443_vm4 = vcmp.lt.s32.totalorder %v2421_v20, 4  ;;  %v2448_v41 = vsel %vm2440_vm2, %v2427_v22, %v2430_v4  ;;  %v2294_v62 = vand.u32 3, %v2293_v59 }
 0x26d   :  { %v2575_v14 = vshll.u32 %v2574_v16, 30  ;;  %v2445_v17 = vsel %vm2443_vm4, %v2433_v50, 2102212464  ;;  %v2449_v10 = vsel %vm2443_vm4, %v2436_v6, 920167782  ;;  %v2452_v58 = vsel %vm2440_vm2, %v2430_v4, %v2433_v50 }
 0x26e   :  { %v2450_v57 = vsel %vm2442_vm0, %v2433_v50, %v2449_v10  ;;  %v2453_v24 = vsel %vm2443_vm4, %v2439_v31, 1326507024  ;;  %v2723_v52 = vand.u32 2139095040, %v13637_v32  ;;  %v2444_v26 = vsel %vm2440_vm2, %v2424_v28, %v2427_v22 }
 0x26f   :  { %v13668_v49 = vsub.s32 %v2572_v23, %v2575_v14  ;;  %v2446_v35 = vsel %vm2442_vm0, %v2430_v4, %v2445_v17  ;;  %v2451_v1 = vsel %vm2441_vm3, %v2448_v41, %v2450_v57  ;;  %vm2292_vm1 = vweird.f32 %v13333_v63 }
 0x270   :  { %v2454_v59 = vsel %vm2442_vm0, %v2436_v6, %v2453_v24  ;;  %v13675_v12 = vmul.u32.u64.low %v13647_v3, %v2451_v1  ;;  %v13676_v33 = vmul.u32.u64.high %v13647_v3, %v2451_v1, %v13675_v12  ;;  %vm7266_vm6 = vcmp.lt.s32.totalorder %v13642_v60, 2 }
 0x271   :  { %vm2514_vm7 = vcmp.lt.s32.totalorder %v13467_v2, 0  ;;  %v2578_v25 = vsub.s32 0, %v13668_v49  ;;  %v2455_v54 = vsel %vm2441_vm3, %v2452_v58, %v2454_v59  ;;  %v2447_v23 = vsel %vm2441_vm3, %v2444_v26, %v2446_v35 }
 0x272   :  { %v13685_v45 = vmul.u32.u64.low %v13647_v3, %v2455_v54  ;;  %v13686_v19 = vmul.u32.u64.high %v13647_v3, %v2455_v54, %v13685_v45  ;;  %v2724_v30 = vshrl.u32 %v2723_v52, 23  ;;  %vm2299_vm5 = vcmp.eq.s32.totalorder %v2294_v62, 2 }
 0x273   :  { %vm7267_vm8 = vcmp.eq.s32.totalorder %v13642_v60, 0  ;;  %vm7270_vm11 = vcmp.eq.s32.totalorder %v13642_v60, 2  ;;  %v10479_v15 = vmin.u32 %v2578_v25, %v13668_v49  ;;  %vm2296_vm9 = vcmp.eq.s32.totalorder %v2294_v62, 0 }
 0x274   :  { %v11057_v13 = vpop.eup %11056  ;;  %v2598_v22 = vsub.s32 4, %v2574_v16  ;;  %v2466_v20 = vadd.s32 1, %v13676_v33  ;;  %vm2295_vm10 = vcmp.lt.s32.totalorder %v2294_v62, 2  ;;  %v2463_v50 = vmul.u32 %v13647_v3, %v2447_v23 }
 0x275   :  { %v11059_v0 = vpop.eup %11058  ;;  %v2300_v27 = vxor.u32 2147483648, %v11057_v13  ;;  %v2580_v4 = vclz %v10479_v15  ;;  %v2568_v31 = vadd.s32 %v13623_v43, %v13609_v47  ;;  %v10486_v41 = vadd.s32 4294967169, %v2724_v30 }
 0x276   :  { %v2297_v18 = vxor.u32 2147483648, %v11059_v0  ;;  %vm2465_vm12 = vc.u32 %v13686_v19, %v13675_v12  ;;  %v2599_v3 = vsel %vm2514_vm7, %v2598_v22, %v2574_v16  ;;  %vm13711_vm14 = vcmp.le.f32.partialorder %v2512_v55, 0.7853982 }
 0x277   :  { %v2301_v6 = vsel %vm2299_vm5, %v2300_v27, %v11059_v0  ;;  %v7272_v28 = vsel %vm7270_vm11, %v2300_v27, %v11059_v0  ;;  %v10480_v10 = vadd.s32 4294967294, %v2580_v4  ;;  %v2467_v58 = vsel %vm2465_vm12, %v2466_v20, %v13676_v33  ;;  %v36_v33 = vld [vmem:[%s16518_s0 + $0xc0] sm:$0xff] }
 0x278   :  { %v2298_v14 = vsel %vm2296_vm9, %v11057_v13, %v2297_v18  ;;  %v7269_v17 = vsel %vm7267_vm8, %v11057_v13, %v2297_v18  ;;  %v2468_v24 = vadd.s32 %v2467_v58, %v2463_v50  ;;  %v2720_v52 = vand.u32 2147483647, %v13637_v32 }
 0x279   :  { %v2302_v57 = vsel %vm2295_vm10, %v2298_v14, %v2301_v6  ;;  %v7273_v62 = vsel %vm7266_vm6, %v7269_v17, %v7272_v28  ;;  %vm10481_vm13 = vcmp.lt.s32.totalorder %v10480_v10, 0  ;;  %v2730_v26 = vadd.s32 1, %v10486_v41 }
 0x27a   :  { %v2303_v47 = vsel %vm2292_vm1, nan, %v2302_v57  ;;  %v7274_v43 = vsel %vm2292_vm1, nan, %v7273_v62  ;;  %v2583_v16 = vsel %vm10481_vm13, 0, %v10480_v10  ;;  %v2469_v59 = vadd.s32 536870912, %v2468_v24 }
 0x27b   :  { %10328 = vst [vmem:[#allocation2 + $0xf0] sm:$0xff] %v2303_v47  ;;  %10144 = vrot.lane.b32.xlu0 %v7274_v43, %s11194_s22  ;;  %v2584_v35 = vsub.s32 32, %v2583_v16  ;;  %v2585_v1 = vshll.u32 %v13668_v49, %v2583_v16  ;;  %v2588_v63 = vsub.s32 4294967266, %v2583_v16  ;;  %v2601_v25 = vsel %vm13711_vm14, 0, %v2599_v3 }
 0x27c   :  { %vm2731_vm15 = vcmp.gt.s32.totalorder %v2730_v26, 0  ;;  %v13722_v23 = vshrl.u32 %v2469_v59, 30  ;;  %v2605_v30 = vadd.s32 3, %v2601_v25  ;;  %v2727_v13 = vand.u32 8388607, %v2720_v52 }
 0x27d   :  { %v2586_v55 = vshrl.u32 %v2568_v31, %v2584_v35  ;;  %v2589_v54 = vadd.s32 127, %v2588_v63  ;;  %v2732_v45 = vsel %vm2731_vm15, %v2730_v26, 0  ;;  %v13727_v15 = vmul.f32 %v11222_v7, %v36_v33 }
 0x27e   :  { %v2734_v49 = vand.u32 31, %v2732_v45  ;;  %v2471_v22 = vshll.u32 %v13722_v23, 30  ;;  %v13732_v6 = vand.u32 3, %v2605_v30  ;;  %v13734_v28 = vand.u32 3, %v2601_v25 }
 0x27f   :  { %v2587_v0 = vor.u32 %v2586_v55, %v2585_v1  ;;  %v2590_v27 = vshll.u32 %v2589_v54, 23  ;;  %v2728_v31 = vor.u32 8388608, %v2727_v13  ;;  %v2619_v41 = vand.u32 2139095040, %v13727_v15 }
 0x280   :  { %v2735_v20 = vsub.s32 32, %v2734_v49  ;;  %v13730_v50 = vsub.s32 %v2468_v24, %v2471_v22  ;;  %v2464_v17 = vadd.s32 %v13675_v12, %v13686_v19  ;;  %v2737_v57 = vshll.u32 %v16537_v40, %v2734_v49 }
 0x281   :  { %v2591_v18 = vor.u32 4788187, %v2590_v27  ;;  %v2594_v4 = vcvt.s32.f32 %v2587_v0  ;;  %v2740_v3 = vshll.u32 %v16533_v42, %v2734_v49  ;;  %v2743_v47 = vshll.u32 %v16529_v44, %v2734_v49 }
 0x282   :  { %v2474_v10 = vsub.s32 0, %v13730_v50  ;;  %v2738_v62 = vshrl.u32 %v16533_v42, %v2735_v20  ;;  %v2741_v58 = vshrl.u32 %v16529_v44, %v2735_v20  ;;  %v2744_v16 = vshrl.u32 %v16531_v46, %v2735_v20 }
 0x283   :  { %v2592_v14 = vand.u32 2147483647, %v2591_v18  ;;  %v2746_v26 = vshll.u32 %v16531_v46, %v2734_v49  ;;  %v2733_v12 = vshrl.u32 %v2732_v45, 5  ;;  %v2747_v19 = vshrl.u32 %v16522_v48, %v2735_v20 }
 0x284   :  { %v10475_v24 = vmin.u32 %v2474_v10, %v13730_v50  ;;  %v13749_v35 = vshll.u32 %v2728_v31, 8  ;;  %v2620_v1 = vshrl.u32 %v2619_v41, 23  ;;  %v2494_v33 = vsub.s32 4, %v13722_v23 }
 0x285   :  { %v2595_v43 = vmul.f32 %v2594_v4, %v2592_v14  ;;  %v2736_v25 = vshrl.u32 %v16537_v40, %v2735_v20  ;;  %v2739_v55 = vor.u32 %v2738_v62, %v2737_v57  ;;  %v2742_v54 = vor.u32 %v2741_v58, %v2740_v3 }
 0x286   :  { %v2476_v59 = vclz %v10475_v24  ;;  %v2749_v30 = vshll.u32 %v16522_v48, %v2734_v49  ;;  %v2750_v13 = vshrl.u32 %v16524_v56, %v2735_v20  ;;  %v2745_v27 = vor.u32 %v2744_v16, %v2743_v47 }
 0x287   :  { %v2596_v63 = vxor.u32 2147483648, %v2595_v43  ;;  %v2748_v22 = vor.u32 %v2747_v19, %v2746_v26  ;;  %vm2410_vm2 = vcmp.lt.s32.totalorder %v13507_v21, 0  ;;  %vm2752_vm3 = vcmp.lt.s32.totalorder %v2733_v12, 1 }
 0x288   :  { %v10476_v0 = vadd.s32 4294967294, %v2476_v59  ;;  %v2751_v4 = vor.u32 %v2750_v13, %v2749_v30  ;;  %vm2755_vm0 = vcmp.lt.s32.totalorder %v2733_v12, 4  ;;  %vm2753_vm1 = vcmp.lt.s32.totalorder %v2733_v12, 2 }
 0x289   :  { %v2597_v45 = vsel %vm2514_vm7, %v2596_v63, %v2595_v43  ;;  %v2757_v49 = vsel %vm2755_vm0, %v2745_v27, 2102212464  ;;  %vm2754_vm6 = vcmp.lt.s32.totalorder %v2733_v12, 3  ;;  %v2756_v31 = vsel %vm2752_vm3, %v2736_v25, %v2739_v55 }
 0x28a   :  { %v2600_v18 = vsel %vm13711_vm14, %v13467_v2, %v2597_v45  ;;  %vm10477_vm4 = vcmp.lt.s32.totalorder %v10476_v0, 0  ;;  %vm13765_vm7 = vcmp.le.f32.partialorder %v2408_v36, 0.7853982  ;;  %v2760_v57 = vsel %vm2752_vm3, %v2739_v55, %v2742_v54 }
 0x28b   :  { %11060 = vcosq.f32 %v2600_v18  ;;  %v2479_v20 = vsel %vm10477_vm4, 0, %v10476_v0  ;;  %v2758_v62 = vsel %vm2754_vm6, %v2742_v54, %v2757_v49  ;;  %v2761_v3 = vsel %vm2755_vm0, %v2748_v22, 920167782 }
 0x28c   :  { %11062 = vsinq.f32 %v2600_v18  ;;  %v2480_v41 = vsub.s32 32, %v2479_v20  ;;  %v2481_v14 = vshll.u32 %v13730_v50, %v2479_v20  ;;  %v2484_v10 = vsub.s32 4294967266, %v2479_v20 }
 0x28d   :  { %v2764_v58 = vsel %vm2752_vm3, %v2742_v54, %v2745_v27  ;;  %v2765_v47 = vsel %vm2755_vm0, %v2751_v4, 1326507024  ;;  %vm7575_vm5 = vcmp.lt.s32.totalorder %v13734_v28, 2  ;;  %v2762_v24 = vsel %vm2754_vm6, %v2745_v27, %v2761_v3 }
 0x28e   :  { %v2482_v43 = vshrl.u32 %v2464_v17, %v2480_v41  ;;  %v2485_v36 = vadd.s32 127, %v2484_v10  ;;  %v2766_v16 = vsel %vm2754_vm6, %v2748_v22, %v2765_v47  ;;  %vm2604_vm8 = vweird.f32 %v13467_v2 }
 0x28f   :  { %vm7576_vm11 = vcmp.eq.s32.totalorder %v13734_v28, 0  ;;  %v2763_v50 = vsel %vm2753_vm1, %v2760_v57, %v2762_v24  ;;  %v2767_v26 = vsel %vm2753_vm1, %v2764_v58, %v2766_v16  ;;  %v10482_v19 = vadd.s32 4294967169, %v2620_v1 }
 0x290   :  { %v2483_v63 = vor.u32 %v2482_v43, %v2481_v14  ;;  %v2486_v59 = vshll.u32 %v2485_v36, 23  ;;  %v13780_v25 = vmul.u32.u64.low %v13749_v35, %v2767_v26  ;;  %v13781_v55 = vmul.u32.u64.high %v13749_v35, %v2767_v26, %v13780_v25 }
 0x291   :  { %v2759_v17 = vsel %vm2753_vm1, %v2756_v31, %v2758_v62  ;;  %v13785_v54 = vmul.u32.u64.low %v13749_v35, %v2763_v50  ;;  %v13786_v30 = vmul.u32.u64.high %v13749_v35, %v2763_v50, %v13785_v54  ;;  %v2626_v13 = vadd.s32 1, %v10482_v19 }
 0x292   :  { %vm7579_vm9 = vcmp.eq.s32.totalorder %v13734_v28, 2  ;;  %v2487_v45 = vor.u32 4788187, %v2486_v59  ;;  %v2490_v0 = vcvt.s32.f32 %v2483_v63  ;;  %v2495_v1 = vsel %vm2410_vm2, %v2494_v33, %v13722_v23 }
 0x293   :  { %vm2608_vm10 = vcmp.eq.s32.totalorder %v13732_v6, 0  ;;  %vm2611_vm12 = vcmp.eq.s32.totalorder %v13732_v6, 2  ;;  %v2616_v12 = vand.u32 2147483647, %v13727_v15  ;;  %vm2627_vm13 = vcmp.gt.s32.totalorder %v2626_v13, 0 }
 0x294   :  { %v2488_v22 = vand.u32 2147483647, %v2487_v45  ;;  %v2775_v18 = vmul.u32 %v13749_v35, %v2759_v17  ;;  %vm2777_vm14 = vc.u32 %v13781_v55, %v13785_v54  ;;  %v2628_v4 = vsel %vm2627_vm13, %v2626_v13, 0 }
 0x295   :  { %v11061_v27 = vpop.eup %11060  ;;  %v2497_v23 = vsel %vm13765_vm7, 0, %v2495_v1  ;;  %v2778_v33 = vadd.s32 1, %v13786_v30  ;;  %v2630_v31 = vand.u32 31, %v2628_v4  ;;  %vm2607_vm15 = vcmp.lt.s32.totalorder %v13732_v6, 2 }
 0x296   :  { %v11063_v49 = vpop.eup %11062  ;;  %v2612_v20 = vxor.u32 2147483648, %v11061_v27  ;;  %v2491_v14 = vmul.f32 %v2490_v0, %v2488_v22  ;;  %v2501_v10 = vadd.s32 3, %v2497_v23  ;;  %v13814_v50 = vand.u32 3, %v2497_v23 }
 0x297   :  { %v2609_v41 = vxor.u32 2147483648, %v11063_v49  ;;  %v2779_v62 = vsel %vm2777_vm14, %v2778_v33, %v13786_v30  ;;  %v2631_v3 = vsub.s32 32, %v2630_v31  ;;  %v2623_v26 = vand.u32 8388607, %v2616_v12 }
 0x298   :  { %v2613_v35 = vsel %vm2611_vm12, %v2612_v20, %v11063_v49  ;;  %v7581_v57 = vsel %vm7579_vm9, %v2612_v20, %v11063_v49  ;;  %v2492_v43 = vxor.u32 2147483648, %v2491_v14  ;;  %v2780_v36 = vadd.s32 %v2779_v62, %v2775_v18 }
 0x299   :  { %v2610_v58 = vsel %vm2608_vm10, %v11061_v27, %v2609_v41  ;;  %v7578_v47 = vsel %vm7576_vm11, %v11061_v27, %v2609_v41  ;;  %v13830_v25 = vshrl.u32 %v2628_v4, 5  ;;  %v2633_v17 = vshll.u32 %v16537_v40, %v2630_v31 }
 0x29a   :  { %v2614_v24 = vsel %vm2607_vm15, %v2610_v58, %v2613_v35  ;;  %v7582_v16 = vsel %vm7575_vm5, %v7578_v47, %v7581_v57  ;;  %v2493_v63 = vsel %vm2410_vm2, %v2492_v43, %v2491_v14  ;;  %v2781_v59 = vadd.s32 536870912, %v2780_v36  ;;  %v39_v58 = vld [vmem:[%s16518_s0 + $0xd8] sm:$0xff] }
 0x29b   :  { %v13820_v19 = vsel %vm2604_vm8, nan, %v2614_v24  ;;  %v7583_v6 = vsel %vm2604_vm8, nan, %v7582_v16  ;;  %v2496_v28 = vsel %vm13765_vm7, %v13507_v21, %v2493_v63  ;;  %v2634_v30 = vshrl.u32 %v16533_v42, %v2631_v3 }
 0x29c   :  { %16600 = vst [vmem:[#allocation10_spill] sm:$0xff] %v13820_v19  ;;  %10150 = vrot.lane.b32.xlu1 %v7583_v6, %s11194_s22  ;;  %11064 = vcosq.f32 %v2496_v28  ;;  %v13834_v13 = vshrl.u32 %v2781_v59, 30  ;;  %v2636_v2 = vshll.u32 %v16533_v42, %v2630_v31  ;;  %v2637_v45 = vshrl.u32 %v16529_v44, %v2631_v3 }
 0x29d   :  { %11066 = vsinq.f32 %v2496_v28  ;;  %v2639_v0 = vshll.u32 %v16529_v44, %v2630_v31  ;;  %v2640_v1 = vshrl.u32 %v16531_v46, %v2631_v3  ;;  %v2642_v60 = vshll.u32 %v16531_v46, %v2630_v31 }
 0x29e   :  { %v2502_v27 = vand.u32 3, %v2501_v10  ;;  %v2783_v22 = vshll.u32 %v13834_v13, 30  ;;  %v2643_v18 = vshrl.u32 %v16522_v48, %v2631_v3  ;;  %vm7473_vm2 = vcmp.eq.s32.totalorder %v13814_v50, 0 }
 0x29f   :  { %vm7476_vm3 = vcmp.eq.s32.totalorder %v13814_v50, 2  ;;  %v2645_v4 = vshll.u32 %v16522_v48, %v2630_v31  ;;  %v2646_v49 = vshrl.u32 %v16524_v56, %v2631_v3  ;;  %vm7472_vm0 = vcmp.lt.s32.totalorder %v13814_v50, 2 }
 0x2a0   :  { %v13848_v20 = vsub.s32 %v2780_v36, %v2783_v22  ;;  %v2624_v23 = vor.u32 8388608, %v2623_v26  ;;  %v2635_v33 = vor.u32 %v2634_v30, %v2633_v17  ;;  %v2644_v41 = vor.u32 %v2643_v18, %v2642_v60 }
 0x2a1   :  { %vm2500_vm4 = vweird.f32 %v13507_v21  ;;  %v2638_v14 = vor.u32 %v2637_v45, %v2636_v2  ;;  %v2641_v10 = vor.u32 %v2640_v1, %v2639_v0  ;;  %v2647_v35 = vor.u32 %v2646_v49, %v2645_v4 }
 0x2a2   :  { %vm2651_vm1 = vcmp.lt.s32.totalorder %v13830_v25, 4  ;;  %vm2503_vm6 = vcmp.lt.s32.totalorder %v2502_v27, 2  ;;  %v2786_v57 = vsub.s32 0, %v13848_v20  ;;  %vm2648_vm7 = vcmp.lt.s32.totalorder %v13830_v25, 1 }
 0x2a3   :  { %vm2650_vm5 = vcmp.lt.s32.totalorder %v13830_v25, 3  ;;  %vm2504_vm8 = vcmp.eq.s32.totalorder %v2502_v27, 0  ;;  %vm2507_vm11 = vcmp.eq.s32.totalorder %v2502_v27, 2  ;;  %v2632_v31 = vshrl.u32 %v16537_v40, %v2631_v3 }
 0x2a4   :  { %v2657_v62 = vsel %vm2651_vm1, %v2644_v41, 920167782  ;;  %v10487_v47 = vmin.u32 %v2786_v57, %v13848_v20  ;;  %vm2649_vm9 = vcmp.lt.s32.totalorder %v13830_v25, 2  ;;  %v2653_v43 = vsel %vm2651_vm1, %v2641_v10, 2102212464 }
 0x2a5   :  { %v2664_v36 = vshll.u32 %v2624_v23, 8  ;;  %vm2722_vm10 = vcmp.lt.s32.totalorder %v13637_v32, 0  ;;  %v2656_v3 = vsel %vm2648_vm7, %v2635_v33, %v2638_v14  ;;  %v2658_v24 = vsel %vm2650_vm5, %v2641_v10, %v2657_v62 }
 0x2a6   :  { %v2660_v16 = vsel %vm2648_vm7, %v2638_v14, %v2641_v10  ;;  %v2661_v26 = vsel %vm2651_vm1, %v2647_v35, 1326507024  ;;  %v11065_v6 = vpop.eup %11064  ;;  %v2776_v63 = vadd.s32 %v13785_v54, %v13781_v55  ;;  %v2788_v59 = vclz %v10487_v47 }
 0x2a7   :  { %v2806_v28 = vsub.s32 4, %v13834_v13  ;;  %v13878_v17 = vmul.f32 %v11227_v9, %v39_v58  ;;  %v11067_v30 = vpop.eup %11066  ;;  %v2508_v2 = vxor.u32 2147483648, %v11065_v6  ;;  %v2652_v45 = vsel %vm2648_vm7, %v2632_v31, %v2635_v33 }
 0x2a8   :  { %v2654_v0 = vsel %vm2650_vm5, %v2638_v14, %v2653_v43  ;;  %v2662_v1 = vsel %vm2650_vm5, %v2644_v41, %v2661_v26  ;;  %v2505_v60 = vxor.u32 2147483648, %v11067_v30  ;;  %v10488_v22 = vadd.s32 4294967294, %v2788_v59 }
 0x2a9   :  { %v2659_v55 = vsel %vm2649_vm9, %v2656_v3, %v2658_v24  ;;  %v2663_v54 = vsel %vm2649_vm9, %v2660_v16, %v2662_v1  ;;  %v2509_v18 = vsel %vm2507_vm11, %v2508_v2, %v11067_v30  ;;  %v7478_v4 = vsel %vm7476_vm3, %v2508_v2, %v11067_v30 }
 0x2aa   :  { %v13893_v49 = vmul.u32.u64.low %v2664_v36, %v2663_v54  ;;  %v13894_v23 = vmul.u32.u64.high %v2664_v36, %v2663_v54, %v13893_v49  ;;  %v2506_v33 = vsel %vm2504_vm8, %v11065_v6, %v2505_v60  ;;  %v7475_v41 = vsel %vm7473_vm2, %v11065_v6, %v2505_v60 }
 0x2ab   :  { %vm10489_vm12 = vcmp.lt.s32.totalorder %v10488_v22, 0  ;;  %v2931_v14 = vand.u32 2139095040, %v13878_v17  ;;  %v2510_v10 = vsel %vm2503_vm6, %v2506_v33, %v2509_v18  ;;  %v7479_v35 = vsel %vm7472_vm0, %v7475_v41, %v7478_v4 }
 0x2ac   :  { %v2791_v57 = vsel %vm10489_vm12, 0, %v10488_v22  ;;  %v2655_v31 = vsel %vm2649_vm9, %v2652_v45, %v2654_v0  ;;  %v2511_v62 = vsel %vm2500_vm4, nan, %v2510_v10  ;;  %v7480_v58 = vsel %vm2500_vm4, nan, %v7479_v35 }
 0x2ad   :  { %v2792_v47 = vsub.s32 32, %v2791_v57  ;;  %v2793_v43 = vshll.u32 %v13848_v20, %v2791_v57  ;;  %10331 = vst [vmem:[#allocation2 + $0x108] sm:$0xff] %v2511_v62  ;;  %10148 = vrot.lane.b32.xlu0 %v7480_v58, %s11194_s22  ;;  %v2796_v27 = vsub.s32 4294967266, %v2791_v57  ;;  %v2932_v24 = vshrl.u32 %v2931_v14, 23 }
 0x2ae   :  { %v13911_v3 = vmul.u32.u64.low %v2664_v36, %v2659_v55  ;;  %v13912_v50 = vmul.u32.u64.high %v2664_v36, %v2659_v55, %v13911_v3  ;;  %v2807_v16 = vsel %vm2722_vm10, %v2806_v28, %v13834_v13  ;;  %vm13920_vm13 = vcmp.le.f32.partialorder %v2720_v52, 0.7853982  ;;  %v38_v28 = vld [vmem:[%s16518_s0 + $0xd0] sm:$0xff] }
 0x2af   :  { %v2794_v25 = vshrl.u32 %v2776_v63, %v2792_v47  ;;  %v2797_v26 = vadd.s32 127, %v2796_v27  ;;  %v10494_v21 = vadd.s32 4294967169, %v2932_v24  ;;  %v2671_v59 = vmul.u32 %v2664_v36, %v2655_v31 }
 0x2b0   :  { %vm2673_vm14 = vc.u32 %v13894_v23, %v13911_v3  ;;  %v2809_v63 = vsel %vm13920_vm13, 0, %v2807_v16  ;;  %v2674_v2 = vadd.s32 1, %v13912_v50  ;;  %v2928_v45 = vand.u32 2147483647, %v13878_v17 }
 0x2b1   :  { %v2795_v6 = vor.u32 %v2794_v25, %v2793_v43  ;;  %v2798_v30 = vshll.u32 %v2797_v26, 23  ;;  %v2938_v13 = vadd.s32 1, %v10494_v21  ;;  %v2813_v52 = vadd.s32 3, %v2809_v63 }
 0x2b2   :  { %v2675_v36 = vsel %vm2673_vm14, %v2674_v2, %v13912_v50  ;;  %v13935_v55 = vmul.f32 %v11222_v7, %v38_v28  ;;  %v13937_v4 = vand.u32 3, %v2809_v63  ;;  %v2935_v14 = vand.u32 8388607, %v2928_v45  ;;  %v41_v50 = vld [vmem:[%s16518_s0 + $0xe8] sm:$0xff] }
 0x2b3   :  { %v2799_v0 = vor.u32 4788187, %v2798_v30  ;;  %v2802_v1 = vcvt.s32.f32 %v2795_v6  ;;  %vm2939_vm15 = vcmp.gt.s32.totalorder %v2938_v13, 0  ;;  %v2676_v60 = vadd.s32 %v2675_v36, %v2671_v59 }
 0x2b4   :  { %v2940_v22 = vsel %vm2939_vm15, %v2938_v13, 0  ;;  %v13939_v41 = vand.u32 3, %v2813_v52  ;;  %v2827_v62 = vand.u32 2139095040, %v13935_v55  ;;  %v13970_v13 = vmul.f32 %v11227_v9, %v41_v50 }
 0x2b5   :  { %v2800_v54 = vand.u32 2147483647, %v2799_v0  ;;  %v2942_v18 = vand.u32 31, %v2940_v22  ;;  %v2677_v49 = vadd.s32 536870912, %v2676_v60  ;;  %v13945_v57 = vshrl.u32 %v2940_v22, 5 }
 0x2b6   :  { %v2936_v28 = vor.u32 8388608, %v2935_v14  ;;  %v2828_v0 = vshrl.u32 %v2827_v62, 23  ;;  %vm2819_vm2 = vcmp.eq.s32.totalorder %v13939_v41, 2  ;;  %vm7785_vm3 = vcmp.eq.s32.totalorder %v13937_v4, 2 }
 0x2b7   :  { %v2803_v33 = vmul.f32 %v2802_v1, %v2800_v54  ;;  %v2943_v10 = vsub.s32 32, %v2942_v18  ;;  %v13943_v35 = vshrl.u32 %v2677_v49, 30  ;;  %v2945_v31 = vshll.u32 %v16537_v40, %v2942_v18 }
 0x2b8   :  { %v2948_v47 = vshll.u32 %v16533_v42, %v2942_v18  ;;  %v2951_v43 = vshll.u32 %v16529_v44, %v2942_v18  ;;  %v2954_v27 = vshll.u32 %v16531_v46, %v2942_v18  ;;  %v2957_v26 = vshll.u32 %v16522_v48, %v2942_v18 }
 0x2b9   :  { %v2804_v58 = vxor.u32 2147483648, %v2803_v33  ;;  %v2679_v24 = vshll.u32 %v13943_v35, 30  ;;  %v2946_v25 = vshrl.u32 %v16533_v42, %v2943_v10  ;;  %v2949_v16 = vshrl.u32 %v16529_v44, %v2943_v10 }
 0x2ba   :  { %v2952_v6 = vshrl.u32 %v16531_v46, %v2943_v10  ;;  %v2955_v59 = vshrl.u32 %v16522_v48, %v2943_v10  ;;  %v2958_v30 = vshrl.u32 %v16524_v56, %v2943_v10  ;;  %v2944_v52 = vshrl.u32 %v16537_v40, %v2943_v10 }
 0x2bb   :  { %v2805_v21 = vsel %vm2722_vm10, %v2804_v58, %v2803_v33  ;;  %v13967_v2 = vsub.s32 %v2676_v60, %v2679_v24  ;;  %v2947_v36 = vor.u32 %v2946_v25, %v2945_v31  ;;  %v2950_v22 = vor.u32 %v2949_v16, %v2948_v47 }
 0x2bc   :  { %v2808_v63 = vsel %vm13920_vm13, %v13637_v32, %v2805_v21  ;;  %v2953_v20 = vor.u32 %v2952_v6, %v2951_v43  ;;  %v2956_v60 = vor.u32 %v2955_v59, %v2954_v27  ;;  %v2959_v54 = vor.u32 %v2958_v30, %v2957_v26 }
 0x2bd   :  { %11068 = vcosq.f32 %v2808_v63  ;;  %v2682_v1 = vsub.s32 0, %v13967_v2  ;;  %vm2960_vm0 = vcmp.lt.s32.totalorder %v13945_v57, 1  ;;  %vm2816_vm4 = vcmp.eq.s32.totalorder %v13939_v41, 0 }
 0x2be   :  { %11070 = vsinq.f32 %v2808_v63  ;;  %vm7782_vm1 = vcmp.eq.s32.totalorder %v13937_v4, 0  ;;  %vm2618_vm6 = vcmp.lt.s32.totalorder %v13727_v15, 0  ;;  %v2672_v18 = vadd.s32 %v13911_v3, %v13894_v23 }
 0x2bf   :  { %v10483_v49 = vmin.u32 %v2682_v1, %v13967_v2  ;;  %vm2963_vm7 = vcmp.lt.s32.totalorder %v13945_v57, 4  ;;  %v2824_v33 = vand.u32 2147483647, %v13935_v55  ;;  %vm2815_vm5 = vcmp.lt.s32.totalorder %v13939_v41, 2 }
 0x2c0   :  { %vm7781_vm8 = vcmp.lt.s32.totalorder %v13937_v4, 2  ;;  %vm2962_vm11 = vcmp.lt.s32.totalorder %v13945_v57, 3  ;;  %v2965_v14 = vsel %vm2963_vm7, %v2953_v20, 2102212464  ;;  %v13990_v10 = vshll.u32 %v2936_v28, 8 }
 0x2c1   :  { %v10490_v31 = vadd.s32 4294967169, %v2828_v0  ;;  %vm2812_vm9 = vweird.f32 %v13637_v32  ;;  %v2684_v23 = vclz %v10483_v49  ;;  %vm2961_vm10 = vcmp.lt.s32.totalorder %v13945_v57, 2 }
 0x2c2   :  { %v2964_v3 = vsel %vm2960_vm0, %v2944_v52, %v2947_v36  ;;  %v2968_v62 = vsel %vm2960_vm0, %v2947_v36, %v2950_v22  ;;  %v2966_v58 = vsel %vm2962_vm11, %v2950_v22, %v2965_v14  ;;  %v2969_v47 = vsel %vm2963_vm7, %v2956_v60, 920167782 }
 0x2c3   :  { %v2972_v43 = vsel %vm2960_vm0, %v2950_v22, %v2953_v20  ;;  %v2973_v27 = vsel %vm2963_vm7, %v2959_v54, 1326507024  ;;  %v10484_v50 = vadd.s32 4294967294, %v2684_v23  ;;  %v2970_v24 = vsel %vm2962_vm11, %v2953_v20, %v2969_v47 }
 0x2c4   :  { %v2974_v25 = vsel %vm2962_vm11, %v2956_v60, %v2973_v27  ;;  %v2831_v16 = vand.u32 8388607, %v2824_v33  ;;  %vm14008_vm12 = vcmp.le.f32.partialorder %v2616_v12, 0.7853982  ;;  %v2702_v21 = vsub.s32 4, %v13943_v35 }
 0x2c5   :  { %v2971_v6 = vsel %vm2961_vm10, %v2968_v62, %v2970_v24  ;;  %v2975_v59 = vsel %vm2961_vm10, %v2972_v43, %v2974_v25  ;;  %v2834_v30 = vadd.s32 1, %v10490_v31  ;;  %vm10485_vm13 = vcmp.lt.s32.totalorder %v10484_v50, 0 }
 0x2c6   :  { %v2967_v63 = vsel %vm2961_vm10, %v2964_v3, %v2966_v58  ;;  %v14020_v28 = vmul.u32.u64.low %v13990_v10, %v2975_v59  ;;  %v14021_v52 = vmul.u32.u64.high %v13990_v10, %v2975_v59, %v14020_v28  ;;  %v2687_v0 = vsel %vm10485_vm13, 0, %v10484_v50 }
 0x2c7   :  { %v11069_v12 = vpop.eup %11068  ;;  %v14024_v1 = vmul.u32.u64.low %v13990_v10, %v2971_v6  ;;  %v14025_v36 = vmul.u32.u64.high %v13990_v10, %v2971_v6, %v14024_v1  ;;  %vm2835_vm14 = vcmp.gt.s32.totalorder %v2834_v30, 0  ;;  %v2688_v60 = vsub.s32 32, %v2687_v0 }
 0x2c8   :  { %v11071_v22 = vpop.eup %11070  ;;  %v2820_v20 = vxor.u32 2147483648, %v11069_v12  ;;  %v2689_v54 = vshll.u32 %v13967_v2, %v2687_v0  ;;  %v2692_v49 = vsub.s32 4294967266, %v2687_v0  ;;  %v2703_v14 = vsel %vm2618_vm6, %v2702_v21, %v13943_v35 }
 0x2c9   :  { %v2817_v57 = vxor.u32 2147483648, %v11071_v22  ;;  %v2983_v31 = vmul.u32 %v13990_v10, %v2967_v63  ;;  %v2832_v23 = vor.u32 8388608, %v2831_v16  ;;  %v2690_v58 = vshrl.u32 %v2672_v18, %v2688_v60 }
 0x2ca   :  { %v2821_v3 = vsel %vm2819_vm2, %v2820_v20, %v11071_v22  ;;  %v7787_v62 = vsel %vm7785_vm3, %v2820_v20, %v11071_v22  ;;  %v2693_v47 = vadd.s32 127, %v2692_v49  ;;  %vm2985_vm15 = vc.u32 %v14021_v52, %v14024_v1 }
 0x2cb   :  { %v2818_v2 = vsel %vm2816_vm4, %v11069_v12, %v2817_v57  ;;  %v7784_v43 = vsel %vm7782_vm1, %v11069_v12, %v2817_v57  ;;  %v2836_v35 = vsel %vm2835_vm14, %v2834_v30, 0  ;;  %v2691_v50 = vor.u32 %v2690_v58, %v2689_v54 }
 0x2cc   :  { %v2822_v10 = vsel %vm2815_vm5, %v2818_v2, %v2821_v3  ;;  %v7788_v27 = vsel %vm7781_vm8, %v7784_v43, %v7787_v62  ;;  %v2694_v18 = vshll.u32 %v2693_v47, 23  ;;  %v2986_v16 = vadd.s32 1, %v14025_v36 }
 0x2cd   :  { %v14050_v24 = vsel %vm2812_vm9, nan, %v2822_v10  ;;  %v7789_v25 = vsel %vm2812_vm9, nan, %v7788_v27  ;;  %v14055_v21 = vshrl.u32 %v2836_v35, 5  ;;  %v2698_v6 = vcvt.s32.f32 %v2691_v50 }
 0x2ce   :  { %16605 = vst [vmem:[#allocation11_spill] sm:$0xff] %v14050_v24  ;;  %10154 = vrot.lane.b32.xlu1 %v7789_v25, %s11194_s22  ;;  %v2695_v41 = vor.u32 4788187, %v2694_v18  ;;  %v2705_v4 = vsel %vm14008_vm12, 0, %v2703_v14  ;;  %v2838_v59 = vand.u32 31, %v2836_v35  ;;  %v2987_v63 = vsel %vm2985_vm15, %v2986_v16, %v14025_v36 }
 0x2cf   :  { %v2709_v30 = vadd.s32 3, %v2705_v4  ;;  %v14064_v32 = vshll.u32 %v2832_v23, 8  ;;  %v3139_v28 = vand.u32 2139095040, %v13970_v13  ;;  %v2988_v0 = vadd.s32 %v2987_v63, %v2983_v31 }
 0x2d0   :  { %v2696_v12 = vand.u32 2147483647, %v2695_v41  ;;  %v2839_v22 = vsub.s32 32, %v2838_v59  ;;  %v2841_v20 = vshll.u32 %v16537_v40, %v2838_v59  ;;  %v2844_v60 = vshll.u32 %v16533_v42, %v2838_v59 }
 0x2d1   :  { %v2847_v54 = vshll.u32 %v16529_v44, %v2838_v59  ;;  %v2850_v49 = vshll.u32 %v16531_v46, %v2838_v59  ;;  %vm2856_vm2 = vcmp.lt.s32.totalorder %v14055_v21, 1  ;;  %v2989_v14 = vadd.s32 536870912, %v2988_v0 }
 0x2d2   :  { %v2699_v57 = vmul.f32 %v2698_v6, %v2696_v12  ;;  %v2842_v36 = vshrl.u32 %v16533_v42, %v2839_v22  ;;  %v2853_v23 = vshll.u32 %v16522_v48, %v2838_v59  ;;  %v2845_v3 = vshrl.u32 %v16529_v44, %v2839_v22 }
 0x2d3   :  { %v2848_v31 = vshrl.u32 %v16531_v46, %v2839_v22  ;;  %v2851_v62 = vshrl.u32 %v16522_v48, %v2839_v22  ;;  %v2854_v58 = vshrl.u32 %v16524_v56, %v2839_v22  ;;  %v14078_v2 = vshrl.u32 %v2989_v14, 30 }
 0x2d4   :  { %v2700_v47 = vxor.u32 2147483648, %v2699_v57  ;;  %v2843_v43 = vor.u32 %v2842_v36, %v2841_v20  ;;  %vm2859_vm3 = vcmp.lt.s32.totalorder %v14055_v21, 4  ;;  %v2846_v35 = vor.u32 %v2845_v3, %v2844_v60 }
 0x2d5   :  { %v2849_v10 = vor.u32 %v2848_v31, %v2847_v54  ;;  %v2852_v27 = vor.u32 %v2851_v62, %v2850_v49  ;;  %v3140_v50 = vshrl.u32 %v3139_v28, 23  ;;  %v2991_v25 = vshll.u32 %v14078_v2, 30 }
 0x2d6   :  { %v2701_v18 = vsel %vm2618_vm6, %v2700_v47, %v2699_v57  ;;  %vm2857_vm0 = vcmp.lt.s32.totalorder %v14055_v21, 2  ;;  %vm2858_vm4 = vcmp.lt.s32.totalorder %v14055_v21, 3  ;;  %v2855_v41 = vor.u32 %v2854_v58, %v2853_v23 }
 0x2d7   :  { %v2704_v16 = vsel %vm14008_vm12, %v13727_v15, %v2701_v18  ;;  %v2864_v6 = vsel %vm2856_vm2, %v2843_v43, %v2846_v35  ;;  %v2865_v59 = vsel %vm2859_vm3, %v2852_v27, 920167782  ;;  %v14093_v63 = vsub.s32 %v2988_v0, %v2991_v25 }
 0x2d8   :  { %11072 = vcosq.f32 %v2704_v16  ;;  %v2840_v28 = vshrl.u32 %v16537_v40, %v2839_v22  ;;  %v2861_v12 = vsel %vm2859_vm3, %v2849_v10, 2102212464  ;;  %v2866_v26 = vsel %vm2858_vm4, %v2849_v10, %v2865_v59 }
 0x2d9   :  { %11074 = vsinq.f32 %v2704_v16  ;;  %v10502_v20 = vadd.s32 4294967169, %v3140_v50  ;;  %v7677_v60 = vand.u32 3, %v2705_v4  ;;  %v2994_v54 = vsub.s32 0, %v14093_v63 }
 0x2da   :  { %v2867_v49 = vsel %vm2857_vm0, %v2864_v6, %v2866_v26  ;;  %v2710_v57 = vand.u32 3, %v2709_v30  ;;  %v2869_v0 = vsel %vm2859_vm3, %v2855_v41, 1326507024  ;;  %v2860_v23 = vsel %vm2856_vm2, %v2840_v28, %v2843_v43 }
 0x2db   :  { %v14106_v22 = vmul.u32.u64.low %v14064_v32, %v2867_v49  ;;  %v14107_v14 = vmul.u32.u64.high %v14064_v32, %v2867_v49, %v14106_v22  ;;  %v10495_v36 = vmin.u32 %v2994_v54, %v14093_v63  ;;  %v2862_v4 = vsel %vm2858_vm4, %v2846_v35, %v2861_v12 }
 0x2dc   :  { %v2868_v3 = vsel %vm2856_vm2, %v2846_v35, %v2849_v10  ;;  %vm2708_vm1 = vweird.f32 %v13727_v15  ;;  %v2870_v30 = vsel %vm2858_vm4, %v2852_v27, %v2869_v0  ;;  %v3136_v31 = vand.u32 2147483647, %v13970_v13 }
 0x2dd   :  { %v3146_v62 = vadd.s32 1, %v10502_v20  ;;  %vm7678_vm6 = vcmp.lt.s32.totalorder %v7677_v60, 2  ;;  %vm7679_vm7 = vcmp.eq.s32.totalorder %v7677_v60, 0  ;;  %vm7682_vm5 = vcmp.eq.s32.totalorder %v7677_v60, 2 }
 0x2de   :  { %v2996_v58 = vclz %v10495_v36  ;;  %vm2711_vm8 = vcmp.lt.s32.totalorder %v2710_v57, 2  ;;  %v2863_v47 = vsel %vm2857_vm0, %v2860_v23, %v2862_v4  ;;  %v2871_v43 = vsel %vm2857_vm0, %v2868_v3, %v2870_v30 }
 0x2df   :  { %vm3147_vm11 = vcmp.gt.s32.totalorder %v3146_v62, 0  ;;  %v14126_v10 = vmul.u32.u64.low %v14064_v32, %v2871_v43  ;;  %v14127_v50 = vmul.u32.u64.high %v14064_v32, %v2871_v43, %v14126_v10  ;;  %vm2712_vm9 = vcmp.eq.s32.totalorder %v2710_v57, 0 }
 0x2e0   :  { %v10496_v35 = vadd.s32 4294967294, %v2996_v58  ;;  %v3148_v27 = vsel %vm3147_vm11, %v3146_v62, 0  ;;  %vm2715_vm10 = vcmp.eq.s32.totalorder %v2710_v57, 2  ;;  %v14131_v18 = vand.u32 8388607, %v3136_v31 }
 0x2e1   :  { %v3150_v25 = vand.u32 31, %v3148_v27  ;;  %v2984_v41 = vadd.s32 %v14024_v1, %v14021_v52  ;;  %v3014_v21 = vsub.s32 4, %v14078_v2  ;;  %v2879_v6 = vmul.u32 %v14064_v32, %v2863_v47 }
 0x2e2   :  { %v11073_v16 = vpop.eup %11072  ;;  %vm10497_vm12 = vcmp.lt.s32.totalorder %v10496_v35, 0  ;;  %vm2930_vm13 = vcmp.lt.s32.totalorder %v13878_v17, 0  ;;  %v2882_v26 = vadd.s32 1, %v14107_v14  ;;  %v14139_v20 = vshrl.u32 %v3148_v27, 5 }
 0x2e3   :  { %v11075_v59 = vpop.eup %11074  ;;  %v2716_v28 = vxor.u32 2147483648, %v11073_v16  ;;  %v2999_v12 = vsel %vm10497_vm12, 0, %v10496_v35  ;;  %vm2881_vm14 = vc.u32 %v14127_v50, %v14106_v22  ;;  %v3151_v32 = vsub.s32 32, %v3150_v25 }
 0x2e4   :  { %v2713_v54 = vxor.u32 2147483648, %v11075_v59  ;;  %v3000_v49 = vsub.s32 32, %v2999_v12  ;;  %v3001_v0 = vshll.u32 %v14093_v63, %v2999_v12  ;;  %v3004_v36 = vsub.s32 4294967266, %v2999_v12 }
 0x2e5   :  { %v2717_v52 = vsel %vm2715_vm10, %v2716_v28, %v11075_v59  ;;  %v7684_v1 = vsel %vm7682_vm5, %v2716_v28, %v11075_v59  ;;  %v2883_v63 = vsel %vm2881_vm14, %v2882_v26, %v14107_v14  ;;  %v3153_v47 = vshll.u32 %v16537_v40, %v3150_v25 }
 0x2e6   :  { %v2714_v23 = vsel %vm2712_vm9, %v11073_v16, %v2713_v54  ;;  %v7681_v4 = vsel %vm7679_vm7, %v11073_v16, %v2713_v54  ;;  %v3002_v3 = vshrl.u32 %v2984_v41, %v3000_v49  ;;  %v3005_v30 = vadd.s32 127, %v3004_v36 }
 0x2e7   :  { %v2718_v62 = vsel %vm2711_vm8, %v2714_v23, %v2717_v52  ;;  %v7685_v58 = vsel %vm7678_vm6, %v7681_v4, %v7684_v1  ;;  %v2884_v16 = vadd.s32 %v2883_v63, %v2879_v6  ;;  %v3154_v57 = vshrl.u32 %v16533_v42, %v3151_v32 }
 0x2e8   :  { %v2719_v43 = vsel %vm2708_vm1, nan, %v2718_v62  ;;  %v7686_v35 = vsel %vm2708_vm1, nan, %v7685_v58  ;;  %v3003_v10 = vor.u32 %v3002_v3, %v3001_v0  ;;  %v3006_v27 = vshll.u32 %v3005_v30, 23 }
 0x2e9   :  { %10334 = vst [vmem:[#allocation2 + $0x120] sm:$0xff] %v2719_v43  ;;  %10152 = vrot.lane.b32.xlu0 %v7686_v35, %s11194_s22  ;;  %v3156_v60 = vshll.u32 %v16533_v42, %v3150_v25  ;;  %v3157_v14 = vshrl.u32 %v16529_v44, %v3151_v32  ;;  %v3159_v28 = vshll.u32 %v16529_v44, %v3150_v25  ;;  %vm14164_vm15 = vcmp.le.f32.partialorder %v2928_v45, 0.7853982 }
 0x2ea   :  { %v3007_v41 = vor.u32 4788187, %v3006_v27  ;;  %v3010_v59 = vcvt.s32.f32 %v3003_v10  ;;  %v3160_v12 = vshrl.u32 %v16531_v46, %v3151_v32  ;;  %v2885_v26 = vadd.s32 536870912, %v2884_v16 }
 0x2eb   :  { %v3144_v6 = vor.u32 8388608, %v14131_v18  ;;  %v3162_v54 = vshll.u32 %v16531_v46, %v3150_v25  ;;  %v3015_v0 = vsel %vm2930_vm13, %v3014_v21, %v14078_v2  ;;  %v3163_v36 = vshrl.u32 %v16522_v48, %v3151_v32 }
 0x2ec   :  { %v3008_v49 = vand.u32 2147483647, %v3007_v41  ;;  %v3165_v52 = vshll.u32 %v16522_v48, %v3150_v25  ;;  %v2886_v1 = vshrl.u32 %v2885_v26, 30  ;;  %v3155_v23 = vor.u32 %v3154_v57, %v3153_v47  ;;  %v40_v41 = vld [vmem:[%s16518_s0 + $0xe0] sm:$0xff] }
 0x2ed   :  { %v3158_v45 = vor.u32 %v3157_v14, %v3156_v60  ;;  %v3166_v4 = vshrl.u32 %v16524_v56, %v3151_v32  ;;  %v3161_v30 = vor.u32 %v3160_v12, %v3159_v28  ;;  %v3164_v62 = vor.u32 %v3163_v36, %v3162_v54 }
 0x2ee   :  { %v3011_v3 = vmul.f32 %v3010_v59, %v3008_v49  ;;  %vm3171_vm2 = vcmp.lt.s32.totalorder %v14139_v20, 4  ;;  %v3017_v18 = vsel %vm14164_vm15, 0, %v3015_v0  ;;  %v2887_v58 = vshll.u32 %v2886_v1, 30 }
 0x2ef   :  { %vm3168_vm3 = vcmp.lt.s32.totalorder %v14139_v20, 1  ;;  %vm3170_vm0 = vcmp.lt.s32.totalorder %v14139_v20, 3  ;;  %v3152_v25 = vshrl.u32 %v16537_v40, %v3151_v32  ;;  %v3167_v21 = vor.u32 %v3166_v4, %v3165_v52 }
 0x2f0   :  { %v3012_v2 = vxor.u32 2147483648, %v3011_v3  ;;  %v3177_v63 = vsel %vm3171_vm2, %v3164_v62, 920167782  ;;  %v3021_v47 = vadd.s32 3, %v3017_v18  ;;  %v14184_v43 = vsub.s32 %v2884_v16, %v2887_v58 }
 0x2f1   :  { %v3173_v35 = vsel %vm3171_vm2, %v3161_v30, 2102212464  ;;  %vm3169_vm4 = vcmp.lt.s32.totalorder %v14139_v20, 2  ;;  %v3176_v27 = vsel %vm3168_vm3, %v3155_v23, %v3158_v45  ;;  %v3178_v32 = vsel %vm3170_vm0, %v3161_v30, %v3177_v63 }
 0x2f2   :  { %v3013_v10 = vsel %vm2930_vm13, %v3012_v2, %v3011_v3  ;;  %v14198_v16 = vand.u32 3, %v3017_v18  ;;  %v2890_v60 = vsub.s32 0, %v14184_v43  ;;  %v3184_v14 = vshll.u32 %v3144_v6, 8 }
 0x2f3   :  { %v3016_v57 = vsel %vm14164_vm15, %v13878_v17, %v3013_v10  ;;  %v3172_v59 = vsel %vm3168_vm3, %v3152_v25, %v3155_v23  ;;  %v3174_v28 = vsel %vm3170_vm0, %v3158_v45, %v3173_v35  ;;  %v3181_v12 = vsel %vm3171_vm2, %v3167_v21, 1326507024  ;;  %v43_v21 = vld [vmem:[%s16518_s0 + $0xf8] sm:$0xff] }
 0x2f4   :  { %11076 = vcosq.f32 %v3016_v57  ;;  %v10491_v15 = vmin.u32 %v2890_v60, %v14184_v43  ;;  %v3179_v26 = vsel %vm3169_vm4, %v3176_v27, %v3178_v32  ;;  %v3180_v6 = vsel %vm3168_vm3, %v3158_v45, %v3161_v30 }
 0x2f5   :  { %11078 = vsinq.f32 %v3016_v57  ;;  %v3022_v54 = vand.u32 3, %v3021_v47  ;;  %v2910_v49 = vsub.s32 4, %v2886_v1  ;;  %v3182_v0 = vsel %vm3170_vm0, %v3164_v62, %v3181_v12 }
 0x2f6   :  { %v14218_v36 = vmul.f32 %v11222_v7, %v40_v41  ;;  %vm7988_vm1 = vcmp.eq.s32.totalorder %v14198_v16, 0  ;;  %vm14223_vm6 = vcmp.le.f32.partialorder %v2824_v33, 0.7853982  ;;  %vm2826_vm7 = vcmp.lt.s32.totalorder %v13935_v55, 0 }
 0x2f7   :  { %v2892_v23 = vclz %v10491_v15  ;;  %vm7987_vm5 = vcmp.lt.s32.totalorder %v14198_v16, 2  ;;  %v3175_v45 = vsel %vm3169_vm4, %v3172_v59, %v3174_v28  ;;  %v3183_v4 = vsel %vm3169_vm4, %v3180_v6, %v3182_v0 }
 0x2f8   :  { %v14233_v3 = vmul.u32.u64.low %v3184_v14, %v3179_v26  ;;  %v14234_v30 = vmul.u32.u64.high %v3184_v14, %v3179_v26, %v14233_v3  ;;  %vm3020_vm8 = vweird.f32 %v13878_v17  ;;  %vm7991_vm11 = vcmp.eq.s32.totalorder %v14198_v16, 2 }
 0x2f9   :  { %v10492_v33 = vadd.s32 4294967294, %v2892_v23  ;;  %v14239_v62 = vmul.u32.u64.low %v3184_v14, %v3183_v4  ;;  %v14240_v18 = vmul.u32.u64.high %v3184_v14, %v3183_v4, %v14239_v62  ;;  %vm3023_vm9 = vcmp.lt.s32.totalorder %v3022_v54, 2 }
 0x2fa   :  { %vm3024_vm10 = vcmp.eq.s32.totalorder %v3022_v54, 0  ;;  %v2911_v58 = vsel %vm2826_vm7, %v2910_v49, %v2886_v1  ;;  %v3035_v20 = vand.u32 2139095040, %v14218_v36  ;;  %vm3027_vm12 = vcmp.eq.s32.totalorder %v3022_v54, 2 }
 0x2fb   :  { %v2880_v2 = vadd.s32 %v14106_v22, %v14127_v50  ;;  %vm10493_vm13 = vcmp.lt.s32.totalorder %v10492_v33, 0  ;;  %v3191_v25 = vmul.u32 %v3184_v14, %v3175_v45  ;;  %v3194_v47 = vadd.s32 1, %v14234_v30 }
 0x2fc   :  { %v2895_v63 = vsel %vm10493_vm13, 0, %v10492_v33  ;;  %v3032_v35 = vand.u32 2147483647, %v14218_v36  ;;  %v3036_v10 = vshrl.u32 %v3035_v20, 23  ;;  %v2913_v57 = vsel %vm14223_vm6, 0, %v2911_v58 }
 0x2fd   :  { %v2896_v27 = vsub.s32 32, %v2895_v63  ;;  %v2897_v1 = vshll.u32 %v14184_v43, %v2895_v63  ;;  %v2900_v32 = vsub.s32 4294967266, %v2895_v63  ;;  %v2917_v50 = vadd.s32 3, %v2913_v57 }
 0x2fe   :  { %v11077_v22 = vpop.eup %11076  ;;  %vm3193_vm14 = vc.u32 %v14240_v18, %v14233_v3  ;;  %v10498_v60 = vadd.s32 4294967169, %v3036_v10  ;;  %v14258_v14 = vmul.f32 %v11227_v9, %v43_v21  ;;  %v3039_v6 = vand.u32 8388607, %v3032_v35 }
 0x2ff   :  { %v11079_v41 = vpop.eup %11078  ;;  %v3028_v59 = vxor.u32 2147483648, %v11077_v22  ;;  %v2898_v28 = vshrl.u32 %v2880_v2, %v2896_v27  ;;  %v2901_v12 = vadd.s32 127, %v2900_v32  ;;  %v3195_v15 = vsel %vm3193_vm14, %v3194_v47, %v14234_v30 }
 0x300   :  { %v3025_v43 = vxor.u32 2147483648, %v11079_v41  ;;  %v3196_v26 = vadd.s32 %v3195_v15, %v3191_v25  ;;  %v3042_v49 = vadd.s32 1, %v10498_v60  ;;  %v3347_v16 = vand.u32 2139095040, %v14258_v14 }
 0x301   :  { %v3029_v0 = vsel %vm3027_vm12, %v3028_v59, %v11079_v41  ;;  %v7993_v23 = vsel %vm7991_vm11, %v3028_v59, %v11079_v41  ;;  %v2899_v45 = vor.u32 %v2898_v28, %v2897_v1  ;;  %v2902_v4 = vshll.u32 %v2901_v12, 23 }
 0x302   :  { %v3026_v33 = vsel %vm3024_vm10, %v11077_v22, %v3025_v43  ;;  %v7990_v62 = vsel %vm7988_vm1, %v11077_v22, %v3025_v43  ;;  %v3197_v58 = vadd.s32 536870912, %v3196_v26  ;;  %vm3043_vm15 = vcmp.gt.s32.totalorder %v3042_v49, 0 }
 0x303   :  { %v3030_v30 = vsel %vm3023_vm9, %v3026_v33, %v3029_v0  ;;  %v7994_v20 = vsel %vm7987_vm5, %v7990_v62, %v7993_v23  ;;  %v2903_v2 = vor.u32 4788187, %v2902_v4  ;;  %v2906_v25 = vcvt.s32.f32 %v2899_v45 }
 0x304   :  { %v14274_v21 = vsel %vm3020_vm8, nan, %v3030_v30  ;;  %v7995_v63 = vsel %vm3020_vm8, nan, %v7994_v20  ;;  %v14278_v47 = vshrl.u32 %v3197_v58, 30  ;;  %v3044_v10 = vsel %vm3043_vm15, %v3042_v49, 0 }
 0x305   :  { %16610 = vst [vmem:[#allocation12_spill] sm:$0xff] %v14274_v21  ;;  %10158 = vrot.lane.b32.xlu1 %v7995_v63, %s11194_s22  ;;  %v2904_v27 = vand.u32 2147483647, %v2903_v2  ;;  %v3046_v54 = vand.u32 31, %v3044_v10  ;;  %v14283_v60 = vand.u32 3, %v2917_v50  ;;  %v14285_v41 = vand.u32 3, %v2913_v57 }
 0x306   :  { %v3199_v1 = vshll.u32 %v14278_v47, 30  ;;  %v3040_v17 = vor.u32 8388608, %v3039_v6  ;;  %v3348_v50 = vshrl.u32 %v3347_v16, 23  ;;  %vm3138_vm2 = vcmp.lt.s32.totalorder %v13970_v13, 0 }
 0x307   :  { %v2907_v32 = vmul.f32 %v2906_v25, %v2904_v27  ;;  %v3047_v22 = vsub.s32 32, %v3046_v54  ;;  %v3049_v12 = vshll.u32 %v16537_v40, %v3046_v54  ;;  %v3052_v43 = vshll.u32 %v16533_v42, %v3046_v54 }
 0x308   :  { %v14287_v59 = vsub.s32 %v3196_v26, %v3199_v1  ;;  %v3055_v23 = vshll.u32 %v16529_v44, %v3046_v54  ;;  %v3058_v6 = vshll.u32 %v16531_v46, %v3046_v54  ;;  %v3045_v62 = vshrl.u32 %v3044_v10, 5 }
 0x309   :  { %v2908_v28 = vxor.u32 2147483648, %v2907_v32  ;;  %v3050_v15 = vshrl.u32 %v16533_v42, %v3047_v22  ;;  %v3053_v0 = vshrl.u32 %v16529_v44, %v3047_v22  ;;  %v3056_v26 = vshrl.u32 %v16531_v46, %v3047_v22 }
 0x30a   :  { %v3202_v49 = vsub.s32 0, %v14287_v59  ;;  %v3059_v45 = vshrl.u32 %v16522_v48, %v3047_v22  ;;  %v3344_v58 = vand.u32 2147483647, %v14258_v14  ;;  %v3192_v30 = vadd.s32 %v14233_v3, %v14240_v18 }
 0x30b   :  { %v2909_v57 = vsel %vm2826_vm7, %v2908_v28, %v2907_v32  ;;  %v3051_v20 = vor.u32 %v3050_v15, %v3049_v12  ;;  %v3054_v2 = vor.u32 %v3053_v0, %v3052_v43  ;;  %v14308_v63 = vshll.u32 %v3040_v17, 8  ;;  %v42_v0 = vld [vmem:[%s16518_s0 + $0xf0] sm:$0xff] }
 0x30c   :  { %v2912_v4 = vsel %vm14223_vm6, %v13935_v55, %v2909_v57  ;;  %v10503_v33 = vmin.u32 %v3202_v49, %v14287_v59  ;;  %v10510_v27 = vadd.s32 4294967169, %v3348_v50  ;;  %vm2923_vm3 = vcmp.eq.s32.totalorder %v14283_v60, 2 }
 0x30d   :  { %11080 = vcosq.f32 %v2912_v4  ;;  %vm7888_vm0 = vcmp.eq.s32.totalorder %v14285_v41, 2  ;;  %v3048_v52 = vshrl.u32 %v16537_v40, %v3047_v22  ;;  %v3057_v10 = vor.u32 %v3056_v26, %v3055_v23 }
 0x30e   :  { %11082 = vsinq.f32 %v2912_v4  ;;  %v3204_v25 = vclz %v10503_v33  ;;  %v3060_v1 = vor.u32 %v3059_v45, %v3058_v6  ;;  %v3061_v16 = vshll.u32 %v16522_v48, %v3046_v54 }
 0x30f   :  { %vm2920_vm4 = vcmp.eq.s32.totalorder %v14283_v60, 0  ;;  %vm7885_vm1 = vcmp.eq.s32.totalorder %v14285_v41, 0  ;;  %v3222_v18 = vsub.s32 4, %v14278_v47  ;;  %v3062_v32 = vshrl.u32 %v16524_v56, %v3047_v22 }
 0x310   :  { %v10504_v3 = vadd.s32 4294967294, %v3204_v25  ;;  %vm3064_vm6 = vcmp.lt.s32.totalorder %v3045_v62, 1  ;;  %vm2919_vm7 = vcmp.lt.s32.totalorder %v14283_v60, 2  ;;  %vm7884_vm5 = vcmp.lt.s32.totalorder %v14285_v41, 2 }
 0x311   :  { %vm3065_vm8 = vcmp.lt.s32.totalorder %v3045_v62, 2  ;;  %vm3066_vm11 = vcmp.lt.s32.totalorder %v3045_v62, 3  ;;  %vm3067_vm9 = vcmp.lt.s32.totalorder %v3045_v62, 4  ;;  %v3072_v17 = vsel %vm3064_vm6, %v3051_v20, %v3054_v2 }
 0x312   :  { %vm2916_vm10 = vweird.f32 %v13935_v55  ;;  %vm10505_vm12 = vcmp.lt.s32.totalorder %v10504_v3, 0  ;;  %v3063_v54 = vor.u32 %v3062_v32, %v3061_v16  ;;  %v3069_v28 = vsel %vm3067_vm9, %v3057_v10, 2102212464 }
 0x313   :  { %v3073_v12 = vsel %vm3067_vm9, %v3060_v1, 920167782  ;;  %v3207_v15 = vsel %vm10505_vm12, 0, %v10504_v3  ;;  %v3068_v22 = vsel %vm3064_vm6, %v3048_v52, %v3051_v20  ;;  %v3070_v43 = vsel %vm3066_vm11, %v3054_v2, %v3069_v28 }
 0x314   :  { %v3074_v49 = vsel %vm3066_vm11, %v3057_v10, %v3073_v12  ;;  %vm14329_vm13 = vcmp.le.f32.partialorder %v3136_v31, 0.7853982  ;;  %v3208_v23 = vsub.s32 32, %v3207_v15  ;;  %v3209_v50 = vshll.u32 %v14287_v59, %v3207_v15 }
 0x315   :  { %v3212_v57 = vsub.s32 4294967266, %v3207_v15  ;;  %v3076_v26 = vsel %vm3064_vm6, %v3054_v2, %v3057_v10  ;;  %v3223_v6 = vsel %vm3138_vm2, %v3222_v18, %v14278_v47  ;;  %v3075_v45 = vsel %vm3065_vm8, %v3072_v17, %v3074_v49 }
 0x316   :  { %v3077_v4 = vsel %vm3067_vm9, %v3063_v54, 1326507024  ;;  %v14342_v31 = vand.u32 8388607, %v3344_v58  ;;  %v3210_v33 = vshrl.u32 %v3192_v30, %v3208_v23  ;;  %v3354_v59 = vadd.s32 1, %v10510_v27 }
 0x317   :  { %v3213_v20 = vadd.s32 127, %v3212_v57  ;;  %v3078_v25 = vsel %vm3066_vm11, %v3060_v1, %v3077_v4  ;;  %v11081_v52 = vpop.eup %11080  ;;  %v3071_v2 = vsel %vm3065_vm8, %v3068_v22, %v3070_v43 }
 0x318   :  { %v3079_v10 = vsel %vm3065_vm8, %v3076_v26, %v3078_v25  ;;  %v14348_v47 = vmul.u32.u64.low %v14308_v63, %v3075_v45  ;;  %v14349_v16 = vmul.u32.u64.high %v14308_v63, %v3075_v45, %v14348_v47  ;;  %v11083_v3 = vpop.eup %11082  ;;  %v2924_v18 = vxor.u32 2147483648, %v11081_v52 }
 0x319   :  { %v3211_v32 = vor.u32 %v3210_v33, %v3209_v50  ;;  %v3214_v17 = vshll.u32 %v3213_v20, 23  ;;  %vm3355_vm14 = vcmp.gt.s32.totalorder %v3354_v59, 0  ;;  %v2921_v30 = vxor.u32 2147483648, %v11083_v3 }
 0x31a   :  { %v14353_v54 = vmul.u32.u64.low %v14308_v63, %v3079_v10  ;;  %v14354_v1 = vmul.u32.u64.high %v14308_v63, %v3079_v10, %v14353_v54  ;;  %v3356_v27 = vsel %vm3355_vm14, %v3354_v59, 0  ;;  %v2925_v62 = vsel %vm2923_vm3, %v2924_v18, %v11083_v3 }
 0x31b   :  { %v7890_v28 = vsel %vm7888_vm0, %v2924_v18, %v11083_v3  ;;  %v3215_v12 = vor.u32 4788187, %v3214_v17  ;;  %v3218_v15 = vcvt.s32.f32 %v3211_v32  ;;  %v2922_v22 = vsel %vm2920_vm4, %v11081_v52, %v2921_v30 }
 0x31c   :  { %v7887_v43 = vsel %vm7885_vm1, %v11081_v52, %v2921_v30  ;;  %v3087_v49 = vmul.u32 %v14308_v63, %v3071_v2  ;;  %v3090_v23 = vadd.s32 1, %v14349_v16  ;;  %v2926_v50 = vsel %vm2919_vm7, %v2922_v22, %v2925_v62 }
 0x31d   :  { %v7891_v57 = vsel %vm7884_vm5, %v7887_v43, %v7890_v28  ;;  %v3216_v26 = vand.u32 2147483647, %v3215_v12  ;;  %v3358_v45 = vand.u32 31, %v3356_v27  ;;  %v2927_v4 = vsel %vm2916_vm10, nan, %v2926_v50 }
 0x31e   :  { %v7892_v33 = vsel %vm2916_vm10, nan, %v7891_v57  ;;  %v3225_v20 = vsel %vm14329_vm13, 0, %v3223_v6  ;;  %vm3089_vm15 = vc.u32 %v14354_v1, %v14348_v47  ;;  %10337 = vst [vmem:[#allocation2 + $0x138] sm:$0xff] %v2927_v4  ;;  %v14381_v52 = vshrl.u32 %v3356_v27, 5 }
 0x31f   :  { %10156 = vrot.lane.b32.xlu0 %v7892_v33, %s11194_s22  ;;  %v3219_v60 = vmul.f32 %v3218_v15, %v3216_v26  ;;  %v3091_v41 = vsel %vm3089_vm15, %v3090_v23, %v14349_v16  ;;  %v3359_v63 = vsub.s32 32, %v3358_v45  ;;  %v3361_v25 = vshll.u32 %v16537_v40, %v3358_v45 }
 0x320   :  { %v3092_v59 = vadd.s32 %v3091_v41, %v3087_v49  ;;  %v3364_v55 = vshll.u32 %v16533_v42, %v3358_v45  ;;  %v3370_v2 = vshll.u32 %v16531_v46, %v3358_v45  ;;  %v3367_v18 = vshll.u32 %v16529_v44, %v3358_v45 }
 0x321   :  { %v3220_v6 = vxor.u32 2147483648, %v3219_v60  ;;  %v3362_v10 = vshrl.u32 %v16533_v42, %v3359_v63  ;;  %v3365_v3 = vshrl.u32 %v16529_v44, %v3359_v63  ;;  %v3368_v16 = vshrl.u32 %v16531_v46, %v3359_v63 }
 0x322   :  { %v3093_v32 = vadd.s32 536870912, %v3092_v59  ;;  %v3371_v17 = vshrl.u32 %v16522_v48, %v3359_v63  ;;  %v3373_v30 = vshll.u32 %v16522_v48, %v3358_v45  ;;  %v3352_v27 = vor.u32 8388608, %v14342_v31 }
 0x323   :  { %v3221_v54 = vsel %vm3138_vm2, %v3220_v6, %v3219_v60  ;;  %v3363_v62 = vor.u32 %v3362_v10, %v3361_v25  ;;  %v3374_v28 = vshrl.u32 %v16524_v56, %v3359_v63  ;;  %v3366_v22 = vor.u32 %v3365_v3, %v3364_v55 }
 0x324   :  { %v3224_v12 = vsel %vm14329_vm13, %v13970_v13, %v3221_v54  ;;  %v14398_v15 = vshrl.u32 %v3093_v32, 30  ;;  %v3372_v43 = vor.u32 %v3371_v17, %v3370_v2  ;;  %v3369_v49 = vor.u32 %v3368_v16, %v3367_v18 }
 0x325   :  { %11084 = vcosq.f32 %v3224_v12  ;;  %v3375_v23 = vor.u32 %v3374_v28, %v3373_v30  ;;  %vm3376_vm3 = vcmp.lt.s32.totalorder %v14381_v52, 1  ;;  %v3229_v50 = vadd.s32 3, %v3225_v20 }
 0x326   :  { %11086 = vsinq.f32 %v3224_v12  ;;  %v3095_v31 = vshll.u32 %v14398_v15, 30  ;;  %vm3378_vm2 = vcmp.lt.s32.totalorder %v14381_v52, 3  ;;  %v8192_v57 = vand.u32 3, %v3225_v20 }
 0x327   :  { %v3360_v26 = vshrl.u32 %v16537_v40, %v3359_v63  ;;  %vm3379_vm0 = vcmp.lt.s32.totalorder %v14381_v52, 4  ;;  %vm3377_vm4 = vcmp.lt.s32.totalorder %v14381_v52, 2  ;;  %v3384_v4 = vsel %vm3376_vm3, %v3363_v62, %v3366_v22 }
 0x328   :  { %v14408_v45 = vsub.s32 %v3092_v59, %v3095_v31  ;;  %v3385_v33 = vsel %vm3379_vm0, %v3372_v43, 920167782  ;;  %v3389_v41 = vsel %vm3379_vm0, %v3375_v23, 1326507024  ;;  %v3392_v25 = vshll.u32 %v3352_v27, 8 }
 0x329   :  { %v3386_v60 = vsel %vm3378_vm2, %v3369_v49, %v3385_v33  ;;  %v14416_v55 = vmul.f32 %v11222_v7, %v42_v0  ;;  %v3230_v20 = vand.u32 3, %v3229_v50  ;;  %v3381_v2 = vsel %vm3379_vm0, %v3369_v49, 2102212464 }
 0x32a   :  { %v3098_v63 = vsub.s32 0, %v14408_v45  ;;  %v3388_v59 = vsel %vm3376_vm3, %v3366_v22, %v3369_v49  ;;  %vm3228_vm1 = vweird.f32 %v13970_v13  ;;  %v3387_v6 = vsel %vm3377_vm4, %v3384_v4, %v3386_v60 }
 0x32b   :  { %v3390_v10 = vsel %vm3378_vm2, %v3372_v43, %v3389_v41  ;;  %vm8193_vm6 = vcmp.lt.s32.totalorder %v8192_v57, 2  ;;  %v3380_v18 = vsel %vm3376_vm3, %v3360_v26, %v3363_v62  ;;  %v3240_v32 = vand.u32 2147483647, %v14416_v55 }
 0x32c   :  { %v10499_v3 = vmin.u32 %v3098_v63, %v14408_v45  ;;  %vm3034_vm7 = vcmp.lt.s32.totalorder %v14218_v36, 0  ;;  %v3382_v16 = vsel %vm3378_vm2, %v3366_v22, %v3381_v2  ;;  %v3391_v17 = vsel %vm3377_vm4, %v3388_v59, %v3390_v10 }
 0x32d   :  { %v14435_v30 = vmul.u32.u64.low %v3392_v25, %v3387_v6  ;;  %v14436_v54 = vmul.u32.u64.high %v3392_v25, %v3387_v6, %v14435_v30  ;;  %vm3231_vm5 = vcmp.lt.s32.totalorder %v3230_v20, 2  ;;  %vm8194_vm8 = vcmp.eq.s32.totalorder %v8192_v57, 0 }
 0x32e   :  { %vm8197_vm11 = vcmp.eq.s32.totalorder %v8192_v57, 2  ;;  %v3100_v27 = vclz %v10499_v3  ;;  %vm3235_vm9 = vcmp.eq.s32.totalorder %v3230_v20, 2  ;;  %v3243_v43 = vand.u32 2139095040, %v14416_v55 }
 0x32f   :  { %v11085_v28 = vpop.eup %11084  ;;  %v14439_v62 = vmul.u32.u64.low %v3392_v25, %v3391_v17  ;;  %v14440_v12 = vmul.u32.u64.high %v3392_v25, %v3391_v17, %v14439_v62  ;;  %vm3232_vm10 = vcmp.eq.s32.totalorder %v3230_v20, 0  ;;  %v3383_v50 = vsel %vm3377_vm4, %v3380_v18, %v3382_v16 }
 0x330   :  { %v11087_v49 = vpop.eup %11086  ;;  %v3236_v22 = vxor.u32 2147483648, %v11085_v28  ;;  %v10500_v23 = vadd.s32 4294967294, %v3100_v27  ;;  %v3088_v0 = vadd.s32 %v14348_v47, %v14354_v1  ;;  %v3118_v26 = vsub.s32 4, %v14398_v15 }
 0x331   :  { %v3233_v31 = vxor.u32 2147483648, %v11087_v49  ;;  %v3402_v4 = vadd.s32 1, %v14436_v54  ;;  %v3244_v41 = vshrl.u32 %v3243_v43, 23  ;;  %v3399_v6 = vmul.u32 %v3392_v25, %v3383_v50  ;;  %v45_v25 = vld [vmem:[%s16518_s0 + $0x108] sm:$0xff] }
 0x332   :  { %v3237_v33 = vsel %vm3235_vm9, %v3236_v22, %v11087_v49  ;;  %v8199_v60 = vsel %vm8197_vm11, %v3236_v22, %v11087_v49  ;;  %vm10501_vm12 = vcmp.lt.s32.totalorder %v10500_v23, 0  ;;  %vm3401_vm13 = vc.u32 %v14440_v12, %v14435_v30 }
 0x333   :  { %v3234_v63 = vsel %vm3232_vm10, %v11085_v28, %v3233_v31  ;;  %v8196_v2 = vsel %vm8194_vm8, %v11085_v28, %v3233_v31  ;;  %v3103_v59 = vsel %vm10501_vm12, 0, %v10500_v23  ;;  %v3403_v20 = vsel %vm3401_vm13, %v3402_v4, %v14436_v54 }
 0x334   :  { %v3238_v52 = vsel %vm3231_vm5, %v3234_v63, %v3237_v33  ;;  %v8200_v10 = vsel %vm8193_vm6, %v8196_v2, %v8199_v60  ;;  %v3104_v3 = vsub.s32 32, %v3103_v59  ;;  %v3105_v47 = vshll.u32 %v14408_v45, %v3103_v59 }
 0x335   :  { %v14456_v1 = vsel %vm3228_vm1, nan, %v3238_v52  ;;  %v8201_v18 = vsel %vm3228_vm1, nan, %v8200_v10  ;;  %v3108_v16 = vsub.s32 4294967266, %v3103_v59  ;;  %v3119_v45 = vsel %vm3034_vm7, %v3118_v26, %v14398_v15 }
 0x336   :  { %16613 = vst [vmem:[#allocation13_spill] sm:$0xff] %v14456_v1  ;;  %10162 = vrot.lane.b32.xlu1 %v8201_v18, %s11194_s22  ;;  %v3106_v57 = vshrl.u32 %v3088_v0, %v3104_v3  ;;  %v10506_v17 = vadd.s32 4294967169, %v3244_v41  ;;  %v3404_v27 = vadd.s32 %v3403_v20, %v3399_v6  ;;  %vm14472_vm14 = vcmp.le.f32.partialorder %v3032_v35, 0.7853982 }
 0x337   :  { %v3109_v13 = vadd.s32 127, %v3108_v16  ;;  %v14477_v49 = vmul.f32 %v11227_v9, %v45_v25  ;;  %v3121_v15 = vsel %vm14472_vm14, 0, %v3119_v45  ;;  %v3247_v54 = vand.u32 8388607, %v3240_v32 }
 0x338   :  { %v3107_v62 = vor.u32 %v3106_v57, %v3105_v47  ;;  %v3250_v43 = vadd.s32 1, %v10506_v17  ;;  %v3405_v23 = vadd.s32 536870912, %v3404_v27  ;;  %v3125_v50 = vadd.s32 3, %v3121_v15 }
 0x339   :  { %v3110_v22 = vshll.u32 %v3109_v13, 23  ;;  %v3248_v41 = vor.u32 8388608, %v3247_v54  ;;  %v3555_v63 = vand.u32 2139095040, %v14477_v49  ;;  %v14489_v59 = vand.u32 3, %v3121_v15 }
 0x33a   :  { %vm3251_vm15 = vcmp.gt.s32.totalorder %v3250_v43, 0  ;;  %v3114_v35 = vcvt.s32.f32 %v3107_v62  ;;  %v14483_v0 = vshrl.u32 %v3405_v23, 30  ;;  %v14487_v2 = vand.u32 3, %v3125_v50 }
 0x33b   :  { %v3111_v31 = vor.u32 4788187, %v3110_v22  ;;  %v3252_v26 = vsel %vm3251_vm15, %v3250_v43, 0  ;;  %v14493_v10 = vadd.s32 %v14435_v30, %v14440_v12  ;;  %v3552_v47 = vand.u32 2147483647, %v14477_v49  ;;  %v44_v30 = vld [vmem:[%s16518_s0 + $0x100] sm:$0xff] }
 0x33c   :  { %v3254_v4 = vand.u32 31, %v3252_v26  ;;  %v3407_v60 = vshll.u32 %v14483_v0, 30  ;;  %v14503_v17 = vshll.u32 %v3248_v41, 8  ;;  %v3556_v13 = vshrl.u32 %v3555_v63, 23 }
 0x33d   :  { %v3112_v33 = vand.u32 2147483647, %v3111_v31  ;;  %vm3346_vm3 = vcmp.lt.s32.totalorder %v14258_v14, 0  ;;  %v3253_v23 = vshrl.u32 %v3252_v26, 5  ;;  %v14518_v54 = vand.u32 8388607, %v3552_v47 }
 0x33e   :  { %v3255_v6 = vsub.s32 32, %v3254_v4  ;;  %v14495_v3 = vsub.s32 %v3404_v27, %v3407_v60  ;;  %v3257_v18 = vshll.u32 %v16537_v40, %v3254_v4  ;;  %v3260_v25 = vshll.u32 %v16533_v42, %v3254_v4 }
 0x33f   :  { %v3115_v52 = vmul.f32 %v3114_v35, %v3112_v33  ;;  %v3263_v12 = vshll.u32 %v16529_v44, %v3254_v4  ;;  %v3266_v62 = vshll.u32 %v16531_v46, %v3254_v4  ;;  %v14524_v33 = vmul.f32 %v11222_v7, %v44_v30 }
 0x340   :  { %v3258_v16 = vshrl.u32 %v16533_v42, %v3255_v6  ;;  %v3261_v57 = vshrl.u32 %v16529_v44, %v3255_v6  ;;  %v3410_v20 = vsub.s32 0, %v14495_v3  ;;  %v3264_v27 = vshrl.u32 %v16531_v46, %v3255_v6 }
 0x341   :  { %v3116_v45 = vxor.u32 2147483648, %v3115_v52  ;;  %v3267_v43 = vshrl.u32 %v16522_v48, %v3255_v6  ;;  %v3256_v41 = vshrl.u32 %v16537_v40, %v3255_v6  ;;  %v10518_v63 = vadd.s32 4294967169, %v3556_v13 }
 0x342   :  { %v10511_v15 = vmin.u32 %v3410_v20, %v14495_v3  ;;  %v3259_v31 = vor.u32 %v3258_v16, %v3257_v18  ;;  %v3262_v35 = vor.u32 %v3261_v57, %v3260_v25  ;;  %v3265_v26 = vor.u32 %v3264_v27, %v3263_v12 }
 0x343   :  { %v3117_v22 = vsel %vm3034_vm7, %v3116_v45, %v3115_v52  ;;  %v3268_v52 = vor.u32 %v3267_v43, %v3266_v62  ;;  %v3269_v45 = vshll.u32 %v16522_v48, %v3254_v4  ;;  %vm3131_vm2 = vcmp.eq.s32.totalorder %v14487_v2, 2 }
 0x344   :  { %v3120_v50 = vsel %vm14472_vm14, %v14218_v36, %v3117_v22  ;;  %v3412_v60 = vclz %v10511_v15  ;;  %vm8094_vm0 = vcmp.eq.s32.totalorder %v14489_v59, 2  ;;  %vm14532_vm4 = vcmp.le.f32.partialorder %v3344_v58, 0.7853982 }
 0x345   :  { %11088 = vcosq.f32 %v3120_v50  ;;  %v3430_v16 = vsub.s32 4, %v14483_v0  ;;  %v3270_v25 = vshrl.u32 %v16524_v56, %v3255_v6  ;;  %vm3272_vm1 = vcmp.lt.s32.totalorder %v3253_v23, 1 }
 0x346   :  { %11090 = vsinq.f32 %v3120_v50  ;;  %v10512_v18 = vadd.s32 4294967294, %v3412_v60  ;;  %vm3128_vm6 = vcmp.eq.s32.totalorder %v14487_v2, 0  ;;  %vm8091_vm7 = vcmp.eq.s32.totalorder %v14489_v59, 0 }
 0x347   :  { %vm3273_vm5 = vcmp.lt.s32.totalorder %v3253_v23, 2  ;;  %vm3274_vm8 = vcmp.lt.s32.totalorder %v3253_v23, 3  ;;  %vm3275_vm11 = vcmp.lt.s32.totalorder %v3253_v23, 4  ;;  %v3280_v4 = vsel %vm3272_vm1, %v3259_v31, %v3262_v35 }
 0x348   :  { %vm3127_vm9 = vcmp.lt.s32.totalorder %v14487_v2, 2  ;;  %vm8090_vm10 = vcmp.lt.s32.totalorder %v14489_v59, 2  ;;  %vm10513_vm12 = vcmp.lt.s32.totalorder %v10512_v18, 0  ;;  %v3271_v58 = vor.u32 %v3270_v25, %v3269_v45 }
 0x349   :  { %v3277_v57 = vsel %vm3275_vm11, %v3265_v26, 2102212464  ;;  %v3281_v6 = vsel %vm3275_vm11, %v3268_v52, 920167782  ;;  %vm3124_vm13 = vweird.f32 %v14218_v36  ;;  %v3415_v20 = vsel %vm10513_vm12, 0, %v10512_v18 }
 0x34a   :  { %v3276_v13 = vsel %vm3272_vm1, %v3256_v41, %v3259_v31  ;;  %v3278_v30 = vsel %vm3274_vm8, %v3262_v35, %v3277_v57  ;;  %v3282_v12 = vsel %vm3274_vm8, %v3265_v26, %v3281_v6  ;;  %v3416_v27 = vsub.s32 32, %v3415_v20 }
 0x34b   :  { %v3417_v62 = vshll.u32 %v14495_v3, %v3415_v20  ;;  %v3420_v43 = vsub.s32 4294967266, %v3415_v20  ;;  %v3284_v22 = vsel %vm3272_vm1, %v3262_v35, %v3265_v26  ;;  %v3431_v15 = vsel %vm3346_vm3, %v3430_v16, %v14483_v0 }
 0x34c   :  { %v3283_v50 = vsel %vm3273_vm5, %v3280_v4, %v3282_v12  ;;  %v3285_v60 = vsel %vm3275_vm11, %v3271_v58, 1326507024  ;;  %v3562_v45 = vadd.s32 1, %v10518_v63  ;;  %v3418_v31 = vshrl.u32 %v14493_v10, %v3416_v27 }
 0x34d   :  { %v3421_v41 = vadd.s32 127, %v3420_v43  ;;  %v3279_v18 = vsel %vm3273_vm5, %v3276_v13, %v3278_v30  ;;  %v3286_v25 = vsel %vm3274_vm8, %v3268_v52, %v3285_v60  ;;  %v3433_v52 = vsel %vm14532_vm4, 0, %v3431_v15 }
 0x34e   :  { %v3287_v3 = vsel %vm3273_vm5, %v3284_v22, %v3286_v25  ;;  %v14561_v35 = vmul.u32.u64.low %v14503_v17, %v3283_v50  ;;  %v14562_v26 = vmul.u32.u64.high %v14503_v17, %v3283_v50, %v14561_v35  ;;  %vm3563_vm14 = vcmp.gt.s32.totalorder %v3562_v45, 0 }
 0x34f   :  { %v11089_v0 = vpop.eup %11088  ;;  %v3419_v16 = vor.u32 %v3418_v31, %v3417_v62  ;;  %v3422_v4 = vshll.u32 %v3421_v41, 23  ;;  %v14566_v63 = vmul.u32.u64.low %v14503_v17, %v3287_v3  ;;  %v14567_v58 = vmul.u32.u64.high %v14503_v17, %v3287_v3, %v14566_v63 }
 0x350   :  { %v11091_v10 = vpop.eup %11090  ;;  %v3132_v57 = vxor.u32 2147483648, %v11089_v0  ;;  %v3560_v23 = vor.u32 8388608, %v14518_v54  ;;  %v3564_v6 = vsel %vm3563_vm14, %v3562_v45, 0  ;;  %v3295_v12 = vmul.u32 %v14503_v17, %v3279_v18 }
 0x351   :  { %v3129_v20 = vxor.u32 2147483648, %v11091_v10  ;;  %v3423_v13 = vor.u32 4788187, %v3422_v4  ;;  %v3426_v30 = vcvt.s32.f32 %v3419_v16  ;;  %v3298_v43 = vadd.s32 1, %v14562_v26 }
 0x352   :  { %v3133_v27 = vsel %vm3131_vm2, %v3132_v57, %v11091_v10  ;;  %v8096_v62 = vsel %vm8094_vm0, %v3132_v57, %v11091_v10  ;;  %v3566_v22 = vand.u32 31, %v3564_v6  ;;  %v3437_v45 = vadd.s32 3, %v3433_v52 }
 0x353   :  { %v3130_v15 = vsel %vm3128_vm6, %v11089_v0, %v3129_v20  ;;  %v8093_v50 = vsel %vm8091_vm7, %v11089_v0, %v3129_v20  ;;  %v3424_v60 = vand.u32 2147483647, %v3423_v13  ;;  %vm3297_vm15 = vc.u32 %v14567_v58, %v14561_v35 }
 0x354   :  { %v3134_v17 = vsel %vm3127_vm9, %v3130_v15, %v3133_v27  ;;  %v8097_v31 = vsel %vm8090_vm10, %v8093_v50, %v8096_v62  ;;  %v3567_v41 = vsub.s32 32, %v3566_v22  ;;  %v3299_v0 = vsel %vm3297_vm15, %v3298_v43, %v14562_v26 }
 0x355   :  { %v3135_v18 = vsel %vm3124_vm13, nan, %v3134_v17  ;;  %v8098_v25 = vsel %vm3124_vm13, nan, %v8097_v31  ;;  %v3427_v3 = vmul.f32 %v3426_v30, %v3424_v60  ;;  %v3300_v2 = vadd.s32 %v3299_v0, %v3295_v12 }
 0x356   :  { %10340 = vst [vmem:[#allocation2 + $0x150] sm:$0xff] %v3135_v18  ;;  %10160 = vrot.lane.b32.xlu0 %v8098_v25, %s11194_s22  ;;  %v3565_v16 = vshrl.u32 %v3564_v6, 5  ;;  %v3569_v59 = vshll.u32 %v16537_v40, %v3566_v22  ;;  %v3570_v4 = vshrl.u32 %v16533_v42, %v3567_v41  ;;  %v3572_v10 = vshll.u32 %v16533_v42, %v3566_v22 }
 0x357   :  { %v3428_v63 = vxor.u32 2147483648, %v3427_v3  ;;  %v3573_v57 = vshrl.u32 %v16529_v44, %v3567_v41  ;;  %v3575_v36 = vshll.u32 %v16529_v44, %v3566_v22  ;;  %v14599_v20 = vand.u32 3, %v3433_v52 }
 0x358   :  { %v3301_v13 = vadd.s32 536870912, %v3300_v2  ;;  %v3576_v26 = vshrl.u32 %v16531_v46, %v3567_v41  ;;  %v3578_v30 = vshll.u32 %v16531_v46, %v3566_v22  ;;  %v3571_v12 = vor.u32 %v3570_v4, %v3569_v59 }
 0x359   :  { %v3429_v6 = vsel %vm3346_vm3, %v3428_v63, %v3427_v3  ;;  %v3579_v27 = vshrl.u32 %v16522_v48, %v3567_v41  ;;  %v3581_v62 = vshll.u32 %v16522_v48, %v3566_v22  ;;  %v3574_v52 = vor.u32 %v3573_v57, %v3572_v10 }
 0x35a   :  { %v3432_v43 = vsel %vm14532_vm4, %v14258_v14, %v3429_v6  ;;  %v14610_v15 = vshrl.u32 %v3301_v13, 30  ;;  %v3582_v50 = vshrl.u32 %v16524_v56, %v3567_v41  ;;  %v3577_v60 = vor.u32 %v3576_v26, %v3575_v36 }
 0x35b   :  { %11092 = vcosq.f32 %v3432_v43  ;;  %v3580_v17 = vor.u32 %v3579_v27, %v3578_v30  ;;  %vm3584_vm2 = vcmp.lt.s32.totalorder %v3565_v16, 1  ;;  %v3568_v18 = vshrl.u32 %v16537_v40, %v3567_v41 }
 0x35c   :  { %11094 = vsinq.f32 %v3432_v43  ;;  %v3303_v31 = vshll.u32 %v14610_v15, 30  ;;  %v3451_v22 = vand.u32 2139095040, %v14524_v33  ;;  %v3583_v25 = vor.u32 %v3582_v50, %v3581_v62 }
 0x35d   :  { %vm3585_vm3 = vcmp.lt.s32.totalorder %v3565_v16, 2  ;;  %vm3586_vm0 = vcmp.lt.s32.totalorder %v3565_v16, 3  ;;  %vm3587_vm4 = vcmp.lt.s32.totalorder %v3565_v16, 4  ;;  %v3592_v0 = vsel %vm3584_vm2, %v3571_v12, %v3574_v52 }
 0x35e   :  { %v14616_v28 = vsub.s32 %v3300_v2, %v3303_v31  ;;  %v3589_v3 = vsel %vm3587_vm4, %v3577_v60, 2102212464  ;;  %v3593_v59 = vsel %vm3587_vm4, %v3580_v17, 920167782  ;;  %v3600_v63 = vshll.u32 %v3560_v23, 8 }
 0x35f   :  { %v3594_v4 = vsel %vm3586_vm0, %v3577_v60, %v3593_v59  ;;  %vm3436_vm1 = vweird.f32 %v14258_v14  ;;  %v3438_v41 = vand.u32 3, %v3437_v45  ;;  %v3588_v57 = vsel %vm3584_vm2, %v3568_v18, %v3571_v12 }
 0x360   :  { %v3306_v10 = vsub.s32 0, %v14616_v28  ;;  %v3590_v36 = vsel %vm3586_vm0, %v3574_v52, %v3589_v3  ;;  %v3595_v2 = vsel %vm3585_vm3, %v3592_v0, %v3594_v4  ;;  %v3597_v13 = vsel %vm3587_vm4, %v3583_v25, 1326507024 }
 0x361   :  { %v3452_v26 = vshrl.u32 %v3451_v22, 23  ;;  %vm8399_vm6 = vcmp.lt.s32.totalorder %v14599_v20, 2  ;;  %v3596_v54 = vsel %vm3584_vm2, %v3574_v52, %v3577_v60  ;;  %v3448_v23 = vand.u32 2147483647, %v14524_v33 }
 0x362   :  { %v10507_v30 = vmin.u32 %v3306_v10, %v14616_v28  ;;  %vm8400_vm7 = vcmp.eq.s32.totalorder %v14599_v20, 0  ;;  %v3598_v45 = vsel %vm3586_vm0, %v3580_v17, %v3597_v13  ;;  %vm3439_vm5 = vcmp.lt.s32.totalorder %v3438_v41, 2 }
 0x363   :  { %v14633_v6 = vmul.u32.u64.low %v3600_v63, %v3595_v2  ;;  %v14634_v12 = vmul.u32.u64.high %v3600_v63, %v3595_v2, %v14633_v6  ;;  %vm8403_vm8 = vcmp.eq.s32.totalorder %v14599_v20, 2  ;;  %v3591_v62 = vsel %vm3585_vm3, %v3588_v57, %v3590_v36 }
 0x364   :  { %v3308_v27 = vclz %v10507_v30  ;;  %vm3440_vm11 = vcmp.eq.s32.totalorder %v3438_v41, 0  ;;  %vm3443_vm9 = vcmp.eq.s32.totalorder %v3438_v41, 2  ;;  %v3599_v52 = vsel %vm3585_vm3, %v3596_v54, %v3598_v45 }
 0x365   :  { %v11093_v43 = vpop.eup %11092  ;;  %v10514_v50 = vadd.s32 4294967169, %v3452_v26  ;;  %v14640_v17 = vmul.u32.u64.low %v3600_v63, %v3599_v52  ;;  %v14641_v22 = vmul.u32.u64.high %v3600_v63, %v3599_v52, %v14640_v17  ;;  %v3296_v3 = vadd.s32 %v14561_v35, %v14567_v58 }
 0x366   :  { %v11095_v60 = vpop.eup %11094  ;;  %v3444_v31 = vxor.u32 2147483648, %v11093_v43  ;;  %v10508_v18 = vadd.s32 4294967294, %v3308_v27  ;;  %v3607_v0 = vmul.u32 %v3600_v63, %v3591_v62  ;;  %v3610_v16 = vadd.s32 1, %v14634_v12 }
 0x367   :  { %v3441_v25 = vxor.u32 2147483648, %v11095_v60  ;;  %v3458_v59 = vadd.s32 1, %v10514_v50  ;;  %v3326_v45 = vsub.s32 4, %v14610_v15  ;;  %vm3609_vm13 = vc.u32 %v14641_v22, %v14633_v6 }
 0x368   :  { %v3445_v4 = vsel %vm3443_vm9, %v3444_v31, %v11095_v60  ;;  %v8405_v10 = vsel %vm8403_vm8, %v3444_v31, %v11095_v60  ;;  %vm10509_vm10 = vcmp.lt.s32.totalorder %v10508_v18, 0  ;;  %vm14667_vm14 = vcmp.le.f32.partialorder %v3240_v32, 0.7853982 }
 0x369   :  { %v3442_v57 = vsel %vm3440_vm11, %v11093_v43, %v3441_v25  ;;  %v8402_v36 = vsel %vm8400_vm7, %v11093_v43, %v3441_v25  ;;  %v3311_v2 = vsel %vm10509_vm10, 0, %v10508_v18  ;;  %vm3459_vm12 = vcmp.gt.s32.totalorder %v3458_v59, 0 }
 0x36a   :  { %v3446_v13 = vsel %vm3439_vm5, %v3442_v57, %v3445_v4  ;;  %v8406_v35 = vsel %vm8399_vm6, %v8402_v36, %v8405_v10  ;;  %v3312_v58 = vsub.s32 32, %v3311_v2  ;;  %v3313_v63 = vshll.u32 %v14616_v28, %v3311_v2 }
 0x36b   :  { %v14657_v26 = vsel %vm3436_vm1, nan, %v3446_v13  ;;  %v8407_v30 = vsel %vm3436_vm1, nan, %v8406_v35  ;;  %v3316_v54 = vsub.s32 4294967266, %v3311_v2  ;;  %v3460_v20 = vsel %vm3459_vm12, %v3458_v59, 0 }
 0x36c   :  { %16618 = vst [vmem:[#allocation14_spill] sm:$0xff] %v14657_v26  ;;  %10166 = vrot.lane.b32.xlu1 %v8407_v30, %s11194_s22  ;;  %v3314_v41 = vshrl.u32 %v3296_v3, %v3312_v58  ;;  %v3611_v14 = vsel %vm3609_vm13, %v3610_v16, %v14634_v12  ;;  %v3462_v62 = vand.u32 31, %v3460_v20  ;;  %vm3242_vm15 = vcmp.lt.s32.totalorder %v14416_v55, 0 }
 0x36d   :  { %v3317_v27 = vadd.s32 127, %v3316_v54  ;;  %v3612_v52 = vadd.s32 %v3611_v14, %v3607_v0  ;;  %v3455_v50 = vand.u32 8388607, %v3448_v23  ;;  %v3327_v31 = vsel %vm3242_vm15, %v3326_v45, %v14610_v15 }
 0x36e   :  { %v3315_v43 = vor.u32 %v3314_v41, %v3313_v63  ;;  %v14678_v32 = vshrl.u32 %v3460_v20, 5  ;;  %v3463_v18 = vsub.s32 32, %v3462_v62  ;;  %v3465_v12 = vshll.u32 %v16537_v40, %v3462_v62 }
 0x36f   :  { %v3318_v60 = vshll.u32 %v3317_v27, 23  ;;  %v3613_v25 = vadd.s32 536870912, %v3612_v52  ;;  %v3468_v3 = vshll.u32 %v16533_v42, %v3462_v62  ;;  %v3471_v4 = vshll.u32 %v16529_v44, %v3462_v62 }
 0x370   :  { %v3322_v17 = vcvt.s32.f32 %v3315_v43  ;;  %v3466_v0 = vshrl.u32 %v16533_v42, %v3463_v18  ;;  %v3474_v10 = vshll.u32 %v16531_v46, %v3462_v62  ;;  %v3469_v15 = vshrl.u32 %v16529_v44, %v3463_v18 }
 0x371   :  { %v3319_v59 = vor.u32 4788187, %v3318_v60  ;;  %v14685_v16 = vshrl.u32 %v3613_v25, 30  ;;  %v3472_v57 = vshrl.u32 %v16531_v46, %v3463_v18  ;;  %v3475_v36 = vshrl.u32 %v16522_v48, %v3463_v18 }
 0x372   :  { %v3329_v13 = vsel %vm14667_vm14, 0, %v3327_v31  ;;  %v3456_v58 = vor.u32 8388608, %v3455_v50  ;;  %v3477_v63 = vshll.u32 %v16522_v48, %v3462_v62  ;;  %v3478_v30 = vshrl.u32 %v16524_v56, %v3463_v18 }
 0x373   :  { %v3320_v2 = vand.u32 2147483647, %v3319_v59  ;;  %v3615_v35 = vshll.u32 %v14685_v16, 30  ;;  %v3464_v45 = vshrl.u32 %v16537_v40, %v3463_v18  ;;  %v3473_v41 = vor.u32 %v3472_v57, %v3471_v4 }
 0x374   :  { %v3476_v20 = vor.u32 %v3475_v36, %v3474_v10  ;;  %v3467_v14 = vor.u32 %v3466_v0, %v3465_v12  ;;  %v3470_v43 = vor.u32 %v3469_v15, %v3468_v3  ;;  %vm3483_vm2 = vcmp.lt.s32.totalorder %v14678_v32, 4 }
 0x375   :  { %v3323_v54 = vmul.f32 %v3322_v17, %v3320_v2  ;;  %v14696_v27 = vsub.s32 %v3612_v52, %v3615_v35  ;;  %v3333_v31 = vadd.s32 3, %v3329_v13  ;;  %vm3480_vm3 = vcmp.lt.s32.totalorder %v14678_v32, 1  ;;  %v47_v17 = vld [vmem:[%s16518_s0 + $0x118] sm:$0xff] }
 0x376   :  { %v3485_v62 = vsel %vm3483_vm2, %v3473_v41, 2102212464  ;;  %vm3554_vm0 = vcmp.lt.s32.totalorder %v14477_v49, 0  ;;  %v3479_v18 = vor.u32 %v3478_v30, %v3477_v63  ;;  %vm3482_vm4 = vcmp.lt.s32.totalorder %v14678_v32, 3 }
 0x377   :  { %v3324_v60 = vxor.u32 2147483648, %v3323_v54  ;;  %v3618_v50 = vsub.s32 0, %v14696_v27  ;;  %v3496_v52 = vshll.u32 %v3456_v58, 8  ;;  %vm3481_vm1 = vcmp.lt.s32.totalorder %v14678_v32, 2 }
 0x378   :  { %v3484_v12 = vsel %vm3480_vm3, %v3464_v45, %v3467_v14  ;;  %v3489_v3 = vsel %vm3483_vm2, %v3476_v20, 920167782  ;;  %v3486_v4 = vsel %vm3482_vm4, %v3470_v43, %v3485_v62  ;;  %v3488_v10 = vsel %vm3480_vm3, %v3467_v14, %v3470_v43 }
 0x379   :  { %v3325_v25 = vsel %vm3242_vm15, %v3324_v60, %v3323_v54  ;;  %v10519_v0 = vmin.u32 %v3618_v50, %v14696_v27  ;;  %v14723_v15 = vand.u32 3, %v3329_v13  ;;  %v3490_v57 = vsel %vm3482_vm4, %v3473_v41, %v3489_v3 }
 0x37a   :  { %v3328_v59 = vsel %vm14667_vm14, %v14416_v55, %v3325_v25  ;;  %v14728_v36 = vmul.f32 %v11227_v9, %v47_v17  ;;  %v3334_v28 = vand.u32 3, %v3333_v31  ;;  %vm14732_vm6 = vcmp.le.f32.partialorder %v3552_v47, 0.7853982 }
 0x37b   :  { %11096 = vcosq.f32 %v3328_v59  ;;  %v3620_v35 = vclz %v10519_v0  ;;  %v3638_v58 = vsub.s32 4, %v14685_v16  ;;  %v3487_v13 = vsel %vm3481_vm1, %v3484_v12, %v3486_v4 }
 0x37c   :  { %11098 = vsinq.f32 %v3328_v59  ;;  %v3491_v63 = vsel %vm3481_vm1, %v3488_v10, %v3490_v57  ;;  %v3492_v30 = vsel %vm3480_vm3, %v3470_v43, %v3473_v41  ;;  %v3493_v54 = vsel %vm3483_vm2, %v3479_v18, 1326507024 }
 0x37d   :  { %v10520_v45 = vadd.s32 4294967294, %v3620_v35  ;;  %v3494_v47 = vsel %vm3482_vm4, %v3476_v20, %v3493_v54  ;;  %v14747_v14 = vmul.u32.u64.low %v3496_v52, %v3491_v63  ;;  %v14748_v60 = vmul.u32.u64.high %v3496_v52, %v3491_v63, %v14747_v14 }
 0x37e   :  { %vm8296_vm7 = vcmp.lt.s32.totalorder %v14723_v15, 2  ;;  %v3608_v31 = vadd.s32 %v14633_v6, %v14641_v22  ;;  %v3495_v62 = vsel %vm3481_vm1, %v3492_v30, %v3494_v47  ;;  %v3763_v41 = vand.u32 2139095040, %v14728_v36 }
 0x37f   :  { %vm3332_vm5 = vweird.f32 %v14416_v55  ;;  %vm10521_vm8 = vcmp.lt.s32.totalorder %v10520_v45, 0  ;;  %v14758_v43 = vmul.u32.u64.low %v3496_v52, %v3495_v62  ;;  %v14759_v50 = vmul.u32.u64.high %v3496_v52, %v3495_v62, %v14758_v43 }
 0x380   :  { %v3760_v20 = vand.u32 2147483647, %v14728_v36  ;;  %v3623_v18 = vsel %vm10521_vm8, 0, %v10520_v45  ;;  %v3639_v17 = vsel %vm3554_vm0, %v3638_v58, %v14685_v16  ;;  %v3503_v25 = vmul.u32 %v3496_v52, %v3487_v13 }
 0x381   :  { %v3764_v6 = vshrl.u32 %v3763_v41, 23  ;;  %v3624_v22 = vsub.s32 32, %v3623_v18  ;;  %v3625_v32 = vshll.u32 %v14696_v27, %v3623_v18  ;;  %v3628_v12 = vsub.s32 4294967266, %v3623_v18 }
 0x382   :  { %v3506_v3 = vadd.s32 1, %v14748_v60  ;;  %vm3336_vm11 = vcmp.eq.s32.totalorder %v3334_v28, 0  ;;  %vm8297_vm9 = vcmp.eq.s32.totalorder %v14723_v15, 0  ;;  %vm8300_vm10 = vcmp.eq.s32.totalorder %v14723_v15, 2 }
 0x383   :  { %v10526_v59 = vadd.s32 4294967169, %v3764_v6  ;;  %vm3339_vm12 = vcmp.eq.s32.totalorder %v3334_v28, 2  ;;  %v3626_v0 = vshrl.u32 %v3608_v31, %v3624_v22  ;;  %v3629_v4 = vadd.s32 127, %v3628_v12 }
 0x384   :  { %vm3505_vm13 = vc.u32 %v14759_v50, %v14747_v14  ;;  %v3641_v52 = vsel %vm14732_vm6, 0, %v3639_v17  ;;  %v3767_v10 = vand.u32 8388607, %v3760_v20  ;;  %vm3335_vm14 = vcmp.lt.s32.totalorder %v3334_v28, 2 }
 0x385   :  { %v11097_v16 = vpop.eup %11096  ;;  %v3507_v27 = vsel %vm3505_vm13, %v3506_v3, %v14748_v60  ;;  %v3770_v57 = vadd.s32 1, %v10526_v59  ;;  %v3627_v13 = vor.u32 %v3626_v0, %v3625_v32  ;;  %v3630_v63 = vshll.u32 %v3629_v4, 23 }
 0x386   :  { %v11099_v35 = vpop.eup %11098  ;;  %v3340_v58 = vxor.u32 2147483648, %v11097_v16  ;;  %v3508_v30 = vadd.s32 %v3507_v27, %v3503_v25  ;;  %v3645_v45 = vadd.s32 3, %v3641_v52  ;;  %v46_v25 = vld [vmem:[%s16518_s0 + $0x110] sm:$0xff]  ;;  %v3768_v12 = vor.u32 8388608, %v3767_v10 }
 0x387   :  { %v3337_v54 = vxor.u32 2147483648, %v11099_v35  ;;  %vm3771_vm15 = vcmp.gt.s32.totalorder %v3770_v57, 0  ;;  %v3631_v62 = vor.u32 4788187, %v3630_v63  ;;  %v3634_v60 = vcvt.s32.f32 %v3627_v13 }
 0x388   :  { %v3341_v47 = vsel %vm3339_vm12, %v3340_v58, %v11099_v35  ;;  %v8302_v31 = vsel %vm8300_vm10, %v3340_v58, %v11099_v35  ;;  %v3509_v18 = vadd.s32 536870912, %v3508_v30  ;;  %v3772_v17 = vsel %vm3771_vm15, %v3770_v57, 0 }
 0x389   :  { %v3338_v41 = vsel %vm3336_vm11, %v11097_v16, %v3337_v54  ;;  %v8299_v43 = vsel %vm8297_vm9, %v11097_v16, %v3337_v54  ;;  %v3632_v32 = vand.u32 2147483647, %v3631_v62  ;;  %v3774_v0 = vand.u32 31, %v3772_v17 }
 0x38a   :  { %v3342_v6 = vsel %vm3335_vm14, %v3338_v41, %v3341_v47  ;;  %v8303_v22 = vsel %vm8296_vm7, %v8299_v43, %v8302_v31  ;;  %v14791_v59 = vshrl.u32 %v3509_v18, 30  ;;  %v14795_v16 = vmul.f32 %v11222_v7, %v46_v25 }
 0x38b   :  { %v3343_v3 = vsel %vm3332_vm5, nan, %v3342_v6  ;;  %v8304_v28 = vsel %vm3332_vm5, nan, %v8303_v22  ;;  %v3635_v4 = vmul.f32 %v3634_v60, %v3632_v32  ;;  %v3775_v27 = vsub.s32 32, %v3774_v0 }
 0x38c   :  { %10343 = vst [vmem:[#allocation2 + $0x168] sm:$0xff] %v3343_v3  ;;  %10164 = vrot.lane.b32.xlu0 %v8304_v28, %s11194_s22  ;;  %v3511_v15 = vshll.u32 %v14791_v59, 30  ;;  %v14798_v57 = vand.u32 3, %v3645_v45  ;;  %v14800_v35 = vand.u32 3, %v3641_v52  ;;  %v14802_v55 = vshll.u32 %v3768_v12, 8 }
 0x38d   :  { %v3636_v10 = vxor.u32 2147483648, %v3635_v4  ;;  %v3777_v13 = vshll.u32 %v16537_v40, %v3774_v0  ;;  %v3778_v63 = vshrl.u32 %v16533_v42, %v3775_v27  ;;  %v3780_v54 = vshll.u32 %v16533_v42, %v3774_v0 }
 0x38e   :  { %v14804_v58 = vsub.s32 %v3508_v30, %v3511_v15  ;;  %v3773_v31 = vshrl.u32 %v3772_v17, 5  ;;  %v3781_v62 = vshrl.u32 %v16529_v44, %v3775_v27  ;;  %v3659_v45 = vand.u32 2139095040, %v14795_v16 }
 0x38f   :  { %v3637_v47 = vsel %vm3554_vm0, %v3636_v10, %v3635_v4  ;;  %v3783_v60 = vshll.u32 %v16529_v44, %v3774_v0  ;;  %v3784_v41 = vshrl.u32 %v16531_v46, %v3775_v27  ;;  %v3776_v43 = vshrl.u32 %v16537_v40, %v3775_v27 }
 0x390   :  { %v3640_v52 = vsel %vm14732_vm6, %v14477_v49, %v3637_v47  ;;  %v3514_v30 = vsub.s32 0, %v14804_v58  ;;  %v3786_v18 = vshll.u32 %v16531_v46, %v3774_v0  ;;  %v3656_v17 = vand.u32 2147483647, %v14795_v16 }
 0x391   :  { %11100 = vcosq.f32 %v3640_v52  ;;  %v3779_v6 = vor.u32 %v3778_v63, %v3777_v13  ;;  %v3782_v22 = vor.u32 %v3781_v62, %v3780_v54  ;;  %vm3651_vm2 = vcmp.eq.s32.totalorder %v14798_v57, 2 }
 0x392   :  { %11102 = vsinq.f32 %v3640_v52  ;;  %v10515_v25 = vmin.u32 %v3514_v30, %v14804_v58  ;;  %vm8609_vm3 = vcmp.eq.s32.totalorder %v14800_v35, 2  ;;  %v3787_v2 = vshrl.u32 %v16522_v48, %v3775_v27 }
 0x393   :  { %v3789_v32 = vshll.u32 %v16522_v48, %v3774_v0  ;;  %vm3792_vm0 = vcmp.lt.s32.totalorder %v3773_v31, 1  ;;  %v3660_v12 = vshrl.u32 %v3659_v45, 23  ;;  %vm3648_vm4 = vcmp.eq.s32.totalorder %v14798_v57, 0 }
 0x394   :  { %vm8606_vm1 = vcmp.eq.s32.totalorder %v14800_v35, 0  ;;  %v3504_v3 = vadd.s32 %v14747_v14, %v14759_v50  ;;  %v3516_v28 = vclz %v10515_v25  ;;  %v3785_v4 = vor.u32 %v3784_v41, %v3783_v60 }
 0x395   :  { %vm3793_vm6 = vcmp.lt.s32.totalorder %v3773_v31, 2  ;;  %vm3647_vm7 = vcmp.lt.s32.totalorder %v14798_v57, 2  ;;  %vm8605_vm5 = vcmp.lt.s32.totalorder %v14800_v35, 2  ;;  %v3788_v15 = vor.u32 %v3787_v2, %v3786_v18 }
 0x396   :  { %v3790_v10 = vshrl.u32 %v16524_v56, %v3775_v27  ;;  %vm3794_vm8 = vcmp.lt.s32.totalorder %v3773_v31, 3  ;;  %vm3795_vm11 = vcmp.lt.s32.totalorder %v3773_v31, 4  ;;  %vm3644_vm9 = vweird.f32 %v14477_v49 }
 0x397   :  { %v10516_v0 = vadd.s32 4294967294, %v3516_v28  ;;  %v3796_v13 = vsel %vm3792_vm0, %v3776_v43, %v3779_v6  ;;  %v3797_v63 = vsel %vm3795_vm11, %v3785_v4, 2102212464  ;;  %v3800_v14 = vsel %vm3792_vm0, %v3779_v6, %v3782_v22 }
 0x398   :  { %v3791_v50 = vor.u32 %v3790_v10, %v3789_v32  ;;  %v3798_v54 = vsel %vm3794_vm8, %v3782_v22, %v3797_v63  ;;  %v3801_v47 = vsel %vm3795_vm11, %v3788_v15, 920167782  ;;  %v10522_v62 = vadd.s32 4294967169, %v3660_v12 }
 0x399   :  { %vm3450_vm10 = vcmp.lt.s32.totalorder %v14524_v33, 0  ;;  %vm10517_vm12 = vcmp.lt.s32.totalorder %v10516_v0, 0  ;;  %v3534_v27 = vsub.s32 4, %v14791_v59  ;;  %v3802_v45 = vsel %vm3794_vm8, %v3785_v4, %v3801_v47 }
 0x39a   :  { %v3804_v52 = vsel %vm3792_vm0, %v3782_v22, %v3785_v4  ;;  %v3519_v30 = vsel %vm10517_vm12, 0, %v10516_v0  ;;  %v3799_v60 = vsel %vm3793_vm6, %v3796_v13, %v3798_v54  ;;  %v3803_v41 = vsel %vm3793_vm6, %v3800_v14, %v3802_v45 }
 0x39b   :  { %v3805_v43 = vsel %vm3795_vm11, %v3791_v50, 1326507024  ;;  %v3520_v18 = vsub.s32 32, %v3519_v30  ;;  %v3521_v25 = vshll.u32 %v14804_v58, %v3519_v30  ;;  %v3524_v6 = vsub.s32 4294967266, %v3519_v30  ;;  %v11101_v32 = vpop.eup %11100 }
 0x39c   :  { %v3806_v2 = vsel %vm3794_vm8, %v3788_v15, %v3805_v43  ;;  %v14851_v28 = vmul.u32.u64.low %v14802_v55, %v3803_v41  ;;  %v14852_v10 = vmul.u32.u64.high %v14802_v55, %v3803_v41, %v14851_v28  ;;  %v3666_v22 = vadd.s32 1, %v10522_v62  ;;  %v11103_v4 = vpop.eup %11102 }
 0x39d   :  { %v3807_v12 = vsel %vm3793_vm6, %v3804_v52, %v3806_v2  ;;  %v3652_v0 = vxor.u32 2147483648, %v11101_v32  ;;  %v3522_v13 = vshrl.u32 %v3504_v3, %v3520_v18  ;;  %v3525_v63 = vadd.s32 127, %v3524_v6 }
 0x39e   :  { %v3815_v14 = vmul.u32 %v14802_v55, %v3799_v60  ;;  %v3649_v50 = vxor.u32 2147483648, %v11103_v4  ;;  %v14857_v58 = vmul.u32.u64.low %v14802_v55, %v3807_v12  ;;  %v14858_v54 = vmul.u32.u64.high %v14802_v55, %v3807_v12, %v14857_v58 }
 0x39f   :  { %vm3667_vm13 = vcmp.gt.s32.totalorder %v3666_v22, 0  ;;  %v3653_v31 = vsel %vm3651_vm2, %v3652_v0, %v11103_v4  ;;  %v8611_v15 = vsel %vm8609_vm3, %v3652_v0, %v11103_v4  ;;  %v3523_v47 = vor.u32 %v3522_v13, %v3521_v25 }
 0x3a0   :  { %v3526_v62 = vshll.u32 %v3525_v63, 23  ;;  %v3650_v3 = vsel %vm3648_vm4, %v11101_v32, %v3649_v50  ;;  %v8608_v45 = vsel %vm8606_vm1, %v11101_v32, %v3649_v50  ;;  %v3818_v52 = vadd.s32 1, %v14852_v10 }
 0x3a1   :  { %v3668_v30 = vsel %vm3667_vm13, %v3666_v22, 0  ;;  %v3654_v55 = vsel %vm3647_vm7, %v3650_v3, %v3653_v31  ;;  %v8612_v60 = vsel %vm8605_vm5, %v8608_v45, %v8611_v15  ;;  %v3530_v43 = vcvt.s32.f32 %v3523_v47 }
 0x3a2   :  { %v3527_v41 = vor.u32 4788187, %v3526_v62  ;;  %v14875_v18 = vsel %vm3644_vm9, nan, %v3654_v55  ;;  %v8613_v25 = vsel %vm3644_vm9, nan, %v8612_v60  ;;  %v3535_v6 = vsel %vm3450_vm10, %v3534_v27, %v14791_v59 }
 0x3a3   :  { %16623 = vst [vmem:[#allocation15_spill] sm:$0xff] %v14875_v18  ;;  %vm3817_vm14 = vc.u32 %v14858_v54, %v14851_v28  ;;  %10170 = vrot.lane.b32.xlu1 %v8613_v25, %s11194_s22  ;;  %v3670_v2 = vand.u32 31, %v3668_v30  ;;  %vm14888_vm15 = vcmp.le.f32.partialorder %v3448_v23, 0.7853982  ;;  %v3663_v12 = vand.u32 8388607, %v3656_v17 }
 0x3a4   :  { %v3528_v57 = vand.u32 2147483647, %v3527_v41  ;;  %v3819_v35 = vsel %vm3817_vm14, %v3818_v52, %v14852_v10  ;;  %v3537_v27 = vsel %vm14888_vm15, 0, %v3535_v6  ;;  %v3669_v52 = vshrl.u32 %v3668_v30, 5 }
 0x3a5   :  { %v3820_v49 = vadd.s32 %v3819_v35, %v3815_v14  ;;  %v3671_v22 = vsub.s32 32, %v3670_v2  ;;  %v3673_v4 = vshll.u32 %v16537_v40, %v3670_v2  ;;  %v3676_v10 = vshll.u32 %v16533_v42, %v3670_v2 }
 0x3a6   :  { %v3531_v59 = vmul.f32 %v3530_v43, %v3528_v57  ;;  %v3679_v13 = vshll.u32 %v16529_v44, %v3670_v2  ;;  %v3682_v23 = vshll.u32 %v16531_v46, %v3670_v2  ;;  %v3685_v58 = vshll.u32 %v16522_v48, %v3670_v2 }
 0x3a7   :  { %v3821_v0 = vadd.s32 536870912, %v3820_v49  ;;  %v3674_v14 = vshrl.u32 %v16533_v42, %v3671_v22  ;;  %v3677_v50 = vshrl.u32 %v16529_v44, %v3671_v22  ;;  %v3680_v15 = vshrl.u32 %v16531_v46, %v3671_v22 }
 0x3a8   :  { %v3532_v63 = vxor.u32 2147483648, %v3531_v59  ;;  %v3683_v47 = vshrl.u32 %v16522_v48, %v3671_v22  ;;  %v3686_v62 = vshrl.u32 %v16524_v56, %v3671_v22  ;;  %v3541_v45 = vadd.s32 3, %v3537_v27 }
 0x3a9   :  { %v14903_v31 = vshrl.u32 %v3821_v0, 30  ;;  %v14913_v60 = vand.u32 3, %v3537_v27  ;;  %v3664_v43 = vor.u32 8388608, %v3663_v12  ;;  %v3675_v25 = vor.u32 %v3674_v14, %v3673_v4  ;;  %v49_v12 = vld [vmem:[%s16518_s0 + $0x128] sm:$0xff] }
 0x3aa   :  { %v3533_v3 = vsel %vm3450_vm10, %v3532_v63, %v3531_v59  ;;  %v3684_v6 = vor.u32 %v3683_v47, %v3682_v23  ;;  %v3687_v57 = vor.u32 %v3686_v62, %v3685_v58  ;;  %v3678_v2 = vor.u32 %v3677_v50, %v3676_v10 }
 0x3ab   :  { %v3536_v55 = vsel %vm14888_vm15, %v14524_v33, %v3533_v3  ;;  %v3823_v41 = vshll.u32 %v14903_v31, 30  ;;  %v3681_v59 = vor.u32 %v3680_v15, %v3679_v13  ;;  %vm3688_vm2 = vcmp.lt.s32.totalorder %v3669_v52, 1 }
 0x3ac   :  { %11104 = vcosq.f32 %v3536_v55  ;;  %vm3691_vm3 = vcmp.lt.s32.totalorder %v3669_v52, 4  ;;  %v3542_v30 = vand.u32 3, %v3541_v45  ;;  %vm3690_vm0 = vcmp.lt.s32.totalorder %v3669_v52, 3  ;;  %v48_v45 = vld [vmem:[%s16518_s0 + $0x120] sm:$0xff] }
 0x3ad   :  { %11106 = vsinq.f32 %v3536_v55  ;;  %v14916_v35 = vsub.s32 %v3820_v49, %v3823_v41  ;;  %v14919_v27 = vshll.u32 %v3664_v43, 8  ;;  %vm8502_vm4 = vcmp.lt.s32.totalorder %v14913_v60, 2 }
 0x3ae   :  { %v3672_v4 = vshrl.u32 %v16537_v40, %v3671_v22  ;;  %vm3689_vm1 = vcmp.lt.s32.totalorder %v3669_v52, 2  ;;  %v3697_v49 = vsel %vm3691_vm3, %v3684_v6, 920167782  ;;  %v3701_v0 = vsel %vm3691_vm3, %v3687_v57, 1326507024 }
 0x3af   :  { %v3826_v32 = vsub.s32 0, %v14916_v35  ;;  %vm3540_vm6 = vweird.f32 %v14524_v33  ;;  %v3693_v13 = vsel %vm3691_vm3, %v3681_v59, 2102212464  ;;  %v3696_v23 = vsel %vm3688_vm2, %v3675_v25, %v3678_v2 }
 0x3b0   :  { %v3700_v63 = vsel %vm3688_vm2, %v3678_v2, %v3681_v59  ;;  %vm8503_vm7 = vcmp.eq.s32.totalorder %v14913_v60, 0  ;;  %v3698_v14 = vsel %vm3690_vm0, %v3681_v59, %v3697_v49  ;;  %v3702_v50 = vsel %vm3690_vm0, %v3684_v6, %v3701_v0 }
 0x3b1   :  { %v10527_v10 = vmin.u32 %v3826_v32, %v14916_v35  ;;  %v14934_v22 = vmul.f32 %v11227_v9, %v49_v12  ;;  %vm3543_vm5 = vcmp.lt.s32.totalorder %v3542_v30, 2  ;;  %vm3544_vm8 = vcmp.eq.s32.totalorder %v3542_v30, 0 }
 0x3b2   :  { %vm8506_vm11 = vcmp.eq.s32.totalorder %v14913_v60, 2  ;;  %v3692_v15 = vsel %vm3688_vm2, %v3672_v4, %v3675_v25  ;;  %v3694_v47 = vsel %vm3690_vm0, %v3678_v2, %v3693_v13  ;;  %v3699_v62 = vsel %vm3689_vm1, %v3696_v23, %v3698_v14 }
 0x3b3   :  { %v3828_v58 = vclz %v10527_v10  ;;  %v3703_v3 = vsel %vm3689_vm1, %v3700_v63, %v3702_v50  ;;  %vm3547_vm9 = vcmp.eq.s32.totalorder %v3542_v30, 2  ;;  %v3816_v25 = vadd.s32 %v14851_v28, %v14858_v54 }
 0x3b4   :  { %v14945_v41 = vmul.u32.u64.low %v14919_v27, %v3703_v3  ;;  %v14946_v43 = vmul.u32.u64.high %v14919_v27, %v3703_v3, %v14945_v41  ;;  %v14951_v57 = vmul.u32.u64.low %v14919_v27, %v3699_v62  ;;  %v14952_v2 = vmul.u32.u64.high %v14919_v27, %v3699_v62, %v14951_v57 }
 0x3b5   :  { %v10528_v55 = vadd.s32 4294967294, %v3828_v58  ;;  %v3971_v59 = vand.u32 2139095040, %v14934_v22  ;;  %v3695_v4 = vsel %vm3689_vm1, %v3692_v15, %v3694_v47  ;;  %v14957_v49 = vmul.f32 %v11222_v7, %v48_v45 }
 0x3b6   :  { %v11105_v6 = vpop.eup %11104  ;;  %v3846_v13 = vsub.s32 4, %v14903_v31  ;;  %v3711_v15 = vmul.u32 %v14919_v27, %v3695_v4  ;;  %vm3713_vm12 = vc.u32 %v14946_v43, %v14951_v57  ;;  %v3714_v41 = vadd.s32 1, %v14952_v2 }
 0x3b7   :  { %v11107_v32 = vpop.eup %11106  ;;  %v3548_v12 = vxor.u32 2147483648, %v11105_v6  ;;  %vm10529_vm10 = vcmp.lt.s32.totalorder %v10528_v55, 0  ;;  %v3972_v23 = vshrl.u32 %v3971_v59, 23  ;;  %vm3762_vm13 = vcmp.lt.s32.totalorder %v14728_v36, 0 }
 0x3b8   :  { %v3545_v0 = vxor.u32 2147483648, %v11107_v32  ;;  %v3831_v10 = vsel %vm10529_vm10, 0, %v10528_v55  ;;  %v3968_v33 = vand.u32 2147483647, %v14934_v22  ;;  %vm14987_vm14 = vcmp.le.f32.partialorder %v3760_v20, 0.7853982 }
 0x3b9   :  { %v3549_v28 = vsel %vm3547_vm9, %v3548_v12, %v11107_v32  ;;  %v8508_v54 = vsel %vm8506_vm11, %v3548_v12, %v11107_v32  ;;  %v3832_v63 = vsub.s32 32, %v3831_v10  ;;  %v3833_v14 = vshll.u32 %v14916_v35, %v3831_v10 }
 0x3ba   :  { %v3546_v50 = vsel %vm3544_vm8, %v11105_v6, %v3545_v0  ;;  %v8505_v52 = vsel %vm8503_vm7, %v11105_v6, %v3545_v0  ;;  %v3836_v58 = vsub.s32 4294967266, %v3831_v10  ;;  %v10534_v60 = vadd.s32 4294967169, %v3972_v23 }
 0x3bb   :  { %v3550_v47 = vsel %vm3543_vm5, %v3546_v50, %v3549_v28  ;;  %v8509_v62 = vsel %vm8502_vm4, %v8505_v52, %v8508_v54  ;;  %v3834_v3 = vshrl.u32 %v3816_v25, %v3832_v63  ;;  %v3847_v6 = vsel %vm3762_vm13, %v3846_v13, %v14903_v31 }
 0x3bc   :  { %v3551_v45 = vsel %vm3540_vm6, nan, %v3550_v47  ;;  %v8510_v35 = vsel %vm3540_vm6, nan, %v8509_v62  ;;  %v3837_v55 = vadd.s32 127, %v3836_v58  ;;  %v3715_v25 = vsel %vm3713_vm12, %v3714_v41, %v14952_v2 }
 0x3bd   :  { %10346 = vst [vmem:[#allocation2 + $0x180] sm:$0xff] %v3551_v45  ;;  %10168 = vrot.lane.b32.xlu0 %v8510_v35, %s11194_s22  ;;  %v3835_v30 = vor.u32 %v3834_v3, %v3833_v14  ;;  %v3716_v59 = vadd.s32 %v3715_v25, %v3711_v15  ;;  %v3978_v32 = vadd.s32 1, %v10534_v60  ;;  %v3867_v12 = vand.u32 2139095040, %v14957_v49 }
 0x3be   :  { %v3838_v27 = vshll.u32 %v3837_v55, 23  ;;  %v3849_v23 = vsel %vm14987_vm14, 0, %v3847_v6  ;;  %v3975_v28 = vand.u32 8388607, %v3968_v33  ;;  %v3864_v45 = vand.u32 2147483647, %v14957_v49 }
 0x3bf   :  { %v3842_v10 = vcvt.s32.f32 %v3835_v30  ;;  %v3717_v31 = vadd.s32 536870912, %v3716_v59  ;;  %vm3979_vm15 = vcmp.gt.s32.totalorder %v3978_v32, 0  ;;  %v3853_v13 = vadd.s32 3, %v3849_v23 }
 0x3c0   :  { %v3839_v0 = vor.u32 4788187, %v3838_v27  ;;  %v3980_v54 = vsel %vm3979_vm15, %v3978_v32, 0  ;;  %v3868_v20 = vshrl.u32 %v3867_v12, 23  ;;  %v14997_v52 = vand.u32 3, %v3849_v23 }
 0x3c1   :  { %v14995_v63 = vshrl.u32 %v3717_v31, 30  ;;  %v3982_v14 = vand.u32 31, %v3980_v54  ;;  %v15000_v62 = vand.u32 3, %v3853_v13  ;;  %v3976_v3 = vor.u32 8388608, %v3975_v28 }
 0x3c2   :  { %v3840_v2 = vand.u32 2147483647, %v3839_v0  ;;  %v15004_v35 = vadd.s32 %v14951_v57, %v14946_v43  ;;  %v10530_v30 = vadd.s32 4294967169, %v3868_v20  ;;  %v3981_v12 = vshrl.u32 %v3980_v54, 5 }
 0x3c3   :  { %v3719_v58 = vshll.u32 %v14995_v63, 30  ;;  %v3983_v15 = vsub.s32 32, %v3982_v14  ;;  %v3985_v41 = vshll.u32 %v16537_v40, %v3982_v14  ;;  %v3988_v6 = vshll.u32 %v16533_v42, %v3982_v14 }
 0x3c4   :  { %v3843_v50 = vmul.f32 %v3842_v10, %v3840_v2  ;;  %v3991_v57 = vshll.u32 %v16529_v44, %v3982_v14  ;;  %v3994_v0 = vshll.u32 %v16531_v46, %v3982_v14  ;;  %v15021_v10 = vshll.u32 %v3976_v3, 8 }
 0x3c5   :  { %v15006_v55 = vsub.s32 %v3716_v59, %v3719_v58  ;;  %v3986_v27 = vshrl.u32 %v16533_v42, %v3983_v15  ;;  %v3989_v25 = vshrl.u32 %v16529_v44, %v3983_v15  ;;  %v3992_v59 = vshrl.u32 %v16531_v46, %v3983_v15 }
 0x3c6   :  { %v3844_v47 = vxor.u32 2147483648, %v3843_v50  ;;  %vm3658_vm2 = vcmp.lt.s32.totalorder %v14795_v16, 0  ;;  %v3984_v4 = vshrl.u32 %v16537_v40, %v3983_v15  ;;  %v15028_v31 = vand.u32 8388607, %v3864_v45 }
 0x3c7   :  { %v3722_v43 = vsub.s32 0, %v15006_v55  ;;  %vm3859_vm3 = vcmp.eq.s32.totalorder %v15000_v62, 2  ;;  %vm8815_vm0 = vcmp.eq.s32.totalorder %v14997_v52, 2  ;;  %v3987_v2 = vor.u32 %v3986_v27, %v3985_v41 }
 0x3c8   :  { %v3845_v60 = vsel %vm3762_vm13, %v3844_v47, %v3843_v50  ;;  %v3990_v13 = vor.u32 %v3989_v25, %v3988_v6  ;;  %v3995_v28 = vshrl.u32 %v16522_v48, %v3983_v15  ;;  %v3997_v54 = vshll.u32 %v16522_v48, %v3982_v14 }
 0x3c9   :  { %v3848_v32 = vsel %vm14987_vm14, %v14728_v36, %v3845_v60  ;;  %v10523_v23 = vmin.u32 %v3722_v43, %v15006_v55  ;;  %vm3856_vm4 = vcmp.eq.s32.totalorder %v15000_v62, 0  ;;  %vm8812_vm1 = vcmp.eq.s32.totalorder %v14997_v52, 0 }
 0x3ca   :  { %11108 = vcosq.f32 %v3848_v32  ;;  %v3742_v50 = vsub.s32 4, %v14995_v63  ;;  %v3993_v58 = vor.u32 %v3992_v59, %v3991_v57  ;;  %v3874_v47 = vadd.s32 1, %v10530_v30 }
 0x3cb   :  { %11110 = vsinq.f32 %v3848_v32  ;;  %v3724_v20 = vclz %v10523_v23  ;;  %vm3855_vm6 = vcmp.lt.s32.totalorder %v15000_v62, 2  ;;  %vm8811_vm7 = vcmp.lt.s32.totalorder %v14997_v52, 2 }
 0x3cc   :  { %v3996_v3 = vor.u32 %v3995_v28, %v3994_v0  ;;  %v3998_v41 = vshrl.u32 %v16524_v56, %v3983_v15  ;;  %vm4000_vm5 = vcmp.lt.s32.totalorder %v3981_v12, 1  ;;  %vm4001_vm8 = vcmp.lt.s32.totalorder %v3981_v12, 2 }
 0x3cd   :  { %vm3852_vm11 = vweird.f32 %v14728_v36  ;;  %v10524_v14 = vadd.s32 4294967294, %v3724_v20  ;;  %vm4002_vm9 = vcmp.lt.s32.totalorder %v3981_v12, 3  ;;  %vm4003_vm10 = vcmp.lt.s32.totalorder %v3981_v12, 4 }
 0x3ce   :  { %v4004_v60 = vsel %vm4000_vm5, %v3984_v4, %v3987_v2  ;;  %v3999_v27 = vor.u32 %v3998_v41, %v3997_v54  ;;  %v4005_v6 = vsel %vm4003_vm10, %v3993_v58, 2102212464  ;;  %v4008_v25 = vsel %vm4000_vm5, %v3987_v2, %v3990_v13 }
 0x3cf   :  { %v4009_v32 = vsel %vm4003_vm10, %v3996_v3, 920167782  ;;  %vm10525_vm12 = vcmp.lt.s32.totalorder %v10524_v14, 0  ;;  %v4006_v30 = vsel %vm4002_vm9, %v3990_v13, %v4005_v6  ;;  %v4012_v57 = vsel %vm4000_vm5, %v3990_v13, %v3993_v58 }
 0x3d0   :  { %v4010_v43 = vsel %vm4002_vm9, %v3993_v58, %v4009_v32  ;;  %v3727_v59 = vsel %vm10525_vm12, 0, %v10524_v14  ;;  %v4007_v15 = vsel %vm4001_vm8, %v4004_v60, %v4006_v30  ;;  %v4013_v23 = vsel %vm4003_vm10, %v3999_v27, 1326507024 }
 0x3d1   :  { %v4011_v0 = vsel %vm4001_vm8, %v4008_v25, %v4010_v43  ;;  %v3728_v28 = vsub.s32 32, %v3727_v59  ;;  %v3729_v20 = vshll.u32 %v15006_v55, %v3727_v59  ;;  %v3732_v4 = vsub.s32 4294967266, %v3727_v59 }
 0x3d2   :  { %v4014_v54 = vsel %vm4002_vm9, %v3996_v3, %v4013_v23  ;;  %v3743_v41 = vsel %vm3658_vm2, %v3742_v50, %v14995_v63  ;;  %v15052_v13 = vmul.u32.u64.low %v15021_v10, %v4011_v0  ;;  %v15053_v58 = vmul.u32.u64.high %v15021_v10, %v4011_v0, %v15052_v13 }
 0x3d3   :  { %v4015_v6 = vsel %vm4001_vm8, %v4012_v57, %v4014_v54  ;;  %v3730_v27 = vshrl.u32 %v15004_v35, %v3728_v28  ;;  %v3733_v55 = vadd.s32 127, %v3732_v4  ;;  %vm3875_vm13 = vcmp.gt.s32.totalorder %v3874_v47, 0 }
 0x3d4   :  { %v11109_v2 = vpop.eup %11108  ;;  %v15058_v3 = vmul.u32.u64.low %v15021_v10, %v4015_v6  ;;  %v15059_v32 = vmul.u32.u64.high %v15021_v10, %v4015_v6, %v15058_v3  ;;  %v4023_v63 = vmul.u32 %v15021_v10, %v4007_v15  ;;  %v4026_v59 = vadd.s32 1, %v15053_v58 }
 0x3d5   :  { %v11111_v14 = vpop.eup %11110  ;;  %v3860_v60 = vxor.u32 2147483648, %v11109_v2  ;;  %v3731_v30 = vor.u32 %v3730_v27, %v3729_v20  ;;  %v3734_v43 = vshll.u32 %v3733_v55, 23  ;;  %v3876_v0 = vsel %vm3875_vm13, %v3874_v47, 0 }
 0x3d6   :  { %v3857_v25 = vxor.u32 2147483648, %v11111_v14  ;;  %vm4025_vm14 = vc.u32 %v15059_v32, %v15052_v13  ;;  %vm15086_vm15 = vcmp.le.f32.partialorder %v3656_v17, 0.7853982  ;;  %v3878_v54 = vand.u32 31, %v3876_v0 }
 0x3d7   :  { %v3861_v12 = vsel %vm3859_vm3, %v3860_v60, %v11111_v14  ;;  %v8817_v50 = vsel %vm8815_vm0, %v3860_v60, %v11111_v14  ;;  %v3735_v23 = vor.u32 4788187, %v3734_v43  ;;  %v3738_v28 = vcvt.s32.f32 %v3731_v30 }
 0x3d8   :  { %v3858_v35 = vsel %vm3856_vm4, %v11109_v2, %v3857_v25  ;;  %v8814_v57 = vsel %vm8812_vm1, %v11109_v2, %v3857_v25  ;;  %v4027_v47 = vsel %vm4025_vm14, %v4026_v59, %v15053_v58  ;;  %v3745_v2 = vsel %vm15086_vm15, 0, %v3743_v41 }
 0x3d9   :  { %v3862_v10 = vsel %vm3855_vm6, %v3858_v35, %v3861_v12  ;;  %v8818_v15 = vsel %vm8811_vm7, %v8814_v57, %v8817_v50  ;;  %v3736_v52 = vand.u32 2147483647, %v3735_v23  ;;  %v4028_v36 = vadd.s32 %v4027_v47, %v4023_v63 }
 0x3da   :  { %v15077_v20 = vsel %vm3852_vm11, nan, %v3862_v10  ;;  %v8819_v4 = vsel %vm3852_vm11, nan, %v8818_v15  ;;  %v3872_v6 = vor.u32 8388608, %v15028_v31  ;;  %v3877_v60 = vshrl.u32 %v3876_v0, 5 }
 0x3db   :  { %16628 = vst [vmem:[#allocation16_spill] sm:$0xff] %v15077_v20  ;;  %10174 = vrot.lane.b32.xlu1 %v8819_v4, %s11194_s22  ;;  %v3739_v14 = vmul.f32 %v3738_v28, %v3736_v52  ;;  %v3879_v27 = vsub.s32 32, %v3878_v54  ;;  %v3881_v55 = vshll.u32 %v16537_v40, %v3878_v54  ;;  %v4029_v25 = vadd.s32 536870912, %v4028_v36  ;;  %v51_v28 = vld [vmem:[%s16518_s0 + $0x138] sm:$0xff] }
 0x3dc   :  { %v3884_v17 = vshll.u32 %v16533_v42, %v3878_v54  ;;  %v3887_v3 = vshll.u32 %v16529_v44, %v3878_v54  ;;  %v3890_v12 = vshll.u32 %v16531_v46, %v3878_v54  ;;  %v3893_v63 = vshll.u32 %v16522_v48, %v3878_v54 }
 0x3dd   :  { %v3740_v58 = vxor.u32 2147483648, %v3739_v14  ;;  %v3882_v50 = vshrl.u32 %v16533_v42, %v3879_v27  ;;  %v3885_v41 = vshrl.u32 %v16529_v44, %v3879_v27  ;;  %v15101_v31 = vshrl.u32 %v4029_v25, 30 }
 0x3de   :  { %v3888_v30 = vshrl.u32 %v16531_v46, %v3879_v27  ;;  %v3891_v43 = vshrl.u32 %v16522_v48, %v3879_v27  ;;  %v3894_v35 = vshrl.u32 %v16524_v56, %v3879_v27  ;;  %vm3896_vm3 = vcmp.lt.s32.totalorder %v3877_v60, 1 }
 0x3df   :  { %v3741_v57 = vsel %vm3658_vm2, %v3740_v58, %v3739_v14  ;;  %v3883_v59 = vor.u32 %v3882_v50, %v3881_v55  ;;  %vm3899_vm0 = vcmp.lt.s32.totalorder %v3877_v60, 4  ;;  %v4031_v10 = vshll.u32 %v15101_v31, 30 }
 0x3e0   :  { %v3744_v0 = vsel %vm15086_vm15, %v14795_v16, %v3741_v57  ;;  %v3886_v15 = vor.u32 %v3885_v41, %v3884_v17  ;;  %v3889_v23 = vor.u32 %v3888_v30, %v3887_v3  ;;  %v3880_v4 = vshrl.u32 %v16537_v40, %v3879_v27 }
 0x3e1   :  { %11112 = vcosq.f32 %v3744_v0  ;;  %v3892_v52 = vor.u32 %v3891_v43, %v3890_v12  ;;  %v3895_v47 = vor.u32 %v3894_v35, %v3893_v63  ;;  %v15116_v54 = vsub.s32 %v4028_v36, %v4031_v10 }
 0x3e2   :  { %11114 = vsinq.f32 %v3744_v0  ;;  %vm3898_vm2 = vcmp.lt.s32.totalorder %v3877_v60, 3  ;;  %v3901_v62 = vsel %vm3899_vm0, %v3889_v23, 2102212464  ;;  %v3749_v14 = vadd.s32 3, %v3745_v2 }
 0x3e3   :  { %v3905_v55 = vsel %vm3899_vm0, %v3892_v52, 920167782  ;;  %v15120_v25 = vshll.u32 %v3872_v6, 8  ;;  %v15123_v17 = vmul.f32 %v11227_v9, %v51_v28  ;;  %v8707_v3 = vand.u32 3, %v3745_v2 }
 0x3e4   :  { %v4034_v58 = vsub.s32 0, %v15116_v54  ;;  %vm3897_vm4 = vcmp.lt.s32.totalorder %v3877_v60, 2  ;;  %v3904_v27 = vsel %vm3896_vm3, %v3883_v59, %v3886_v15  ;;  %v3900_v36 = vsel %vm3896_vm3, %v3880_v4, %v3883_v59 }
 0x3e5   :  { %v3902_v12 = vsel %vm3898_vm2, %v3886_v15, %v3901_v62  ;;  %v3906_v50 = vsel %vm3898_vm2, %v3889_v23, %v3905_v55  ;;  %v3909_v41 = vsel %vm3899_vm0, %v3895_v47, 1326507024  ;;  %vm3748_vm1 = vweird.f32 %v14795_v16 }
 0x3e6   :  { %v10535_v6 = vmin.u32 %v4034_v58, %v15116_v54  ;;  %v3908_v63 = vsel %vm3896_vm3, %v3886_v15, %v3889_v23  ;;  %v3750_v2 = vand.u32 3, %v3749_v14  ;;  %v3907_v30 = vsel %vm3897_vm4, %v3904_v27, %v3906_v50 }
 0x3e7   :  { %v3910_v43 = vsel %vm3898_vm2, %v3892_v52, %v3909_v41  ;;  %v4179_v35 = vand.u32 2139095040, %v15123_v17  ;;  %vm8708_vm6 = vcmp.lt.s32.totalorder %v8707_v3, 2  ;;  %vm8709_vm7 = vcmp.eq.s32.totalorder %v8707_v3, 0 }
 0x3e8   :  { %v4036_v57 = vclz %v10535_v6  ;;  %v3903_v59 = vsel %vm3897_vm4, %v3900_v36, %v3902_v12  ;;  %v3911_v0 = vsel %vm3897_vm4, %v3908_v63, %v3910_v43  ;;  %vm8712_vm5 = vcmp.eq.s32.totalorder %v8707_v3, 2 }
 0x3e9   :  { %v15140_v10 = vmul.u32.u64.low %v15120_v25, %v3907_v30  ;;  %v15141_v28 = vmul.u32.u64.high %v15120_v25, %v3907_v30, %v15140_v10  ;;  %v4180_v15 = vshrl.u32 %v4179_v35, 23  ;;  %vm3970_vm8 = vcmp.lt.s32.totalorder %v14934_v22, 0 }
 0x3ea   :  { %v10536_v23 = vadd.s32 4294967294, %v4036_v57  ;;  %v15146_v4 = vmul.u32.u64.low %v15120_v25, %v3911_v0  ;;  %v15147_v52 = vmul.u32.u64.high %v15120_v25, %v3911_v0, %v15146_v4  ;;  %vm3751_vm11 = vcmp.lt.s32.totalorder %v3750_v2, 2 }
 0x3eb   :  { %v11113_v47 = vpop.eup %11112  ;;  %vm3752_vm9 = vcmp.eq.s32.totalorder %v3750_v2, 0  ;;  %vm3755_vm10 = vcmp.eq.s32.totalorder %v3750_v2, 2  ;;  %v10542_v60 = vadd.s32 4294967169, %v4180_v15  ;;  %v4024_v55 = vadd.s32 %v15052_v13, %v15059_v32  ;;  %v50_v32 = vld [vmem:[%s16518_s0 + $0x130] sm:$0xff] }
 0x3ec   :  { %v11115_v62 = vpop.eup %11114  ;;  %v3756_v14 = vxor.u32 2147483648, %v11113_v47  ;;  %vm10537_vm12 = vcmp.lt.s32.totalorder %v10536_v23, 0  ;;  %v3919_v58 = vmul.u32 %v15120_v25, %v3903_v59  ;;  %v3922_v12 = vadd.s32 1, %v15141_v28 }
 0x3ed   :  { %v3753_v27 = vxor.u32 2147483648, %v11115_v62  ;;  %v4039_v36 = vsel %vm10537_vm12, 0, %v10536_v23  ;;  %v4186_v50 = vadd.s32 1, %v10542_v60  ;;  %v4054_v13 = vsub.s32 4, %v15101_v31 }
 0x3ee   :  { %v3757_v41 = vsel %vm3755_vm10, %v3756_v14, %v11115_v62  ;;  %v8714_v6 = vsel %vm8712_vm5, %v3756_v14, %v11115_v62  ;;  %v4040_v63 = vsub.s32 32, %v4039_v36  ;;  %v4041_v30 = vshll.u32 %v15116_v54, %v4039_v36 }
 0x3ef   :  { %v3754_v43 = vsel %vm3752_vm9, %v11113_v47, %v3753_v27  ;;  %v8711_v35 = vsel %vm8709_vm7, %v11113_v47, %v3753_v27  ;;  %v4044_v57 = vsub.s32 4294967266, %v4039_v36  ;;  %vm3921_vm13 = vc.u32 %v15147_v52, %v15140_v10 }
 0x3f0   :  { %v3758_v25 = vsel %vm3751_vm11, %v3754_v43, %v3757_v41  ;;  %v8715_v59 = vsel %vm8708_vm6, %v8711_v35, %v8714_v6  ;;  %v4042_v0 = vshrl.u32 %v4024_v55, %v4040_v63  ;;  %v3923_v4 = vsel %vm3921_vm13, %v3922_v12, %v15141_v28 }
 0x3f1   :  { %v3759_v54 = vsel %vm3748_vm1, nan, %v3758_v25  ;;  %v8716_v15 = vsel %vm3748_vm1, nan, %v8715_v59  ;;  %v4045_v23 = vadd.s32 127, %v4044_v57  ;;  %v3924_v47 = vadd.s32 %v3923_v4, %v3919_v58 }
 0x3f2   :  { %10349 = vst [vmem:[#allocation2 + $0x198] sm:$0xff] %v3759_v54  ;;  %10172 = vrot.lane.b32.xlu0 %v8716_v15, %s11194_s22  ;;  %v4043_v2 = vor.u32 %v4042_v0, %v4041_v30  ;;  %vm4187_vm14 = vcmp.gt.s32.totalorder %v4186_v50, 0  ;;  %v15172_v3 = vmul.f32 %v11222_v7, %v50_v32  ;;  %v4055_v62 = vsel %vm3970_vm8, %v4054_v13, %v15101_v31 }
 0x3f3   :  { %v4046_v60 = vshll.u32 %v4045_v23, 23  ;;  %v16521_v16 = vand.u32 2147483647, %v15123_v17  ;;  %v4188_v14 = vsel %vm4187_vm14, %v4186_v50, 0  ;;  %v3925_v55 = vadd.s32 536870912, %v3924_v47 }
 0x3f4   :  { %v4190_v27 = vand.u32 31, %v4188_v14  ;;  %vm15180_vm15 = vcmp.le.f32.partialorder %v3968_v33, 0.7853982  ;;  %v4050_v36 = vcvt.s32.f32 %v4043_v2  ;;  %v4075_v30 = vand.u32 2139095040, %v15172_v3 }
 0x3f5   :  { %v4047_v58 = vor.u32 4788187, %v4046_v60  ;;  %v4057_v12 = vsel %vm15180_vm15, 0, %v4055_v62  ;;  %v15186_v41 = vshrl.u32 %v3925_v55, 30  ;;  %v4183_v50 = vand.u32 8388607, %v16521_v16 }
 0x3f6   :  { %v4191_v6 = vsub.s32 32, %v4190_v27  ;;  %v4061_v63 = vadd.s32 3, %v4057_v12  ;;  %v4193_v43 = vshll.u32 %v16537_v40, %v4190_v27  ;;  %v4196_v35 = vshll.u32 %v16533_v42, %v4190_v27 }
 0x3f7   :  { %v4048_v31 = vand.u32 2147483647, %v4047_v58  ;;  %v3927_v33 = vshll.u32 %v15186_v41, 30  ;;  %v4199_v57 = vshll.u32 %v16529_v44, %v4190_v27  ;;  %v4189_v54 = vshrl.u32 %v4188_v14, 5 }
 0x3f8   :  { %v4194_v32 = vshrl.u32 %v16533_v42, %v4191_v6  ;;  %v4197_v25 = vshrl.u32 %v16529_v44, %v4191_v6  ;;  %v4200_v59 = vshrl.u32 %v16531_v46, %v4191_v6  ;;  %v4202_v15 = vshll.u32 %v16531_v46, %v4190_v27 }
 0x3f9   :  { %v4051_v13 = vmul.f32 %v4050_v36, %v4048_v31  ;;  %v15198_v0 = vsub.s32 %v3924_v47, %v3927_v33  ;;  %v4203_v23 = vshrl.u32 %v16522_v48, %v4191_v6  ;;  %v15202_v2 = vand.u32 3, %v4057_v12 }
 0x3fa   :  { %v4205_v60 = vshll.u32 %v16522_v48, %v4190_v27  ;;  %v4206_v62 = vshrl.u32 %v16524_v56, %v4191_v6  ;;  %v15206_v55 = vand.u32 3, %v4061_v63  ;;  %v4184_v36 = vor.u32 8388608, %v4183_v50 }
 0x3fb   :  { %v4052_v4 = vxor.u32 2147483648, %v4051_v13  ;;  %v3930_v58 = vsub.s32 0, %v15198_v0  ;;  %v4076_v31 = vshrl.u32 %v4075_v30, 23  ;;  %v4195_v14 = vor.u32 %v4194_v32, %v4193_v43 }
 0x3fc   :  { %v4198_v33 = vor.u32 %v4197_v25, %v4196_v35  ;;  %v4201_v16 = vor.u32 %v4200_v59, %v4199_v57  ;;  %v4204_v48 = vor.u32 %v4203_v23, %v4202_v15  ;;  %vm4208_vm3 = vcmp.lt.s32.totalorder %v4189_v54, 1 }
 0x3fd   :  { %v4053_v47 = vsel %vm3970_vm8, %v4052_v4, %v4051_v13  ;;  %v10531_v27 = vmin.u32 %v3930_v58, %v15198_v0  ;;  %v4192_v63 = vshrl.u32 %v16537_v40, %v4191_v6  ;;  %v4207_v56 = vor.u32 %v4206_v62, %v4205_v60 }
 0x3fe   :  { %v4056_v12 = vsel %vm15180_vm15, %v14934_v22, %v4053_v47  ;;  %v4072_v50 = vand.u32 2147483647, %v15172_v3  ;;  %vm4210_vm0 = vcmp.lt.s32.totalorder %v4189_v54, 3  ;;  %v15217_v43 = vshll.u32 %v4184_v36, 8 }
 0x3ff   :  { %11116 = vcosq.f32 %v4056_v12  ;;  %v3932_v30 = vclz %v10531_v27  ;;  %vm9021_vm2 = vcmp.eq.s32.totalorder %v15202_v2, 2  ;;  %vm4209_vm4 = vcmp.lt.s32.totalorder %v4189_v54, 2 }
 0x400   :  { %11118 = vsinq.f32 %v4056_v12  ;;  %vm4211_vm1 = vcmp.lt.s32.totalorder %v4189_v54, 4  ;;  %v4216_v28 = vsel %vm4208_vm3, %v4195_v14, %v4198_v33  ;;  %v10538_v35 = vadd.s32 4294967169, %v4076_v31 }
 0x401   :  { %vm9018_vm6 = vcmp.eq.s32.totalorder %v15202_v2, 0  ;;  %vm3866_vm7 = vcmp.lt.s32.totalorder %v14957_v49, 0  ;;  %v10532_v6 = vadd.s32 4294967294, %v3932_v30  ;;  %v4213_v57 = vsel %vm4211_vm1, %v4201_v16, 2102212464 }
 0x402   :  { %v4217_v13 = vsel %vm4211_vm1, %v4204_v48, 920167782  ;;  %v4220_v32 = vsel %vm4208_vm3, %v4198_v33, %v4201_v16  ;;  %vm9017_vm5 = vcmp.lt.s32.totalorder %v15202_v2, 2  ;;  %v4212_v25 = vsel %vm4208_vm3, %v4192_v63, %v4195_v14 }
 0x403   :  { %v4214_v59 = vsel %vm4210_vm0, %v4198_v33, %v4213_v57  ;;  %v4218_v15 = vsel %vm4210_vm0, %v4201_v16, %v4217_v13  ;;  %v4221_v23 = vsel %vm4211_vm1, %v4207_v56, 1326507024  ;;  %vm4060_vm8 = vweird.f32 %v14934_v22 }
 0x404   :  { %v3920_v4 = vadd.s32 %v15140_v10, %v15147_v52  ;;  %vm10533_vm11 = vcmp.lt.s32.totalorder %v10532_v6, 0  ;;  %v4219_v60 = vsel %vm4209_vm4, %v4216_v28, %v4218_v15  ;;  %v4222_v62 = vsel %vm4210_vm0, %v4204_v48, %v4221_v23 }
 0x405   :  { %v3935_v58 = vsel %vm10533_vm11, 0, %v10532_v6  ;;  %v4223_v36 = vsel %vm4209_vm4, %v4220_v32, %v4222_v62  ;;  %v15235_v31 = vmul.u32.u64.low %v15217_v43, %v4219_v60  ;;  %v15236_v47 = vmul.u32.u64.high %v15217_v43, %v4219_v60, %v15235_v31 }
 0x406   :  { %vm15241_vm9 = vcmp.le.f32.partialorder %v3864_v45, 0.7853982  ;;  %v3936_v10 = vsub.s32 32, %v3935_v58  ;;  %v3937_v52 = vshll.u32 %v15198_v0, %v3935_v58  ;;  %v3940_v16 = vsub.s32 4294967266, %v3935_v58 }
 0x407   :  { %v4215_v48 = vsel %vm4209_vm4, %v4212_v25, %v4214_v59  ;;  %v3950_v14 = vsub.s32 4, %v15186_v41  ;;  %v15249_v33 = vmul.u32.u64.low %v15217_v43, %v4223_v36  ;;  %v15250_v12 = vmul.u32.u64.high %v15217_v43, %v4223_v36, %v15249_v33 }
 0x408   :  { %v4082_v27 = vadd.s32 1, %v10538_v35  ;;  %vm4063_vm10 = vcmp.lt.s32.totalorder %v15206_v55, 2  ;;  %vm4064_vm12 = vcmp.eq.s32.totalorder %v15206_v55, 0  ;;  %v3938_v45 = vshrl.u32 %v3920_v4, %v3936_v10 }
 0x409   :  { %v3941_v63 = vadd.s32 127, %v3940_v16  ;;  %v11117_v30 = vpop.eup %11116  ;;  %vm4067_vm13 = vcmp.eq.s32.totalorder %v15206_v55, 2  ;;  %v4231_v0 = vmul.u32 %v15217_v43, %v4215_v48  ;;  %v4234_v54 = vadd.s32 1, %v15236_v47 }
 0x40a   :  { %vm4083_vm14 = vcmp.gt.s32.totalorder %v4082_v27, 0  ;;  %v11119_v28 = vpop.eup %11118  ;;  %v4068_v6 = vxor.u32 2147483648, %v11117_v30  ;;  %v3939_v57 = vor.u32 %v3938_v45, %v3937_v52  ;;  %v3951_v25 = vsel %vm3866_vm7, %v3950_v14, %v15186_v41 }
 0x40b   :  { %v3942_v13 = vshll.u32 %v3941_v63, 23  ;;  %v4084_v32 = vsel %vm4083_vm14, %v4082_v27, 0  ;;  %v4065_v35 = vxor.u32 2147483648, %v11119_v28  ;;  %vm4233_vm15 = vc.u32 %v15250_v12, %v15235_v31 }
 0x40c   :  { %v4079_v59 = vand.u32 8388607, %v4072_v50  ;;  %v4069_v43 = vsel %vm4067_vm13, %v4068_v6, %v11119_v28  ;;  %v9023_v15 = vsel %vm9021_vm2, %v4068_v6, %v11119_v28  ;;  %v3946_v4 = vcvt.s32.f32 %v3939_v57 }
 0x40d   :  { %v3943_v23 = vor.u32 4788187, %v3942_v13  ;;  %v4066_v60 = vsel %vm4064_vm12, %v11117_v30, %v4065_v35  ;;  %v9020_v62 = vsel %vm9018_vm6, %v11117_v30, %v4065_v35  ;;  %v4235_v41 = vsel %vm4233_vm15, %v4234_v54, %v15236_v47 }
 0x40e   :  { %v4086_v58 = vand.u32 31, %v4084_v32  ;;  %v4070_v36 = vsel %vm4063_vm10, %v4066_v60, %v4069_v43  ;;  %v9024_v10 = vsel %vm9017_vm5, %v9020_v62, %v9023_v15  ;;  %v4236_v16 = vadd.s32 %v4235_v41, %v4231_v0 }
 0x40f   :  { %v3944_v52 = vand.u32 2147483647, %v3943_v23  ;;  %v15277_v48 = vsel %vm4060_vm8, nan, %v4070_v36  ;;  %v9025_v14 = vsel %vm4060_vm8, nan, %v9024_v10  ;;  %v3953_v33 = vsel %vm15241_vm9, 0, %v3951_v25 }
 0x410   :  { %16635 = vst [vmem:[#allocation17_spill] sm:$0xff] %v15277_v48  ;;  %v4087_v47 = vsub.s32 32, %v4086_v58  ;;  %10178 = vrot.lane.b32.xlu1 %v9025_v14, %s11194_s22  ;;  %v4237_v27 = vadd.s32 536870912, %v4236_v16  ;;  %v4089_v2 = vshll.u32 %v16537_v40, %v4086_v58  ;;  %v4092_v45 = vshll.u32 %v16533_v42, %v4086_v58 }
 0x411   :  { %v3947_v55 = vmul.f32 %v3946_v4, %v3944_v52  ;;  %v4095_v0 = vshll.u32 %v16529_v44, %v4086_v58  ;;  %v4098_v6 = vshll.u32 %v16531_v46, %v4086_v58  ;;  %v16636_v57 = vmov 920167782  }
 0x412   :  { %v4090_v63 = vshrl.u32 %v16533_v42, %v4087_v47  ;;  %v4093_v30 = vshrl.u32 %v16529_v44, %v4087_v47  ;;  %v4096_v22 = vshrl.u32 %v16531_v46, %v4087_v47  ;;  %v15290_v28 = vshrl.u32 %v4237_v27, 30 }
 0x413   :  { %v3948_v54 = vxor.u32 2147483648, %v3947_v55  ;;  %v4099_v13 = vshrl.u32 %v16636_v57, %v4087_v47  ;;  %v3957_v35 = vadd.s32 3, %v3953_v33  ;;  %v4085_v25 = vshrl.u32 %v4084_v32, 5 }
 0x414   :  { %v4101_v43 = vshll.u32 %v16636_v57, %v4086_v58  ;;  %v15297_v23 = vand.u32 3, %v3953_v33  ;;  %v4239_v4 = vshll.u32 %v15290_v28, 30  ;;  %v4080_v60 = vor.u32 8388608, %v4079_v59 }
 0x415   :  { %v3949_v15 = vsel %vm3866_vm7, %v3948_v54, %v3947_v55  ;;  %v4091_v41 = vor.u32 %v4090_v63, %v4089_v2  ;;  %v4100_v36 = vor.u32 %v4099_v13, %v4098_v6  ;;  %v16637_v10 = vmov 1326507024  }
 0x416   :  { %v3952_v62 = vsel %vm15241_vm9, %v14957_v49, %v3949_v15  ;;  %v4102_v52 = vshrl.u32 %v16637_v10, %v4087_v47  ;;  %v15304_v32 = vsub.s32 %v4236_v16, %v4239_v4  ;;  %v4094_v58 = vor.u32 %v4093_v30, %v4092_v45  ;;  %v53_v16 = vld [vmem:[%s16518_s0 + $0x148] sm:$0xff] }
 0x417   :  { %11120 = vcosq.f32 %v3952_v62  ;;  %v4097_v14 = vor.u32 %v4096_v22, %v4095_v0  ;;  %vm4104_vm3 = vcmp.lt.s32.totalorder %v4085_v25, 1  ;;  %vm4107_vm0 = vcmp.lt.s32.totalorder %v4085_v25, 4 }
 0x418   :  { %11122 = vsinq.f32 %v3952_v62  ;;  %v4103_v55 = vor.u32 %v4102_v52, %v4101_v43  ;;  %v4242_v33 = vsub.s32 0, %v15304_v32  ;;  %vm4106_vm2 = vcmp.lt.s32.totalorder %v4085_v25, 3 }
 0x419   :  { %v3958_v59 = vand.u32 3, %v3957_v35  ;;  %v4088_v56 = vshrl.u32 %v16537_v40, %v4087_v47  ;;  %v4113_v27 = vsel %vm4107_vm0, %v4100_v36, 920167782  ;;  %v15309_v2 = vshll.u32 %v4080_v60, 8 }
 0x41a   :  { %v10543_v45 = vmin.u32 %v4242_v33, %v15304_v32  ;;  %vm4105_vm4 = vcmp.lt.s32.totalorder %v4085_v25, 2  ;;  %v4109_v63 = vsel %vm4107_vm0, %v4097_v14, 2102212464  ;;  %v4112_v30 = vsel %vm4104_vm3, %v4091_v41, %v4094_v58 }
 0x41b   :  { %vm3956_vm1 = vweird.f32 %v14957_v49  ;;  %vm8914_vm6 = vcmp.lt.s32.totalorder %v15297_v23, 2  ;;  %v4114_v47 = vsel %vm4106_vm2, %v4097_v14, %v4113_v27  ;;  %v4116_v0 = vsel %vm4104_vm3, %v4094_v58, %v4097_v14 }
 0x41c   :  { %v4117_v22 = vsel %vm4107_vm0, %v4103_v55, 1326507024  ;;  %vm8915_vm7 = vcmp.eq.s32.totalorder %v15297_v23, 0  ;;  %vm8918_vm5 = vcmp.eq.s32.totalorder %v15297_v23, 2  ;;  %v4244_v54 = vclz %v10543_v45 }
 0x41d   :  { %v15325_v6 = vmul.f32 %v11227_v9, %v53_v16  ;;  %v4108_v13 = vsel %vm4104_vm3, %v4088_v56, %v4091_v41  ;;  %v4110_v35 = vsel %vm4106_vm2, %v4094_v58, %v4109_v63  ;;  %v4115_v43 = vsel %vm4105_vm4, %v4112_v30, %v4114_v47 }
 0x41e   :  { %v4118_v15 = vsel %vm4106_vm2, %v4100_v36, %v4117_v22  ;;  %vm4178_vm8 = vcmp.lt.s32.totalorder %v15123_v17, 0  ;;  %v10544_v4 = vadd.s32 4294967294, %v4244_v54  ;;  %vm3959_vm11 = vcmp.lt.s32.totalorder %v3958_v59, 2 }
 0x41f   :  { %v4119_v60 = vsel %vm4105_vm4, %v4116_v0, %v4118_v15  ;;  %v15334_v62 = vmul.u32.u64.low %v15309_v2, %v4115_v43  ;;  %v15335_v52 = vmul.u32.u64.high %v15309_v2, %v4115_v43, %v15334_v62  ;;  %vm3960_vm9 = vcmp.eq.s32.totalorder %v3958_v59, 0 }
 0x420   :  { %v15339_v41 = vmul.u32.u64.low %v15309_v2, %v4119_v60  ;;  %v15340_v14 = vmul.u32.u64.high %v15309_v2, %v4119_v60, %v15339_v41  ;;  %vm3963_vm10 = vcmp.eq.s32.totalorder %v3958_v59, 2  ;;  %v4232_v36 = vadd.s32 %v15235_v31, %v15250_v12 }
 0x421   :  { %v11121_v58 = vpop.eup %11120  ;;  %vm10545_vm12 = vcmp.lt.s32.totalorder %v10544_v4, 0  ;;  %v4111_v55 = vsel %vm4105_vm4, %v4108_v13, %v4110_v35  ;;  %v4262_v16 = vsub.s32 4, %v15290_v28  ;;  %v4387_v45 = vand.u32 2139095040, %v15325_v6 }
 0x422   :  { %v11123_v33 = vpop.eup %11122  ;;  %v3964_v56 = vxor.u32 2147483648, %v11121_v58  ;;  %v4247_v27 = vsel %vm10545_vm12, 0, %v10544_v4  ;;  %v4127_v31 = vmul.u32 %v15309_v2, %v4111_v55  ;;  %vm4129_vm13 = vc.u32 %v15340_v14, %v15334_v62  ;;  %v52_v2 = vld [vmem:[%s16518_s0 + $0x140] sm:$0xff] }
 0x423   :  { %v3961_v63 = vxor.u32 2147483648, %v11123_v33  ;;  %v4248_v30 = vsub.s32 32, %v4247_v27  ;;  %v4249_v47 = vshll.u32 %v15304_v32, %v4247_v27  ;;  %v4252_v0 = vsub.s32 4294967266, %v4247_v27 }
 0x424   :  { %v3965_v22 = vsel %vm3963_vm10, %v3964_v56, %v11123_v33  ;;  %v8920_v54 = vsel %vm8918_vm5, %v3964_v56, %v11123_v33  ;;  %v4130_v15 = vadd.s32 1, %v15335_v52  ;;  %v4388_v4 = vshrl.u32 %v4387_v45, 23 }
 0x425   :  { %v3962_v12 = vsel %vm3960_vm9, %v11121_v58, %v3961_v63  ;;  %v8917_v25 = vsel %vm8915_vm7, %v11121_v58, %v3961_v63  ;;  %v4250_v13 = vshrl.u32 %v4232_v36, %v4248_v30  ;;  %v4253_v35 = vadd.s32 127, %v4252_v0 }
 0x426   :  { %v3966_v43 = vsel %vm3959_vm11, %v3962_v12, %v3965_v22  ;;  %v8921_v32 = vsel %vm8914_vm6, %v8917_v25, %v8920_v54  ;;  %v4263_v23 = vsel %vm4178_vm8, %v4262_v16, %v15290_v28  ;;  %v4131_v59 = vsel %vm4129_vm13, %v4130_v15, %v15335_v52  ;;  %v55_v54 = vld [vmem:[%s16518_s0 + $0x158] sm:$0xff] }
 0x427   :  { %v3967_v60 = vsel %vm3956_vm1, nan, %v3966_v43  ;;  %v8922_v41 = vsel %vm3956_vm1, nan, %v8921_v32  ;;  %v4251_v58 = vor.u32 %v4250_v13, %v4249_v47  ;;  %v4254_v36 = vshll.u32 %v4253_v35, 23 }
 0x428   :  { %10352 = vst [vmem:[#allocation2 + $0x1b0] sm:$0xff] %v3967_v60  ;;  %10176 = vrot.lane.b32.xlu0 %v8922_v41, %s11194_s22  ;;  %v16526_v55 = vand.u32 2147483647, %v15325_v6  ;;  %v10550_v33 = vadd.s32 4294967169, %v4388_v4  ;;  %v4132_v27 = vadd.s32 %v4131_v59, %v4127_v31  ;;  %v15377_v45 = vmul.f32 %v11222_v7, %v52_v2 }
 0x429   :  { %v4255_v56 = vor.u32 4788187, %v4254_v36  ;;  %v4258_v49 = vcvt.s32.f32 %v4251_v58  ;;  %v16638_v63 = vand.u32 2147483647, %v15123_v17  ;;  %vm4074_vm3 = vcmp.lt.s32.totalorder %v15172_v3, 0 }
 0x42a   :  { %v4394_v28 = vadd.s32 1, %v10550_v33  ;;  %v4133_v47 = vadd.s32 536870912, %v4132_v27  ;;  %v4391_v22 = vand.u32 8388607, %v16526_v55  ;;  %v4283_v13 = vand.u32 2139095040, %v15377_v45 }
 0x42b   :  { %vm15381_vm14 = vcmp.le.f32.partialorder %v16638_v63, 0.7853982  ;;  %v4256_v16 = vand.u32 2147483647, %v4255_v56  ;;  %v15397_v4 = vmul.f32 %v11227_v9, %v55_v54  ;;  %v16528_v58 = vand.u32 2147483647, %v15377_v45 }
 0x42c   :  { %v4265_v52 = vsel %vm15381_vm14, 0, %v4263_v23  ;;  %vm4395_vm15 = vcmp.gt.s32.totalorder %v4394_v28, 0  ;;  %v4134_v12 = vshrl.u32 %v4133_v47, 30  ;;  %v4392_v60 = vor.u32 8388608, %v4391_v22 }
 0x42d   :  { %v4269_v0 = vadd.s32 3, %v4265_v52  ;;  %v4259_v31 = vmul.f32 %v4258_v49, %v4256_v16  ;;  %v4396_v25 = vsel %vm4395_vm15, %v4394_v28, 0  ;;  %v15394_v32 = vand.u32 3, %v4265_v52 }
 0x42e   :  { %v4398_v35 = vand.u32 31, %v4396_v25  ;;  %v4135_v15 = vshll.u32 %v4134_v12, 30  ;;  %v15406_v59 = vshrl.u32 %v4396_v25, 5  ;;  %v4284_v33 = vshrl.u32 %v4283_v13, 23 }
 0x42f   :  { %v4260_v43 = vxor.u32 2147483648, %v4259_v31  ;;  %v15399_v2 = vand.u32 3, %v4269_v0  ;;  %v4158_v52 = vsub.s32 4, %v4134_v12  ;;  %vm9227_vm2 = vcmp.eq.s32.totalorder %v15394_v32, 2 }
 0x430   :  { %v4399_v41 = vsub.s32 32, %v4398_v35  ;;  %v15404_v23 = vsub.s32 %v4132_v27, %v4135_v15  ;;  %v4401_v49 = vshll.u32 %v16537_v40, %v4398_v35  ;;  %v4404_v28 = vshll.u32 %v16533_v42, %v4398_v35 }
 0x431   :  { %v4261_v36 = vsel %vm4178_vm8, %v4260_v43, %v4259_v31  ;;  %v4407_v27 = vshll.u32 %v16529_v44, %v4398_v35  ;;  %v4410_v30 = vshll.u32 %v16531_v46, %v4398_v35  ;;  %vm4275_vm0 = vcmp.eq.s32.totalorder %v15399_v2, 2 }
 0x432   :  { %v4264_v56 = vsel %vm15381_vm14, %v15123_v17, %v4261_v36  ;;  %v4402_v63 = vshrl.u32 %v16533_v42, %v4399_v41  ;;  %v4138_v16 = vsub.s32 0, %v15404_v23  ;;  %v4405_v47 = vshrl.u32 %v16529_v44, %v4399_v41 }
 0x433   :  { %11124 = vcosq.f32 %v4264_v56  ;;  %v4408_v0 = vshrl.u32 %v16531_v46, %v4399_v41  ;;  %v4128_v22 = vadd.s32 %v15334_v62, %v15340_v14  ;;  %v15424_v31 = vshll.u32 %v4392_v60, 8 }
 0x434   :  { %11126 = vsinq.f32 %v4264_v56  ;;  %v10539_v54 = vmin.u32 %v4138_v16, %v15404_v23  ;;  %v15426_v25 = vadd.s32 4294967169, %v4284_v33  ;;  %vm4272_vm4 = vcmp.eq.s32.totalorder %v15399_v2, 0 }
 0x435   :  { %vm9224_vm1 = vcmp.eq.s32.totalorder %v15394_v32, 0  ;;  %v4400_v13 = vshrl.u32 %v16537_v40, %v4399_v41  ;;  %v4403_v43 = vor.u32 %v4402_v63, %v4401_v49  ;;  %v4406_v15 = vor.u32 %v4405_v47, %v4404_v28 }
 0x436   :  { %v4411_v36 = vshrl.u32 %v16636_v57, %v4399_v41  ;;  %vm4271_vm6 = vcmp.lt.s32.totalorder %v15399_v2, 2  ;;  %vm9223_vm7 = vcmp.lt.s32.totalorder %v15394_v32, 2  ;;  %v4140_v62 = vclz %v10539_v54 }
 0x437   :  { %v4159_v14 = vsel %vm4074_vm3, %v4158_v52, %v4134_v12  ;;  %v4409_v60 = vor.u32 %v4408_v0, %v4407_v27  ;;  %v4595_v33 = vand.u32 2139095040, %v15397_v4  ;;  %vm4268_vm5 = vweird.f32 %v15123_v17 }
 0x438   :  { %v4412_v56 = vor.u32 %v4411_v36, %v4410_v30  ;;  %v4413_v16 = vshll.u32 %v16636_v57, %v4398_v35  ;;  %v4414_v49 = vshrl.u32 %v16637_v10, %v4399_v41  ;;  %vm4416_vm8 = vcmp.lt.s32.totalorder %v15406_v59, 1 }
 0x439   :  { %v10540_v63 = vadd.s32 4294967294, %v4140_v62  ;;  %vm4417_vm11 = vcmp.lt.s32.totalorder %v15406_v59, 2  ;;  %vm4418_vm9 = vcmp.lt.s32.totalorder %v15406_v59, 3  ;;  %vm4419_vm10 = vcmp.lt.s32.totalorder %v15406_v59, 4 }
 0x43a   :  { %v4415_v12 = vor.u32 %v4414_v49, %v4413_v16  ;;  %v4420_v28 = vsel %vm4416_vm8, %v4400_v13, %v4403_v43  ;;  %v4421_v52 = vsel %vm4419_vm10, %v4409_v60, 2102212464  ;;  %v4424_v27 = vsel %vm4416_vm8, %v4403_v43, %v4406_v15 }
 0x43b   :  { %vm10541_vm12 = vcmp.lt.s32.totalorder %v10540_v63, 0  ;;  %v4422_v47 = vsel %vm4418_vm9, %v4406_v15, %v4421_v52  ;;  %v4425_v35 = vsel %vm4419_vm10, %v4412_v56, 920167782  ;;  %v4428_v0 = vsel %vm4416_vm8, %v4406_v15, %v4409_v60 }
 0x43c   :  { %v4143_v41 = vsel %vm10541_vm12, 0, %v10540_v63  ;;  %v4423_v30 = vsel %vm4417_vm11, %v4420_v28, %v4422_v47  ;;  %v4426_v54 = vsel %vm4418_vm9, %v4409_v60, %v4425_v35  ;;  %v4429_v36 = vsel %vm4419_vm10, %v4415_v12, 1326507024 }
 0x43d   :  { %v11125_v62 = vpop.eup %11124  ;;  %v4144_v55 = vsub.s32 32, %v4143_v41  ;;  %v4145_v13 = vshll.u32 %v15404_v23, %v4143_v41  ;;  %v4148_v16 = vsub.s32 4294967266, %v4143_v41  ;;  %v4427_v43 = vsel %vm4417_vm11, %v4424_v27, %v4426_v54 }
 0x43e   :  { %v11127_v49 = vpop.eup %11126  ;;  %v4276_v52 = vxor.u32 2147483648, %v11125_v62  ;;  %v4430_v15 = vsel %vm4418_vm9, %v4412_v56, %v4429_v36  ;;  %v15456_v63 = vmul.u32.u64.low %v15424_v31, %v4427_v43  ;;  %v15457_v28 = vmul.u32.u64.high %v15424_v31, %v4427_v43, %v15456_v63 }
 0x43f   :  { %v4273_v60 = vxor.u32 2147483648, %v11127_v49  ;;  %v4146_v12 = vshrl.u32 %v4128_v22, %v4144_v55  ;;  %v4149_v47 = vadd.s32 127, %v4148_v16  ;;  %v4431_v23 = vsel %vm4417_vm11, %v4428_v0, %v4430_v15 }
 0x440   :  { %v4277_v35 = vsel %vm4275_vm0, %v4276_v52, %v11127_v49  ;;  %v9229_v27 = vsel %vm9227_vm2, %v4276_v52, %v11127_v49  ;;  %v15467_v41 = vmul.u32.u64.low %v15424_v31, %v4431_v23  ;;  %v15468_v56 = vmul.u32.u64.high %v15424_v31, %v4431_v23, %v15467_v41 }
 0x441   :  { %v4274_v54 = vsel %vm4272_vm4, %v11125_v62, %v4273_v60  ;;  %v9226_v55 = vsel %vm9224_vm1, %v11125_v62, %v4273_v60  ;;  %v4147_v22 = vor.u32 %v4146_v12, %v4145_v13  ;;  %v4150_v36 = vshll.u32 %v4149_v47, 23  ;;  %v54_v47 = vld [vmem:[%s16518_s0 + $0x150] sm:$0xff] }
 0x442   :  { %v4278_v59 = vsel %vm4271_vm6, %v4274_v54, %v4277_v35  ;;  %v9230_v0 = vsel %vm9223_vm7, %v9226_v55, %v9229_v27  ;;  %v4439_v16 = vmul.u32 %v15424_v31, %v4423_v30  ;;  %v4442_v43 = vadd.s32 1, %v15457_v28 }
 0x443   :  { %v15482_v49 = vsel %vm4268_vm5, nan, %v4278_v59  ;;  %v9231_v52 = vsel %vm4268_vm5, nan, %v9230_v0  ;;  %v4151_v62 = vor.u32 4788187, %v4150_v36  ;;  %v4154_v13 = vcvt.s32.f32 %v4147_v22 }
 0x444   :  { %16641 = vst [vmem:[#allocation18_spill] sm:$0xff] %v15482_v49  ;;  %10182 = vrot.lane.b32.xlu1 %v9231_v52, %s11194_s22  ;;  %vm15489_vm13 = vcmp.le.f32.partialorder %v4072_v50, 0.7853982  ;;  %vm4441_vm14 = vc.u32 %v15468_v56, %v15456_v63  ;;  %v4290_v2 = vadd.s32 1, %v15426_v25  ;;  %v4287_v15 = vand.u32 8388607, %v16528_v58 }
 0x445   :  { %v4152_v31 = vand.u32 2147483647, %v4151_v62  ;;  %v4161_v17 = vsel %vm15489_vm13, 0, %v4159_v14  ;;  %v4443_v30 = vsel %vm4441_vm14, %v4442_v43, %v15457_v28  ;;  %v16527_v50 = vand.u32 2147483647, %v15397_v4 }
 0x446   :  { %v4165_v60 = vadd.s32 3, %v4161_v17  ;;  %v4444_v12 = vadd.s32 %v4443_v30, %v4439_v16  ;;  %vm4291_vm15 = vcmp.gt.s32.totalorder %v4290_v2, 0  ;;  %v4596_v35 = vshrl.u32 %v4595_v33, 23 }
 0x447   :  { %v4155_v23 = vmul.f32 %v4154_v13, %v4152_v31  ;;  %v4292_v25 = vsel %vm4291_vm15, %v4290_v2, 0  ;;  %v15507_v41 = vand.u32 3, %v4161_v17  ;;  %v4288_v54 = vor.u32 8388608, %v4287_v15 }
 0x448   :  { %v4445_v14 = vadd.s32 536870912, %v4444_v12  ;;  %v4294_v27 = vand.u32 31, %v4292_v25  ;;  %v15510_v55 = vmul.f32 %v11222_v7, %v54_v47  ;;  %v15512_v22 = vand.u32 3, %v4165_v60 }
 0x449   :  { %v4156_v28 = vxor.u32 2147483648, %v4155_v23  ;;  %v4599_v0 = vand.u32 8388607, %v16527_v50  ;;  %v10558_v52 = vadd.s32 4294967169, %v4596_v35  ;;  %v4293_v47 = vshrl.u32 %v4292_v25, 5 }
 0x44a   :  { %v15514_v36 = vshrl.u32 %v4445_v14, 30  ;;  %v4295_v59 = vsub.s32 32, %v4294_v27  ;;  %v4297_v16 = vshll.u32 %v16537_v40, %v4294_v27  ;;  %v4300_v43 = vshll.u32 %v16533_v42, %v4294_v27 }
 0x44b   :  { %v4157_v33 = vsel %vm4074_vm3, %v4156_v28, %v4155_v23  ;;  %v4303_v2 = vshll.u32 %v16529_v44, %v4294_v27  ;;  %v4306_v31 = vshll.u32 %v16531_v46, %v4294_v27  ;;  %vm9124_vm3 = vcmp.eq.s32.totalorder %v15507_v41, 2 }
 0x44c   :  { %v4160_v62 = vsel %vm15489_vm13, %v15172_v3, %v4157_v33  ;;  %v4447_v13 = vshll.u32 %v15514_v36, 30  ;;  %v4298_v17 = vshrl.u32 %v16533_v42, %v4295_v59  ;;  %v4301_v30 = vshrl.u32 %v16529_v44, %v4295_v59 }
 0x44d   :  { %11128 = vcosq.f32 %v4160_v62  ;;  %v4304_v15 = vshrl.u32 %v16531_v46, %v4295_v59  ;;  %v4307_v32 = vshrl.u32 %v16636_v57, %v4295_v59  ;;  %v4309_v23 = vshll.u32 %v16636_v57, %v4294_v27 }
 0x44e   :  { %11130 = vsinq.f32 %v4160_v62  ;;  %v15531_v60 = vsub.s32 %v4444_v12, %v4447_v13  ;;  %v15536_v35 = vshll.u32 %v4288_v54, 8  ;;  %v4600_v14 = vor.u32 8388608, %v4599_v0 }
 0x44f   :  { %vm4168_vm0 = vcmp.eq.s32.totalorder %v15512_v22, 0  ;;  %vm4171_vm2 = vcmp.eq.s32.totalorder %v15512_v22, 2  ;;  %vm9121_vm4 = vcmp.eq.s32.totalorder %v15507_v41, 0  ;;  %v4296_v12 = vshrl.u32 %v16537_v40, %v4295_v59 }
 0x450   :  { %v4450_v28 = vsub.s32 0, %v15531_v60  ;;  %v4299_v25 = vor.u32 %v4298_v17, %v4297_v16  ;;  %vm4167_vm1 = vcmp.lt.s32.totalorder %v15512_v22, 2  ;;  %vm9120_vm6 = vcmp.lt.s32.totalorder %v15507_v41, 2 }
 0x451   :  { %v4302_v33 = vor.u32 %v4301_v30, %v4300_v43  ;;  %v4305_v27 = vor.u32 %v4304_v15, %v4303_v2  ;;  %v4308_v54 = vor.u32 %v4307_v32, %v4306_v31  ;;  %v4310_v0 = vshrl.u32 %v16637_v10, %v4295_v59 }
 0x452   :  { %vm4164_vm7 = vweird.f32 %v15172_v3  ;;  %v4440_v62 = vadd.s32 %v15456_v63, %v15468_v56  ;;  %v10551_v13 = vmin.u32 %v4450_v28, %v15531_v60  ;;  %vm4312_vm5 = vcmp.lt.s32.totalorder %v4293_v47, 1 }
 0x453   :  { %v4602_v50 = vadd.s32 1, %v10558_v52  ;;  %v4311_v58 = vor.u32 %v4310_v0, %v4309_v23  ;;  %vm4314_vm8 = vcmp.lt.s32.totalorder %v4293_v47, 3  ;;  %vm4315_vm11 = vcmp.lt.s32.totalorder %v4293_v47, 4 }
 0x454   :  { %v15550_v16 = vshll.u32 %v4600_v14, 8  ;;  %v4452_v17 = vclz %v10551_v13  ;;  %vm4313_vm9 = vcmp.lt.s32.totalorder %v4293_v47, 2  ;;  %v4316_v43 = vsel %vm4312_vm5, %v4296_v12, %v4299_v25 }
 0x455   :  { %v4491_v2 = vand.u32 2139095040, %v15510_v55  ;;  %v4317_v59 = vsel %vm4315_vm11, %v4305_v27, 2102212464  ;;  %v4320_v31 = vsel %vm4312_vm5, %v4299_v25, %v4302_v33  ;;  %v4321_v30 = vsel %vm4315_vm11, %v4308_v54, 920167782 }
 0x456   :  { %v4324_v15 = vsel %vm4312_vm5, %v4302_v33, %v4305_v27  ;;  %v10552_v32 = vadd.s32 4294967294, %v4452_v17  ;;  %v4318_v63 = vsel %vm4314_vm8, %v4302_v33, %v4317_v59  ;;  %v4322_v56 = vsel %vm4314_vm8, %v4305_v27, %v4321_v30 }
 0x457   :  { %v4325_v52 = vsel %vm4315_vm11, %v4311_v58, 1326507024  ;;  %v11129_v23 = vpop.eup %11128  ;;  %v4470_v28 = vsub.s32 4, %v15514_v36  ;;  %v15557_v14 = vsel %vm4313_vm9, %v4316_v43, %v4318_v63  ;;  %v4323_v12 = vsel %vm4313_vm9, %v4320_v31, %v4322_v56 }
 0x458   :  { %v4326_v0 = vsel %vm4314_vm8, %v4308_v54, %v4325_v52  ;;  %v11131_v13 = vpop.eup %11130  ;;  %v4172_v25 = vxor.u32 2147483648, %v11129_v23  ;;  %vm10553_vm10 = vcmp.lt.s32.totalorder %v10552_v32, 0  ;;  %vm4603_vm12 = vcmp.gt.s32.totalorder %v4602_v50, 0 }
 0x459   :  { %v4327_v17 = vsel %vm4313_vm9, %v4324_v15, %v4326_v0  ;;  %v4169_v33 = vxor.u32 2147483648, %v11131_v13  ;;  %v4455_v59 = vsel %vm10553_vm10, 0, %v10552_v32  ;;  %v4604_v63 = vsel %vm4603_vm12, %v4602_v50, 0 }
 0x45a   :  { %v15563_v58 = vmul.u32.u64.low %v15536_v35, %v4327_v17  ;;  %v15564_v27 = vmul.u32.u64.high %v15536_v35, %v4327_v17, %v15563_v58  ;;  %v4173_v43 = vsel %vm4171_vm2, %v4172_v25, %v11131_v13  ;;  %v9126_v31 = vsel %vm9124_vm3, %v4172_v25, %v11131_v13 }
 0x45b   :  { %v4456_v30 = vsub.s32 32, %v4455_v59  ;;  %v4457_v54 = vshll.u32 %v15531_v60, %v4455_v59  ;;  %v4170_v47 = vsel %vm4168_vm0, %v11129_v23, %v4169_v33  ;;  %v9123_v15 = vsel %vm9121_vm4, %v11129_v23, %v4169_v33 }
 0x45c   :  { %v4460_v32 = vsub.s32 4294967266, %v4455_v59  ;;  %v4174_v56 = vsel %vm4167_vm1, %v4170_v47, %v4173_v43  ;;  %v9127_v52 = vsel %vm9120_vm6, %v9123_v15, %v9126_v31  ;;  %vm4386_vm13 = vcmp.lt.s32.totalorder %v15325_v6, 0 }
 0x45d   :  { %v4458_v0 = vshrl.u32 %v4440_v62, %v4456_v30  ;;  %v15580_v13 = vshrl.u32 %v4604_v63, 5  ;;  %v4175_v60 = vsel %vm4164_vm7, nan, %v4174_v56  ;;  %v9128_v25 = vsel %vm4164_vm7, nan, %v9127_v52 }
 0x45e   :  { %v4461_v23 = vadd.s32 127, %v4460_v32  ;;  %v4606_v17 = vand.u32 31, %v4604_v63  ;;  %10355 = vst [vmem:[#allocation2 + $0x1c8] sm:$0xff] %v4175_v60  ;;  %10180 = vrot.lane.b32.xlu0 %v9128_v25, %s11194_s22  ;;  %v15588_v41 = vmul.u32.u64.low %v15536_v35, %v4323_v12  ;;  %v15589_v22 = vmul.u32.u64.high %v15536_v35, %v4323_v12, %v15588_v41 }
 0x45f   :  { %v4459_v50 = vor.u32 %v4458_v0, %v4457_v54  ;;  %v4335_v62 = vmul.u32 %v15536_v35, %v15557_v14  ;;  %v16644_v33 = vand.u32 2147483647, %v15325_v6  ;;  %vm4624_vm3 = vcmp.lt.s32.totalorder %v15580_v13, 1 }
 0x460   :  { %v4462_v3 = vshll.u32 %v4461_v23, 23  ;;  %v4607_v58 = vsub.s32 32, %v4606_v17  ;;  %v4609_v43 = vshll.u32 %v16537_v40, %v4606_v17  ;;  %v4612_v31 = vshll.u32 %v16533_v42, %v4606_v17 }
 0x461   :  { %vm15596_vm14 = vcmp.le.f32.partialorder %v16644_v33, 0.7853982  ;;  %v4466_v30 = vcvt.s32.f32 %v4459_v50  ;;  %vm4337_vm15 = vc.u32 %v15564_v27, %v15588_v41  ;;  %v4615_v12 = vshll.u32 %v16529_v44, %v4606_v17 }
 0x462   :  { %v4463_v35 = vor.u32 4788187, %v4462_v3  ;;  %v4608_v14 = vshrl.u32 %v16537_v40, %v4607_v58  ;;  %v4610_v54 = vshrl.u32 %v16533_v42, %v4607_v58  ;;  %v4613_v47 = vshrl.u32 %v16529_v44, %v4607_v58 }
 0x463   :  { %v4338_v15 = vadd.s32 1, %v15589_v22  ;;  %v4616_v32 = vshrl.u32 %v16531_v46, %v4607_v58  ;;  %v4618_v63 = vshll.u32 %v16531_v46, %v4606_v17  ;;  %v4619_v56 = vshrl.u32 %v16636_v57, %v4607_v58 }
 0x464   :  { %v4464_v52 = vand.u32 2147483647, %v4463_v35  ;;  %v4611_v0 = vor.u32 %v4610_v54, %v4609_v43  ;;  %v4614_v60 = vor.u32 %v4613_v47, %v4612_v31  ;;  %v4621_v25 = vshll.u32 %v16636_v57, %v4606_v17 }
 0x465   :  { %v4339_v23 = vsel %vm4337_vm15, %v4338_v15, %v15589_v22  ;;  %v4617_v50 = vor.u32 %v4616_v32, %v4615_v12  ;;  %v4620_v33 = vor.u32 %v4619_v56, %v4618_v63  ;;  %v4622_v3 = vshrl.u32 %v16637_v10, %v4607_v58 }
 0x466   :  { %v4467_v44 = vmul.f32 %v4466_v30, %v4464_v52  ;;  %v4471_v46 = vsel %vm4386_vm13, %v4470_v28, %v15514_v36  ;;  %v4340_v42 = vadd.s32 %v4339_v23, %v4335_v62  ;;  %vm4626_vm0 = vcmp.lt.s32.totalorder %v15580_v13, 3 }
 0x467   :  { %v4623_v43 = vor.u32 %v4622_v3, %v4621_v25  ;;  %vm4625_vm2 = vcmp.lt.s32.totalorder %v15580_v13, 2  ;;  %vm4627_vm4 = vcmp.lt.s32.totalorder %v15580_v13, 4  ;;  %v4632_v17 = vsel %vm4624_vm3, %v4611_v0, %v4614_v60 }
 0x468   :  { %v4468_v22 = vxor.u32 2147483648, %v4467_v44  ;;  %v4341_v58 = vadd.s32 536870912, %v4340_v42  ;;  %v4629_v31 = vsel %vm4627_vm4, %v4617_v50, 2102212464  ;;  %v4633_v30 = vsel %vm4627_vm4, %v4620_v33, 920167782 }
 0x469   :  { %v4628_v12 = vsel %vm4624_vm3, %v4608_v14, %v4611_v0  ;;  %v4634_v36 = vsel %vm4626_vm0, %v4617_v50, %v4633_v30  ;;  %v4636_v28 = vsel %vm4624_vm3, %v4614_v60, %v4617_v50  ;;  %v4637_v62 = vsel %vm4627_vm4, %v4623_v43, 1326507024 }
 0x46a   :  { %v4469_v35 = vsel %vm4386_vm13, %v4468_v22, %v4467_v44  ;;  %v4342_v54 = vshrl.u32 %v4341_v58, 30  ;;  %v4630_v47 = vsel %vm4626_vm0, %v4614_v60, %v4629_v31  ;;  %v4635_v15 = vsel %vm4625_vm2, %v4632_v17, %v4634_v36 }
 0x46b   :  { %v4472_v14 = vsel %vm15596_vm14, %v15325_v6, %v4469_v35  ;;  %v4638_v32 = vsel %vm4626_vm0, %v4620_v33, %v4637_v62  ;;  %v15644_v63 = vmul.u32.u64.low %v15550_v16, %v4635_v15  ;;  %v15645_v56 = vmul.u32.u64.high %v15550_v16, %v4635_v15, %v15644_v63  ;;  %v57_v35 = vld [vmem:[%s16518_s0 + $0x168] sm:$0xff] }
 0x46c   :  { %v4473_v44 = vsel %vm15596_vm14, 0, %v4471_v46  ;;  %11132 = vcosq.f32 %v4472_v14  ;;  %v4343_v52 = vshll.u32 %v4342_v54, 30  ;;  %v4639_v0 = vsel %vm4625_vm2, %v4636_v28, %v4638_v32 }
 0x46d   :  { %11134 = vsinq.f32 %v4472_v14  ;;  %v4477_v60 = vadd.s32 3, %v4473_v44  ;;  %v15653_v25 = vmul.u32.u64.low %v15550_v16, %v4639_v0  ;;  %v15654_v23 = vmul.u32.u64.high %v15550_v16, %v4639_v0, %v15653_v25 }
 0x46e   :  { %v15656_v50 = vsub.s32 %v4340_v42, %v4343_v52  ;;  %v4631_v33 = vsel %vm4625_vm2, %v4628_v12, %v4630_v47  ;;  %v4492_v59 = vshrl.u32 %v4491_v2, 23  ;;  %v9428_v46 = vand.u32 3, %v4473_v44 }
 0x46f   :  { %v4650_v3 = vadd.s32 1, %v15645_v56  ;;  %v4366_v17 = vsub.s32 4, %v4342_v54  ;;  %v4478_v58 = vand.u32 3, %v4477_v60  ;;  %v4647_v31 = vmul.u32 %v15550_v16, %v4631_v33 }
 0x470   :  { %v4346_v43 = vsub.s32 0, %v15656_v50  ;;  %v10554_v22 = vadd.s32 4294967169, %v4492_v59  ;;  %vm4649_vm1 = vc.u32 %v15654_v23, %v15644_v63  ;;  %vm4476_vm6 = vweird.f32 %v15325_v6 }
 0x471   :  { %v16647_v42 = vand.u32 2147483647, %v15377_v45  ;;  %vm4282_vm5 = vcmp.lt.s32.totalorder %v15377_v45, 0  ;;  %vm9429_vm8 = vcmp.lt.s32.totalorder %v9428_v46, 2  ;;  %v4651_v30 = vsel %vm4649_vm1, %v4650_v3, %v15645_v56 }
 0x472   :  { %v10547_v2 = vmin.u32 %v4346_v43, %v15656_v50  ;;  %v16535_v16 = vand.u32 2147483647, %v15510_v55  ;;  %v4498_v12 = vadd.s32 1, %v10554_v22  ;;  %vm9430_vm11 = vcmp.eq.s32.totalorder %v9428_v46, 0 }
 0x473   :  { %vm15670_vm7 = vcmp.le.f32.partialorder %v16647_v42, 0.7853982  ;;  %vm9433_vm9 = vcmp.eq.s32.totalorder %v9428_v46, 2  ;;  %v4367_v28 = vsel %vm4282_vm5, %v4366_v17, %v4342_v54  ;;  %vm4479_vm10 = vcmp.lt.s32.totalorder %v4478_v58, 2 }
 0x474   :  { %v4348_v36 = vclz %v10547_v2  ;;  %vm4480_vm12 = vcmp.eq.s32.totalorder %v4478_v58, 0  ;;  %v4652_v62 = vadd.s32 %v4651_v30, %v4647_v31  ;;  %vm4499_vm13 = vcmp.gt.s32.totalorder %v4498_v12, 0 }
 0x475   :  { %vm4483_vm14 = vcmp.eq.s32.totalorder %v4478_v58, 2  ;;  %v4336_v15 = vadd.s32 %v15588_v41, %v15564_v27  ;;  %v4500_v32 = vsel %vm4499_vm13, %v4498_v12, 0  ;;  %v4369_v54 = vsel %vm15670_vm7, 0, %v4367_v28 }
 0x476   :  { %v11133_v47 = vpop.eup %11132  ;;  %v10548_v14 = vadd.s32 4294967294, %v4348_v36  ;;  %v4653_v52 = vadd.s32 536870912, %v4652_v62  ;;  %v4495_v0 = vand.u32 8388607, %v16535_v16  ;;  %v4502_v25 = vand.u32 31, %v4500_v32 }
 0x477   :  { %v11135_v56 = vpop.eup %11134  ;;  %v4484_v44 = vxor.u32 2147483648, %v11133_v47  ;;  %v15690_v33 = vmul.f32 %v11227_v9, %v57_v35  ;;  %v4373_v46 = vadd.s32 3, %v4369_v54 }
 0x478   :  { %v4481_v60 = vxor.u32 2147483648, %v11135_v56  ;;  %vm10549_vm15 = vcmp.lt.s32.totalorder %v10548_v14, 0  ;;  %v15693_v3 = vshrl.u32 %v4653_v52, 30 }
 0x479   :  { %v4485_v59 = vsel %vm4483_vm14, %v4484_v44, %v11135_v56  ;;  %v9435_v27 = vsel %vm9433_vm9, %v4484_v44, %v11135_v56  ;;  %v4351_v41 = vsel %vm10549_vm15, 0, %v10548_v14  ;;  %v15710_v56 = vand.u32 3, %v4369_v54 }
 0x47a   :  { %v4482_v43 = vsel %vm4480_vm12, %v11133_v47, %v4481_v60  ;;  %v9432_v17 = vsel %vm9430_vm11, %v11133_v47, %v4481_v60  ;;  %v4352_v22 = vsub.s32 32, %v4351_v41  ;;  %v4353_v31 = vshll.u32 %v15656_v50, %v4351_v41 }
 0x47b   :  { %v4486_v42 = vsel %vm4479_vm10, %v4482_v43, %v4485_v59  ;;  %v9436_v2 = vsel %vm9429_vm8, %v9432_v17, %v9435_v27  ;;  %v4356_v30 = vsub.s32 4294967266, %v4351_v41  ;;  %v4655_v12 = vshll.u32 %v15693_v3, 30 }
 0x47c   :  { %v15703_v36 = vsel %vm4476_vm6, nan, %v4486_v42  ;;  %v9437_v28 = vsel %vm4476_vm6, nan, %v9436_v2  ;;  %v4354_v35 = vshrl.u32 %v4336_v15, %v4352_v22  ;;  %v4503_v50 = vsub.s32 32, %v4502_v25 }
 0x47d   :  { %16650 = vst [vmem:[#allocation19_spill] sm:$0xff] %v15703_v36  ;;  %10186 = vrot.lane.b32.xlu1 %v9437_v28, %s11194_s22  ;;  %v4357_v47 = vadd.s32 127, %v4356_v30  ;;  %v15708_v14 = vsub.s32 %v4652_v62, %v4655_v12  ;;  %v4496_v44 = vor.u32 8388608, %v4495_v0  ;;  %v4505_v59 = vshll.u32 %v16537_v40, %v4502_v25 }
 0x47e   :  { %v4355_v58 = vor.u32 %v4354_v35, %v4353_v31  ;;  %v4803_v6 = vand.u32 2139095040, %v15690_v33  ;;  %v16651_v15 = vmov 2475754826   ;;  %v16652_v62 = vmov 2131351028  }
 0x47f   :  { %v4358_v52 = vshll.u32 %v4357_v47, 23  ;;  %v4658_v60 = vsub.s32 0, %v15708_v14  ;;  %v4506_v41 = vshrl.u32 %v16651_v15, %v4503_v50  ;;  %v4508_v43 = vshll.u32 %v16651_v15, %v4502_v25 }
 0x480   :  { %v4362_v27 = vcvt.s32.f32 %v4355_v58  ;;  %v4511_v17 = vshll.u32 %v16652_v62, %v4502_v25  ;;  %v4509_v54 = vshrl.u32 %v16652_v62, %v4503_v50  ;;  %v16653_v0 = vmov 2102212464  }
 0x481   :  { %v4359_v22 = vor.u32 4788187, %v4358_v52  ;;  %v10559_v31 = vmin.u32 %v4658_v60, %v15708_v14  ;;  %v4512_v42 = vshrl.u32 %v16653_v0, %v4503_v50  ;;  %v15721_v2 = vand.u32 3, %v4373_v46 }
 0x482   :  { %v4648_v30 = vadd.s32 %v15644_v63, %v15654_v23  ;;  %v4501_v12 = vshrl.u32 %v4500_v32, 5  ;;  %v16539_v28 = vand.u32 2147483647, %v15690_v33  ;;  %v15726_v58 = vshll.u32 %v4496_v44, 8 }
 0x483   :  { %v4360_v35 = vand.u32 2147483647, %v4359_v22  ;;  %v4660_v47 = vclz %v10559_v31  ;;  %v4804_v16 = vshrl.u32 %v4803_v6, 23  ;;  %v4504_v52 = vshrl.u32 %v16537_v40, %v4503_v50 }
 0x484   :  { %v4507_v60 = vor.u32 %v4506_v41, %v4505_v59  ;;  %v4510_v36 = vor.u32 %v4509_v54, %v4508_v43  ;;  %v4513_v49 = vor.u32 %v4512_v42, %v4511_v17  ;;  %v4514_v46 = vshll.u32 %v16653_v0, %v4502_v25 }
 0x485   :  { %v4363_v48 = vmul.f32 %v4362_v27, %v4360_v35  ;;  %v10560_v20 = vadd.s32 4294967294, %v4660_v47  ;;  %v4515_v18 = vshrl.u32 %v16636_v57, %v4503_v50  ;;  %v4517_v63 = vshll.u32 %v16636_v57, %v4502_v25 }
 0x486   :  { %v4518_v23 = vshrl.u32 %v16637_v10, %v4503_v50  ;;  %vm4520_vm3 = vcmp.lt.s32.totalorder %v4501_v12, 1  ;;  %vm4521_vm0 = vcmp.lt.s32.totalorder %v4501_v12, 2  ;;  %vm4522_vm4 = vcmp.lt.s32.totalorder %v4501_v12, 3 }
 0x487   :  { %v4364_v32 = vxor.u32 2147483648, %v4363_v48  ;;  %vm10561_vm2 = vcmp.lt.s32.totalorder %v10560_v20, 0  ;;  %v4516_v44 = vor.u32 %v4515_v18, %v4514_v46  ;;  %vm4523_vm1 = vcmp.lt.s32.totalorder %v4501_v12, 4 }
 0x488   :  { %v4663_v6 = vsel %vm10561_vm2, 0, %v10560_v20  ;;  %v4519_v59 = vor.u32 %v4518_v23, %v4517_v63  ;;  %v4524_v27 = vsel %vm4520_vm3, %v4504_v52, %v4507_v60  ;;  %v4525_v22 = vsel %vm4523_vm1, %v4513_v49, 2102212464 }
 0x489   :  { %v4365_v41 = vsel %vm4282_vm5, %v4364_v32, %v4363_v48  ;;  %v4664_v43 = vsub.s32 32, %v4663_v6  ;;  %v4665_v17 = vshll.u32 %v15708_v14, %v4663_v6  ;;  %v4668_v25 = vsub.s32 4294967266, %v4663_v6 }
 0x48a   :  { %v4368_v50 = vsel %vm15670_vm7, %v15377_v45, %v4365_v41  ;;  %v4528_v18 = vsel %vm4520_vm3, %v4507_v60, %v4510_v36  ;;  %v4529_v20 = vsel %vm4523_vm1, %v4516_v44, 920167782  ;;  %v4526_v42 = vsel %vm4522_vm4, %v4510_v36, %v4525_v22 }
 0x48b   :  { %11136 = vcosq.f32 %v4368_v50  ;;  %v4666_v31 = vshrl.u32 %v4648_v30, %v4664_v43  ;;  %v4669_v54 = vadd.s32 127, %v4668_v25  ;;  %v4678_v48 = vsub.s32 4, %v15693_v3 }
 0x48c   :  { %11138 = vsinq.f32 %v4368_v50  ;;  %v4530_v14 = vsel %vm4522_vm4, %v4513_v49, %v4529_v20  ;;  %v4532_v35 = vsel %vm4520_vm3, %v4510_v36, %v4513_v49  ;;  %v4533_v60 = vsel %vm4523_vm1, %v4519_v59, 1326507024 }
 0x48d   :  { %v4667_v13 = vor.u32 %v4666_v31, %v4665_v17  ;;  %v4670_v47 = vshll.u32 %v4669_v54, 23  ;;  %v4531_v52 = vsel %vm4521_vm0, %v4528_v18, %v4530_v14  ;;  %v4527_v46 = vsel %vm4521_vm0, %v4524_v27, %v4526_v42 }
 0x48e   :  { %v4534_v30 = vsel %vm4522_vm4, %v4516_v44, %v4533_v60  ;;  %v15752_v63 = vmul.u32.u64.low %v15726_v58, %v4531_v52  ;;  %v15753_v23 = vmul.u32.u64.high %v15726_v58, %v4531_v52, %v15752_v63  ;;  %v10566_v49 = vadd.s32 4294967169, %v4804_v16 }
 0x48f   :  { %v4671_v32 = vor.u32 4788187, %v4670_v47  ;;  %v4674_v6 = vcvt.s32.f32 %v4667_v13  ;;  %v4535_v41 = vsel %vm4521_vm0, %v4532_v35, %v4534_v30  ;;  %vm4372_vm6 = vweird.f32 %v15377_v45 }
 0x490   :  { %v16654_v36 = vand.u32 2147483647, %v15397_v4  ;;  %vm4594_vm5 = vcmp.lt.s32.totalorder %v15397_v4, 0  ;;  %v15766_v44 = vmul.u32.u64.low %v15726_v58, %v4535_v41  ;;  %v15767_v27 = vmul.u32.u64.high %v15726_v58, %v4535_v41, %v15766_v44  ;;  %v56_v41 = vld [vmem:[%s16518_s0 + $0x160] sm:$0xff] }
 0x491   :  { %vm9326_vm8 = vcmp.lt.s32.totalorder %v15710_v56, 2  ;;  %v4672_v43 = vand.u32 2147483647, %v4671_v32  ;;  %v4679_v16 = vsel %vm4594_vm5, %v4678_v48, %v15693_v3  ;;  %v4810_v12 = vadd.s32 1, %v10566_v49 }
 0x492   :  { %vm15760_vm7 = vcmp.le.f32.partialorder %v16654_v36, 0.7853982  ;;  %vm9327_vm11 = vcmp.eq.s32.totalorder %v15710_v56, 0  ;;  %v4543_v17 = vmul.u32 %v15726_v58, %v4527_v46  ;;  %v4546_v25 = vadd.s32 1, %v15753_v23 }
 0x493   :  { %v15778_v50 = vand.u32 8388607, %v16539_v28  ;;  %vm4375_vm9 = vcmp.lt.s32.totalorder %v15721_v2, 2  ;;  %vm9330_vm10 = vcmp.eq.s32.totalorder %v15710_v56, 2  ;;  %v4675_v22 = vmul.f32 %v4674_v6, %v4672_v43 }
 0x494   :  { %vm4811_vm12 = vcmp.gt.s32.totalorder %v4810_v12, 0  ;;  %vm4379_vm13 = vcmp.eq.s32.totalorder %v15721_v2, 2  ;;  %v4681_v3 = vsel %vm15760_vm7, 0, %v4679_v16  ;;  %vm4545_vm14 = vc.u32 %v15767_v27, %v15752_v63 }
 0x495   :  { %v4812_v58 = vsel %vm4811_vm12, %v4810_v12, 0  ;;  %v11137_v18 = vpop.eup %11136  ;;  %v4676_v20 = vxor.u32 2147483648, %v4675_v22  ;;  %v4685_v31 = vadd.s32 3, %v4681_v3  ;;  %v4547_v54 = vsel %vm4545_vm14, %v4546_v25, %v15753_v23 }
 0x496   :  { %v4814_v42 = vand.u32 31, %v4812_v58  ;;  %v11139_v48 = vpop.eup %11138  ;;  %vm4376_vm15 = vcmp.eq.s32.totalorder %v15721_v2, 0  ;;  %v4380_v14 = vxor.u32 2147483648, %v11137_v18  ;;  %v4548_v35 = vadd.s32 %v4547_v54, %v4543_v17 }
 0x497   :  { %v4808_v13 = vor.u32 8388608, %v15778_v50  ;;  %v4377_v47 = vxor.u32 2147483648, %v11139_v48  ;;  %v4677_v52 = vsel %vm4594_vm5, %v4676_v20, %v4675_v22  ;;  %v15792_v60 = vand.u32 3, %v4681_v3 }
 0x498   :  { %v4815_v46 = vsub.s32 32, %v4814_v42  ;;  %v4381_v30 = vsel %vm4379_vm13, %v4380_v14, %v11139_v48  ;;  %v9332_v23 = vsel %vm9330_vm10, %v4380_v14, %v11139_v48  ;;  %v4680_v32 = vsel %vm15760_vm7, %v15397_v4, %v4677_v52 }
 0x499   :  { %v4549_v6 = vadd.s32 536870912, %v4548_v35  ;;  %v4378_v49 = vsel %vm4376_vm15, %v11137_v18, %v4377_v47  ;;  %v9329_v36 = vsel %vm9327_vm11, %v11137_v18, %v4377_v47  ;;  %11140 = vcosq.f32 %v4680_v32 }
 0x49a   :  { %v15806_v44 = vand.u32 3, %v4685_v31  ;;  %v4382_v43 = vsel %vm4375_vm9, %v4378_v49, %v4381_v30  ;;  %v9333_v16 = vsel %vm9326_vm8, %v9329_v36, %v9332_v23  ;;  %11142 = vsinq.f32 %v4680_v32 }
 0x49b   :  { %v15812_v59 = vshrl.u32 %v4549_v6, 30  ;;  %v4383_v12 = vsel %vm4372_vm6, nan, %v4382_v43  ;;  %v9334_v17 = vsel %vm4372_vm6, nan, %v9333_v16  ;;  %v4817_v25 = vshll.u32 %v16537_v40, %v4814_v42 }
 0x49c   :  { %v15820_v50 = vmul.f32 %v11222_v7, %v56_v41  ;;  %10358 = vst [vmem:[#allocation2 + $0x1e0] sm:$0xff] %v4383_v12  ;;  %10184 = vrot.lane.b32.xlu0 %v9334_v17, %s11194_s22  ;;  %vm9636_vm3 = vcmp.eq.s32.totalorder %v15792_v60, 0  ;;  %v4818_v2 = vshrl.u32 %v16651_v15, %v4815_v46  ;;  %v4820_v22 = vshll.u32 %v16651_v15, %v4814_v42 }
 0x49d   :  { %v4551_v56 = vshll.u32 %v15812_v59, 30  ;;  %v4821_v3 = vshrl.u32 %v16652_v62, %v4815_v46  ;;  %vm9635_vm0 = vcmp.lt.s32.totalorder %v15792_v60, 2  ;;  %v4823_v45 = vshll.u32 %v16652_v62, %v4814_v42 }
 0x49e   :  { %v4824_v18 = vshrl.u32 %v16653_v0, %v4815_v46  ;;  %v4826_v20 = vshll.u32 %v16653_v0, %v4814_v42  ;;  %v4827_v31 = vshrl.u32 %v16636_v57, %v4815_v46  ;;  %vm4684_vm2 = vweird.f32 %v15397_v4 }
 0x49f   :  { %vm4687_vm4 = vcmp.lt.s32.totalorder %v15806_v44, 2  ;;  %vm9639_vm1 = vcmp.eq.s32.totalorder %v15792_v60, 2  ;;  %v15836_v54 = vsub.s32 %v4548_v35, %v4551_v56  ;;  %v4813_v48 = vshrl.u32 %v4812_v58, 5 }
 0x4a0   :  { %vm4688_vm6 = vcmp.eq.s32.totalorder %v15806_v44, 0  ;;  %v4829_v14 = vshll.u32 %v16636_v57, %v4814_v42  ;;  %v4830_v47 = vshrl.u32 %v16637_v10, %v4815_v46  ;;  %v4699_v52 = vand.u32 2139095040, %v15820_v50 }
 0x4a1   :  { %vm4691_vm7 = vcmp.eq.s32.totalorder %v15806_v44, 2  ;;  %v4554_v30 = vsub.s32 0, %v15836_v54  ;;  %v4816_v23 = vshrl.u32 %v16537_v40, %v4815_v46  ;;  %v15845_v32 = vshll.u32 %v4808_v13, 8 }
 0x4a2   :  { %v4819_v6 = vor.u32 %v4818_v2, %v4817_v25  ;;  %v4822_v35 = vor.u32 %v4821_v3, %v4820_v22  ;;  %v4825_v41 = vor.u32 %v4824_v18, %v4823_v45  ;;  %v4828_v58 = vor.u32 %v4827_v31, %v4826_v20 }
 0x4a3   :  { %v4544_v49 = vadd.s32 %v15752_v63, %v15767_v27  ;;  %v10555_v42 = vmin.u32 %v4554_v30, %v15836_v54  ;;  %vm4832_vm5 = vcmp.lt.s32.totalorder %v4813_v48, 1  ;;  %vm4835_vm8 = vcmp.lt.s32.totalorder %v4813_v48, 4  ;;  %v11141_v36 = vpop.eup %11140 }
 0x4a4   :  { %v4574_v43 = vsub.s32 4, %v15812_v59  ;;  %v4831_v16 = vor.u32 %v4830_v47, %v4829_v14  ;;  %v4837_v12 = vsel %vm4835_vm8, %v4825_v41, 2102212464  ;;  %v4700_v46 = vshrl.u32 %v4699_v52, 23  ;;  %v11143_v13 = vpop.eup %11142 }
 0x4a5   :  { %v4692_v17 = vxor.u32 2147483648, %v11141_v36  ;;  %vm4490_vm11 = vcmp.lt.s32.totalorder %v15510_v55, 0  ;;  %v4556_v25 = vclz %v10555_v42  ;;  %vm4833_vm9 = vcmp.lt.s32.totalorder %v4813_v48, 2 }
 0x4a6   :  { %vm4834_vm10 = vcmp.lt.s32.totalorder %v4813_v48, 3  ;;  %v4689_v56 = vxor.u32 2147483648, %v11143_v13  ;;  %v4836_v63 = vsel %vm4832_vm5, %v4816_v23, %v4819_v6  ;;  %v4840_v27 = vsel %vm4832_vm5, %v4819_v6, %v4822_v35 }
 0x4a7   :  { %v4841_v2 = vsel %vm4835_vm8, %v4828_v58, 920167782  ;;  %v4693_v22 = vsel %vm4691_vm7, %v4692_v17, %v11143_v13  ;;  %v9641_v3 = vsel %vm9639_vm1, %v4692_v17, %v11143_v13  ;;  %v10556_v45 = vadd.s32 4294967294, %v4556_v25 }
 0x4a8   :  { %v4838_v18 = vsel %vm4834_vm10, %v4822_v35, %v4837_v12  ;;  %v4690_v20 = vsel %vm4688_vm6, %v11141_v36, %v4689_v56  ;;  %v9638_v31 = vsel %vm9636_vm3, %v11141_v36, %v4689_v56  ;;  %v4842_v14 = vsel %vm4834_vm10, %v4825_v41, %v4841_v2 }
 0x4a9   :  { %v4844_v47 = vsel %vm4832_vm5, %v4822_v35, %v4825_v41  ;;  %v4694_v52 = vsel %vm4687_vm4, %v4690_v20, %v4693_v22  ;;  %v9642_v30 = vsel %vm9635_vm0, %v9638_v31, %v9641_v3  ;;  %vm10557_vm12 = vcmp.lt.s32.totalorder %v10556_v45, 0 }
 0x4aa   :  { %v4843_v23 = vsel %vm4833_vm9, %v4840_v27, %v4842_v14  ;;  %v15874_v6 = vsel %vm4684_vm2, nan, %v4694_v52  ;;  %v9643_v42 = vsel %vm4684_vm2, nan, %v9642_v30  ;;  %v4559_v36 = vsel %vm10557_vm12, 0, %v10556_v45 }
 0x4ab   :  { %16657 = vst [vmem:[#allocation20_spill] sm:$0xff] %v15874_v6  ;;  %v4845_v12 = vsel %vm4835_vm8, %v4831_v16, 1326507024  ;;  %10190 = vrot.lane.b32.xlu1 %v9643_v42, %s11194_s22  ;;  %v4560_v44 = vsub.s32 32, %v4559_v36  ;;  %v4561_v35 = vshll.u32 %v15836_v54, %v4559_v36  ;;  %v4564_v60 = vsub.s32 4294967266, %v4559_v36 }
 0x4ac   :  { %v4846_v41 = vsel %vm4834_vm10, %v4828_v58, %v4845_v12  ;;  %v4839_v13 = vsel %vm4833_vm9, %v4836_v63, %v4838_v18  ;;  %v15885_v25 = vmul.u32.u64.low %v15845_v32, %v4843_v23  ;;  %v15886_v56 = vmul.u32.u64.high %v15845_v32, %v4843_v23, %v15885_v25 }
 0x4ad   :  { %v4847_v17 = vsel %vm4833_vm9, %v4844_v47, %v4846_v41  ;;  %v4562_v4 = vshrl.u32 %v4544_v49, %v4560_v44  ;;  %v4565_v27 = vadd.s32 127, %v4564_v60  ;;  %v4575_v54 = vsel %vm4490_vm11, %v4574_v43, %v15812_v59  ;;  %v59_v49 = vld [vmem:[%s16518_s0 + $0x178] sm:$0xff] }
 0x4ae   :  { %v15890_v16 = vmul.u32.u64.low %v15845_v32, %v4847_v17  ;;  %v15891_v2 = vmul.u32.u64.high %v15845_v32, %v4847_v17, %v15890_v16  ;;  %v10562_v58 = vadd.s32 4294967169, %v4700_v46  ;;  %v4855_v48 = vmul.u32 %v15845_v32, %v4839_v13  ;;  %v15923_v17 = vpop.permute.xlu1 %10108 }
 0x4af   :  { %v4563_v22 = vor.u32 %v4562_v4, %v4561_v35  ;;  %v4566_v63 = vshll.u32 %v4565_v27, 23  ;;  %v16536_v3 = vand.u32 2147483647, %v15820_v50  ;;  %v16658_v45 = vand.u32 2147483647, %v15510_v55 }
 0x4b0   :  { %v4858_v20 = vadd.s32 1, %v15886_v56  ;;  %v4706_v59 = vadd.s32 1, %v10562_v58  ;;  %vm4857_vm14 = vc.u32 %v15891_v2, %v15885_v25  ;;  %v15914_v47 = vmul.f32 %v11227_v9, %v59_v49  ;;  %v15925_v9 = vpop.permute.xlu0 %10104 }
 0x4b1   :  { %vm15903_vm13 = vcmp.le.f32.partialorder %v16658_v45, 0.7853982  ;;  %v4567_v43 = vor.u32 4788187, %v4566_v63  ;;  %v4570_v46 = vcvt.s32.f32 %v4563_v22  ;;  %v4703_v23 = vand.u32 8388607, %v16536_v3 }
 0x4b2   :  { %v4577_v32 = vsel %vm15903_vm13, 0, %v4575_v54  ;;  %v4859_v14 = vsel %vm4857_vm14, %v4858_v20, %v15886_v56  ;;  %vm4707_vm15 = vcmp.gt.s32.totalorder %v4706_v59, 0  ;;  %v5011_v13 = vand.u32 2139095040, %v15914_v47 }
 0x4b3   :  { %v4581_v31 = vadd.s32 3, %v4577_v32  ;;  %v4568_v52 = vand.u32 2147483647, %v4567_v43  ;;  %v4860_v30 = vadd.s32 %v4859_v14, %v4855_v48  ;;  %v4708_v42 = vsel %vm4707_vm15, %v4706_v59, 0 }
 0x4b4   :  { %v4710_v36 = vand.u32 31, %v4708_v42  ;;  %v15920_v60 = vand.u32 3, %v4577_v32  ;;  %v4704_v27 = vor.u32 8388608, %v4703_v23  ;;  %v4709_v45 = vshrl.u32 %v4708_v42, 5  ;;  %v15946_v14 = vpop.permute.xlu0 %10106 }
 0x4b5   :  { %v4571_v12 = vmul.f32 %v4570_v46, %v4568_v52  ;;  %v4861_v44 = vadd.s32 536870912, %v4860_v30  ;;  %v15918_v35 = vand.u32 3, %v4581_v31  ;;  %v15944_v31 = vpop.permute.xlu1 %10110  ;;  %vm4802_vm10 = vcmp.lt.s32.totalorder %v15690_v33, 0 }
 0x4b6   :  { %v4711_v41 = vsub.s32 32, %v4710_v36  ;;  %v4713_v16 = vshll.u32 %v16537_v40, %v4710_v36  ;;  %v4716_v58 = vshll.u32 %v16651_v15, %v4710_v36  ;;  %v4722_v63 = vshll.u32 %v16653_v0, %v4710_v36 }
 0x4b7   :  { %v4572_v56 = vxor.u32 2147483648, %v4571_v12  ;;  %v15927_v4 = vshrl.u32 %v4861_v44, 30  ;;  %v4719_v43 = vshll.u32 %v16652_v62, %v4710_v36  ;;  %v4725_v32 = vshll.u32 %v16636_v57, %v4710_v36 }
 0x4b8   :  { %v4714_v54 = vshrl.u32 %v16651_v15, %v4711_v41  ;;  %v4717_v22 = vshrl.u32 %v16652_v62, %v4711_v41  ;;  %v4723_v20 = vshrl.u32 %v16636_v57, %v4711_v41  ;;  %v4720_v46 = vshrl.u32 %v16653_v0, %v4711_v41 }
 0x4b9   :  { %v4573_v48 = vsel %vm4490_vm11, %v4572_v56, %v4571_v12  ;;  %v4863_v49 = vshll.u32 %v15927_v4, 30  ;;  %v4712_v23 = vshrl.u32 %v16537_v40, %v4711_v41  ;;  %v4726_v44 = vshrl.u32 %v16637_v10, %v4711_v41 }
 0x4ba   :  { %v4576_v59 = vsel %vm15903_vm13, %v15510_v55, %v4573_v48  ;;  %v4715_v42 = vor.u32 %v4714_v54, %v4713_v16  ;;  %v4718_v12 = vor.u32 %v4717_v22, %v4716_v58  ;;  %v4724_v18 = vor.u32 %v4723_v20, %v4722_v63  ;;  %v15958_v16 = vpop.permute.xlu0 %10112 }
 0x4bb   :  { %11144 = vcosq.f32 %v4576_v59  ;;  %v15948_v52 = vsub.s32 %v4860_v30, %v4863_v49  ;;  %vm9536_vm3 = vcmp.eq.s32.totalorder %v15920_v60, 2  ;;  %vm4728_vm0 = vcmp.lt.s32.totalorder %v4709_v45, 1  ;;  %v15956_v49 = vpop.permute.xlu1 %10114 }
 0x4bc   :  { %11146 = vsinq.f32 %v4576_v59  ;;  %v5012_v36 = vshrl.u32 %v5011_v13, 23  ;;  %vm4584_vm2 = vcmp.eq.s32.totalorder %v15918_v35, 0  ;;  %vm9533_vm4 = vcmp.eq.s32.totalorder %v15920_v60, 0 }
 0x4bd   :  { %v4866_v56 = vsub.s32 0, %v15948_v52  ;;  %v4721_v30 = vor.u32 %v4720_v46, %v4719_v43  ;;  %v4727_v48 = vor.u32 %v4726_v44, %v4725_v32  ;;  %vm4731_vm1 = vcmp.lt.s32.totalorder %v4709_v45, 4 }
 0x4be   :  { %vm4583_vm6 = vcmp.lt.s32.totalorder %v15918_v35, 2  ;;  %vm9532_vm7 = vcmp.lt.s32.totalorder %v15920_v60, 2  ;;  %vm4729_vm5 = vcmp.lt.s32.totalorder %v4709_v45, 2  ;;  %vm4730_vm8 = vcmp.lt.s32.totalorder %v4709_v45, 3 }
 0x4bf   :  { %v10567_v41 = vmin.u32 %v4866_v56, %v15948_v52  ;;  %v15963_v13 = vshll.u32 %v4704_v27, 8  ;;  %vm4580_vm11 = vweird.f32 %v15510_v55  ;;  %v4732_v54 = vsel %vm4728_vm0, %v4712_v23, %v4715_v42  ;;  %v15976_v44 = vpop.permute.xlu1 %10118  ;;  %v15978_v56 = vpop.permute.xlu0 %10116 }
 0x4c0   :  { %v4733_v58 = vsel %vm4731_vm1, %v4721_v30, 2102212464  ;;  %v4736_v22 = vsel %vm4728_vm0, %v4715_v42, %v4718_v12  ;;  %v4737_v63 = vsel %vm4731_vm1, %v4724_v18, 920167782  ;;  %vm4587_vm9 = vcmp.eq.s32.totalorder %v15918_v35, 2 }
 0x4c1   :  { %v4868_v20 = vclz %v10567_v41  ;;  %v16540_v59 = vand.u32 2147483647, %v15914_v47  ;;  %v10574_v43 = vadd.s32 4294967169, %v5012_v36  ;;  %v4734_v46 = vsel %vm4730_vm8, %v4718_v12, %v4733_v58 }
 0x4c2   :  { %v4738_v27 = vsel %vm4730_vm8, %v4721_v30, %v4737_v63  ;;  %v4740_v32 = vsel %vm4728_vm0, %v4718_v12, %v4721_v30  ;;  %v4741_v23 = vsel %vm4731_vm1, %v4727_v48, 1326507024  ;;  %v4735_v41 = vsel %vm4729_vm5, %v4732_v54, %v4734_v46 }
 0x4c3   :  { %v10568_v42 = vadd.s32 4294967294, %v4868_v20  ;;  %v4739_v3 = vsel %vm4729_vm5, %v4736_v22, %v4738_v27  ;;  %v4742_v36 = vsel %vm4730_vm8, %v4724_v18, %v4741_v23  ;;  %v4856_v58 = vadd.s32 %v15885_v25, %v15891_v2  ;;  %v15998_v2 = vpop.permute.xlu1 %10122  ;;  %v16000_v45 = vpop.permute.xlu0 %10120 }
 0x4c4   :  { %v4743_v12 = vsel %vm4729_vm5, %v4740_v32, %v4742_v36  ;;  %v15988_v30 = vmul.u32.u64.low %v15963_v13, %v4739_v3  ;;  %v15989_v48 = vmul.u32.u64.high %v15963_v13, %v4739_v3, %v15988_v30  ;;  %v5018_v54 = vadd.s32 1, %v10574_v43 }
 0x4c5   :  { %v11145_v63 = vpop.eup %11144  ;;  %vm10569_vm12 = vcmp.lt.s32.totalorder %v10568_v42, 0  ;;  %v15993_v20 = vmul.u32.u64.low %v15963_v13, %v4743_v12  ;;  %v15994_v40 = vmul.u32.u64.high %v15963_v13, %v4743_v12, %v15993_v20  ;;  %v4886_v27 = vsub.s32 4, %v15927_v4 }
 0x4c6   :  { %v11147_v22 = vpop.eup %11146  ;;  %v4588_v46 = vxor.u32 2147483648, %v11145_v63  ;;  %v4871_v18 = vsel %vm10569_vm12, 0, %v10568_v42  ;;  %v4751_v25 = vmul.u32 %v15963_v13, %v4735_v41  ;;  %v4754_v42 = vadd.s32 1, %v15989_v48 }
 0x4c7   :  { %v4585_v3 = vxor.u32 2147483648, %v11147_v22  ;;  %v4872_v32 = vsub.s32 32, %v4871_v18  ;;  %v4873_v23 = vshll.u32 %v15948_v52, %v4871_v18  ;;  %v4876_v36 = vsub.s32 4294967266, %v4871_v18  ;;  %v58_v52 = vld [vmem:[%s16518_s0 + $0x170] sm:$0xff]  ;;  %s11195_s0 = smov [#allocation2]  }
 0x4c8   :  { %v4589_v12 = vsel %vm4587_vm9, %v4588_v46, %v11147_v22  ;;  %v9538_v43 = vsel %vm9536_vm3, %v4588_v46, %v11147_v22  ;;  %vm5019_vm13 = vcmp.gt.s32.totalorder %v5018_v54, 0  ;;  %vm4753_vm14 = vc.u32 %v15994_v40, %v15988_v30 }
 0x4c9   :  { %v4586_v13 = vsel %vm4584_vm2, %v11145_v63, %v4585_v3  ;;  %v9535_v41 = vsel %vm9533_vm4, %v11145_v63, %v4585_v3  ;;  %v4874_v20 = vshrl.u32 %v4856_v58, %v4872_v32  ;;  %v4877_v28 = vadd.s32 127, %v4876_v36  ;;  %v16025_v63 = vpop.permute.xlu1 %10126  ;;  %v16027_v58 = vpop.permute.xlu0 %10124 }
 0x4ca   :  { %v4590_v18 = vsel %vm4583_vm6, %v4586_v13, %v4589_v12  ;;  %v9539_v22 = vsel %vm9532_vm7, %v9535_v41, %v9538_v43  ;;  %v16023_v46 = vand.u32 8388607, %v16540_v59  ;;  %v4887_v36 = vsel %vm4802_vm10, %v4886_v27, %v15927_v4 }
 0x4cb   :  { %v4591_v3 = vsel %vm4580_vm11, nan, %v4590_v18  ;;  %v9540_v35 = vsel %vm4580_vm11, nan, %v9539_v22  ;;  %v4875_v32 = vor.u32 %v4874_v20, %v4873_v23  ;;  %v4878_v60 = vshll.u32 %v4877_v28, 23 }
 0x4cc   :  { %10361 = vst [vmem:[#allocation2 + $0x1f8] sm:$0xff] %v4591_v3  ;;  %10188 = vrot.lane.b32.xlu0 %v9540_v35, %s11194_s22  ;;  %v4755_v12 = vsel %vm4753_vm14, %v4754_v42, %v15989_v48  ;;  %v5020_v43 = vsel %vm5019_vm13, %v5018_v54, 0  ;;  %v16040_v13 = vmul.f32 %v11222_v7, %v58_v52  ;;  %v16662_v23 = vand.u32 2147483647, %v15690_v33 }
 0x4cd   :  { %v4879_v41 = vor.u32 4788187, %v4878_v60  ;;  %v4882_v18 = vcvt.s32.f32 %v4875_v32  ;;  %v4756_v55 = vadd.s32 %v4755_v12, %v4751_v25  ;;  %v5022_v20 = vand.u32 31, %v5020_v43  ;;  %v16048_v22 = vpop.permute.xlu1 %10130  ;;  %v16050_v4 = vpop.permute.xlu0 %10128 }
 0x4ce   :  { %16661 = vst [vmem:[#allocation21_spill] sm:$0xff] %v16040_v13  ;;  %vm16044_vm15 = vcmp.le.f32.partialorder %v16662_v23, 0.7853982  ;;  %16665 = vst [vmem:[#allocation22_spill] sm:$0xff] %v16050_v4  ;;  %v5016_v27 = vor.u32 8388608, %v16023_v46  ;;  %v16055_v25 = vshrl.u32 %v5020_v43, 5  ;;  %vm4892_vm9 = vweird.f32 %v15690_v33 }
 0x4cf   :  { %v4880_v48 = vand.u32 2147483647, %v4879_v41  ;;  %v4889_v54 = vsel %vm16044_vm15, 0, %v4887_v36  ;;  %v4757_v7 = vadd.s32 536870912, %v4756_v55  ;;  %v5023_v52 = vsub.s32 32, %v5022_v20 }
 0x4d0   :  { %v4893_v42 = vadd.s32 3, %v4889_v54  ;;  %v4907_v3 = vand.u32 2139095040, %v16040_v13  ;;  %v16666_v60 = vmov 683565275   ;;  %v5028_v23 = vshll.u32 %v16651_v15, %v5022_v20 }
 0x4d1   :  { %v4883_v35 = vmul.f32 %v4882_v18, %v4880_v48  ;;  %v16058_v32 = vshrl.u32 %v4757_v7, 30  ;;  %v5025_v12 = vshll.u32 %v16666_v60, %v5022_v20  ;;  %v5026_v41 = vshrl.u32 %v16651_v15, %v5023_v52  ;;  %v16066_v43 = vpop.permute.xlu1 %10134  ;;  %v16068_v6 = vpop.permute.xlu0 %10132 }
 0x4d2   :  { %v5029_v36 = vshrl.u32 %v16652_v62, %v5023_v52  ;;  %v5031_v59 = vshll.u32 %v16652_v62, %v5022_v20  ;;  %v5034_v46 = vshll.u32 %v16653_v0, %v5022_v20  ;;  %16667 = vst [vmem:[#allocation23_spill] sm:$0xff] %v16066_v43  ;;  %16668 = vst [vmem:[#allocation24_spill] sm:$0xff] %v16068_v6  ;;  %v16073_v1 = vand.u32 3, %v4889_v54 }
 0x4d3   :  { %v4884_v26 = vxor.u32 2147483648, %v4883_v35  ;;  %v4759_v18 = vshll.u32 %v16058_v32, 30  ;;  %v5032_v48 = vshrl.u32 %v16653_v0, %v5023_v52  ;;  %v5035_v7 = vshrl.u32 %v16636_v57, %v5023_v52 }
 0x4d4   :  { %v5037_v21 = vshll.u32 %v16636_v57, %v5022_v20  ;;  %v5038_v24 = vshrl.u32 %v16637_v10, %v5023_v52  ;;  %v16080_v11 = vand.u32 3, %v4893_v42  ;;  %v4908_v37 = vshrl.u32 %v4907_v3, 23 }
 0x4d5   :  { %v4885_v5 = vsel %vm4802_vm10, %v4884_v26, %v4883_v35  ;;  %v16082_v53 = vsub.s32 %v4756_v55, %v4759_v18  ;;  %v5027_v54 = vor.u32 %v5026_v41, %v5025_v12  ;;  %v5030_v43 = vor.u32 %v5029_v36, %v5028_v23  ;;  %v16087_v20 = vpop.permute.xlu1 %10138  ;;  %v16089_v4 = vpop.permute.xlu0 %10136 }
 0x4d6   :  { %v4888_v6 = vsel %vm16044_vm15, %v15690_v33, %v4885_v5  ;;  %v5036_v34 = vor.u32 %v5035_v7, %v5034_v46  ;;  %v5033_v26 = vor.u32 %v5032_v48, %v5031_v59  ;;  %vm5040_vm3 = vcmp.lt.s32.totalorder %v16055_v25, 1 }
 0x4d7   :  { %11148 = vcosq.f32 %v4888_v6  ;;  %v4762_v19 = vsub.s32 0, %v16082_v53  ;;  %vm4698_vm0 = vcmp.lt.s32.totalorder %v15820_v50, 0  ;;  %v5024_v55 = vshrl.u32 %v16666_v60, %v5023_v52 }
 0x4d8   :  { %11150 = vsinq.f32 %v4888_v6  ;;  %v5039_v28 = vor.u32 %v5038_v24, %v5037_v21  ;;  %vm5043_vm2 = vcmp.lt.s32.totalorder %v16055_v25, 4  ;;  %vm9845_vm4 = vcmp.eq.s32.totalorder %v16073_v1, 2 }
 0x4d9   :  { %v10563_v5 = vmin.u32 %v4762_v19, %v16082_v53  ;;  %vm5042_vm1 = vcmp.lt.s32.totalorder %v16055_v25, 3  ;;  %v16099_v42 = vshll.u32 %v5016_v27, 8  ;;  %vm9842_vm6 = vcmp.eq.s32.totalorder %v16073_v1, 0  ;;  %v16109_v59 = vpop.permute.xlu1 %10142  ;;  %v16111_v19 = vpop.permute.xlu0 %10140 }
 0x4da   :  { %vm5041_vm7 = vcmp.lt.s32.totalorder %v16055_v25, 2  ;;  %v5045_v6 = vsel %vm5043_vm2, %v5033_v26, 2102212464  ;;  %v5048_v24 = vsel %vm5040_vm3, %v5027_v54, %v5030_v43  ;;  %v5049_v21 = vsel %vm5043_vm2, %v5036_v34, 920167782 }
 0x4db   :  { %vm4895_vm5 = vcmp.lt.s32.totalorder %v16080_v11, 2  ;;  %vm4896_vm8 = vcmp.eq.s32.totalorder %v16080_v11, 0  ;;  %vm9841_vm11 = vcmp.lt.s32.totalorder %v16073_v1, 2  ;;  %v4764_v27 = vclz %v10563_v5 }
 0x4dc   :  { %v4782_v52 = vsub.s32 4, %v16058_v32  ;;  %v5052_v3 = vsel %vm5040_vm3, %v5030_v43, %v5033_v26  ;;  %v5044_v35 = vsel %vm5040_vm3, %v5024_v55, %v5027_v54  ;;  %v5050_v12 = vsel %vm5042_vm1, %v5033_v26, %v5049_v21 }
 0x4dd   :  { %v5053_v23 = vsel %vm5043_vm2, %v5039_v28, 1326507024  ;;  %v10570_v41 = vadd.s32 4294967169, %v4908_v37  ;;  %v16669_v36 = vand.u32 2147483647, %v15820_v50  ;;  %v10564_v18 = vadd.s32 4294967294, %v4764_v27  ;;  %v16146_v28 = vpop.permute.xlu1 %10146  ;;  %v16148_v5 = vpop.permute.xlu0 %10144 }
 0x4de   :  { %v5046_v48 = vsel %vm5042_vm1, %v5030_v43, %v5045_v6  ;;  %v5051_v7 = vsel %vm5041_vm7, %v5048_v24, %v5050_v12  ;;  %v5054_v54 = vsel %vm5042_vm1, %v5036_v34, %v5053_v23  ;;  %vm4899_vm12 = vcmp.eq.s32.totalorder %v16080_v11, 2 }
 0x4df   :  { %vm16128_vm10 = vcmp.le.f32.partialorder %v16669_v36, 0.7853982  ;;  %v5055_v37 = vsel %vm5041_vm7, %v5052_v3, %v5054_v54  ;;  %v16142_v26 = vmul.u32.u64.low %v16099_v42, %v5051_v7  ;;  %v16143_v55 = vmul.u32.u64.high %v16099_v42, %v5051_v7, %v16142_v26 }
 0x4e0   :  { %v4752_v43 = vadd.s32 %v15988_v30, %v15994_v40  ;;  %vm10565_vm13 = vcmp.lt.s32.totalorder %v10564_v18, 0  ;;  %v16153_v34 = vmul.u32.u64.low %v16099_v42, %v5055_v37  ;;  %v16154_v6 = vmul.u32.u64.high %v16099_v42, %v5055_v37, %v16153_v34 }
 0x4e1   :  { %v4767_v24 = vsel %vm10565_vm13, 0, %v10564_v18  ;;  %v5047_v21 = vsel %vm5041_vm7, %v5044_v35, %v5046_v48  ;;  %v4914_v27 = vadd.s32 1, %v10570_v41  ;;  %vm10200_vm14 = vcmask 424960   ;;  %v11149_v3 = vpop.eup %11148  ;;  %v16166_v35 = vpop.permute.xlu1 %10150 }
 0x4e2   :  { %v4768_v12 = vsub.s32 32, %v4767_v24  ;;  %v4769_v23 = vshll.u32 %v16082_v53, %v4767_v24  ;;  %v4772_v36 = vsub.s32 4294967266, %v4767_v24  ;;  %v4783_v40 = vsel %vm4698_vm0, %v4782_v52, %v16058_v32  ;;  %v11151_v30 = vpop.eup %11150  ;;  %v16168_v41 = vpop.permute.xlu0 %10148 }
 0x4e3   :  { %v4900_v7 = vxor.u32 2147483648, %v11149_v3  ;;  %v5066_v54 = vadd.s32 1, %v16143_v55  ;;  %vm4915_vm15 = vcmp.gt.s32.totalorder %v4914_v27, 0  ;;  %v10274_v25 = vsel %vm10200_vm14, %v11699_v38, %v15923_v17 }
 0x4e4   :  { %v4897_v18 = vxor.u32 2147483648, %v11151_v30  ;;  %v4770_v53 = vshrl.u32 %v4752_v43, %v4768_v12  ;;  %v4773_v48 = vadd.s32 127, %v4772_v36  ;;  %v5063_v37 = vmul.u32 %v16099_v42, %v5047_v21  ;;  %10302 = vst [vmem:[#allocation2 + $0x20] sm:$0xff] %v10274_v25 }
 0x4e5   :  { %v4901_v32 = vsel %vm4899_vm12, %v4900_v7, %v11151_v30  ;;  %v9847_v52 = vsel %vm9845_vm4, %v4900_v7, %v11151_v30  ;;  %vm5065_vm3 = vc.u32 %v16154_v6, %v16142_v26  ;;  %v4916_v38 = vsel %vm4915_vm15, %v4914_v27, 0  ;;  %v16188_v27 = vpop.permute.xlu1 %10154 }
 0x4e6   :  { %v4898_v34 = vsel %vm4896_vm8, %v11149_v3, %v4897_v18  ;;  %v9844_v43 = vsel %vm9842_vm6, %v11149_v3, %v4897_v18  ;;  %v4771_v24 = vor.u32 %v4770_v53, %v4769_v23  ;;  %v4774_v12 = vshll.u32 %v4773_v48, 23  ;;  %v16190_v7 = vpop.permute.xlu0 %10152 }
 0x4e7   :  { %v4902_v42 = vsel %vm4895_vm5, %v4898_v34, %v4901_v32  ;;  %v9848_v21 = vsel %vm9841_vm11, %v9844_v43, %v9847_v52  ;;  %v4785_v36 = vsel %vm16128_vm10, 0, %v4783_v40  ;;  %v5067_v30 = vsel %vm5065_vm3, %v5066_v54, %v16143_v55 }
 0x4e8   :  { %v16194_v3 = vsel %vm4892_vm9, nan, %v4902_v42  ;;  %v9849_v11 = vsel %vm4892_vm9, nan, %v9848_v21  ;;  %v4775_v23 = vor.u32 4788187, %v4774_v12  ;;  %v4778_v25 = vcvt.s32.f32 %v4771_v24 }
 0x4e9   :  { %16672 = vst [vmem:[#allocation25_spill] sm:$0xff] %v16194_v3  ;;  %10194 = vrot.lane.b32.xlu1 %v9849_v11, %s11194_s22  ;;  %v5068_v1 = vadd.s32 %v5067_v30, %v5063_v37  ;;  %v16673_v40 = vand.u32 2147483647, %v16040_v13  ;;  %v4918_v55 = vand.u32 31, %v4916_v38  ;;  %v4789_v53 = vadd.s32 3, %v4785_v36  ;;  %v16209_v37 = vpop.permute.xlu1 %10158 }
 0x4ea   :  { %v4776_v54 = vand.u32 2147483647, %v4775_v23  ;;  %v16201_v48 = vand.u32 3, %v4785_v36  ;;  %v10273_v32 = vsel %vm10200_vm14, %v11817_v51, %v15925_v9  ;;  %v16206_v33 = vshrl.u32 %v4916_v38, 5  ;;  %v16211_v24 = vpop.permute.xlu0 %10156 }
 0x4eb   :  { %v4911_v18 = vand.u32 8388607, %v16673_v40  ;;  %v5069_v52 = vadd.s32 536870912, %v5068_v1  ;;  %v4919_v34 = vsub.s32 32, %v4918_v55  ;;  %v4921_v43 = vshll.u32 %v16666_v60, %v4918_v55  ;;  %10298 = vst [vmem:[#allocation2 + $0x8] sm:$0xff] %v10273_v32  ;;  %16674 = vst [vmem:[#allocation26_spill] sm:$0xff] %v16211_v24 }
 0x4ec   :  { %v4779_v12 = vmul.f32 %v4778_v25, %v4776_v54  ;;  %v4927_v42 = vshll.u32 %v16652_v62, %v4918_v55  ;;  %v4930_v21 = vshll.u32 %v16653_v0, %v4918_v55  ;;  %v4933_v36 = vshll.u32 %v16636_v57, %v4918_v55 }
 0x4ed   :  { %v16216_v30 = vshrl.u32 %v5069_v52, 30  ;;  %v4922_v51 = vshrl.u32 %v16651_v15, %v4919_v34  ;;  %v4924_v38 = vshll.u32 %v16651_v15, %v4918_v55  ;;  %v4925_v11 = vshrl.u32 %v16652_v62, %v4919_v34  ;;  %v16227_v52 = vpop.permute.xlu1 %10162 }
 0x4ee   :  { %v4780_v23 = vxor.u32 2147483648, %v4779_v12  ;;  %v4928_v40 = vshrl.u32 %v16653_v0, %v4919_v34  ;;  %v4931_v32 = vshrl.u32 %v16636_v57, %v4919_v34  ;;  %v4934_v25 = vshrl.u32 %v16637_v10, %v4919_v34  ;;  %v16229_v24 = vpop.permute.xlu0 %10160 }
 0x4ef   :  { %v5071_v54 = vshll.u32 %v16216_v30, 30  ;;  %v4912_v3 = vor.u32 8388608, %v4911_v18  ;;  %v4920_v13 = vshrl.u32 %v16666_v60, %v4919_v34  ;;  %vm4939_vm2 = vcmp.lt.s32.totalorder %v16206_v33, 4  ;;  %16675 = vst [vmem:[#allocation27_spill] sm:$0xff] %v16229_v24 }
 0x4f0   :  { %v4781_v15 = vsel %vm4698_vm0, %v4780_v23, %v4779_v12  ;;  %v4929_v62 = vor.u32 %v4928_v40, %v4927_v42  ;;  %v4932_v0 = vor.u32 %v4931_v32, %v4930_v21  ;;  %v4935_v55 = vor.u32 %v4934_v25, %v4933_v36 }
 0x4f1   :  { %v4784_v57 = vsel %vm16128_vm10, %v15820_v50, %v4781_v15  ;;  %v16236_v10 = vsub.s32 %v5068_v1, %v5071_v54  ;;  %v4923_v18 = vor.u32 %v4922_v51, %v4921_v43  ;;  %v4926_v60 = vor.u32 %v4925_v11, %v4924_v38  ;;  %v16247_v46 = vpop.permute.xlu1 %10166 }
 0x4f2   :  { %11152 = vcosq.f32 %v4784_v57  ;;  %v16238_v34 = vand.u32 3, %v4789_v53  ;;  %vm4936_vm4 = vcmp.lt.s32.totalorder %v16206_v33, 1  ;;  %v4941_v24 = vsel %vm4939_vm2, %v4929_v62, 2102212464  ;;  %v16249_v1 = vpop.permute.xlu0 %10164 }
 0x4f3   :  { %11154 = vsinq.f32 %v4784_v57  ;;  %v5074_v12 = vsub.s32 0, %v16236_v10  ;;  %vm4938_vm0 = vcmp.lt.s32.totalorder %v16206_v33, 3  ;;  %v16245_v42 = vshll.u32 %v4912_v3, 8 }
 0x4f4   :  { %vm9742_vm1 = vcmp.eq.s32.totalorder %v16201_v48, 2  ;;  %vm4937_vm6 = vcmp.lt.s32.totalorder %v16206_v33, 2  ;;  %v4940_v53 = vsel %vm4936_vm4, %v4920_v13, %v4923_v18  ;;  %v4945_v43 = vsel %vm4939_vm2, %v4932_v0, 920167782 }
 0x4f5   :  { %v4949_v21 = vsel %vm4939_vm2, %v4935_v55, 1326507024  ;;  %vm9739_vm7 = vcmp.eq.s32.totalorder %v16201_v48, 0  ;;  %v10575_v3 = vmin.u32 %v5074_v12, %v16236_v10  ;;  %v4942_v36 = vsel %vm4938_vm0, %v4926_v60, %v4941_v24  ;;  %v16279_v32 = vpop.permute.xlu1 %10170 }
 0x4f6   :  { %v4944_v51 = vsel %vm4936_vm4, %v4923_v18, %v4926_v60  ;;  %v4948_v38 = vsel %vm4936_vm4, %v4926_v60, %v4929_v62  ;;  %vm4791_vm5 = vcmp.lt.s32.totalorder %v16238_v34, 2  ;;  %vm4792_vm8 = vcmp.eq.s32.totalorder %v16238_v34, 0 }
 0x4f7   :  { %vm9738_vm11 = vcmp.lt.s32.totalorder %v16201_v48, 2  ;;  %v4946_v13 = vsel %vm4938_vm0, %v4929_v62, %v4945_v43  ;;  %v4950_v11 = vsel %vm4938_vm0, %v4932_v0, %v4949_v21  ;;  %vm10299_vm9 = vcmask 850944   ;;  %v16290_v0 = vpop.permute.xlu0 %10168 }
 0x4f8   :  { %vm4788_vm10 = vweird.f32 %v15820_v50  ;;  %vm4795_vm12 = vcmp.eq.s32.totalorder %v16238_v34, 2  ;;  %v5064_v24 = vadd.s32 %v16142_v26, %v16154_v6  ;;  %v5076_v23 = vclz %v10575_v3  ;;  %v16680_v50 = vld [vmem:[#allocation6_spill] sm:$0xff] }
 0x4f9   :  { %v5094_v40 = vsub.s32 4, %v16216_v30  ;;  %v4943_v25 = vsel %vm4937_vm6, %v4940_v53, %v4942_v36  ;;  %v4947_v54 = vsel %vm4937_vm6, %v4944_v51, %v4946_v13  ;;  %v4951_v15 = vsel %vm4937_vm6, %v4948_v38, %v4950_v11  ;;  %v16676_v13 = vld [vmem:[#allocation22_spill] sm:$0xff] }
 0x4fa   :  { %v10202_v62 = vsel %vm10200_vm14, %v15923_v17, %v15944_v31  ;;  %v10576_v26 = vadd.s32 4294967294, %v5076_v23  ;;  %v16293_v6 = vmul.u32.u64.low %v16245_v42, %v4951_v15  ;;  %v16294_v55 = vmul.u32.u64.high %v16245_v42, %v4951_v15, %v16293_v6 }
 0x4fb   :  { %10303 = vst.msk [vmem:[#allocation2 + $0x28] sm:$0xff] %vm10299_vm9, %v10202_v62  ;;  %v10201_v57 = vsel %vm10200_vm14, %v15925_v9, %v15946_v14  ;;  %v16301_v33 = vmul.u32.u64.low %v16245_v42, %v4947_v54  ;;  %v16302_v18 = vmul.u32.u64.high %v16245_v42, %v4947_v54, %v16301_v33  ;;  %v10203_v17 = vsel %vm10200_vm14, %v15958_v16, %v15956_v49  ;;  %v16677_v6 = vld [vmem:[#allocation5_spill] sm:$0xff] }
 0x4fc   :  { %10300 = vst.msk [vmem:[#allocation2 + $0x10] sm:$0xff] %vm10299_vm9, %v10201_v57  ;;  %v10275_v31 = vsel %vm10200_vm14, %v11950_v29, %v15958_v16  ;;  %vm10577_vm13 = vcmp.lt.s32.totalorder %v10576_v26, 0  ;;  %10306 = vst.msk [vmem:[#allocation2 + $0x40] sm:$0xff] %vm10299_vm9, %v10203_v17  ;;  %v10204_v9 = vsel %vm10200_vm14, %v15978_v56, %v15976_v44  ;;  %v10276_v14 = vsel %vm10200_vm14, %v12130_v61, %v15978_v56  ;;  %v11153_v60 = vpop.eup %11152  ;;  %v16333_v44 = vpop.permute.xlu1 %10174  ;;  %v16679_v17 = vld [vmem:[#allocation24_spill] sm:$0xff] }
 0x4fd   :  { %10305 = vst [vmem:[#allocation2 + $0x38] sm:$0xff] %v10275_v31  ;;  %v10205_v49 = vsel %vm10200_vm14, %v16000_v45, %v15998_v2  ;;  %v5079_v12 = vsel %vm10577_vm13, 0, %v10576_v26  ;;  %10308 = vst [vmem:[#allocation2 + $0x50] sm:$0xff] %v10276_v14  ;;  %v10277_v29 = vsel %vm10200_vm14, %v12346_v8, %v16000_v45  ;;  %v10206_v16 = vsel %vm10200_vm14, %v16027_v58, %v16025_v63  ;;  %v11155_v56 = vpop.eup %11154  ;;  %v16341_v63 = vpop.permute.xlu0 %10172 }
 0x4fe   :  { %10309 = vst.msk [vmem:[#allocation2 + $0x58] sm:$0xff] %vm10299_vm9, %v10204_v9  ;;  %10312 = vst.msk [vmem:[#allocation2 + $0x70] sm:$0xff] %vm10299_vm9, %v10205_v49  ;;  %v10278_v61 = vsel %vm10200_vm14, %v12586_v39, %v16027_v58  ;;  %v4796_v2 = vxor.u32 2147483648, %v11153_v60  ;;  %v5080_v53 = vsub.s32 32, %v5079_v12  ;;  %v5081_v43 = vshll.u32 %v16236_v10, %v5079_v12 }
 0x4ff   :  { %v5084_v21 = vsub.s32 4294967266, %v5079_v12  ;;  %10311 = vst [vmem:[#allocation2 + $0x68] sm:$0xff] %v10277_v29  ;;  %10314 = vst [vmem:[#allocation2 + $0x80] sm:$0xff] %v10278_v61  ;;  %v4793_v8 = vxor.u32 2147483648, %v11155_v56  ;;  %v4959_v45 = vmul.u32 %v16245_v42, %v4943_v25  ;;  %vm4961_vm15 = vc.u32 %v16294_v55, %v16301_v33 }
 0x500   :  { %10315 = vst.msk [vmem:[#allocation2 + $0x88] sm:$0xff] %vm10299_vm9, %v10206_v16  ;;  %v4962_v39 = vadd.s32 1, %v16302_v18  ;;  %v4797_v58 = vsel %vm4795_vm12, %v4796_v2, %v11155_v56  ;;  %v9744_v10 = vsel %vm9742_vm1, %v4796_v2, %v11155_v56  ;;  %v5082_v3 = vshrl.u32 %v5064_v24, %v5080_v53  ;;  %v16368_v34 = vpop.permute.xlu1 %10178  ;;  %v16682_v56 = vld [vmem:[#allocation8_spill] sm:$0xff] }
 0x501   :  { %v5085_v36 = vadd.s32 127, %v5084_v21  ;;  %v4794_v51 = vsel %vm4792_vm8, %v11153_v60, %v4793_v8  ;;  %v9741_v42 = vsel %vm9739_vm7, %v11153_v60, %v4793_v8  ;;  %vm5010_vm3 = vcmp.lt.s32.totalorder %v15914_v47, 0  ;;  %v16681_v60 = vld [vmem:[#allocation7_spill] sm:$0xff]  ;;  %v10177_v16 = vpop.permute.xlu0 %10176 }
 0x502   :  { %v4963_v38 = vsel %vm4961_vm15, %v4962_v39, %v16302_v18  ;;  %v10207_v11 = vsel %vm10200_vm14, %v16676_v13, %v16048_v22  ;;  %v4798_v23 = vsel %vm4791_vm5, %v4794_v51, %v4797_v58  ;;  %v9745_v24 = vsel %vm9738_vm11, %v9741_v42, %v9744_v10  ;;  %v16678_v18 = vld [vmem:[#allocation23_spill] sm:$0xff] }
 0x503   :  { %v5083_v25 = vor.u32 %v5082_v3, %v5081_v43  ;;  %v5086_v54 = vshll.u32 %v5085_v36, 23  ;;  %10318 = vst.msk [vmem:[#allocation2 + $0xa0] sm:$0xff] %vm10299_vm9, %v10207_v11  ;;  %v4799_v15 = vsel %vm4788_vm10, nan, %v4798_v23  ;;  %v9746_v62 = vsel %vm4788_vm10, nan, %v9745_v24  ;;  %v16684_v43 = vld [vmem:[#allocation10_spill] sm:$0xff]  ;;  %v16692_v36 = vld [vmem:[#allocation13_spill] sm:$0xff] }
 0x504   :  { %v4964_v26 = vadd.s32 %v4963_v38, %v4959_v45  ;;  %v10279_v22 = vsel %vm10200_vm14, %v16677_v6, %v16676_v13  ;;  %10364 = vst [vmem:[#allocation2 + $0x210] sm:$0xff] %v4799_v15  ;;  %10192 = vrot.lane.b32.xlu0 %v9746_v62, %s11194_s22  ;;  %v10208_v31 = vsel %vm10200_vm14, %v16679_v17, %v16678_v18  ;;  %v10183_v42 = vpop.permute.xlu1 %10182  ;;  %v16693_v11 = vld [vmem:[#allocation14_spill] sm:$0xff]  ;;  %v16695_v62 = vld [vmem:[#allocation16_spill] sm:$0xff]  ;;  %vm5100_vm5 = vweird.f32 %v15914_v47 }
 0x505   :  { %v5087_v48 = vor.u32 4788187, %v5086_v54  ;;  %v5090_v57 = vcvt.s32.f32 %v5083_v25  ;;  %10317 = vst [vmem:[#allocation2 + $0x98] sm:$0xff] %v10279_v22  ;;  %v10280_v9 = vsel %vm10200_vm14, %v16680_v50, %v16679_v17  ;;  %10321 = vst.msk [vmem:[#allocation2 + $0xb8] sm:$0xff] %vm10299_vm9, %v10208_v31  ;;  %v10209_v49 = vsel %vm10200_vm14, %v16089_v4, %v16087_v20  ;;  %v16694_v25 = vld [vmem:[#allocation15_spill] sm:$0xff]  ;;  %v10181_v15 = vpop.permute.xlu0 %10180 }
 0x506   :  { %v4965_v14 = vadd.s32 536870912, %v4964_v26  ;;  %10320 = vst [vmem:[#allocation2 + $0xb0] sm:$0xff] %v10280_v9  ;;  %v10281_v12 = vsel %vm10200_vm14, %v16681_v60, %v16089_v4  ;;  %v10210_v29 = vsel %vm10200_vm14, %v16111_v19, %v16109_v59  ;;  %10324 = vst.msk [vmem:[#allocation2 + $0xd0] sm:$0xff] %vm10299_vm9, %v10209_v49  ;;  %v10282_v2 = vsel %vm10200_vm14, %v16682_v56, %v16111_v19  ;;  %v16683_v4 = vld [vmem:[#allocation9_spill] sm:$0xff] }
 0x507   :  { %v5088_v61 = vand.u32 2147483647, %v5087_v48  ;;  %10323 = vst [vmem:[#allocation2 + $0xc8] sm:$0xff] %v10281_v12  ;;  %10327 = vst.msk [vmem:[#allocation2 + $0xe8] sm:$0xff] %vm10299_vm9, %v10210_v29  ;;  %v10211_v20 = vsel %vm10200_vm14, %v16148_v5, %v16146_v28  ;;  %v10283_v53 = vsel %vm10200_vm14, %v16683_v4, %v16148_v5  ;;  %v10212_v19 = vsel %vm10200_vm14, %v16168_v41, %v16166_v35  ;;  %v16685_v5 = vld [vmem:[#allocation11_spill] sm:$0xff]  ;;  %v16686_v35 = vld [vmem:[#allocation26_spill] sm:$0xff] }
 0x508   :  { %v16398_v59 = vshrl.u32 %v4965_v14, 30  ;;  %10326 = vst [vmem:[#allocation2 + $0xe0] sm:$0xff] %v10282_v2  ;;  %10329 = vst [vmem:[#allocation2 + $0xf8] sm:$0xff] %v10283_v53  ;;  %v10284_v21 = vsel %vm10200_vm14, %v16684_v43, %v16168_v41  ;;  %v10213_v28 = vsel %vm10200_vm14, %v16190_v7, %v16188_v27  ;;  %v10285_v45 = vsel %vm10200_vm14, %v16685_v5, %v16190_v7  ;;  %v16687_v41 = vld [vmem:[#allocation12_spill] sm:$0xff]  ;;  %v16691_v7 = vld [vmem:[#allocation27_spill] sm:$0xff]  ;;  %v10187_v18 = vpop.permute.xlu1 %10186 }
 0x509   :  { %10330 = vst.msk [vmem:[#allocation2 + $0x100] sm:$0xff] %vm10299_vm9, %v10211_v20  ;;  %v5091_v8 = vmul.f32 %v5090_v57, %v5088_v61  ;;  %10332 = vst [vmem:[#allocation2 + $0x110] sm:$0xff] %v10284_v21  ;;  %v10214_v39 = vsel %vm10200_vm14, %v16686_v35, %v16209_v37  ;;  %v10286_v58 = vsel %vm10200_vm14, %v16687_v41, %v16686_v35  ;;  %v16688_v27 = vand.u32 2147483647, %v15914_v47  ;;  %v16698_v14 = vld [vmem:[#allocation19_spill] sm:$0xff] }
 0x50a   :  { %10333 = vst.msk [vmem:[#allocation2 + $0x118] sm:$0xff] %vm10299_vm9, %v10212_v19  ;;  %10336 = vst.msk [vmem:[#allocation2 + $0x130] sm:$0xff] %vm10299_vm9, %v10213_v28  ;;  %v4967_v3 = vshll.u32 %v16398_v59, 30  ;;  %v10215_v37 = vsel %vm10200_vm14, %v16691_v7, %v16227_v52  ;;  %v10287_v51 = vsel %vm10200_vm14, %v16692_v36, %v16691_v7  ;;  %v10216_v13 = vsel %vm10200_vm14, %v16249_v1, %v16247_v46  ;;  %v16699_v36 = vld [vmem:[#allocation21_spill] sm:$0xff] }
 0x50b   :  { %vm16423_vm2 = vcmp.le.f32.partialorder %v16688_v27, 0.7853982  ;;  %10335 = vst [vmem:[#allocation2 + $0x128] sm:$0xff] %v10285_v45  ;;  %10338 = vst [vmem:[#allocation2 + $0x140] sm:$0xff] %v10286_v58  ;;  %v5092_v38 = vxor.u32 2147483648, %v5091_v8  ;;  %v10288_v23 = vsel %vm10200_vm14, %v16693_v11, %v16249_v1  ;;  %v10217_v52 = vsel %vm10200_vm14, %v16290_v0, %v16279_v32 }
 0x50c   :  { %10339 = vst.msk [vmem:[#allocation2 + $0x148] sm:$0xff] %vm10299_vm9, %v10214_v39  ;;  %10341 = vst [vmem:[#allocation2 + $0x158] sm:$0xff] %v10287_v51  ;;  %v4968_v24 = vsub.s32 %v4964_v26, %v4967_v3  ;;  %v10289_v54 = vsel %vm10200_vm14, %v16694_v25, %v16290_v0  ;;  %v10218_v46 = vsel %vm10200_vm14, %v16341_v63, %v16333_v44  ;;  %vm4906_vm10 = vcmp.lt.s32.totalorder %v16699_v36, 0 }
 0x50d   :  { %10342 = vst.msk [vmem:[#allocation2 + $0x160] sm:$0xff] %vm10299_vm9, %v10215_v37  ;;  %10344 = vst [vmem:[#allocation2 + $0x170] sm:$0xff] %v10288_v23  ;;  %v5093_v1 = vsel %vm5010_vm3, %v5092_v38, %v5091_v8  ;;  %v5095_v32 = vsel %vm5010_vm3, %v5094_v40, %v16216_v30  ;;  %v10290_v0 = vsel %vm10200_vm14, %v16695_v62, %v16341_v63  ;;  %v16696_v30 = vld [vmem:[#allocation17_spill] sm:$0xff]  ;;  %v16697_v63 = vld [vmem:[#allocation18_spill] sm:$0xff]  ;;  %v4990_v37 = vsub.s32 4, %v16398_v59 }
 0x50e   :  { %10345 = vst.msk [vmem:[#allocation2 + $0x178] sm:$0xff] %vm10299_vm9, %v10216_v13  ;;  %10348 = vst.msk [vmem:[#allocation2 + $0x190] sm:$0xff] %vm10299_vm9, %v10217_v52  ;;  %v10219_v44 = vsel %vm10200_vm14, %v10177_v16, %v16368_v34  ;;  %v5096_v26 = vsel %vm16423_vm2, %v15914_v47, %v5093_v1  ;;  %v4970_v6 = vsub.s32 0, %v4968_v24  ;;  %v10291_v40 = vsel %vm10200_vm14, %v16696_v30, %v10177_v16  ;;  %v10185_v50 = vpop.permute.xlu0 %10184 }
 0x50f   :  { %10347 = vst [vmem:[#allocation2 + $0x188] sm:$0xff] %v10289_v54  ;;  %10351 = vst.msk [vmem:[#allocation2 + $0x1a8] sm:$0xff] %vm10299_vm9, %v10218_v46  ;;  %11156 = vcosq.f32 %v5096_v26  ;;  %v10220_v22 = vsel %vm10200_vm14, %v10181_v15, %v10183_v42  ;;  %v10292_v48 = vsel %vm10200_vm14, %v16697_v63, %v10181_v15  ;;  %v5097_v34 = vsel %vm16423_vm2, 0, %v5095_v32 }
 0x510   :  { %10350 = vst [vmem:[#allocation2 + $0x1a0] sm:$0xff] %v10290_v0  ;;  %10354 = vst.msk [vmem:[#allocation2 + $0x1c0] sm:$0xff] %vm10299_vm9, %v10219_v44  ;;  %11158 = vsinq.f32 %v5096_v26  ;;  %v10571_v57 = vmin.u32 %v4970_v6, %v4968_v24  ;;  %v5101_v17 = vadd.s32 3, %v5097_v34  ;;  %v10221_v9 = vsel %vm10200_vm14, %v10185_v50, %v10187_v18 }
 0x511   :  { %10353 = vst [vmem:[#allocation2 + $0x1b8] sm:$0xff] %v10291_v40  ;;  %10356 = vst [vmem:[#allocation2 + $0x1d0] sm:$0xff] %v10292_v48  ;;  %v10293_v49 = vsel %vm10200_vm14, %v16698_v14, %v10185_v50  ;;  %v10046_v29 = vand.u32 3, %v5097_v34  ;;  %v4960_v16 = vadd.s32 %v16301_v33, %v16294_v55  ;;  %v16700_v51 = vand.u32 2147483647, %v16699_v36  ;;  %v16701_v48 = vld [vmem:[#allocation20_spill] sm:$0xff] }
 0x512   :  { %10357 = vst.msk [vmem:[#allocation2 + $0x1d8] sm:$0xff] %vm10299_vm9, %v10220_v22  ;;  %v4972_v31 = vclz %v10571_v57  ;;  %10359 = vst [vmem:[#allocation2 + $0x1e8] sm:$0xff] %v10293_v49  ;;  %v5102_v12 = vand.u32 3, %v5101_v17  ;;  %v4991_v13 = vsel %vm4906_vm10, %v4990_v37, %v16398_v59 }
 0x513   :  { %10360 = vst.msk [vmem:[#allocation2 + $0x1f0] sm:$0xff] %vm10299_vm9, %v10221_v9  ;;  %vm10048_vm1 = vcmp.eq.s32.totalorder %v10046_v29, 0  ;;  %vm10051_vm6 = vcmp.eq.s32.totalorder %v10046_v29, 2  ;;  %vm10047_vm11 = vcmp.lt.s32.totalorder %v10046_v29, 2  ;;  %vm4905_vm12 = vcmp.le.f32.partialorder %v16700_v51, 0.7853982 }
 0x514   :  { %v10572_v60 = vadd.s32 4294967294, %v4972_v31  ;;  %vm5107_vm0 = vcmp.eq.s32.totalorder %v5102_v12, 2  ;;  %vm5104_vm7 = vcmp.eq.s32.totalorder %v5102_v12, 0  ;;  %vm5103_vm8 = vcmp.lt.s32.totalorder %v5102_v12, 2  ;;  %v16702_v31 = vld [vmem:[#allocation25_spill] sm:$0xff] }
 0x515   :  { %v4993_v23 = vsel %vm4905_vm12, 0, %v4991_v13 }
 0x516   :  { %vm10573_vm4 = vcmp.lt.s32.totalorder %v10572_v60, 0  ;;  %v4997_v52 = vadd.s32 3, %v4993_v23  ;;  %v9943_v25 = vand.u32 3, %v4993_v23 }
 0x517   :  { %v4975_v61 = vsel %vm10573_vm4, 0, %v10572_v60 }
 0x518   :  { %v4976_v56 = vsub.s32 32, %v4975_v61  ;;  %v4977_v2 = vshll.u32 %v4968_v24, %v4975_v61  ;;  %v4980_v20 = vsub.s32 4294967266, %v4975_v61  ;;  %v4998_v24 = vand.u32 3, %v4997_v52 }
 0x519   :  { %v11157_v4 = vpop.eup %11156  ;;  %vm9948_vm15 = vcmp.eq.s32.totalorder %v9943_v25, 2  ;;  %vm9945_vm2 = vcmp.eq.s32.totalorder %v9943_v25, 0 }
 0x51a   :  { %v11159_v53 = vpop.eup %11158  ;;  %v5108_v19 = vxor.u32 2147483648, %v11157_v4  ;;  %v4978_v43 = vshrl.u32 %v4960_v16, %v4976_v56  ;;  %v4981_v21 = vadd.s32 127, %v4980_v20  ;;  %vm5003_vm13 = vcmp.eq.s32.totalorder %v4998_v24, 2 }
 0x51b   :  { %v5105_v28 = vxor.u32 2147483648, %v11159_v53  ;;  %vm5000_vm3 = vcmp.eq.s32.totalorder %v4998_v24, 0  ;;  %vm4999_vm4 = vcmp.lt.s32.totalorder %v4998_v24, 2 }
 0x51c   :  { %v5109_v55 = vsel %vm5107_vm0, %v5108_v19, %v11159_v53  ;;  %v10053_v33 = vsel %vm10051_vm6, %v5108_v19, %v11159_v53  ;;  %v4979_v8 = vor.u32 %v4978_v43, %v4977_v2  ;;  %v4982_v5 = vshll.u32 %v4981_v21, 23 }
 0x51d   :  { %v5106_v45 = vsel %vm5104_vm7, %v11157_v4, %v5105_v28  ;;  %v10050_v35 = vsel %vm10048_vm1, %v11157_v4, %v5105_v28  ;;  %vm9944_vm0 = vcmp.lt.s32.totalorder %v9943_v25, 2  ;;  %vm4996_vm1 = vweird.f32 %v16699_v36  ;;  %v10191_v40 = vpop.permute.xlu1 %10190 }
 0x51e   :  { %v5110_v39 = vsel %vm5103_vm8, %v5106_v45, %v5109_v55  ;;  %v10054_v41 = vsel %vm10047_vm11, %v10050_v35, %v10053_v33  ;;  %v4983_v58 = vor.u32 4788187, %v4982_v5  ;;  %v4986_v27 = vcvt.s32.f32 %v4979_v8 }
 0x51f   :  { %v5111_v10 = vsel %vm5100_vm5, nan, %v5110_v39  ;;  %v10055_v3 = vsel %vm5100_vm5, nan, %v10054_v41 }
 0x520   :  { %10198 = vrot.lane.b32.xlu1 %v10055_v3, %s11194_s22  ;;  %v4984_v7 = vand.u32 2147483647, %v4983_v58 }
 0x522   :  { %v4987_v47 = vmul.f32 %v4986_v27, %v4984_v7 }
 0x524   :  { %v4988_v42 = vxor.u32 2147483648, %v4987_v47 }
 0x526   :  { %v4989_v38 = vsel %vm4906_vm10, %v4988_v42, %v4987_v47 }
 0x527   :  { %v4992_v11 = vsel %vm4905_vm12, %v16699_v36, %v4989_v38 }
 0x528   :  { %11160 = vcosq.f32 %v4992_v11 }
 0x529   :  { %11162 = vsinq.f32 %v4992_v11 }
 0x532   :  { %v11161_v54 = vpop.eup %11160 }
 0x533   :  { %v11163_v46 = vpop.eup %11162  ;;  %v5004_v15 = vxor.u32 2147483648, %v11161_v54 }
 0x534   :  { %v5001_v1 = vxor.u32 2147483648, %v11163_v46 }
 0x535   :  { %v5005_v59 = vsel %vm5003_vm13, %v5004_v15, %v11163_v46  ;;  %v9950_v32 = vsel %vm9948_vm15, %v5004_v15, %v11163_v46 }
 0x536   :  { %v5002_v62 = vsel %vm5000_vm3, %v11161_v54, %v5001_v1  ;;  %v9947_v0 = vsel %vm9945_vm2, %v11161_v54, %v5001_v1 }
 0x537   :  { %v5006_v44 = vsel %vm4999_vm4, %v5002_v62, %v5005_v59  ;;  %v9951_v26 = vsel %vm9944_vm0, %v9947_v0, %v9950_v32 }
 0x538   :  { %v5007_v6 = vsel %vm4996_vm1, nan, %v5006_v44  ;;  %v9952_v30 = vsel %vm4996_vm1, nan, %v9951_v26 }
 0x539   :  { %10367 = vst [vmem:[#allocation2 + $0x228] sm:$0xff] %v5007_v6  ;;  %10196 = vrot.lane.b32.xlu0 %v9952_v30, %s11194_s22  ;;  %s10375_s22 = sshll.u32 %s11195_s0, 4  ;;  %s10376_s22 = int_to_ptr.vmem [resolvable:$true] %s10375_s22 }
 0x53a   :  { %s11164_s23 = scalar_lea.vmem %s10376_s22, 9216  ;;  %p11169_p1 = scmp.lt.s32.totalorder %s10376_s22, %s10376_s22 }
 0x53b   :  { %p11165_p0 = scmp.ne.s32.totalorder %s10376_s22, %s11164_s23  ;;  %p11170_p2 = scmp.lt.s32.totalorder %s11164_s23, %s11164_s23 }
 0x53d   :  { %p11171_p3 = por %p11170_p2, %p11169_p1 }
 0x53e   :  { %v10189_v22 = vpop.permute.xlu0 %10188 }
 0x53f   :  { %v10222_v63 = vsel %vm10200_vm14, %v10189_v22, %v10191_v40  ;;  %v10294_v34 = vsel %vm10200_vm14, %v16701_v48, %v10189_v22  ;;  %p11172_p4 = pnand %p11171_p3, %p11165_p0 }
 0x540   :  { %10362 = vst [vmem:[#allocation2 + $0x200] sm:$0xff] %v10294_v34  ;;  %10363 = vst.msk [vmem:[#allocation2 + $0x208] sm:$0xff] %vm10299_vm9, %v10222_v63 }
 0x55b   :  { %v10195_v57 = vpop.permute.xlu1 %10194 }
 0x576   :  { %v10193_v18 = vpop.permute.xlu0 %10192 }
 0x577   :  { %v10223_v17 = vsel %vm10200_vm14, %v10193_v18, %v10195_v57  ;;  %v10295_v50 = vsel %vm10200_vm14, %v16702_v31, %v10193_v18 }
 0x578   :  { %10365 = vst [vmem:[#allocation2 + $0x218] sm:$0xff] %v10295_v50  ;;  %10366 = vst.msk [vmem:[#allocation2 + $0x220] sm:$0xff] %vm10299_vm9, %v10223_v17 }
 0x592   :  { %v10199_v9 = vpop.permute.xlu1 %10198 }
 0x5ab   :  { %v10197_v14 = vpop.permute.xlu0 %10196 }
 0x5ac   :  { %v10224_v49 = vsel %vm10200_vm14, %v10197_v14, %v10199_v9  ;;  %v10296_v60 = vsel %vm10200_vm14, %v5111_v10, %v10197_v14 }
 0x5ad   :  { %10368 = vst [vmem:[#allocation2 + $0x230] sm:$0xff] %v10296_v60  ;;  %10369 = vst.msk [vmem:[#allocation2 + $0x238] sm:$0xff] %vm10299_vm9, %v10224_v49 }
 0x5ae   :  { %11175 = shalt.err (!%p11172_p4)
}
 0x5af   :  { %s11176_s26 = scalar_lea.hbm %s16520_s2, 9216 }
 0x5b0   :  { %p11177_p5 = scmp.ne.s32.totalorder %s16520_s2, %s11176_s26  ;;  %p11180_p6 = scmp.lt.u32.totalorder %s11176_s26, %s16520_s2 }
 0x5b2   :  { %p11182_p7 = pnand %p11180_p6, %p11177_p5 }
 0x5b4   :  { %11185 = shalt.err (!%p11182_p7)
}
 0x5b5   :  { %s11196_s3 = smov 384   ;;  %s11197_s4 = smov 24  }
 0x5b6   :  { %10381 = dma.vmem_to_hbm [thread:$0]  %s10376_s22, 9216, %s16520_s2, [#allocation3], %s11196_s3, %s11196_s3, %s11197_s4  }
 0x5b7   :  { %11186 = dma.done.wait [#allocation3], 9216  }
 0x5b8   :  { %11187 = vsyncadd [#allocation3], 4294958080 }
 0x5b9   :  { %10385 = vsyncpa [#allocation3], 1 }

</bundles_post_ra>
